<compile_context>
chip_gen: v6e
topology: v6e:2x2x1
jax: 0.10.0
libtpu: 0.0.40
codegen_flags: <defaults>
</compile_context>

<pallas_src>
import jax
import jax.numpy as jnp
from jax.experimental import pallas as pl
from jax.experimental.pallas import tpu as pltpu

D = 512
NEG_SLOPE = 0.2
BN_EPS = 1e-5


def _leaky(x):
    return jnp.where(x > 0, x, NEG_SLOPE * x)


def nonlocal_mp_kernel(f_ref, w1p_ref, b1_ref, w2_ref, b2_ref, w3_ref, b3_ref,
                       w4a_ref, w4b_ref, b4_ref, gamma_ref, beta_ref, out_ref):
    B, V, d = f_ref.shape
    fb = f_ref[...].reshape(B * V, d).astype(jnp.bfloat16)     # (B*V, D)

    # Relation layer 1 as one wide matmul: F @ [W1[:D] | W1[D:]] -> (B*V, 2D).
    ac = jnp.dot(fb, w1p_ref[...], preferred_element_type=jnp.float32)
    a = (ac[:, :d] + b1_ref[...]).reshape(B, V, 1, d)          # F_i term (+ bias once)
    c = ac[:, d:].reshape(B, 1, V, d)                          # F_j term
    h = _leaky(a + c)                                          # (B, V, V, D) f32

    # Relation layers 2 & 3 on the full flattened pair slab (B*V*V rows).
    h = h.reshape(B * V * V, d).astype(jnp.bfloat16)
    h = _leaky(jnp.dot(h, w2_ref[...], preferred_element_type=jnp.float32)
               + b2_ref[...])
    h = _leaky(jnp.dot(h.astype(jnp.bfloat16), w3_ref[...],
                       preferred_element_type=jnp.float32) + b3_ref[...])

    # torch.sum(M, -2): sum over the j axis (XLU sublane reduction, f32).
    m = h.reshape(B, V, V, d).sum(axis=2).reshape(B * V, d)

    # Fusion linear on concat(F, M) == F @ W4a + M @ W4b (no concat slab,
    # reuses the bf16 copy of F from above).
    fused = (jnp.dot(fb, w4a_ref[...], preferred_element_type=jnp.float32)
             + jnp.dot(m.astype(jnp.bfloat16), w4b_ref[...],
                       preferred_element_type=jnp.float32)
             + b4_ref[...])                                    # (B*V, D) f32

    # BatchNorm1d (training-mode batch stats, biased variance) + LeakyReLU.
    mean = jnp.mean(fused, axis=0, keepdims=True)
    var = jnp.mean((fused - mean) ** 2, axis=0, keepdims=True)
    y = (fused - mean) * jax.lax.rsqrt(var + BN_EPS)
    out_ref[...] = _leaky(y * gamma_ref[...] + beta_ref[...])


def pack_params(params):
    """One-time weight prep, hoisted out of the forward path (cache the result).

    Merges the split-concat W1 into one (D, 2D) bf16 slab, splits W4 into two
    (D, D) bf16 halves, casts W2/W3 to bf16 and reshapes biases/affine params
    to (1, D) rows.
    """
    w1, b1, w2, b2, w3, b3, w4, b4, gamma, beta = params
    bf16 = lambda w: w.astype(jnp.bfloat16)
    row = lambda b: b.reshape(1, D)
    w1p = bf16(jnp.concatenate([w1[:D], w1[D:]], axis=1))      # (D, 2D)
    w4a, w4b = bf16(w4[:D]), bf16(w4[D:])                      # (D, D) each
    return (w1p, row(b1), bf16(w2), row(b2), bf16(w3), row(b3),
            w4a, w4b, row(b4), row(gamma), row(beta))


def non_local_mp(F, packed):
    """F: (B, n_view, 512) float32, packed = pack_params(...) -> (B, n_view, 512)."""
    B, V, d = F.shape
    assert d == D

    n_in = 1 + len(packed)
    vmem_specs = [pl.BlockSpec(memory_space=pltpu.MemorySpace.VMEM)
                  for _ in range(n_in)]
    out_spec = pl.BlockSpec(memory_space=pltpu.MemorySpace.VMEM)

    flops = 2 * (B * V * D * (2 * D)          # relation layer 1 (wide K=D, N=2D)
                 + 2 * B * V * V * D * D      # relation layers 2 & 3
                 + 2 * B * V * D * D)         # fusion: two K=D matmuls
    bytes_accessed = (sum(int(x.size) * x.dtype.itemsize for x in packed)
                      + int(F.size) * F.dtype.itemsize
                      + B * V * D * 4)        # output

    out = pl.pallas_call(
        nonlocal_mp_kernel,
        out_shape=jax.ShapeDtypeStruct((B * V, D), jnp.float32),
        in_specs=vmem_specs,
        out_specs=out_spec,
        cost_estimate=pl.CostEstimate(flops=flops, transcendentals=0,
                                      bytes_accessed=bytes_accessed),
    )(F, *packed)
    return out.reshape(B, V, D)


def non_local_mp_ref(F, params):
    """Pure-JAX f32 reference mirroring the PyTorch forward exactly."""
    w1, b1, w2, b2, w3, b3, w4, b4, gamma, beta = params
    B, V, _ = F.shape
    hp = jax.lax.Precision.HIGHEST
    F_i = jnp.broadcast_to(F[:, :, None, :], (B, V, V, D))
    F_j = jnp.broadcast_to(F[:, None, :, :], (B, V, V, D))
    M = jnp.concatenate([F_i, F_j], axis=3)
    M = _leaky(jnp.dot(M, w1, precision=hp) + b1)
    M = _leaky(jnp.dot(M, w2, precision=hp) + b2)
    M = _leaky(jnp.dot(M, w3, precision=hp) + b3)
    M = jnp.sum(M, axis=-2)
    x = jnp.dot(jnp.concatenate([F, M], axis=2).reshape(-1, 2 * D), w4,
                precision=hp) + b4
    mean = x.mean(axis=0)
    var = ((x - mean) ** 2).mean(axis=0)
    y = (x - mean) / jnp.sqrt(var + BN_EPS) * gamma + beta
    return _leaky(y).reshape(B, V, D)


def init_params(key):
    ks = jax.random.split(key, 8)
    scale = 0.03
    w1 = jax.random.normal(ks[0], (2 * D, D), jnp.float32) * scale
    b1 = jax.random.normal(ks[1], (D,), jnp.float32) * 0.01
    w2 = jax.random.normal(ks[2], (D, D), jnp.float32) * scale
    b2 = jax.random.normal(ks[3], (D,), jnp.float32) * 0.01
    w3 = jax.random.normal(ks[4], (D, D), jnp.float32) * scale
    b3 = jax.random.normal(ks[5], (D,), jnp.float32) * 0.01
    w4 = jax.random.normal(ks[6], (2 * D, D), jnp.float32) * scale
    b4 = jax.random.normal(ks[7], (D,), jnp.float32) * 0.01
    gamma = jnp.ones((D,), jnp.float32)   # BatchNorm1d default init
    beta = jnp.zeros((D,), jnp.float32)
    return (w1, b1, w2, b2, w3, b3, w4, b4, gamma, beta)


if __name__ == "__main__":
    B, n_view = 2, 8
    key = jax.random.PRNGKey(0)
    kF, kP = jax.random.split(key)
    F = jax.random.normal(kF, (B, n_view, D), jnp.float32)
    params = init_params(kP)

    # One-time weight packing (amortized across calls; kept out of the
    # per-call forward path as per the perf review).
    packed = jax.block_until_ready(pack_params(params))

    out = jax.block_until_ready(non_local_mp(F, packed))
    ref = jax.block_until_ready(non_local_mp_ref(F, params))

    assert out.shape == (B, n_view, D)
    err = jnp.max(jnp.abs(out - ref))
    # bf16 MXU operands with f32 accumulation vs f32 reference.
    assert jnp.allclose(out, ref, rtol=2e-2, atol=2e-2), f"max abs err {err}"
    print("KERNEL_OK")
</pallas_src>

<mosaic_0001>
module attributes {stable_mosaic.version = 11 : i64} {
  func.func @nonlocal_mp_kernel(%arg0: memref<2x8x512xf32, #tpu.memory_space<vmem>>, %arg1: memref<512x1024xbf16, #tpu.memory_space<vmem>>, %arg2: memref<1x512xf32, #tpu.memory_space<vmem>>, %arg3: memref<512x512xbf16, #tpu.memory_space<vmem>>, %arg4: memref<1x512xf32, #tpu.memory_space<vmem>>, %arg5: memref<512x512xbf16, #tpu.memory_space<vmem>>, %arg6: memref<1x512xf32, #tpu.memory_space<vmem>>, %arg7: memref<512x512xbf16, #tpu.memory_space<vmem>>, %arg8: memref<512x512xbf16, #tpu.memory_space<vmem>>, %arg9: memref<1x512xf32, #tpu.memory_space<vmem>>, %arg10: memref<1x512xf32, #tpu.memory_space<vmem>>, %arg11: memref<1x512xf32, #tpu.memory_space<vmem>>, %arg12: memref<16x512xf32, #tpu.memory_space<vmem>>) attributes {dimension_semantics = [], scalar_prefetch = 0 : i64, scratch_operands = 0 : i64, tpu.core_type = #tpu.core_type<tc>} {
    %c0 = arith.constant 0 : index
    %c0_0 = arith.constant 0 : index
    %c0_1 = arith.constant 0 : index
    %0 = vector.load %arg0[%c0, %c0_0, %c0_1] : memref<2x8x512xf32, #tpu.memory_space<vmem>>, vector<2x8x512xf32>
    %1 = vector.shape_cast %0 : vector<2x8x512xf32> to vector<16x512xf32>
    %2 = arith.truncf %1 : vector<16x512xf32> to vector<16x512xbf16>
    %c0_2 = arith.constant 0 : index
    %c0_3 = arith.constant 0 : index
    %3 = vector.load %arg1[%c0_2, %c0_3] : memref<512x1024xbf16, #tpu.memory_space<vmem>>, vector<512x1024xbf16>
    %cst = arith.constant dense<0.000000e+00> : vector<16x1024xf32>
    %4 = tpu.matmul %2, %3, %cst {dimension_numbers = #tpu.dot_dimension_numbers<[1], [0], [0], [1], [0, 0, 1, 1], [], []>} : vector<16x512xbf16>, vector<512x1024xbf16>, vector<16x1024xf32> -> vector<16x1024xf32>
    %5 = vector.extract_strided_slice %4 {offsets = [0, 0], sizes = [16, 512], strides = [1, 1]} : vector<16x1024xf32> to vector<16x512xf32>
    %c0_4 = arith.constant 0 : index
    %c0_5 = arith.constant 0 : index
    %6 = vector.load %arg2[%c0_4, %c0_5] : memref<1x512xf32, #tpu.memory_space<vmem>>, vector<1x512xf32>
    %7 = vector.broadcast %6 : vector<1x512xf32> to vector<16x512xf32>
    %8 = arith.addf %5, %7 : vector<16x512xf32>
    %9 = vector.shape_cast %8 : vector<16x512xf32> to vector<2x8x1x512xf32>
    %10 = vector.extract_strided_slice %4 {offsets = [0, 512], sizes = [16, 512], strides = [1, 1]} : vector<16x1024xf32> to vector<16x512xf32>
    %11 = vector.shape_cast %10 : vector<16x512xf32> to vector<2x1x8x512xf32>
    %12 = vector.broadcast %9 : vector<2x8x1x512xf32> to vector<2x8x8x512xf32>
    %13 = vector.broadcast %11 : vector<2x1x8x512xf32> to vector<2x8x8x512xf32>
    %14 = arith.addf %12, %13 : vector<2x8x8x512xf32>
    %cst_6 = arith.constant 0.000000e+00 : f32
    %15 = vector.broadcast %cst_6 : f32 to vector<2x8x8x512xf32>
    %16 = arith.cmpf ogt, %14, %15 : vector<2x8x8x512xf32>
    %cst_7 = arith.constant 2.000000e-01 : f32
    %17 = vector.broadcast %cst_7 : f32 to vector<2x8x8x512xf32>
    %18 = arith.mulf %17, %14 : vector<2x8x8x512xf32>
    %19 = arith.select %16, %14, %18 : vector<2x8x8x512xi1>, vector<2x8x8x512xf32>
    %20 = vector.shape_cast %19 : vector<2x8x8x512xf32> to vector<128x512xf32>
    %21 = arith.truncf %20 : vector<128x512xf32> to vector<128x512xbf16>
    %c0_8 = arith.constant 0 : index
    %c0_9 = arith.constant 0 : index
    %22 = vector.load %arg3[%c0_8, %c0_9] : memref<512x512xbf16, #tpu.memory_space<vmem>>, vector<512x512xbf16>
    %cst_10 = arith.constant dense<0.000000e+00> : vector<128x512xf32>
    %23 = tpu.matmul %21, %22, %cst_10 {dimension_numbers = #tpu.dot_dimension_numbers<[1], [0], [0], [1], [0, 0, 1, 1], [], []>} : vector<128x512xbf16>, vector<512x512xbf16>, vector<128x512xf32> -> vector<128x512xf32>
    %c0_11 = arith.constant 0 : index
    %c0_12 = arith.constant 0 : index
    %24 = vector.load %arg4[%c0_11, %c0_12] : memref<1x512xf32, #tpu.memory_space<vmem>>, vector<1x512xf32>
    %25 = vector.broadcast %24 : vector<1x512xf32> to vector<128x512xf32>
    %26 = arith.addf %23, %25 : vector<128x512xf32>
    %cst_13 = arith.constant 0.000000e+00 : f32
    %27 = vector.broadcast %cst_13 : f32 to vector<128x512xf32>
    %28 = arith.cmpf ogt, %26, %27 : vector<128x512xf32>
    %cst_14 = arith.constant 2.000000e-01 : f32
    %29 = vector.broadcast %cst_14 : f32 to vector<128x512xf32>
    %30 = arith.mulf %29, %26 : vector<128x512xf32>
    %31 = arith.select %28, %26, %30 : vector<128x512xi1>, vector<128x512xf32>
    %32 = arith.truncf %31 : vector<128x512xf32> to vector<128x512xbf16>
    %c0_15 = arith.constant 0 : index
    %c0_16 = arith.constant 0 : index
    %33 = vector.load %arg5[%c0_15, %c0_16] : memref<512x512xbf16, #tpu.memory_space<vmem>>, vector<512x512xbf16>
    %cst_17 = arith.constant dense<0.000000e+00> : vector<128x512xf32>
    %34 = tpu.matmul %32, %33, %cst_17 {dimension_numbers = #tpu.dot_dimension_numbers<[1], [0], [0], [1], [0, 0, 1, 1], [], []>} : vector<128x512xbf16>, vector<512x512xbf16>, vector<128x512xf32> -> vector<128x512xf32>
    %c0_18 = arith.constant 0 : index
    %c0_19 = arith.constant 0 : index
    %35 = vector.load %arg6[%c0_18, %c0_19] : memref<1x512xf32, #tpu.memory_space<vmem>>, vector<1x512xf32>
    %36 = vector.broadcast %35 : vector<1x512xf32> to vector<128x512xf32>
    %37 = arith.addf %34, %36 : vector<128x512xf32>
    %cst_20 = arith.constant 0.000000e+00 : f32
    %38 = vector.broadcast %cst_20 : f32 to vector<128x512xf32>
    %39 = arith.cmpf ogt, %37, %38 : vector<128x512xf32>
    %cst_21 = arith.constant 2.000000e-01 : f32
    %40 = vector.broadcast %cst_21 : f32 to vector<128x512xf32>
    %41 = arith.mulf %40, %37 : vector<128x512xf32>
    %42 = arith.select %39, %37, %41 : vector<128x512xi1>, vector<128x512xf32>
    %43 = vector.shape_cast %42 : vector<128x512xf32> to vector<2x8x8x512xf32>
    %cst_22 = arith.constant dense<0.000000e+00> : vector<2x8x512xf32>
    %44 = vector.multi_reduction <add>, %43, %cst_22 [2] : vector<2x8x8x512xf32> to vector<2x8x512xf32>
    %45 = vector.shape_cast %44 : vector<2x8x512xf32> to vector<16x512xf32>
    %c0_23 = arith.constant 0 : index
    %c0_24 = arith.constant 0 : index
    %46 = vector.load %arg7[%c0_23, %c0_24] : memref<512x512xbf16, #tpu.memory_space<vmem>>, vector<512x512xbf16>
    %cst_25 = arith.constant dense<0.000000e+00> : vector<16x512xf32>
    %47 = tpu.matmul %2, %46, %cst_25 {dimension_numbers = #tpu.dot_dimension_numbers<[1], [0], [0], [1], [0, 0, 1, 1], [], []>} : vector<16x512xbf16>, vector<512x512xbf16>, vector<16x512xf32> -> vector<16x512xf32>
    %48 = arith.truncf %45 : vector<16x512xf32> to vector<16x512xbf16>
    %c0_26 = arith.constant 0 : index
    %c0_27 = arith.constant 0 : index
    %49 = vector.load %arg8[%c0_26, %c0_27] : memref<512x512xbf16, #tpu.memory_space<vmem>>, vector<512x512xbf16>
    %cst_28 = arith.constant dense<0.000000e+00> : vector<16x512xf32>
    %50 = tpu.matmul %48, %49, %cst_28 {dimension_numbers = #tpu.dot_dimension_numbers<[1], [0], [0], [1], [0, 0, 1, 1], [], []>} : vector<16x512xbf16>, vector<512x512xbf16>, vector<16x512xf32> -> vector<16x512xf32>
    %51 = arith.addf %47, %50 : vector<16x512xf32>
    %c0_29 = arith.constant 0 : index
    %c0_30 = arith.constant 0 : index
    %52 = vector.load %arg9[%c0_29, %c0_30] : memref<1x512xf32, #tpu.memory_space<vmem>>, vector<1x512xf32>
    %53 = vector.broadcast %52 : vector<1x512xf32> to vector<16x512xf32>
    %54 = arith.addf %51, %53 : vector<16x512xf32>
    %cst_31 = arith.constant dense<0.000000e+00> : vector<512xf32>
    %55 = vector.multi_reduction <add>, %54, %cst_31 [0] : vector<16x512xf32> to vector<512xf32>
    %56 = vector.shape_cast %55 : vector<512xf32> to vector<1x512xf32>
    %cst_32 = arith.constant 1.600000e+01 : f32
    %57 = vector.broadcast %cst_32 : f32 to vector<1x512xf32>
    %58 = arith.divf %56, %57 : vector<1x512xf32>
    %59 = vector.broadcast %58 : vector<1x512xf32> to vector<16x512xf32>
    %60 = arith.subf %54, %59 : vector<16x512xf32>
    %61 = arith.mulf %60, %60 : vector<16x512xf32>
    %cst_33 = arith.constant dense<0.000000e+00> : vector<512xf32>
    %62 = vector.multi_reduction <add>, %61, %cst_33 [0] : vector<16x512xf32> to vector<512xf32>
    %63 = vector.shape_cast %62 : vector<512xf32> to vector<1x512xf32>
    %cst_34 = arith.constant 1.600000e+01 : f32
    %64 = vector.broadcast %cst_34 : f32 to vector<1x512xf32>
    %65 = arith.divf %63, %64 : vector<1x512xf32>
    %66 = vector.broadcast %58 : vector<1x512xf32> to vector<16x512xf32>
    %67 = arith.subf %54, %66 : vector<16x512xf32>
    %cst_35 = arith.constant 9.99999974E-6 : f32
    %68 = vector.broadcast %cst_35 : f32 to vector<1x512xf32>
    %69 = arith.addf %65, %68 : vector<1x512xf32>
    %70 = math.rsqrt %69 : vector<1x512xf32>
    %71 = vector.broadcast %70 : vector<1x512xf32> to vector<16x512xf32>
    %72 = arith.mulf %67, %71 : vector<16x512xf32>
    %c0_36 = arith.constant 0 : index
    %c0_37 = arith.constant 0 : index
    %73 = vector.load %arg10[%c0_36, %c0_37] : memref<1x512xf32, #tpu.memory_space<vmem>>, vector<1x512xf32>
    %74 = vector.broadcast %73 : vector<1x512xf32> to vector<16x512xf32>
    %75 = arith.mulf %72, %74 : vector<16x512xf32>
    %c0_38 = arith.constant 0 : index
    %c0_39 = arith.constant 0 : index
    %76 = vector.load %arg11[%c0_38, %c0_39] : memref<1x512xf32, #tpu.memory_space<vmem>>, vector<1x512xf32>
    %77 = vector.broadcast %76 : vector<1x512xf32> to vector<16x512xf32>
    %78 = arith.addf %75, %77 : vector<16x512xf32>
    %cst_40 = arith.constant 0.000000e+00 : f32
    %79 = vector.broadcast %cst_40 : f32 to vector<16x512xf32>
    %80 = arith.cmpf ogt, %78, %79 : vector<16x512xf32>
    %cst_41 = arith.constant 2.000000e-01 : f32
    %81 = vector.broadcast %cst_41 : f32 to vector<16x512xf32>
    %82 = arith.mulf %81, %78 : vector<16x512xf32>
    %83 = arith.select %80, %78, %82 : vector<16x512xi1>, vector<16x512xf32>
    %c0_42 = arith.constant 0 : index
    %c0_43 = arith.constant 0 : index
    %84 = vector.load %arg12[%c0_42, %c0_43] : memref<16x512xf32, #tpu.memory_space<vmem>>, vector<16x512xf32>
    tpu.vector_store %arg12[%c0_42, %c0_43], %83 {strides = array<i32>} : memref<16x512xf32, #tpu.memory_space<vmem>>, vector<16x512xf32>,
    return
  }
}

</mosaic_0001>

<bundles_post_ra>
// kernel: tpu_custom_call.1
= control target key start
LH: loop header
LB: loop body
LE: loop exit
PB: predicated region body
PF: predicated region fallthrough
CT: control target
= control target key end

     0   :  { %17 = vsyncpa [#allocation3], 0  ;;  %s12121_s0 = inlined_call_operand.hbm [shape: f32[2,8,512], index: 0, kind: input, shape index: {}]   ;;  %s12122_s1 = inlined_call_operand.hbm [shape: bf16[512,1024], index: 1, kind: input, shape index: {}]   ;;  %s12123_s2 = inlined_call_operand.hbm [shape: f32[1,512], index: 2, kind: input, shape index: {}]   ;;  %s12124_s3 = inlined_call_operand.hbm [shape: bf16[512,512], index: 3, kind: input, shape index: {}]   ;;  %s12125_s4 = inlined_call_operand.vmem [shape: f32[1,512], index: 4, kind: input, shape index: {}]   ;;  %s12126_s5 = inlined_call_operand.hbm [shape: bf16[512,512], index: 5, kind: input, shape index: {}]   ;;  %s12127_s6 = inlined_call_operand.vmem [shape: f32[1,512], index: 6, kind: input, shape index: {}]   ;;  %s12128_s7 = inlined_call_operand.hbm [shape: bf16[512,512], index: 7, kind: input, shape index: {}]   ;;  %s12129_s8 = inlined_call_operand.hbm [shape: bf16[512,512], index: 8, kind: input, shape index: {}]   ;;  %s12130_s9 = inlined_call_operand.vmem [shape: f32[1,512], index: 9, kind: input, shape index: {}]   ;;  %s12131_s10 = inlined_call_operand.vmem [shape: f32[1,512], index: 10, kind: input, shape index: {}]   ;;  %s12132_s11 = inlined_call_operand.vmem [shape: f32[1,512], index: 11, kind: input, shape index: {}]   ;;  %s12133_s12 = inlined_call_operand.hbm [shape: f32[16,512], index: 12, kind: output, shape index: {}]  }
   0x1   :  { %18 = vsyncpa [#allocation6], 0 }
   0x2   :  { %19 = vsyncpa [#allocation9], 0 }
   0x3   :  { %20 = vsyncpa [#allocation12], 0 }
   0x4   :  { %21 = vsyncpa [#allocation4], 0  ;;  %s10202_s21 = smov [#allocation5]   ;;  %s10203_s23 = smov [#allocation8]  }
   0x5   :  { %s39_s22 = sshll.u32 %s10202_s21, 4  ;;  %s61_s24 = sshll.u32 %s10203_s23, 4  ;;  %s40_s22 = int_to_ptr.vmem [resolvable:$true] %s39_s22  ;;  %s62_s24 = int_to_ptr.vmem [resolvable:$true] %s61_s24 }
   0x6   :  { %s10040_s25 = scalar_lea.vmem %s40_s22, 32768  ;;  %p10045_p1 = scmp.lt.s32.totalorder %s40_s22, %s40_s22 }
   0x7   :  { %p10041_p0 = scmp.ne.s32.totalorder %s40_s22, %s10040_s25  ;;  %p10046_p2 = scmp.lt.s32.totalorder %s10040_s25, %s10040_s25 }
   0x9   :  { %p10047_p3 = por %p10046_p2, %p10045_p1 }
   0xb   :  { %p10048_p4 = pnand %p10047_p3, %p10041_p0 }
   0xd   :  { %10051 = shalt.err (!%p10048_p4)
}
   0xe   :  { %s10204_s26 = smov 512   ;;  %s10205_s27 = smov 32  }
   0xf   :  { %45 = dma.hbm_to_vmem [thread:$0]  %s12122_s1, 32768, %s40_s22, [#allocation6], %s10204_s26, %s10204_s26, %s10205_s27  }
  0x10   :  { %s10060_s30 = scalar_lea.vmem %s62_s24, 16384  ;;  %p10065_p6 = scmp.lt.s32.totalorder %s62_s24, %s62_s24 }
  0x11   :  { %p10061_p5 = scmp.ne.s32.totalorder %s62_s24, %s10060_s30  ;;  %p10066_p7 = scmp.lt.s32.totalorder %s10060_s30, %s10060_s30 }
  0x13   :  { %p10067_p8 = por %p10066_p7, %p10065_p6 }
  0x15   :  { %p10068_p9 = pnand %p10067_p8, %p10061_p5 }
  0x17   :  { %10071 = shalt.err (!%p10068_p9)
}
  0x18   :  { %s10206_s13 = smov 256   ;;  %s10207_s14 = smov 16  }
  0x19   :  { %67 = dma.hbm_to_vmem [thread:$0]  %s12124_s3, 16384, %s62_s24, [#allocation9], %s10206_s13, %s10206_s13, %s10207_s14  }
  0x1a   :  { %s10208_s17 = smov [#allocation11]   ;;  %s10209_s19 = smov [#allocation2]  }
  0x1b   :  { %s89_s18 = sshll.u32 %s10208_s17, 4  ;;  %s27_s1 = sshll.u32 %s10209_s19, 4  ;;  %s90_s18 = int_to_ptr.vmem [resolvable:$true] %s89_s18  ;;  %s28_s1 = int_to_ptr.vmem [resolvable:$true] %s27_s1 }
  0x1c   :  { %s10080_s20 = scalar_lea.vmem %s90_s18, 16384  ;;  %p10085_p11 = scmp.lt.s32.totalorder %s90_s18, %s90_s18 }
  0x1d   :  { %p10081_p10 = scmp.ne.s32.totalorder %s90_s18, %s10080_s20  ;;  %p10086_p12 = scmp.lt.s32.totalorder %s10080_s20, %s10080_s20 }
  0x1f   :  { %p10087_p13 = por %p10086_p12, %p10085_p11 }
  0x21   :  { %p10088_p0 = pnand %p10087_p13, %p10081_p10 }
  0x23   :  { %10091 = shalt.err (!%p10088_p0)
}
  0x24   :  { %95 = dma.hbm_to_vmem [thread:$0]  %s12128_s7, 16384, %s90_s18, [#allocation12], %s10206_s13, %s10206_s13, %s10207_s14  }
  0x25   :  { %s10100_s3 = scalar_lea.vmem %s28_s1, 1024  ;;  %p10105_p2 = scmp.lt.s32.totalorder %s28_s1, %s28_s1 }
  0x26   :  { %p10101_p1 = scmp.ne.s32.totalorder %s28_s1, %s10100_s3  ;;  %p10106_p3 = scmp.lt.s32.totalorder %s10100_s3, %s10100_s3 }
  0x28   :  { %p10107_p4 = por %p10106_p3, %p10105_p2 }
  0x2a   :  { %p10108_p5 = pnand %p10107_p4, %p10101_p1 }
  0x2c   :  { %10111 = shalt.err (!%p10108_p5)
}
  0x2d   :  { %33 = dma.hbm_to_vmem [thread:$0]  %s12121_s0, 1024, %s28_s1, [#allocation3], %s10204_s26, %s10204_s26, %s10205_s27  }
  0x2e   :  { %s10210_s25 = smov [#allocation7]   ;;  %s10211_s29 = smov [#allocation10]  }
  0x2f   :  { %s52_s28 = sshll.u32 %s10210_s25, 4  ;;  %s75_s30 = sshll.u32 %s10211_s29, 4  ;;  %s53_s28 = int_to_ptr.vmem [resolvable:$true] %s52_s28  ;;  %s76_s30 = int_to_ptr.vmem [resolvable:$true] %s75_s30 }
  0x30   :  { %s10120_s7 = scalar_lea.vmem %s53_s28, 64  ;;  %p10125_p7 = scmp.lt.s32.totalorder %s53_s28, %s53_s28 }
  0x31   :  { %p10121_p6 = scmp.ne.s32.totalorder %s53_s28, %s10120_s7  ;;  %p10126_p8 = scmp.lt.s32.totalorder %s10120_s7, %s10120_s7 }
  0x33   :  { %p10127_p9 = por %p10126_p8, %p10125_p7 }
  0x35   :  { %p10128_p10 = pnand %p10127_p9, %p10121_p6 }
  0x37   :  { %10131 = shalt.err (!%p10128_p10)
}
  0x38   :  { %55 = dma.hbm_to_vmem [thread:$0]  %s12123_s2, 64, %s53_s28, [#allocation6]  }
  0x39   :  { %s10140_s17 = scalar_lea.vmem %s76_s30, 16384  ;;  %p10145_p12 = scmp.lt.s32.totalorder %s76_s30, %s76_s30 }
  0x3a   :  { %p10141_p11 = scmp.ne.s32.totalorder %s76_s30, %s10140_s17  ;;  %p10146_p13 = scmp.lt.s32.totalorder %s10140_s17, %s10140_s17 }
  0x3c   :  { %p10147_p0 = por %p10146_p13, %p10145_p12 }
  0x3e   :  { %p10148_p1 = pnand %p10147_p0, %p10141_p11 }
  0x40   :  { %10151 = shalt.err (!%p10148_p1)
}
  0x41   :  { %81 = dma.hbm_to_vmem [thread:$0]  %s12126_s5, 16384, %s76_s30, [#allocation9], %s10206_s13, %s10206_s13, %s10207_s14  }
  0x42   :  { %s10212_s19 = smov [#allocation13]  }
  0x43   :  { %s101_s1 = sshll.u32 %s10212_s19, 4  ;;  %s102_s1 = int_to_ptr.vmem [resolvable:$true] %s101_s1 }
  0x44   :  { %s10160_s20 = scalar_lea.vmem %s102_s1, 16384  ;;  %p10165_p3 = scmp.lt.s32.totalorder %s102_s1, %s102_s1 }
  0x45   :  { %p10161_p2 = scmp.ne.s32.totalorder %s102_s1, %s10160_s20  ;;  %p10166_p4 = scmp.lt.s32.totalorder %s10160_s20, %s10160_s20 }
  0x47   :  { %p10167_p5 = por %p10166_p4, %p10165_p3 }
  0x49   :  { %p10168_p6 = pnand %p10167_p5, %p10161_p2 }
  0x4b   :  { %10171 = shalt.err (!%p10168_p6)
}
  0x4c   :  { %107 = dma.hbm_to_vmem [thread:$0]  %s12129_s8, 16384, %s102_s1, [#allocation12], %s10206_s13, %s10206_s13, %s10207_s14  }
  0x4d   :  { %10192 = dma.done.wait [#allocation3], 1024  }
  0x4e   :  { %10193 = vsyncadd [#allocation3], 4294966272 }
  0x4f   :  { %10194 = dma.done.wait [#allocation6], 32832  }
  0x50   :  { %10195 = vsyncadd [#allocation6], 4294934464 }
  0x51   :  { %10196 = dma.done.wait [#allocation9], 32768  }
  0x52   :  { %10197 = vsyncadd [#allocation9], 4294934528 }
  0x53   :  { %10198 = dma.done.wait [#allocation12], 32768  }
  0x54   :  { %10199 = vsyncadd [#allocation12], 4294934528  ;;  %v203_v0 = vld [vmem:[#allocation5 + $0x1c0] sm:$0xff]  ;;  %v136_v54 = vld [vmem:[#allocation2 + $0x8] sm:$0xff] }
  0x55   :  { %v207_v1 = vld [vmem:[#allocation5 + $0x1e0] sm:$0xff]  ;;  %v140_v55 = vld [vmem:[#allocation2 + $0x28] sm:$0xff]  ;;  %v138_v59 = vld [vmem:[#allocation2 + $0x18] sm:$0xff] }
  0x56   :  { %v331_v2 = vld [vmem:[#allocation5 + $0x5c0] sm:$0xff]  ;;  %v8532_v3 = vcombine.high %v203_v0, %v207_v1  ;;  %v8531_v5 = vcombine.low %v203_v0, %v207_v1  ;;  %v10319_v58 = vpack.c.bf16 %v140_v55, %v136_v54  ;;  %v142_v60 = vld [vmem:[#allocation2 + $0x38] sm:$0xff] }
  0x57   :  { %v335_v4 = vld [vmem:[#allocation5 + $0x5e0] sm:$0xff]  ;;  %v10321_v63 = vpack.c.bf16 %v142_v60, %v138_v59 }
  0x58   :  { %v195_v6 = vld [vmem:[#allocation5 + $0x180] sm:$0xff]  ;;  %v8660_v8 = vcombine.high %v331_v2, %v335_v4  ;;  %v8659_v9 = vcombine.low %v331_v2, %v335_v4  ;;  %1683 = vmatprep.subr.bf16.mxu0 %v8532_v3  ;;  %12150 = vst [vmem:[#allocation20_spill] sm:$0xff] %v10319_v58  ;;  %1715 = vmatprep.mubr.bf16.mxu0 %v10319_v58 }
  0x59   :  { %v199_v7 = vld [vmem:[#allocation5 + $0x1a0] sm:$0xff]  ;;  %1684 = vmatpush1.bf16.msra.mxu0 %v8531_v5  ;;  %12151 = vst [vmem:[#allocation21_spill] sm:$0xff] %v10321_v63  ;;  %1758 = vmatprep.mubr.bf16.mxu1 %v10321_v63 }
  0x5a   :  { %v8524_v10 = vcombine.high %v195_v6, %v199_v7  ;;  %v323_v11 = vld [vmem:[#allocation5 + $0x580] sm:$0xff]  ;;  %1726 = vmatprep.subr.bf16.mxu1 %v8660_v8  ;;  %v8523_v18 = vcombine.low %v195_v6, %v199_v7 }
  0x5b   :  { %v327_v12 = vld [vmem:[#allocation5 + $0x5a0] sm:$0xff]  ;;  %1727 = vmatpush1.bf16.msra.mxu1 %v8659_v9 }
  0x5c   :  { %v187_v13 = vld [vmem:[#allocation5 + $0x140] sm:$0xff]  ;;  %v8652_v14 = vcombine.high %v323_v11, %v327_v12  ;;  %1685 = vmatprep.subr.bf16.mxu0 %v8524_v10  ;;  %v8651_v19 = vcombine.low %v323_v11, %v327_v12 }
  0x5d   :  { %v191_v15 = vld [vmem:[#allocation5 + $0x160] sm:$0xff]  ;;  %1686 = vmatpush1.bf16.msra.mxu0 %v8523_v18 }
  0x5e   :  { %v315_v16 = vld [vmem:[#allocation5 + $0x540] sm:$0xff]  ;;  %v8516_v20 = vcombine.high %v187_v13, %v191_v15  ;;  %1728 = vmatprep.subr.bf16.mxu1 %v8652_v14  ;;  %v8515_v26 = vcombine.low %v187_v13, %v191_v15 }
  0x5f   :  { %v319_v17 = vld [vmem:[#allocation5 + $0x560] sm:$0xff]  ;;  %1729 = vmatpush1.bf16.msra.mxu1 %v8651_v19 }
  0x60   :  { %v8644_v21 = vcombine.high %v315_v16, %v319_v17  ;;  %v179_v22 = vld [vmem:[#allocation5 + $0x100] sm:$0xff]  ;;  %1687 = vmatprep.subr.bf16.mxu0 %v8516_v20  ;;  %v8643_v27 = vcombine.low %v315_v16, %v319_v17 }
  0x61   :  { %v183_v23 = vld [vmem:[#allocation5 + $0x120] sm:$0xff]  ;;  %1688 = vmatpush1.bf16.msra.mxu0 %v8515_v26 }
  0x62   :  { %v307_v24 = vld [vmem:[#allocation5 + $0x500] sm:$0xff]  ;;  %v8508_v28 = vcombine.high %v179_v22, %v183_v23  ;;  %1730 = vmatprep.subr.bf16.mxu1 %v8644_v21  ;;  %v8507_v34 = vcombine.low %v179_v22, %v183_v23 }
  0x63   :  { %v311_v25 = vld [vmem:[#allocation5 + $0x520] sm:$0xff]  ;;  %1731 = vmatpush1.bf16.msra.mxu1 %v8643_v27 }
  0x64   :  { %v8636_v29 = vcombine.high %v307_v24, %v311_v25  ;;  %v171_v30 = vld [vmem:[#allocation5 + $0xc0] sm:$0xff]  ;;  %1689 = vmatprep.subr.bf16.mxu0 %v8508_v28  ;;  %v8635_v35 = vcombine.low %v307_v24, %v311_v25 }
  0x65   :  { %v175_v31 = vld [vmem:[#allocation5 + $0xe0] sm:$0xff]  ;;  %1690 = vmatpush1.bf16.msra.mxu0 %v8507_v34 }
  0x66   :  { %v299_v32 = vld [vmem:[#allocation5 + $0x4c0] sm:$0xff]  ;;  %v8500_v36 = vcombine.high %v171_v30, %v175_v31  ;;  %1732 = vmatprep.subr.bf16.mxu1 %v8636_v29  ;;  %v8499_v42 = vcombine.low %v171_v30, %v175_v31 }
  0x67   :  { %v303_v33 = vld [vmem:[#allocation5 + $0x4e0] sm:$0xff]  ;;  %1733 = vmatpush1.bf16.msra.mxu1 %v8635_v35 }
  0x68   :  { %v8628_v37 = vcombine.high %v299_v32, %v303_v33  ;;  %v163_v38 = vld [vmem:[#allocation5 + $0x80] sm:$0xff]  ;;  %1691 = vmatprep.subr.bf16.mxu0 %v8500_v36  ;;  %v8627_v43 = vcombine.low %v299_v32, %v303_v33 }
  0x69   :  { %v167_v39 = vld [vmem:[#allocation5 + $0xa0] sm:$0xff]  ;;  %1692 = vmatpush1.bf16.msra.mxu0 %v8499_v42 }
  0x6a   :  { %v291_v40 = vld [vmem:[#allocation5 + $0x480] sm:$0xff]  ;;  %v8492_v44 = vcombine.high %v163_v38, %v167_v39  ;;  %1734 = vmatprep.subr.bf16.mxu1 %v8628_v37  ;;  %v8491_v50 = vcombine.low %v163_v38, %v167_v39 }
  0x6b   :  { %v295_v41 = vld [vmem:[#allocation5 + $0x4a0] sm:$0xff]  ;;  %1735 = vmatpush1.bf16.msra.mxu1 %v8627_v43 }
  0x6c   :  { %v8620_v45 = vcombine.high %v291_v40, %v295_v41  ;;  %v155_v46 = vld [vmem:[#allocation5 + $0x40] sm:$0xff]  ;;  %1693 = vmatprep.subr.bf16.mxu0 %v8492_v44  ;;  %v8619_v51 = vcombine.low %v291_v40, %v295_v41 }
  0x6d   :  { %v159_v47 = vld [vmem:[#allocation5 + $0x60] sm:$0xff]  ;;  %1694 = vmatpush1.bf16.msra.mxu0 %v8491_v50 }
  0x6e   :  { %v283_v48 = vld [vmem:[#allocation5 + $0x440] sm:$0xff]  ;;  %v8484_v52 = vcombine.high %v155_v46, %v159_v47  ;;  %1736 = vmatprep.subr.bf16.mxu1 %v8620_v45  ;;  %v8483_v0 = vcombine.low %v155_v46, %v159_v47 }
  0x6f   :  { %v287_v49 = vld [vmem:[#allocation5 + $0x460] sm:$0xff]  ;;  %1737 = vmatpush1.bf16.msra.mxu1 %v8619_v51 }
  0x70   :  { %v147_v53 = vld [vmem:[#allocation5] sm:$0xff]  ;;  %v8612_v56 = vcombine.high %v283_v48, %v287_v49  ;;  %1695 = vmatprep.subr.bf16.mxu0 %v8484_v52  ;;  %v8611_v1 = vcombine.low %v283_v48, %v287_v49 }
  0x71   :  { %v151_v57 = vld [vmem:[#allocation5 + $0x20] sm:$0xff]  ;;  %1696 = vmatpush1.bf16.msra.mxu0 %v8483_v0 }
  0x72   :  { %v275_v61 = vld [vmem:[#allocation5 + $0x400] sm:$0xff]  ;;  %v8476_v2 = vcombine.high %v147_v53, %v151_v57  ;;  %1738 = vmatprep.subr.bf16.mxu1 %v8612_v56  ;;  %v8475_v8 = vcombine.low %v147_v53, %v151_v57 }
  0x73   :  { %v279_v62 = vld [vmem:[#allocation5 + $0x420] sm:$0xff]  ;;  %1739 = vmatpush1.bf16.msra.mxu1 %v8611_v1 }
  0x74   :  { %v8604_v3 = vcombine.high %v275_v61, %v279_v62  ;;  %v267_v4 = vld [vmem:[#allocation5 + $0x3c0] sm:$0xff]  ;;  %1697 = vmatprep.subr.bf16.mxu0 %v8476_v2  ;;  %v8603_v9 = vcombine.low %v275_v61, %v279_v62 }
  0x75   :  { %v271_v5 = vld [vmem:[#allocation5 + $0x3e0] sm:$0xff]  ;;  %1698 = vmatpush1.bf16.msra.mxu0 %v8475_v8  ;;  %v332_v8 = vld [vmem:[#allocation5 + $0x5c8] sm:$0xff] }
  0x76   :  { %v395_v6 = vld [vmem:[#allocation5 + $0x7c0] sm:$0xff]  ;;  %v8596_v10 = vcombine.high %v267_v4, %v271_v5  ;;  %1740 = vmatprep.subr.bf16.mxu1 %v8604_v3  ;;  %v8595_v16 = vcombine.low %v267_v4, %v271_v5 }
  0x77   :  { %v399_v7 = vld [vmem:[#allocation5 + $0x7e0] sm:$0xff]  ;;  %1741 = vmatpush1.bf16.msra.mxu1 %v8603_v9  ;;  %v336_v9 = vld [vmem:[#allocation5 + $0x5e8] sm:$0xff] }
  0x78   :  { %v8724_v11 = vcombine.high %v395_v6, %v399_v7  ;;  %v259_v12 = vld [vmem:[#allocation5 + $0x380] sm:$0xff]  ;;  %1699 = vmatprep.subr.bf16.mxu0 %v8596_v10  ;;  %v8723_v17 = vcombine.low %v395_v6, %v399_v7  ;;  %v204_v6 = vld [vmem:[#allocation5 + $0x1c8] sm:$0xff] }
  0x79   :  { %v263_v13 = vld [vmem:[#allocation5 + $0x3a0] sm:$0xff]  ;;  %1700 = vmatpush2.bf16.msra.mxu0 %v8595_v16  ;;  %v208_v7 = vld [vmem:[#allocation5 + $0x1e8] sm:$0xff] }
  0x7a   :  { %v387_v14 = vld [vmem:[#allocation5 + $0x780] sm:$0xff]  ;;  %v8588_v18 = vcombine.high %v259_v12, %v263_v13  ;;  %1742 = vmatprep.subr.bf16.mxu1 %v8724_v11  ;;  %v8587_v24 = vcombine.low %v259_v12, %v263_v13  ;;  %v8534_v16 = vcombine.high %v204_v6, %v208_v7 }
  0x7b   :  { %v391_v15 = vld [vmem:[#allocation5 + $0x7a0] sm:$0xff]  ;;  %1743 = vmatpush2.bf16.msra.mxu1 %v8723_v17  ;;  %v8662_v17 = vcombine.high %v332_v8, %v336_v9 }
  0x7c   :  { %v8716_v19 = vcombine.high %v387_v14, %v391_v15  ;;  %v251_v20 = vld [vmem:[#allocation5 + $0x340] sm:$0xff]  ;;  %1701 = vmatprep.subr.bf16.mxu0 %v8588_v18  ;;  %v8715_v25 = vcombine.low %v387_v14, %v391_v15  ;;  %v137_v14 = vld [vmem:[#allocation2 + $0x10] sm:$0xff]  ;;  %v196_v18 = vld [vmem:[#allocation5 + $0x188] sm:$0xff] }
  0x7d   :  { %v255_v21 = vld [vmem:[#allocation5 + $0x360] sm:$0xff]  ;;  %1702 = vmatpush2.bf16.msra.mxu0 %v8587_v24  ;;  %v141_v15 = vld [vmem:[#allocation2 + $0x30] sm:$0xff]  ;;  %v8533_v24 = vcombine.low %v204_v6, %v208_v7  ;;  %v152_v6 = vld [vmem:[#allocation5 + $0x28] sm:$0xff] }
  0x7e   :  { %v379_v22 = vld [vmem:[#allocation5 + $0x740] sm:$0xff]  ;;  %v8580_v26 = vcombine.high %v251_v20, %v255_v21  ;;  %1744 = vmatprep.subr.bf16.mxu1 %v8716_v19  ;;  %v8579_v32 = vcombine.low %v251_v20, %v255_v21  ;;  %v200_v19 = vld [vmem:[#allocation5 + $0x1a8] sm:$0xff] }
  0x7f   :  { %v383_v23 = vld [vmem:[#allocation5 + $0x760] sm:$0xff]  ;;  %1745 = vmatpush2.bf16.msra.mxu1 %v8715_v25  ;;  %v324_v21 = vld [vmem:[#allocation5 + $0x588] sm:$0xff]  ;;  %v8661_v25 = vcombine.low %v332_v8, %v336_v9 }
  0x80   :  { %v8708_v27 = vcombine.high %v379_v22, %v383_v23  ;;  %v243_v28 = vld [vmem:[#allocation5 + $0x300] sm:$0xff]  ;;  %1703 = vmatprep.subr.bf16.mxu0 %v8580_v26  ;;  %v8707_v33 = vcombine.low %v379_v22, %v383_v23  ;;  %v328_v22 = vld [vmem:[#allocation5 + $0x5a8] sm:$0xff]  ;;  %v10327_v23 = vpack.c.bf16 %v141_v15, %v137_v14  ;;  %v8526_v26 = vcombine.high %v196_v18, %v200_v19 }
  0x81   :  { %v247_v29 = vld [vmem:[#allocation5 + $0x320] sm:$0xff]  ;;  %1704 = vmatpush2.bf16.msra.mxu0 %v8579_v32  ;;  %v8525_v32 = vcombine.low %v196_v18, %v200_v19  ;;  %v276_v7 = vld [vmem:[#allocation5 + $0x408] sm:$0xff] }
  0x82   :  { %v371_v30 = vld [vmem:[#allocation5 + $0x700] sm:$0xff]  ;;  %v8572_v34 = vcombine.high %v243_v28, %v247_v29  ;;  %1746 = vmatprep.subr.bf16.mxu1 %v8708_v27  ;;  %v8571_v40 = vcombine.low %v243_v28, %v247_v29  ;;  %12153 = vst [vmem:[#allocation23_spill] sm:$0xff] %v10327_v23  ;;  %v8654_v27 = vcombine.high %v324_v21, %v328_v22  ;;  %v188_v28 = vld [vmem:[#allocation5 + $0x148] sm:$0xff] }
  0x83   :  { %v375_v31 = vld [vmem:[#allocation5 + $0x720] sm:$0xff]  ;;  %1747 = vmatpush2.bf16.msra.mxu1 %v8707_v33  ;;  %v192_v29 = vld [vmem:[#allocation5 + $0x168] sm:$0xff]  ;;  %v8653_v33 = vcombine.low %v324_v21, %v328_v22 }
  0x84   :  { %v8700_v35 = vcombine.high %v371_v30, %v375_v31  ;;  %v235_v36 = vld [vmem:[#allocation5 + $0x2c0] sm:$0xff]  ;;  %1705 = vmatprep.subr.bf16.mxu0 %v8572_v34  ;;  %v8699_v41 = vcombine.low %v371_v30, %v375_v31  ;;  %v316_v30 = vld [vmem:[#allocation5 + $0x548] sm:$0xff]  ;;  %v8518_v34 = vcombine.high %v188_v28, %v192_v29 }
  0x85   :  { %v239_v37 = vld [vmem:[#allocation5 + $0x2e0] sm:$0xff]  ;;  %1706 = vmatpush2.bf16.msra.mxu0 %v8571_v40  ;;  %v320_v31 = vld [vmem:[#allocation5 + $0x568] sm:$0xff]  ;;  %v8517_v40 = vcombine.low %v188_v28, %v192_v29 }
  0x86   :  { %v363_v38 = vld [vmem:[#allocation5 + $0x6c0] sm:$0xff]  ;;  %v8564_v42 = vcombine.high %v235_v36, %v239_v37  ;;  %1748 = vmatprep.subr.bf16.mxu1 %v8700_v35  ;;  %v8563_v48 = vcombine.low %v235_v36, %v239_v37  ;;  %v180_v35 = vld [vmem:[#allocation5 + $0x108] sm:$0xff] }
  0x87   :  { %v367_v39 = vld [vmem:[#allocation5 + $0x6e0] sm:$0xff]  ;;  %1749 = vmatpush2.bf16.msra.mxu1 %v8699_v41  ;;  %v184_v36 = vld [vmem:[#allocation5 + $0x128] sm:$0xff]  ;;  %v8645_v41 = vcombine.low %v316_v30, %v320_v31 }
  0x88   :  { %v8692_v43 = vcombine.high %v363_v38, %v367_v39  ;;  %v227_v44 = vld [vmem:[#allocation5 + $0x280] sm:$0xff]  ;;  %1707 = vmatprep.subr.bf16.mxu0 %v8564_v42  ;;  %v8691_v49 = vcombine.low %v363_v38, %v367_v39  ;;  %v308_v37 = vld [vmem:[#allocation5 + $0x508] sm:$0xff]  ;;  %v8646_v38 = vcombine.high %v316_v30, %v320_v31  ;;  %v8510_v42 = vcombine.high %v180_v35, %v184_v36 }
  0x89   :  { %v231_v45 = vld [vmem:[#allocation5 + $0x2a0] sm:$0xff]  ;;  %1708 = vmatpush2.bf16.msra.mxu0 %v8563_v48  ;;  %v312_v39 = vld [vmem:[#allocation5 + $0x528] sm:$0xff]  ;;  %v8509_v48 = vcombine.low %v180_v35, %v184_v36 }
  0x8a   :  { %v355_v46 = vld [vmem:[#allocation5 + $0x680] sm:$0xff]  ;;  %v8556_v50 = vcombine.high %v227_v44, %v231_v45  ;;  %1750 = vmatprep.subr.bf16.mxu1 %v8692_v43  ;;  %v8555_v56 = vcombine.low %v227_v44, %v231_v45  ;;  %v172_v43 = vld [vmem:[#allocation5 + $0xc8] sm:$0xff] }
  0x8b   :  { %v359_v47 = vld [vmem:[#allocation5 + $0x6a0] sm:$0xff]  ;;  %1751 = vmatpush2.bf16.msra.mxu1 %v8691_v49  ;;  %v176_v44 = vld [vmem:[#allocation5 + $0xe8] sm:$0xff]  ;;  %v8637_v49 = vcombine.low %v308_v37, %v312_v39 }
  0x8c   :  { %v8684_v51 = vcombine.high %v355_v46, %v359_v47  ;;  %v219_v52 = vld [vmem:[#allocation5 + $0x240] sm:$0xff]  ;;  %1709 = vmatprep.subr.bf16.mxu0 %v8556_v50  ;;  %v8683_v57 = vcombine.low %v355_v46, %v359_v47  ;;  %v300_v45 = vld [vmem:[#allocation5 + $0x4c8] sm:$0xff]  ;;  %v8638_v46 = vcombine.high %v308_v37, %v312_v39  ;;  %v8502_v50 = vcombine.high %v172_v43, %v176_v44 }
  0x8d   :  { %v223_v53 = vld [vmem:[#allocation5 + $0x260] sm:$0xff]  ;;  %1710 = vmatpush2.bf16.msra.mxu0 %v8555_v56  ;;  %v304_v47 = vld [vmem:[#allocation5 + $0x4e8] sm:$0xff]  ;;  %v8501_v56 = vcombine.low %v172_v43, %v176_v44 }
  0x8e   :  { %v347_v54 = vld [vmem:[#allocation5 + $0x640] sm:$0xff]  ;;  %v8548_v59 = vcombine.high %v219_v52, %v223_v53  ;;  %1752 = vmatprep.subr.bf16.mxu1 %v8684_v51  ;;  %v8547_v2 = vcombine.low %v219_v52, %v223_v53  ;;  %v164_v51 = vld [vmem:[#allocation5 + $0x88] sm:$0xff] }
  0x8f   :  { %v351_v55 = vld [vmem:[#allocation5 + $0x660] sm:$0xff]  ;;  %1753 = vmatpush2.bf16.msra.mxu1 %v8683_v57  ;;  %v168_v52 = vld [vmem:[#allocation5 + $0xa8] sm:$0xff]  ;;  %v8629_v57 = vcombine.low %v300_v45, %v304_v47 }
  0x90   :  { %v8676_v60 = vcombine.high %v347_v54, %v351_v55  ;;  %v211_v61 = vld [vmem:[#allocation5 + $0x200] sm:$0xff]  ;;  %1711 = vmatprep.subr.bf16.mxu0 %v8548_v59  ;;  %v8675_v3 = vcombine.low %v347_v54, %v351_v55  ;;  %v292_v53 = vld [vmem:[#allocation5 + $0x488] sm:$0xff]  ;;  %v8630_v54 = vcombine.high %v300_v45, %v304_v47  ;;  %v8494_v59 = vcombine.high %v164_v51, %v168_v52 }
  0x91   :  { %v215_v62 = vld [vmem:[#allocation5 + $0x220] sm:$0xff]  ;;  %1712 = vmatpush2.bf16.msra.mxu0 %v8547_v2  ;;  %v296_v55 = vld [vmem:[#allocation5 + $0x4a8] sm:$0xff]  ;;  %v8493_v2 = vcombine.low %v164_v51, %v168_v52 }
  0x92   :  { %v339_v0 = vld [vmem:[#allocation5 + $0x600] sm:$0xff]  ;;  %v8540_v4 = vcombine.high %v211_v61, %v215_v62  ;;  %1754 = vmatprep.subr.bf16.mxu1 %v8676_v60  ;;  %v8539_v10 = vcombine.low %v211_v61, %v215_v62  ;;  %v156_v60 = vld [vmem:[#allocation5 + $0x48] sm:$0xff] }
  0x93   :  { %v343_v1 = vld [vmem:[#allocation5 + $0x620] sm:$0xff]  ;;  %1755 = vmatpush2.bf16.msra.mxu1 %v8675_v3  ;;  %v160_v61 = vld [vmem:[#allocation5 + $0x68] sm:$0xff]  ;;  %v8621_v3 = vcombine.low %v292_v53, %v296_v55 }
  0x94   :  { %v8668_v5 = vcombine.high %v339_v0, %v343_v1  ;;  %v135_v11 = vld [vmem:[#allocation2] sm:$0xff]  ;;  %1713 = vmatprep.subr.bf16.mxu0 %v8540_v4  ;;  %v8667_v13 = vcombine.low %v339_v0, %v343_v1  ;;  %v284_v62 = vld [vmem:[#allocation5 + $0x448] sm:$0xff]  ;;  %v8622_v0 = vcombine.high %v292_v53, %v296_v55  ;;  %v8486_v4 = vcombine.high %v156_v60, %v160_v61 }
  0x95   :  { %v139_v12 = vld [vmem:[#allocation2 + $0x20] sm:$0xff]  ;;  %1714 = vmatpush2.bf16.msra.mxu0 %v8539_v10  ;;  %v288_v1 = vld [vmem:[#allocation5 + $0x468] sm:$0xff]  ;;  %v8485_v10 = vcombine.low %v156_v60, %v160_v61 }
  0x96   :  { %1756 = vmatprep.subr.bf16.mxu1 %v8668_v5  ;;  %v10325_v20 = vpack.c.bf16 %v139_v12, %v135_v11  ;;  %1769 = vmatprep.subr.bf16.mxu0 %v8534_v16  ;;  %v148_v5 = vld [vmem:[#allocation5 + $0x8] sm:$0xff]  ;;  %v8614_v8 = vcombine.high %v284_v62, %v288_v1  ;;  %v8613_v11 = vcombine.low %v284_v62, %v288_v1 }
  0x97   :  { %1757 = vmatpush2.bf16.msra.mxu1 %v8667_v13  ;;  %v280_v9 = vld [vmem:[#allocation5 + $0x428] sm:$0xff]  ;;  %v8478_v12 = vcombine.high %v148_v5, %v152_v6  ;;  %v8477_v18 = vcombine.low %v148_v5, %v152_v6 }
  0x98   :  { %12152 = vst [vmem:[#allocation22_spill] sm:$0xff] %v10325_v20  ;;  %1812 = vmatprep.subr.bf16.mxu1 %v8662_v17  ;;  %1716 = vmatmul.mubr.bf16.vlgmr.msra.gmra.mxu0 %v10325_v20  ;;  %v268_v13 = vld [vmem:[#allocation5 + $0x3c8] sm:$0xff]  ;;  %v8606_v16 = vcombine.high %v276_v7, %v280_v9  ;;  %v8605_v19 = vcombine.low %v276_v7, %v280_v9 }
  0x99   :  { %1770 = vmatpush1.bf16.msra.mxu0 %v8533_v24  ;;  %1801 = vmatprep.mubr.bf16.mxu0 %v10319_v58  ;;  %v272_v14 = vld [vmem:[#allocation5 + $0x3e8] sm:$0xff] }
  0x9a   :  { %1759 = vmatmul.mubr.bf16.vlgmr.msra.gmra.mxu1 %v10327_v23  ;;  %1771 = vmatprep.subr.bf16.mxu0 %v8526_v26  ;;  %v396_v15 = vld [vmem:[#allocation5 + $0x7c8] sm:$0xff]  ;;  %v8598_v21 = vcombine.high %v268_v13, %v272_v14  ;;  %v8597_v28 = vcombine.low %v268_v13, %v272_v14 }
  0x9b   :  { %1813 = vmatpush1.bf16.msra.mxu1 %v8661_v25  ;;  %1844 = vmatprep.mubr.bf16.mxu1 %v10321_v63  ;;  %v400_v17 = vld [vmem:[#allocation5 + $0x7e8] sm:$0xff] }
  0x9c   :  { %1814 = vmatprep.subr.bf16.mxu1 %v8654_v27  ;;  %v260_v22 = vld [vmem:[#allocation5 + $0x388] sm:$0xff]  ;;  %v8726_v26 = vcombine.high %v396_v15, %v400_v17  ;;  %v8725_v29 = vcombine.low %v396_v15, %v400_v17  ;;  %v205_v17 = vld [vmem:[#allocation5 + $0x1d0] sm:$0xff] }
  0x9d   :  { %1772 = vmatpush1.bf16.msra.mxu0 %v8525_v32  ;;  %v264_v24 = vld [vmem:[#allocation5 + $0x3a8] sm:$0xff] }
  0x9e   :  { %1773 = vmatprep.subr.bf16.mxu0 %v8518_v34  ;;  %v388_v25 = vld [vmem:[#allocation5 + $0x788] sm:$0xff]  ;;  %v8590_v30 = vcombine.high %v260_v22, %v264_v24  ;;  %v8589_v36 = vcombine.low %v260_v22, %v264_v24  ;;  %v337_v22 = vld [vmem:[#allocation5 + $0x5f0] sm:$0xff] }
  0x9f   :  { %1815 = vmatpush1.bf16.msra.mxu1 %v8653_v33  ;;  %v392_v27 = vld [vmem:[#allocation5 + $0x7a8] sm:$0xff] }
  0xa0   :  { %1816 = vmatprep.subr.bf16.mxu1 %v8646_v38  ;;  %v252_v31 = vld [vmem:[#allocation5 + $0x348] sm:$0xff]  ;;  %v8718_v34 = vcombine.high %v388_v25, %v392_v27  ;;  %v8717_v37 = vcombine.low %v388_v25, %v392_v27  ;;  %v197_v27 = vld [vmem:[#allocation5 + $0x190] sm:$0xff] }
  0xa1   :  { %1774 = vmatpush1.bf16.msra.mxu0 %v8517_v40  ;;  %v256_v32 = vld [vmem:[#allocation5 + $0x368] sm:$0xff] }
  0xa2   :  { %1775 = vmatprep.subr.bf16.mxu0 %v8510_v42  ;;  %v380_v33 = vld [vmem:[#allocation5 + $0x748] sm:$0xff]  ;;  %v8582_v38 = vcombine.high %v252_v31, %v256_v32  ;;  %v8581_v44 = vcombine.low %v252_v31, %v256_v32  ;;  %v329_v31 = vld [vmem:[#allocation5 + $0x5b0] sm:$0xff] }
  0xa3   :  { %1817 = vmatpush1.bf16.msra.mxu1 %v8645_v41  ;;  %v384_v35 = vld [vmem:[#allocation5 + $0x768] sm:$0xff] }
  0xa4   :  { %1818 = vmatprep.subr.bf16.mxu1 %v8638_v46  ;;  %v244_v39 = vld [vmem:[#allocation5 + $0x308] sm:$0xff]  ;;  %v8710_v42 = vcombine.high %v380_v33, %v384_v35  ;;  %v8709_v45 = vcombine.low %v380_v33, %v384_v35  ;;  %v189_v33 = vld [vmem:[#allocation5 + $0x150] sm:$0xff] }
  0xa5   :  { %1776 = vmatpush1.bf16.msra.mxu0 %v8509_v48  ;;  %v248_v40 = vld [vmem:[#allocation5 + $0x328] sm:$0xff] }
  0xa6   :  { %1777 = vmatprep.subr.bf16.mxu0 %v8502_v50  ;;  %v372_v41 = vld [vmem:[#allocation5 + $0x708] sm:$0xff]  ;;  %v8574_v46 = vcombine.high %v244_v39, %v248_v40  ;;  %v8573_v52 = vcombine.low %v244_v39, %v248_v40 }
  0xa7   :  { %1819 = vmatpush1.bf16.msra.mxu1 %v8637_v49  ;;  %v376_v43 = vld [vmem:[#allocation5 + $0x728] sm:$0xff] }
  0xa8   :  { %1820 = vmatprep.subr.bf16.mxu1 %v8630_v54  ;;  %v236_v47 = vld [vmem:[#allocation5 + $0x2c8] sm:$0xff]  ;;  %v8702_v50 = vcombine.high %v372_v41, %v376_v43  ;;  %v8701_v53 = vcombine.low %v372_v41, %v376_v43  ;;  %v181_v41 = vld [vmem:[#allocation5 + $0x110] sm:$0xff] }
  0xa9   :  { %1778 = vmatpush1.bf16.msra.mxu0 %v8501_v56  ;;  %v240_v48 = vld [vmem:[#allocation5 + $0x2e8] sm:$0xff] }
  0xaa   :  { %1779 = vmatprep.subr.bf16.mxu0 %v8494_v59  ;;  %v364_v49 = vld [vmem:[#allocation5 + $0x6c8] sm:$0xff]  ;;  %v8566_v54 = vcombine.high %v236_v47, %v240_v48  ;;  %v8565_v61 = vcombine.low %v236_v47, %v240_v48 }
  0xab   :  { %1821 = vmatpush1.bf16.msra.mxu1 %v8629_v57  ;;  %v368_v51 = vld [vmem:[#allocation5 + $0x6e8] sm:$0xff] }
  0xac   :  { %1822 = vmatprep.subr.bf16.mxu1 %v8622_v0  ;;  %v228_v55 = vld [vmem:[#allocation5 + $0x288] sm:$0xff]  ;;  %v8694_v59 = vcombine.high %v364_v49, %v368_v51  ;;  %v8693_v62 = vcombine.low %v364_v49, %v368_v51  ;;  %v173_v49 = vld [vmem:[#allocation5 + $0xd0] sm:$0xff] }
  0xad   :  { %1780 = vmatpush1.bf16.msra.mxu0 %v8493_v2  ;;  %v232_v56 = vld [vmem:[#allocation5 + $0x2a8] sm:$0xff] }
  0xae   :  { %1781 = vmatprep.subr.bf16.mxu0 %v8486_v4  ;;  %v356_v57 = vld [vmem:[#allocation5 + $0x688] sm:$0xff]  ;;  %v8558_v0 = vcombine.high %v228_v55, %v232_v56  ;;  %v8557_v6 = vcombine.low %v228_v55, %v232_v56 }
  0xaf   :  { %1823 = vmatpush1.bf16.msra.mxu1 %v8621_v3  ;;  %v360_v60 = vld [vmem:[#allocation5 + $0x6a8] sm:$0xff] }
  0xb0   :  { %1824 = vmatprep.subr.bf16.mxu1 %v8614_v8  ;;  %v220_v1 = vld [vmem:[#allocation5 + $0x248] sm:$0xff]  ;;  %v8686_v4 = vcombine.high %v356_v57, %v360_v60  ;;  %v8685_v7 = vcombine.low %v356_v57, %v360_v60  ;;  %v165_v57 = vld [vmem:[#allocation5 + $0x90] sm:$0xff] }
  0xb1   :  { %1782 = vmatpush1.bf16.msra.mxu0 %v8485_v10  ;;  %v224_v2 = vld [vmem:[#allocation5 + $0x268] sm:$0xff] }
  0xb2   :  { %1783 = vmatprep.subr.bf16.mxu0 %v8478_v12  ;;  %v348_v3 = vld [vmem:[#allocation5 + $0x648] sm:$0xff]  ;;  %v8550_v8 = vcombine.high %v220_v1, %v224_v2  ;;  %v8549_v14 = vcombine.low %v220_v1, %v224_v2 }
  0xb3   :  { %1825 = vmatpush1.bf16.msra.mxu1 %v8613_v11  ;;  %v352_v5 = vld [vmem:[#allocation5 + $0x668] sm:$0xff] }
  0xb4   :  { %1826 = vmatprep.subr.bf16.mxu1 %v8606_v16  ;;  %v212_v9 = vld [vmem:[#allocation5 + $0x208] sm:$0xff]  ;;  %v8678_v12 = vcombine.high %v348_v3, %v352_v5  ;;  %v8677_v15 = vcombine.low %v348_v3, %v352_v5  ;;  %v157_v3 = vld [vmem:[#allocation5 + $0x50] sm:$0xff] }
  0xb5   :  { %1784 = vmatpush1.bf16.msra.mxu0 %v8477_v18  ;;  %v216_v10 = vld [vmem:[#allocation5 + $0x228] sm:$0xff]  ;;  %v209_v18 = vld [vmem:[#allocation5 + $0x1f0] sm:$0xff] }
  0xb6   :  { %1785 = vmatprep.subr.bf16.mxu0 %v8598_v21  ;;  %v340_v11 = vld [vmem:[#allocation5 + $0x608] sm:$0xff]  ;;  %v8542_v16 = vcombine.high %v212_v9, %v216_v10  ;;  %v8541_v24 = vcombine.low %v212_v9, %v216_v10  ;;  %v8535_v32 = vcombine.low %v205_v17, %v209_v18 }
  0xb7   :  { %1827 = vmatpush1.bf16.msra.mxu1 %v8605_v19  ;;  %v344_v13 = vld [vmem:[#allocation5 + $0x628] sm:$0xff]  ;;  %v333_v19 = vld [vmem:[#allocation5 + $0x5d0] sm:$0xff] }
  0xb8   :  { %1828 = vmatprep.subr.bf16.mxu1 %v8726_v26  ;;  %v8670_v21 = vcombine.high %v340_v11, %v344_v13  ;;  %v8669_v25 = vcombine.low %v340_v11, %v344_v13  ;;  %v8536_v26 = vcombine.high %v205_v17, %v209_v18  ;;  %v8663_v35 = vcombine.low %v333_v19, %v337_v22  ;;  %v149_v11 = vld [vmem:[#allocation5 + $0x10] sm:$0xff] }
  0xb9   :  { %1786 = vmatpush2.bf16.msra.mxu0 %v8597_v28  ;;  %v201_v28 = vld [vmem:[#allocation5 + $0x1b0] sm:$0xff] }
  0xba   :  { %1787 = vmatprep.subr.bf16.mxu0 %v8590_v30  ;;  %v8664_v30 = vcombine.high %v333_v19, %v337_v22  ;;  %v8527_v40 = vcombine.low %v197_v27, %v201_v28  ;;  %v269_v19 = vld [vmem:[#allocation5 + $0x3d0] sm:$0xff] }
  0xbb   :  { %1829 = vmatpush2.bf16.msra.mxu1 %v8725_v29  ;;  %v325_v29 = vld [vmem:[#allocation5 + $0x590] sm:$0xff] }
  0xbc   :  { %1830 = vmatprep.subr.bf16.mxu1 %v8718_v34  ;;  %v193_v34 = vld [vmem:[#allocation5 + $0x170] sm:$0xff]  ;;  %v8656_v39 = vcombine.high %v325_v29, %v329_v31  ;;  %v8655_v43 = vcombine.low %v325_v29, %v329_v31 }
  0xbd   :  { %1788 = vmatpush2.bf16.msra.mxu0 %v8589_v36  ;;  %v8528_v36 = vcombine.high %v197_v27, %v201_v28  ;;  %v8519_v48 = vcombine.low %v189_v33, %v193_v34  ;;  %v261_v29 = vld [vmem:[#allocation5 + $0x390] sm:$0xff] }
  0xbe   :  { %1789 = vmatprep.subr.bf16.mxu0 %v8582_v38  ;;  %v321_v38 = vld [vmem:[#allocation5 + $0x570] sm:$0xff] }
  0xbf   :  { %1831 = vmatpush2.bf16.msra.mxu1 %v8717_v37  ;;  %v317_v37 = vld [vmem:[#allocation5 + $0x550] sm:$0xff] }
  0xc0   :  { %1832 = vmatprep.subr.bf16.mxu1 %v8710_v42  ;;  %v185_v42 = vld [vmem:[#allocation5 + $0x130] sm:$0xff]  ;;  %v8648_v47 = vcombine.high %v317_v37, %v321_v38  ;;  %v8647_v51 = vcombine.low %v317_v37, %v321_v38 }
  0xc1   :  { %1790 = vmatpush2.bf16.msra.mxu0 %v8581_v44  ;;  %v8520_v44 = vcombine.high %v189_v33, %v193_v34  ;;  %v8511_v56 = vcombine.low %v181_v41, %v185_v42  ;;  %v389_v33 = vld [vmem:[#allocation5 + $0x790] sm:$0xff] }
  0xc2   :  { %1791 = vmatprep.subr.bf16.mxu0 %v8574_v46  ;;  %v313_v46 = vld [vmem:[#allocation5 + $0x530] sm:$0xff] }
  0xc3   :  { %1833 = vmatpush2.bf16.msra.mxu1 %v8709_v45  ;;  %v309_v45 = vld [vmem:[#allocation5 + $0x510] sm:$0xff] }
  0xc4   :  { %1834 = vmatprep.subr.bf16.mxu1 %v8702_v50  ;;  %v177_v50 = vld [vmem:[#allocation5 + $0xf0] sm:$0xff]  ;;  %v8640_v55 = vcombine.high %v309_v45, %v313_v46  ;;  %v8639_v60 = vcombine.low %v309_v45, %v313_v46 }
  0xc5   :  { %1792 = vmatpush2.bf16.msra.mxu0 %v8573_v52  ;;  %v8512_v52 = vcombine.high %v181_v41, %v185_v42  ;;  %v8503_v2 = vcombine.low %v173_v49, %v177_v50  ;;  %v393_v34 = vld [vmem:[#allocation5 + $0x7b0] sm:$0xff] }
  0xc6   :  { %1793 = vmatprep.subr.bf16.mxu0 %v8566_v54  ;;  %v305_v54 = vld [vmem:[#allocation5 + $0x4f0] sm:$0xff] }
  0xc7   :  { %1835 = vmatpush2.bf16.msra.mxu1 %v8701_v53  ;;  %v301_v53 = vld [vmem:[#allocation5 + $0x4d0] sm:$0xff] }
  0xc8   :  { %1836 = vmatprep.subr.bf16.mxu1 %v8694_v59  ;;  %v169_v59 = vld [vmem:[#allocation5 + $0xb0] sm:$0xff]  ;;  %v8632_v1 = vcombine.high %v301_v53, %v305_v54  ;;  %v8631_v5 = vcombine.low %v301_v53, %v305_v54 }
  0xc9   :  { %1794 = vmatpush2.bf16.msra.mxu0 %v8565_v61  ;;  %v8504_v61 = vcombine.high %v173_v49, %v177_v50  ;;  %v8495_v10 = vcombine.low %v165_v57, %v169_v59  ;;  %v253_v37 = vld [vmem:[#allocation5 + $0x350] sm:$0xff] }
  0xca   :  { %1795 = vmatprep.subr.bf16.mxu0 %v8558_v0  ;;  %v297_v0 = vld [vmem:[#allocation5 + $0x4b0] sm:$0xff] }
  0xcb   :  { %1837 = vmatpush2.bf16.msra.mxu1 %v8693_v62  ;;  %v293_v62 = vld [vmem:[#allocation5 + $0x490] sm:$0xff] }
  0xcc   :  { %1838 = vmatprep.subr.bf16.mxu1 %v8686_v4  ;;  %v161_v4 = vld [vmem:[#allocation5 + $0x70] sm:$0xff]  ;;  %v8624_v9 = vcombine.high %v293_v62, %v297_v0  ;;  %v8623_v13 = vcombine.low %v293_v62, %v297_v0 }
  0xcd   :  { %1796 = vmatpush2.bf16.msra.mxu0 %v8557_v6  ;;  %v8496_v6 = vcombine.high %v165_v57, %v169_v59  ;;  %v8487_v18 = vcombine.low %v157_v3, %v161_v4  ;;  %v257_v38 = vld [vmem:[#allocation5 + $0x370] sm:$0xff] }
  0xce   :  { %1797 = vmatprep.subr.bf16.mxu0 %v8550_v8  ;;  %v289_v8 = vld [vmem:[#allocation5 + $0x470] sm:$0xff] }
  0xcf   :  { %1839 = vmatpush2.bf16.msra.mxu1 %v8685_v7  ;;  %v285_v7 = vld [vmem:[#allocation5 + $0x450] sm:$0xff] }
  0xd0   :  { %1840 = vmatprep.subr.bf16.mxu1 %v8678_v12  ;;  %v153_v12 = vld [vmem:[#allocation5 + $0x30] sm:$0xff]  ;;  %v8616_v17 = vcombine.high %v285_v7, %v289_v8  ;;  %v8615_v22 = vcombine.low %v285_v7, %v289_v8 }
  0xd1   :  { %1798 = vmatpush2.bf16.msra.mxu0 %v8549_v14  ;;  %v8488_v14 = vcombine.high %v157_v3, %v161_v4  ;;  %v8479_v28 = vcombine.low %v149_v11, %v153_v12  ;;  %v381_v41 = vld [vmem:[#allocation5 + $0x750] sm:$0xff] }
  0xd2   :  { %1799 = vmatprep.subr.bf16.mxu0 %v8542_v16  ;;  %v281_v16 = vld [vmem:[#allocation5 + $0x430] sm:$0xff] }
  0xd3   :  { %1841 = vmatpush2.bf16.msra.mxu1 %v8677_v15  ;;  %v277_v15 = vld [vmem:[#allocation5 + $0x410] sm:$0xff] }
  0xd4   :  { %1842 = vmatprep.subr.bf16.mxu1 %v8670_v21  ;;  %v273_v21 = vld [vmem:[#allocation5 + $0x3f0] sm:$0xff]  ;;  %v8608_v27 = vcombine.high %v277_v15, %v281_v16  ;;  %v8607_v31 = vcombine.low %v277_v15, %v281_v16 }
  0xd5   :  { %1800 = vmatpush2.bf16.msra.mxu0 %v8541_v24  ;;  %v8480_v24 = vcombine.high %v149_v11, %v153_v12  ;;  %v385_v42 = vld [vmem:[#allocation5 + $0x770] sm:$0xff] }
  0xd6   :  { %1855 = vmatprep.subr.bf16.mxu0 %v8536_v26  ;;  %v401_v26 = vld [vmem:[#allocation5 + $0x7f0] sm:$0xff] }
  0xd7   :  { %1843 = vmatpush2.bf16.msra.mxu1 %v8669_v25  ;;  %v397_v25 = vld [vmem:[#allocation5 + $0x7d0] sm:$0xff] }
  0xd8   :  { %1898 = vmatprep.subr.bf16.mxu1 %v8664_v30  ;;  %1802 = vmatmul.mubr.bf16.vlgmr.msra.gmra.mxu0 %v10325_v20  ;;  %v265_v30 = vld [vmem:[#allocation5 + $0x3b0] sm:$0xff] }
  0xd9   :  { %1856 = vmatpush1.bf16.msra.mxu0 %v8535_v32  ;;  %1887 = vmatprep.mubr.bf16.mxu0 %v10319_v58  ;;  %v8600_v32 = vcombine.high %v269_v19, %v273_v21  ;;  %v245_v45 = vld [vmem:[#allocation5 + $0x310] sm:$0xff] }
  0xda   :  { %1845 = vmatmul.mubr.bf16.vlgmr.msra.gmra.mxu1 %v10327_v23  ;;  %1857 = vmatprep.subr.bf16.mxu0 %v8528_v36  ;;  %v8599_v36 = vcombine.low %v269_v19, %v273_v21  ;;  %v249_v46 = vld [vmem:[#allocation5 + $0x330] sm:$0xff] }
  0xdb   :  { %1899 = vmatpush1.bf16.msra.mxu1 %v8663_v35  ;;  %1930 = vmatprep.mubr.bf16.mxu1 %v10321_v63  ;;  %v8728_v35 = vcombine.high %v397_v25, %v401_v26  ;;  %v373_v49 = vld [vmem:[#allocation5 + $0x710] sm:$0xff] }
  0xdc   :  { %1900 = vmatprep.subr.bf16.mxu1 %v8656_v39  ;;  %v8727_v39 = vcombine.low %v397_v25, %v401_v26  ;;  %v377_v50 = vld [vmem:[#allocation5 + $0x730] sm:$0xff]  ;;  %v206_v25 = vld [vmem:[#allocation5 + $0x1d8] sm:$0xff] }
  0xdd   :  { %1858 = vmatpush1.bf16.msra.mxu0 %v8527_v40  ;;  %v8592_v40 = vcombine.high %v261_v29, %v265_v30  ;;  %v237_v53 = vld [vmem:[#allocation5 + $0x2d0] sm:$0xff]  ;;  %v210_v26 = vld [vmem:[#allocation5 + $0x1f8] sm:$0xff] }
  0xde   :  { %1859 = vmatprep.subr.bf16.mxu0 %v8520_v44  ;;  %v8591_v44 = vcombine.low %v261_v29, %v265_v30  ;;  %v241_v54 = vld [vmem:[#allocation5 + $0x2f0] sm:$0xff]  ;;  %v334_v29 = vld [vmem:[#allocation5 + $0x5d8] sm:$0xff] }
  0xdf   :  { %1901 = vmatpush1.bf16.msra.mxu1 %v8655_v43  ;;  %v8720_v43 = vcombine.high %v389_v33, %v393_v34  ;;  %v365_v57 = vld [vmem:[#allocation5 + $0x6d0] sm:$0xff]  ;;  %v338_v30 = vld [vmem:[#allocation5 + $0x5f8] sm:$0xff] }
  0xe0   :  { %1902 = vmatprep.subr.bf16.mxu1 %v8648_v47  ;;  %v8719_v47 = vcombine.low %v389_v33, %v393_v34  ;;  %v369_v59 = vld [vmem:[#allocation5 + $0x6f0] sm:$0xff]  ;;  %v198_v33 = vld [vmem:[#allocation5 + $0x198] sm:$0xff] }
  0xe1   :  { %1860 = vmatpush1.bf16.msra.mxu0 %v8519_v48  ;;  %v8584_v48 = vcombine.high %v253_v37, %v257_v38  ;;  %v229_v62 = vld [vmem:[#allocation5 + $0x290] sm:$0xff]  ;;  %v202_v34 = vld [vmem:[#allocation5 + $0x1b8] sm:$0xff] }
  0xe2   :  { %1861 = vmatprep.subr.bf16.mxu0 %v8512_v52  ;;  %v8583_v52 = vcombine.low %v253_v37, %v257_v38  ;;  %v233_v0 = vld [vmem:[#allocation5 + $0x2b0] sm:$0xff]  ;;  %v326_v37 = vld [vmem:[#allocation5 + $0x598] sm:$0xff] }
  0xe3   :  { %1903 = vmatpush1.bf16.msra.mxu1 %v8647_v51  ;;  %v8712_v51 = vcombine.high %v381_v41, %v385_v42  ;;  %v357_v3 = vld [vmem:[#allocation5 + $0x690] sm:$0xff]  ;;  %v330_v38 = vld [vmem:[#allocation5 + $0x5b8] sm:$0xff] }
  0xe4   :  { %1904 = vmatprep.subr.bf16.mxu1 %v8640_v55  ;;  %v8711_v55 = vcombine.low %v381_v41, %v385_v42  ;;  %v361_v4 = vld [vmem:[#allocation5 + $0x6b0] sm:$0xff]  ;;  %v190_v41 = vld [vmem:[#allocation5 + $0x158] sm:$0xff] }
  0xe5   :  { %1862 = vmatpush1.bf16.msra.mxu0 %v8511_v56  ;;  %v8576_v56 = vcombine.high %v245_v45, %v249_v46  ;;  %v221_v7 = vld [vmem:[#allocation5 + $0x250] sm:$0xff]  ;;  %v194_v42 = vld [vmem:[#allocation5 + $0x178] sm:$0xff] }
  0xe6   :  { %1863 = vmatprep.subr.bf16.mxu0 %v8504_v61  ;;  %v8575_v61 = vcombine.low %v245_v45, %v249_v46  ;;  %v225_v8 = vld [vmem:[#allocation5 + $0x270] sm:$0xff]  ;;  %v318_v45 = vld [vmem:[#allocation5 + $0x558] sm:$0xff] }
  0xe7   :  { %1905 = vmatpush1.bf16.msra.mxu1 %v8639_v60  ;;  %v8704_v60 = vcombine.high %v373_v49, %v377_v50  ;;  %v349_v11 = vld [vmem:[#allocation5 + $0x650] sm:$0xff]  ;;  %v322_v46 = vld [vmem:[#allocation5 + $0x578] sm:$0xff] }
  0xe8   :  { %1906 = vmatprep.subr.bf16.mxu1 %v8632_v1  ;;  %v8703_v1 = vcombine.low %v373_v49, %v377_v50  ;;  %v353_v12 = vld [vmem:[#allocation5 + $0x670] sm:$0xff]  ;;  %v182_v49 = vld [vmem:[#allocation5 + $0x118] sm:$0xff] }
  0xe9   :  { %1864 = vmatpush1.bf16.msra.mxu0 %v8503_v2  ;;  %v8568_v2 = vcombine.high %v237_v53, %v241_v54  ;;  %v213_v15 = vld [vmem:[#allocation5 + $0x210] sm:$0xff]  ;;  %v186_v50 = vld [vmem:[#allocation5 + $0x138] sm:$0xff] }
  0xea   :  { %1865 = vmatprep.subr.bf16.mxu0 %v8496_v6  ;;  %v8567_v6 = vcombine.low %v237_v53, %v241_v54  ;;  %v217_v16 = vld [vmem:[#allocation5 + $0x230] sm:$0xff]  ;;  %v310_v53 = vld [vmem:[#allocation5 + $0x518] sm:$0xff] }
  0xeb   :  { %1907 = vmatpush1.bf16.msra.mxu1 %v8631_v5  ;;  %v8696_v5 = vcombine.high %v365_v57, %v369_v59  ;;  %v341_v19 = vld [vmem:[#allocation5 + $0x610] sm:$0xff]  ;;  %v314_v54 = vld [vmem:[#allocation5 + $0x538] sm:$0xff] }
  0xec   :  { %1908 = vmatprep.subr.bf16.mxu1 %v8624_v9  ;;  %v8695_v9 = vcombine.low %v365_v57, %v369_v59  ;;  %v345_v21 = vld [vmem:[#allocation5 + $0x630] sm:$0xff]  ;;  %v174_v57 = vld [vmem:[#allocation5 + $0xd8] sm:$0xff] }
  0xed   :  { %1866 = vmatpush1.bf16.msra.mxu0 %v8495_v10  ;;  %v8560_v10 = vcombine.high %v229_v62, %v233_v0  ;;  %v178_v59 = vld [vmem:[#allocation5 + $0xf8] sm:$0xff] }
  0xee   :  { %1867 = vmatprep.subr.bf16.mxu0 %v8488_v14  ;;  %v8559_v14 = vcombine.low %v229_v62, %v233_v0  ;;  %v302_v62 = vld [vmem:[#allocation5 + $0x4d8] sm:$0xff] }
  0xef   :  { %1909 = vmatpush1.bf16.msra.mxu1 %v8623_v13  ;;  %v8688_v13 = vcombine.high %v357_v3, %v361_v4  ;;  %v306_v0 = vld [vmem:[#allocation5 + $0x4f8] sm:$0xff] }
  0xf0   :  { %1910 = vmatprep.subr.bf16.mxu1 %v8616_v17  ;;  %v8687_v17 = vcombine.low %v357_v3, %v361_v4  ;;  %v166_v3 = vld [vmem:[#allocation5 + $0x98] sm:$0xff] }
  0xf1   :  { %1868 = vmatpush1.bf16.msra.mxu0 %v8487_v18  ;;  %v8552_v18 = vcombine.high %v221_v7, %v225_v8  ;;  %v170_v4 = vld [vmem:[#allocation5 + $0xb8] sm:$0xff] }
  0xf2   :  { %1869 = vmatprep.subr.bf16.mxu0 %v8480_v24  ;;  %v8551_v24 = vcombine.low %v221_v7, %v225_v8  ;;  %v294_v7 = vld [vmem:[#allocation5 + $0x498] sm:$0xff] }
  0xf3   :  { %1911 = vmatpush1.bf16.msra.mxu1 %v8615_v22  ;;  %v8680_v22 = vcombine.high %v349_v11, %v353_v12  ;;  %v298_v8 = vld [vmem:[#allocation5 + $0x4b8] sm:$0xff] }
  0xf4   :  { %1912 = vmatprep.subr.bf16.mxu1 %v8608_v27  ;;  %v8679_v27 = vcombine.low %v349_v11, %v353_v12  ;;  %v158_v11 = vld [vmem:[#allocation5 + $0x58] sm:$0xff] }
  0xf5   :  { %1870 = vmatpush1.bf16.msra.mxu0 %v8479_v28  ;;  %v8544_v28 = vcombine.high %v213_v15, %v217_v16  ;;  %v162_v12 = vld [vmem:[#allocation5 + $0x78] sm:$0xff] }
  0xf6   :  { %1871 = vmatprep.subr.bf16.mxu0 %v8600_v32  ;;  %v8543_v32 = vcombine.low %v213_v15, %v217_v16  ;;  %v286_v15 = vld [vmem:[#allocation5 + $0x458] sm:$0xff] }
  0xf7   :  { %1913 = vmatpush1.bf16.msra.mxu1 %v8607_v31  ;;  %v8672_v31 = vcombine.high %v341_v19, %v345_v21  ;;  %v290_v16 = vld [vmem:[#allocation5 + $0x478] sm:$0xff] }
  0xf8   :  { %1914 = vmatprep.subr.bf16.mxu1 %v8728_v35  ;;  %v8671_v35 = vcombine.low %v341_v19, %v345_v21  ;;  %v8625_v19 = vcombine.low %v294_v7, %v298_v8  ;;  %v8490_v21 = vcombine.high %v158_v11, %v162_v12 }
  0xf9   :  { %1872 = vmatpush2.bf16.msra.mxu0 %v8599_v36  ;;  %v8538_v36 = vcombine.high %v206_v25, %v210_v26 }
  0xfa   :  { %1873 = vmatprep.subr.bf16.mxu0 %v8592_v40  ;;  %v8537_v40 = vcombine.low %v206_v25, %v210_v26  ;;  %v154_v25 = vld [vmem:[#allocation5 + $0x38] sm:$0xff] }
  0xfb   :  { %1915 = vmatpush2.bf16.msra.mxu1 %v8727_v39  ;;  %v8666_v39 = vcombine.high %v334_v29, %v338_v30  ;;  %v278_v26 = vld [vmem:[#allocation5 + $0x418] sm:$0xff] }
  0xfc   :  { %1916 = vmatprep.subr.bf16.mxu1 %v8720_v43  ;;  %v8665_v43 = vcombine.low %v334_v29, %v338_v30  ;;  %v8617_v29 = vcombine.low %v286_v15, %v290_v16 }
  0xfd   :  { %1874 = vmatpush2.bf16.msra.mxu0 %v8591_v44  ;;  %v8530_v44 = vcombine.high %v198_v33, %v202_v34 }
  0xfe   :  { %1875 = vmatprep.subr.bf16.mxu0 %v8584_v48  ;;  %v8529_v48 = vcombine.low %v198_v33, %v202_v34  ;;  %v274_v33 = vld [vmem:[#allocation5 + $0x3f8] sm:$0xff] }
  0xff   :  { %1917 = vmatpush2.bf16.msra.mxu1 %v8719_v47  ;;  %v8658_v47 = vcombine.high %v326_v37, %v330_v38  ;;  %v398_v34 = vld [vmem:[#allocation5 + $0x7d8] sm:$0xff] }
 0x100   :  { %1918 = vmatprep.subr.bf16.mxu1 %v8712_v51  ;;  %v8657_v51 = vcombine.low %v326_v37, %v330_v38  ;;  %v262_v37 = vld [vmem:[#allocation5 + $0x398] sm:$0xff] }
 0x101   :  { %1876 = vmatpush2.bf16.msra.mxu0 %v8583_v52  ;;  %v8522_v52 = vcombine.high %v190_v41, %v194_v42  ;;  %v266_v38 = vld [vmem:[#allocation5 + $0x3b8] sm:$0xff] }
 0x102   :  { %1877 = vmatprep.subr.bf16.mxu0 %v8576_v56  ;;  %v8521_v56 = vcombine.low %v190_v41, %v194_v42  ;;  %v390_v41 = vld [vmem:[#allocation5 + $0x798] sm:$0xff] }
 0x103   :  { %1919 = vmatpush2.bf16.msra.mxu1 %v8711_v55  ;;  %v8650_v55 = vcombine.high %v318_v45, %v322_v46  ;;  %v394_v42 = vld [vmem:[#allocation5 + $0x7b8] sm:$0xff] }
 0x104   :  { %1920 = vmatprep.subr.bf16.mxu1 %v8704_v60  ;;  %v8649_v60 = vcombine.low %v318_v45, %v322_v46  ;;  %v254_v45 = vld [vmem:[#allocation5 + $0x358] sm:$0xff] }
 0x105   :  { %1878 = vmatpush2.bf16.msra.mxu0 %v8575_v61  ;;  %v8514_v61 = vcombine.high %v182_v49, %v186_v50  ;;  %v258_v46 = vld [vmem:[#allocation5 + $0x378] sm:$0xff] }
 0x106   :  { %1879 = vmatprep.subr.bf16.mxu0 %v8568_v2  ;;  %v8513_v2 = vcombine.low %v182_v49, %v186_v50  ;;  %v382_v49 = vld [vmem:[#allocation5 + $0x758] sm:$0xff] }
 0x107   :  { %1921 = vmatpush2.bf16.msra.mxu1 %v8703_v1  ;;  %v8642_v1 = vcombine.high %v310_v53, %v314_v54  ;;  %v386_v50 = vld [vmem:[#allocation5 + $0x778] sm:$0xff] }
 0x108   :  { %1922 = vmatprep.subr.bf16.mxu1 %v8696_v5  ;;  %v8641_v5 = vcombine.low %v310_v53, %v314_v54  ;;  %v246_v53 = vld [vmem:[#allocation5 + $0x318] sm:$0xff] }
 0x109   :  { %1880 = vmatpush2.bf16.msra.mxu0 %v8567_v6  ;;  %v8506_v6 = vcombine.high %v174_v57, %v178_v59  ;;  %v250_v54 = vld [vmem:[#allocation5 + $0x338] sm:$0xff] }
 0x10a   :  { %1881 = vmatprep.subr.bf16.mxu0 %v8560_v10  ;;  %v8505_v10 = vcombine.low %v174_v57, %v178_v59  ;;  %v374_v57 = vld [vmem:[#allocation5 + $0x718] sm:$0xff] }
 0x10b   :  { %1923 = vmatpush2.bf16.msra.mxu1 %v8695_v9  ;;  %v8634_v9 = vcombine.high %v302_v62, %v306_v0  ;;  %v378_v59 = vld [vmem:[#allocation5 + $0x738] sm:$0xff] }
 0x10c   :  { %1924 = vmatprep.subr.bf16.mxu1 %v8688_v13  ;;  %v8633_v13 = vcombine.low %v302_v62, %v306_v0  ;;  %v238_v62 = vld [vmem:[#allocation5 + $0x2d8] sm:$0xff] }
 0x10d   :  { %1882 = vmatpush2.bf16.msra.mxu0 %v8559_v14  ;;  %v8498_v14 = vcombine.high %v166_v3, %v170_v4  ;;  %v242_v0 = vld [vmem:[#allocation5 + $0x2f8] sm:$0xff] }
 0x10e   :  { %1883 = vmatprep.subr.bf16.mxu0 %v8552_v18  ;;  %v8497_v18 = vcombine.low %v166_v3, %v170_v4  ;;  %v366_v3 = vld [vmem:[#allocation5 + $0x6d8] sm:$0xff] }
 0x10f   :  { %1925 = vmatpush2.bf16.msra.mxu1 %v8687_v17  ;;  %v8626_v17 = vcombine.high %v294_v7, %v298_v8  ;;  %v370_v4 = vld [vmem:[#allocation5 + $0x6f8] sm:$0xff] }
 0x110   :  { %1926 = vmatprep.subr.bf16.mxu1 %v8680_v22  ;;  %v8618_v22 = vcombine.high %v286_v15, %v290_v16  ;;  %v230_v7 = vld [vmem:[#allocation5 + $0x298] sm:$0xff] }
 0x111   :  { %1884 = vmatpush2.bf16.msra.mxu0 %v8551_v24  ;;  %v150_v24 = vld [vmem:[#allocation5 + $0x18] sm:$0xff] }
 0x112   :  { %1885 = vmatprep.subr.bf16.mxu0 %v8544_v28  ;;  %v8489_v28 = vcombine.low %v158_v11, %v162_v12  ;;  %v8482_v30 = vcombine.high %v150_v24, %v154_v25  ;;  %v234_v8 = vld [vmem:[#allocation5 + $0x2b8] sm:$0xff] }
 0x113   :  { %1927 = vmatpush2.bf16.msra.mxu1 %v8679_v27  ;;  %v282_v27 = vld [vmem:[#allocation5 + $0x438] sm:$0xff] }
 0x114   :  { %1928 = vmatprep.subr.bf16.mxu1 %v8672_v31  ;;  %v8610_v31 = vcombine.high %v278_v26, %v282_v27  ;;  %v358_v11 = vld [vmem:[#allocation5 + $0x698] sm:$0xff] }
 0x115   :  { %1886 = vmatpush2.bf16.msra.mxu0 %v8543_v32  ;;  %v270_v32 = vld [vmem:[#allocation5 + $0x3d8] sm:$0xff] }
 0x116   :  { %1941 = vmatprep.subr.bf16.mxu0 %v8538_v36  ;;  %v8481_v36 = vcombine.low %v150_v24, %v154_v25  ;;  %v362_v12 = vld [vmem:[#allocation5 + $0x6b8] sm:$0xff]  ;;  %v8561_v24 = vcombine.low %v230_v7, %v234_v8 }
 0x117   :  { %1929 = vmatpush2.bf16.msra.mxu1 %v8671_v35  ;;  %v402_v35 = vld [vmem:[#allocation5 + $0x7f8] sm:$0xff] }
 0x118   :  { %1984 = vmatprep.subr.bf16.mxu1 %v8666_v39  ;;  %1888 = vmatmul.mubr.bf16.vlgmr.msra.gmra.mxu0 %v10325_v20  ;;  %v8609_v39 = vcombine.low %v278_v26, %v282_v27  ;;  %v222_v15 = vld [vmem:[#allocation5 + $0x258] sm:$0xff]  ;;  %v8689_v27 = vcombine.low %v358_v11, %v362_v12 }
 0x119   :  { %1942 = vmatpush1.bf16.msra.mxu0 %v8537_v40  ;;  %1973 = vmatprep.mubr.bf16.mxu0 %v10319_v58  ;;  %v8602_v40 = vcombine.high %v270_v32, %v274_v33  ;;  %v226_v16 = vld [vmem:[#allocation5 + $0x278] sm:$0xff] }
 0x11a   :  { %1931 = vmatmul.mubr.bf16.vlgmr.msra.gmra.mxu1 %v10327_v23  ;;  %1943 = vmatprep.subr.bf16.mxu0 %v8530_v44  ;;  %v8601_v44 = vcombine.low %v270_v32, %v274_v33  ;;  %v214_v25 = vld [vmem:[#allocation5 + $0x218] sm:$0xff]  ;;  %v8553_v32 = vcombine.low %v222_v15, %v226_v16 }
 0x11b   :  { %1985 = vmatpush1.bf16.msra.mxu1 %v8665_v43  ;;  %2016 = vmatprep.mubr.bf16.mxu1 %v10321_v63  ;;  %v8730_v43 = vcombine.high %v398_v34, %v402_v35  ;;  %v218_v26 = vld [vmem:[#allocation5 + $0x238] sm:$0xff] }
 0x11c   :  { %1986 = vmatprep.subr.bf16.mxu1 %v8658_v47  ;;  %v8729_v47 = vcombine.low %v398_v34, %v402_v35  ;;  %v8546_v34 = vcombine.high %v214_v25, %v218_v26  ;;  %v9400_v63 = vld [vmem:[#allocation8 + $0x2e8] ss:$16 sps:$4 sm:$0xff]  }
 0x11d   :  { %1944 = vmatpush1.bf16.msra.mxu0 %v8529_v48  ;;  %v8594_v48 = vcombine.high %v262_v37, %v266_v38 }
 0x11e   :  { %1945 = vmatprep.subr.bf16.mxu0 %v8522_v52  ;;  %v8593_v52 = vcombine.low %v262_v37, %v266_v38  ;;  %v8545_v37 = vcombine.low %v214_v25, %v218_v26  ;;  %v9295_v25 = vld [vmem:[#allocation8 + $0x140] ss:$16 sps:$4 sm:$0xff]   ;;  %v9300_v26 = vld [vmem:[#allocation8 + $0x124] ss:$16 sps:$4 sm:$0xff]  }
 0x11f   :  { %1987 = vmatpush1.bf16.msra.mxu1 %v8657_v51  ;;  %v8722_v51 = vcombine.high %v390_v41, %v394_v42 }
 0x120   :  { %1988 = vmatprep.subr.bf16.mxu1 %v8650_v55  ;;  %v8721_v55 = vcombine.low %v390_v41, %v394_v42  ;;  %v9259_v41 = vld [vmem:[#allocation8 + $0xc0] ss:$16 sps:$4 sm:$0xff]   ;;  %v9264_v42 = vld [vmem:[#allocation8 + $0xa4] ss:$16 sps:$4 sm:$0xff]  }
 0x121   :  { %1946 = vmatpush1.bf16.msra.mxu0 %v8521_v56  ;;  %v8586_v56 = vcombine.high %v254_v45, %v258_v46 }
 0x122   :  { %1947 = vmatprep.subr.bf16.mxu0 %v8514_v61  ;;  %v8585_v61 = vcombine.low %v254_v45, %v258_v46  ;;  %v9265_v45 = vld [vmem:[#allocation8 + $0x80] ss:$16 sps:$4 sm:$0xff]   ;;  %v9270_v46 = vld [vmem:[#allocation8 + $0x64] ss:$16 sps:$4 sm:$0xff]  }
 0x123   :  { %1989 = vmatpush1.bf16.msra.mxu1 %v8649_v60  ;;  %v8714_v60 = vcombine.high %v382_v49, %v386_v50 }
 0x124   :  { %1990 = vmatprep.subr.bf16.mxu1 %v8642_v1  ;;  %v8713_v1 = vcombine.low %v382_v49, %v386_v50  ;;  %v9273_v49 = vld [vmem:[#allocation8 + $0x44] ss:$16 sps:$4 sm:$0xff]   ;;  %v9304_v50 = vld [vmem:[#allocation8 + $0x2e0] ss:$16 sps:$4 sm:$0xff]  }
 0x125   :  { %1948 = vmatpush1.bf16.msra.mxu0 %v8513_v2  ;;  %v8578_v2 = vcombine.high %v246_v53, %v250_v54 }
 0x126   :  { %1949 = vmatprep.subr.bf16.mxu0 %v8506_v6  ;;  %v8577_v6 = vcombine.low %v246_v53, %v250_v54  ;;  %v9271_v53 = vld [vmem:[#allocation8 + $0x40] ss:$16 sps:$4 sm:$0xff]   ;;  %v9276_v54 = vld [vmem:[#allocation8 + $0x24] ss:$16 sps:$4 sm:$0xff]  }
 0x127   :  { %1991 = vmatpush1.bf16.msra.mxu1 %v8641_v5  ;;  %v8706_v5 = vcombine.high %v374_v57, %v378_v59 }
 0x128   :  { %1992 = vmatprep.subr.bf16.mxu1 %v8634_v9  ;;  %v8705_v9 = vcombine.low %v374_v57, %v378_v59  ;;  %v9274_v57 = vld [vmem:[#allocation8 + $0x20] ss:$16 sps:$4 sm:$0xff]   ;;  %v9279_v59 = vld [vmem:[#allocation8 + $0x4] ss:$16 sps:$4 sm:$0xff]  }
 0x129   :  { %1950 = vmatpush1.bf16.msra.mxu0 %v8505_v10  ;;  %v8570_v10 = vcombine.high %v238_v62, %v242_v0 }
 0x12a   :  { %1951 = vmatprep.subr.bf16.mxu0 %v8498_v14  ;;  %v8569_v14 = vcombine.low %v238_v62, %v242_v0  ;;  %v9277_v62 = vld [vmem:[#allocation8] ss:$16 sps:$4 sm:$0xff]   ;;  %v9282_v0 = vld [vmem:[#allocation8 + $0x1e4] ss:$16 sps:$4 sm:$0xff]  }
 0x12b   :  { %1993 = vmatpush1.bf16.msra.mxu1 %v8633_v13  ;;  %v8698_v13 = vcombine.high %v366_v3, %v370_v4 }
 0x12c   :  { %1994 = vmatprep.subr.bf16.mxu1 %v8626_v17  ;;  %v8697_v17 = vcombine.low %v366_v3, %v370_v4  ;;  %v9280_v3 = vld [vmem:[#allocation8 + $0x1e0] ss:$16 sps:$4 sm:$0xff]   ;;  %v9285_v4 = vld [vmem:[#allocation8 + $0x1c4] ss:$16 sps:$4 sm:$0xff]  }
 0x12d   :  { %1952 = vmatpush1.bf16.msra.mxu0 %v8497_v18  ;;  %v8562_v18 = vcombine.high %v230_v7, %v234_v8  ;;  %v9283_v7 = vld [vmem:[#allocation8 + $0x1c0] ss:$16 sps:$4 sm:$0xff]   ;;  %v9288_v8 = vld [vmem:[#allocation8 + $0x1a4] ss:$16 sps:$4 sm:$0xff]  }
 0x12e   :  { %1953 = vmatprep.subr.bf16.mxu0 %v8490_v21  ;;  %v354_v21 = vld [vmem:[#allocation5 + $0x678] sm:$0xff] }
 0x12f   :  { %1995 = vmatpush1.bf16.msra.mxu1 %v8625_v19  ;;  %v350_v19 = vld [vmem:[#allocation5 + $0x658] sm:$0xff] }
 0x130   :  { %1996 = vmatprep.subr.bf16.mxu1 %v8618_v22  ;;  %v8690_v22 = vcombine.high %v358_v11, %v362_v12  ;;  %v8681_v33 = vcombine.low %v350_v19, %v354_v21  ;;  %v9286_v11 = vld [vmem:[#allocation8 + $0x1a0] ss:$16 sps:$4 sm:$0xff]   ;;  %v9291_v12 = vld [vmem:[#allocation8 + $0x184] ss:$16 sps:$4 sm:$0xff]  }
 0x131   :  { %1954 = vmatpush1.bf16.msra.mxu0 %v8489_v28  ;;  %v8554_v28 = vcombine.high %v222_v15, %v226_v16  ;;  %v9289_v15 = vld [vmem:[#allocation8 + $0x180] ss:$16 sps:$4 sm:$0xff]   ;;  %v9294_v16 = vld [vmem:[#allocation8 + $0x164] ss:$16 sps:$4 sm:$0xff]  }
 0x132   :  { %1955 = vmatprep.subr.bf16.mxu0 %v8482_v30  ;;  %v346_v30 = vld [vmem:[#allocation5 + $0x638] sm:$0xff] }
 0x133   :  { %1997 = vmatpush1.bf16.msra.mxu1 %v8617_v29  ;;  %v342_v29 = vld [vmem:[#allocation5 + $0x618] sm:$0xff] }
 0x134   :  { %1998 = vmatprep.subr.bf16.mxu1 %v8610_v31  ;;  %v8682_v31 = vcombine.high %v350_v19, %v354_v21  ;;  %v8674_v35 = vcombine.high %v342_v29, %v346_v30  ;;  %v8673_v38 = vcombine.low %v342_v29, %v346_v30  ;;  %v9292_v19 = vld [vmem:[#allocation8 + $0x160] ss:$16 sps:$4 sm:$0xff]   ;;  %v9297_v21 = vld [vmem:[#allocation8 + $0x144] ss:$16 sps:$4 sm:$0xff]  }
 0x135   :  { %1956 = vmatpush1.bf16.msra.mxu0 %v8481_v36  ;;  %v9258_v36 = vld [vmem:[#allocation8 + $0xe4] ss:$16 sps:$4 sm:$0xff]   ;;  %v9298_v29 = vld [vmem:[#allocation8 + $0x120] ss:$16 sps:$4 sm:$0xff]  }
 0x136   :  { %1957 = vmatprep.subr.bf16.mxu0 %v8602_v40  ;;  %v9261_v40 = vld [vmem:[#allocation8 + $0xc4] ss:$16 sps:$4 sm:$0xff]  }
 0x137   :  { %1999 = vmatpush1.bf16.msra.mxu1 %v8609_v39  ;;  %v9256_v39 = vld [vmem:[#allocation8 + $0xe0] ss:$16 sps:$4 sm:$0xff]   ;;  %v9303_v30 = vld [vmem:[#allocation8 + $0x104] ss:$16 sps:$4 sm:$0xff]  }
 0x138   :  { %2000 = vmatprep.subr.bf16.mxu1 %v8730_v43  ;;  %v9262_v43 = vld [vmem:[#allocation8 + $0xa0] ss:$16 sps:$4 sm:$0xff]  }
 0x139   :  { %1958 = vmatpush2.bf16.msra.mxu0 %v8601_v44  ;;  %v9267_v44 = vld [vmem:[#allocation8 + $0x84] ss:$16 sps:$4 sm:$0xff]  }
 0x13a   :  { %1959 = vmatprep.subr.bf16.mxu0 %v8594_v48  ;;  %v9306_v48 = vld [vmem:[#allocation8 + $0x2e4] ss:$16 sps:$4 sm:$0xff]  }
 0x13b   :  { %2001 = vmatpush2.bf16.msra.mxu1 %v8729_v47  ;;  %v9268_v47 = vld [vmem:[#allocation8 + $0x60] ss:$16 sps:$4 sm:$0xff]  }
 0x13c   :  { %2002 = vmatprep.subr.bf16.mxu1 %v8722_v51  ;;  %v9310_v51 = vld [vmem:[#allocation8 + $0x2c0] ss:$16 sps:$4 sm:$0xff]  }
 0x13d   :  { %1960 = vmatpush2.bf16.msra.mxu0 %v8593_v52  ;;  %v9312_v52 = vld [vmem:[#allocation8 + $0x2c4] ss:$16 sps:$4 sm:$0xff]  }
 0x13e   :  { %1961 = vmatprep.subr.bf16.mxu0 %v8586_v56  ;;  %v9318_v56 = vld [vmem:[#allocation8 + $0x2a4] ss:$16 sps:$4 sm:$0xff]  }
 0x13f   :  { %2003 = vmatpush2.bf16.msra.mxu1 %v8721_v55  ;;  %v9316_v55 = vld [vmem:[#allocation8 + $0x2a0] ss:$16 sps:$4 sm:$0xff]  }
 0x140   :  { %2004 = vmatprep.subr.bf16.mxu1 %v8714_v60  ;;  %v9322_v60 = vld [vmem:[#allocation8 + $0x280] ss:$16 sps:$4 sm:$0xff]  }
 0x141   :  { %1962 = vmatpush2.bf16.msra.mxu0 %v8585_v61  ;;  %v9324_v61 = vld [vmem:[#allocation8 + $0x284] ss:$16 sps:$4 sm:$0xff]  }
 0x142   :  { %1963 = vmatprep.subr.bf16.mxu0 %v8578_v2  ;;  %v9330_v2 = vld [vmem:[#allocation8 + $0x264] ss:$16 sps:$4 sm:$0xff]  }
 0x143   :  { %2005 = vmatpush2.bf16.msra.mxu1 %v8713_v1  ;;  %v9328_v1 = vld [vmem:[#allocation8 + $0x260] ss:$16 sps:$4 sm:$0xff]  }
 0x144   :  { %2006 = vmatprep.subr.bf16.mxu1 %v8706_v5  ;;  %v9334_v5 = vld [vmem:[#allocation8 + $0x240] ss:$16 sps:$4 sm:$0xff]  }
 0x145   :  { %1964 = vmatpush2.bf16.msra.mxu0 %v8577_v6  ;;  %v9336_v6 = vld [vmem:[#allocation8 + $0x244] ss:$16 sps:$4 sm:$0xff]  }
 0x146   :  { %1965 = vmatprep.subr.bf16.mxu0 %v8570_v10  ;;  %v9342_v10 = vld [vmem:[#allocation8 + $0x224] ss:$16 sps:$4 sm:$0xff]  }
 0x147   :  { %2007 = vmatpush2.bf16.msra.mxu1 %v8705_v9  ;;  %v9340_v9 = vld [vmem:[#allocation8 + $0x220] ss:$16 sps:$4 sm:$0xff]  }
 0x148   :  { %2008 = vmatprep.subr.bf16.mxu1 %v8698_v13  ;;  %v9346_v13 = vld [vmem:[#allocation8 + $0x200] ss:$16 sps:$4 sm:$0xff]  }
 0x149   :  { %1966 = vmatpush2.bf16.msra.mxu0 %v8569_v14  ;;  %v9348_v14 = vld [vmem:[#allocation8 + $0x204] ss:$16 sps:$4 sm:$0xff]  }
 0x14a   :  { %1967 = vmatprep.subr.bf16.mxu0 %v8562_v18  ;;  %v9354_v18 = vld [vmem:[#allocation8 + $0x3e4] ss:$16 sps:$4 sm:$0xff]  }
 0x14b   :  { %2009 = vmatpush2.bf16.msra.mxu1 %v8697_v17  ;;  %v9352_v17 = vld [vmem:[#allocation8 + $0x3e0] ss:$16 sps:$4 sm:$0xff]  }
 0x14c   :  { %2010 = vmatprep.subr.bf16.mxu1 %v8690_v22  ;;  %v9358_v22 = vld [vmem:[#allocation8 + $0x3c0] ss:$16 sps:$4 sm:$0xff]  }
 0x14d   :  { %1968 = vmatpush2.bf16.msra.mxu0 %v8561_v24  ;;  %v9360_v24 = vld [vmem:[#allocation8 + $0x3c4] ss:$16 sps:$4 sm:$0xff]  }
 0x14e   :  { %1969 = vmatprep.subr.bf16.mxu0 %v8554_v28  ;;  %v9366_v28 = vld [vmem:[#allocation8 + $0x3a4] ss:$16 sps:$4 sm:$0xff]  }
 0x14f   :  { %2011 = vmatpush2.bf16.msra.mxu1 %v8689_v27  ;;  %v9364_v27 = vld [vmem:[#allocation8 + $0x3a0] ss:$16 sps:$4 sm:$0xff]  }
 0x150   :  { %2012 = vmatprep.subr.bf16.mxu1 %v8682_v31  ;;  %v9370_v31 = vld [vmem:[#allocation8 + $0x380] ss:$16 sps:$4 sm:$0xff]  }
 0x151   :  { %1970 = vmatpush2.bf16.msra.mxu0 %v8553_v32  ;;  %v9372_v32 = vld [vmem:[#allocation8 + $0x384] ss:$16 sps:$4 sm:$0xff]  }
 0x152   :  { %1971 = vmatprep.subr.bf16.mxu0 %v8546_v34  ;;  %v9309_v34 = vld [vmem:[#allocation8 + $0xec] ss:$16 sps:$4 sm:$0xff]  }
 0x153   :  { %2013 = vmatpush2.bf16.msra.mxu1 %v8681_v33  ;;  %v9301_v33 = vld [vmem:[#allocation8 + $0x100] ss:$16 sps:$4 sm:$0xff]  }
 0x154   :  { %2014 = vmatprep.subr.bf16.mxu1 %v8674_v35  ;;  %v9376_v35 = vld [vmem:[#allocation8 + $0x360] ss:$16 sps:$4 sm:$0xff]  }
 0x155   :  { %1972 = vmatpush2.bf16.msra.mxu0 %v8545_v37  ;;  %v9382_v37 = vld [vmem:[#allocation8 + $0x340] ss:$16 sps:$4 sm:$0xff]  }
 0x156   :  { %3599 = vmatprep.subr.bf16.mxu0 %v9258_v36  ;;  %v9378_v36 = vld [vmem:[#allocation8 + $0x364] ss:$16 sps:$4 sm:$0xff]  }
 0x157   :  { %2015 = vmatpush2.bf16.msra.mxu1 %v8673_v38  ;;  %v9384_v38 = vld [vmem:[#allocation8 + $0x344] ss:$16 sps:$4 sm:$0xff]  }
 0x158   :  { %1974 = vmatmul.mubr.bf16.vlgmr.msra.gmra.mxu0 %v10325_v20  ;;  %3712 = vmatprep.subr.bf16.mxu1 %v9306_v48 }
 0x159   :  { %3600 = vmatpush1.bf16.msra.mxu0 %v9256_v39  ;;  %v9388_v39 = vld [vmem:[#allocation8 + $0x320] ss:$16 sps:$4 sm:$0xff]  }
 0x15a   :  { %2017 = vmatmul.mubr.bf16.vlgmr.msra.gmra.mxu1 %v10327_v23  ;;  %3601 = vmatprep.subr.bf16.mxu0 %v9261_v40  ;;  %v9390_v40 = vld [vmem:[#allocation8 + $0x324] ss:$16 sps:$4 sm:$0xff]  }
 0x15b   :  { %3713 = vmatpush1.bf16.msra.mxu1 %v9304_v50  ;;  %v2029_v50 = vlaneseq }
 0x15c   :  { %3714 = vmatprep.subr.bf16.mxu1 %v9312_v52 }
 0x15d   :  { %3602 = vmatpush1.bf16.msra.mxu0 %v9259_v41  ;;  %v9396_v41 = vld [vmem:[#allocation8 + $0x304] ss:$16 sps:$4 sm:$0xff]  }
 0x15e   :  { %3603 = vmatprep.subr.bf16.mxu0 %v9264_v42  ;;  %v9394_v42 = vld [vmem:[#allocation8 + $0x300] ss:$16 sps:$4 sm:$0xff]  }
 0x15f   :  { %3715 = vmatpush1.bf16.msra.mxu1 %v9310_v51 }
 0x160   :  { %3716 = vmatprep.subr.bf16.mxu1 %v9318_v56 }
 0x161   :  { %3604 = vmatpush1.bf16.msra.mxu0 %v9262_v43  ;;  %v9402_v43 = vld [vmem:[#allocation8 + $0x2ec] ss:$16 sps:$4 sm:$0xff]  }
 0x162   :  { %3605 = vmatprep.subr.bf16.mxu0 %v9267_v44  ;;  %v1717_v44 = vpop.f32.mrf.mxu0 }
 0x163   :  { %3717 = vmatpush1.bf16.msra.mxu1 %v9316_v55 }
 0x164   :  { %3718 = vmatprep.subr.bf16.mxu1 %v9324_v61 }
 0x165   :  { %3606 = vmatpush1.bf16.msra.mxu0 %v9265_v45  ;;  %v1760_v45 = vpop.f32.mrf.mxu1 }
 0x166   :  { %3607 = vmatprep.subr.bf16.mxu0 %v9270_v46  ;;  %v1719_v46 = vpop.f32.mrf.mxu0 }
 0x167   :  { %3719 = vmatpush1.bf16.msra.mxu1 %v9322_v60 }
 0x168   :  { %3720 = vmatprep.subr.bf16.mxu1 %v9330_v2  ;;  %v1721_v48 = vpop.f32.mrf.mxu0 }
 0x169   :  { %3608 = vmatpush1.bf16.msra.mxu0 %v9268_v47  ;;  %v1762_v47 = vpop.f32.mrf.mxu1 }
 0x16a   :  { %3609 = vmatprep.subr.bf16.mxu0 %v9273_v49  ;;  %v1723_v51 = vpop.f32.mrf.mxu0 }
 0x16b   :  { %3721 = vmatpush1.bf16.msra.mxu1 %v9328_v1  ;;  %v1764_v49 = vpop.f32.mrf.mxu1 }
 0x16c   :  { %3722 = vmatprep.subr.bf16.mxu1 %v9336_v6  ;;  %v1761_v6 = vadd.f32 %v1760_v45, %v1717_v44 }
 0x16d   :  { %3610 = vmatpush1.bf16.msra.mxu0 %v9271_v53  ;;  %v1766_v52 = vpop.f32.mrf.mxu1  ;;  %v2030_v53 = vshrl.u32 %v2029_v50, 7 }
 0x16e   :  { %3611 = vmatprep.subr.bf16.mxu0 %v9276_v54 }
 0x16f   :  { %3723 = vmatpush1.bf16.msra.mxu1 %v9334_v5  ;;  %v10343_v56 = vsub.s32 2, %v2030_v53 }
 0x170   :  { %3724 = vmatprep.subr.bf16.mxu1 %v9342_v10 }
 0x171   :  { %3612 = vmatpush1.bf16.msra.mxu0 %v9274_v57  ;;  %12154 = vst [vmem:[#allocation24_spill] sm:$0xff] %v10343_v56  ;;  %v10345_v57 = vsub.s32 3, %v2030_v53 }
 0x172   :  { %3613 = vmatprep.subr.bf16.mxu0 %v9279_v59  ;;  %v10347_v59 = vsub.s32 0, %v2030_v53 }
 0x173   :  { %3725 = vmatpush1.bf16.msra.mxu1 %v9340_v9  ;;  %12155 = vst [vmem:[#allocation25_spill] sm:$0xff] %v10345_v57  ;;  %v10213_v9 = vmov 1966171168  }
 0x174   :  { %3726 = vmatprep.subr.bf16.mxu1 %v9348_v14  ;;  %12156 = vst [vmem:[#allocation26_spill] sm:$0xff] %v10347_v59  ;;  %v2070_v10 = vunpack.c.l.s4 %v10213_v9 }
 0x175   :  { %3614 = vmatpush1.bf16.msra.mxu0 %v9277_v62  ;;  %v2027_v62 = vld [vmem:[#allocation7] sm:$0xf] }
 0x176   :  { %3615 = vmatprep.subr.bf16.mxu0 %v9282_v0  ;;  %v10349_v0 = vsub.s32 1, %v2030_v53  ;;  %v2040_v2 = vrot.slane %v2027_v62, %v10343_v56  ;;  %v2032_v5 = vrot.slane %v2027_v62, %v10347_v59 }
 0x177   :  { %3727 = vmatpush1.bf16.msra.mxu1 %v9346_v13 }
 0x178   :  { %3728 = vmatprep.subr.bf16.mxu1 %v9354_v18  ;;  %12157 = vst [vmem:[#allocation27_spill] sm:$0xff] %v10349_v0  ;;  %v2049_v13 = vadd.f32 %v2032_v5, %v1761_v6 }
 0x179   :  { %3616 = vmatpush2.bf16.msra.mxu0 %v9280_v3 }
 0x17a   :  { %3617 = vmatprep.subr.bf16.mxu0 %v9285_v4  ;;  %v2044_v4 = vrot.slane %v2027_v62, %v10345_v57 }
 0x17b   :  { %3729 = vmatpush2.bf16.msra.mxu1 %v9352_v17 }
 0x17c   :  { %3730 = vmatprep.subr.bf16.mxu1 %v9360_v24 }
 0x17d   :  { %3618 = vmatpush2.bf16.msra.mxu0 %v9283_v7  ;;  %v1763_v7 = vadd.f32 %v1762_v47, %v1719_v46 }
 0x17e   :  { %3619 = vmatprep.subr.bf16.mxu0 %v9288_v8  ;;  %v2036_v8 = vrot.slane %v2027_v62, %v10349_v0 }
 0x17f   :  { %3731 = vmatpush2.bf16.msra.mxu1 %v9358_v22 }
 0x180   :  { %3732 = vmatprep.subr.bf16.mxu1 %v9366_v28  ;;  %v2050_v14 = vadd.f32 %v2036_v8, %v1763_v7 }
 0x181   :  { %3620 = vmatpush2.bf16.msra.mxu0 %v9286_v11 }
 0x182   :  { %3621 = vmatprep.subr.bf16.mxu0 %v9291_v12 }
 0x183   :  { %3733 = vmatpush2.bf16.msra.mxu1 %v9364_v27  ;;  %v2066_v27 = vcombine.high %v2049_v13, %v2050_v14 }
 0x184   :  { %3734 = vmatprep.subr.bf16.mxu1 %v9372_v32 }
 0x185   :  { %3622 = vmatpush2.bf16.msra.mxu0 %v9289_v15  ;;  %v2071_v15 = vunpack.c.0.s8 %v2070_v10 }
 0x186   :  { %3623 = vmatprep.subr.bf16.mxu0 %v9294_v16 }
 0x187   :  { %3735 = vmatpush2.bf16.msra.mxu1 %v9370_v31 }
 0x188   :  { %3736 = vmatprep.subr.bf16.mxu1 %v9378_v36 }
 0x189   :  { %3624 = vmatpush2.bf16.msra.mxu0 %v9292_v19  ;;  %v2065_v19 = vcombine.low %v2049_v13, %v2050_v14 }
 0x18a   :  { %3625 = vmatprep.subr.bf16.mxu0 %v9297_v21  ;;  %v10355_v21 = vsub.s32 %v2071_v15, %v2030_v53 }
 0x18b   :  { %3737 = vmatpush2.bf16.msra.mxu1 %v9376_v35  ;;  %v1767_v35 = vadd.f32 %v1766_v52, %v1723_v51 }
 0x18c   :  { %3738 = vmatprep.subr.bf16.mxu1 %v9384_v38  ;;  %v2075_v28 = vrot.slane %v2065_v19, %v10355_v21 }
 0x18d   :  { %3626 = vmatpush2.bf16.msra.mxu0 %v9295_v25 }
 0x18e   :  { %3627 = vmatprep.subr.bf16.mxu0 %v9300_v26 }
 0x18f   :  { %3739 = vmatpush2.bf16.msra.mxu1 %v9382_v37  ;;  %v1765_v37 = vadd.f32 %v1764_v49, %v1721_v48 }
 0x190   :  { %3740 = vmatprep.subr.bf16.mxu1 %v9390_v40 }
 0x191   :  { %3628 = vmatpush2.bf16.msra.mxu0 %v9298_v29  ;;  %v10375_v46 = vadd.f32 %v2032_v5, %v1765_v37 }
 0x192   :  { %3629 = vmatprep.subr.bf16.mxu0 %v9303_v30 }
 0x193   :  { %3741 = vmatpush2.bf16.msra.mxu1 %v9388_v39 }
 0x194   :  { %3742 = vmatprep.subr.bf16.mxu1 %v9396_v41 }
 0x195   :  { %3630 = vmatpush2.bf16.msra.mxu0 %v9301_v33 }
 0x196   :  { %3825 = vmatprep.subr.bf16.mxu0 %v9309_v34  ;;  %v2082_v34 = vrot.slane %v2066_v27, %v10355_v21 }
 0x197   :  { %3743 = vmatpush2.bf16.msra.mxu1 %v9394_v42  ;;  %v10371_v42 = vadd.f32 %v2036_v8, %v1767_v35 }
 0x198   :  { %3938 = vmatprep.subr.bf16.mxu1 %v9402_v43  ;;  %v1803_v54 = vpop.f32.mrf.mxu0 }
 0x19a   :  { %v1846_v55 = vpop.f32.mrf.mxu1  ;;  %v1805_v60 = vpop.f32.mrf.mxu0 }
 0x19b   :  { %v1847_v1 = vadd.f32 %v1846_v55, %v1803_v54  ;;  %v2133_v55 = vcombine.low %v10375_v46, %v10371_v42 }
 0x19c   :  { %v1848_v61 = vpop.f32.mrf.mxu1  ;;  %v1807_v16 = vpop.f32.mrf.mxu0 }
 0x19d   :  { %v1849_v3 = vadd.f32 %v1848_v61, %v1805_v60  ;;  %v2051_v11 = vadd.f32 %v2040_v2, %v1847_v1 }
 0x19e   :  { %v1850_v17 = vpop.f32.mrf.mxu1  ;;  %v1809_v22 = vpop.f32.mrf.mxu0 }
 0x19f   :  { %v2052_v12 = vadd.f32 %v2044_v4, %v1849_v3  ;;  %v1851_v33 = vadd.f32 %v1850_v17, %v1807_v16 }
 0x1a0   :  { %v1852_v24 = vpop.f32.mrf.mxu1 }
 0x1a1   :  { %v2067_v18 = vcombine.low %v2051_v11, %v2052_v12  ;;  %v2068_v25 = vcombine.high %v2051_v11, %v2052_v12  ;;  %v1853_v29 = vadd.f32 %v1852_v24, %v1809_v22  ;;  %v10369_v41 = vadd.f32 %v2040_v2, %v1851_v33 }
 0x1a3   :  { %v2089_v26 = vrot.slane %v2067_v18, %v10355_v21  ;;  %v2096_v30 = vrot.slane %v2068_v25, %v10355_v21  ;;  %v10361_v36 = vadd.f32 %v2044_v4, %v1853_v29 }
 0x1a5   :  { %v2097_v31 = vcombine.low %v2075_v28, %v2089_v26  ;;  %v2098_v32 = vcombine.high %v2075_v28, %v2089_v26  ;;  %v2099_v38 = vcombine.low %v2082_v34, %v2096_v30  ;;  %v2100_v43 = vcombine.high %v2082_v34, %v2096_v30 }
 0x1a6   :  { %v2135_v44 = vcombine.low %v10369_v41, %v10361_v36 }
 0x1a7   :  { %v10364_v39 = vrot.slane %v2097_v31, %v10355_v21  ;;  %v10367_v40 = vrot.slane %v2098_v32, %v10355_v21  ;;  %v10378_v47 = vrot.slane %v2099_v38, %v10355_v21  ;;  %v10397_v60 = vrot.slane %v2100_v43, %v10355_v21  ;;  %v9307_v32 = vld [vmem:[#allocation8 + $0xe8] ss:$16 sps:$4 sm:$0xff]   ;;  %v9315_v43 = vld [vmem:[#allocation8 + $0xcc] ss:$16 sps:$4 sm:$0xff]  }
 0x1a8   :  { %v10400_v61 = vrot.slane %v2135_v44, %v10355_v21 }
 0x1a9   :  { %v10382_v49 = vcombine.high %v10364_v39, %v10364_v39  ;;  %v10386_v50 = vcombine.high %v10367_v40, %v10367_v40  ;;  %v2204_v53 = vrot.slane %v10364_v39, %v10347_v59  ;;  %v2220_v54 = vrot.slane %v10367_v40, %v10347_v59 }
 0x1aa   :  { %v2208_v1 = vrot.slane %v10364_v39, %v10349_v0  ;;  %v2224_v3 = vrot.slane %v10367_v40, %v10349_v0  ;;  %v2272_v9 = vrot.slane %v10378_v47, %v10349_v0  ;;  %v2288_v30 = vrot.slane %v10397_v60, %v10349_v0 }
 0x1ab   :  { %v2240_v6 = vrot.slane %v10382_v49, %v10349_v0  ;;  %v2256_v7 = vrot.slane %v10386_v50, %v10349_v0  ;;  %v2236_v8 = vrot.slane %v10382_v49, %v10347_v59  ;;  %v2252_v12 = vrot.slane %v10386_v50, %v10347_v59 }
 0x1ac   :  { %v10432_v34 = vcombine.high %v10378_v47, %v10378_v47  ;;  %v10436_v35 = vcombine.high %v10397_v60, %v10397_v60  ;;  %v12159_v23 = vrot.slane %v10386_v50, %v10345_v57 }
 0x1d8   :  { %v1889_v45 = vpop.f32.mrf.mxu0 }
 0x1da   :  { %v1932_v48 = vpop.f32.mrf.mxu1  ;;  %v1891_v52 = vpop.f32.mrf.mxu0 }
 0x1db   :  { %v10388_v51 = vadd.f32 %v1932_v48, %v1889_v45  ;;  %v2143_v48 = vrot.slane %v2133_v55, %v10355_v21  ;;  %v9313_v55 = vld [vmem:[#allocation8 + $0xc8] ss:$16 sps:$4 sm:$0xff]  }
 0x1dc   :  { %v1934_v62 = vpop.f32.mrf.mxu1 }
 0x1dd   :  { %v10404_v2 = vadd.f32 %v1934_v62, %v1891_v52  ;;  %v2521_v4 = vadd.f32 %v2204_v53, %v10388_v51  ;;  %v2525_v5 = vadd.f32 %v2220_v54, %v10388_v51  ;;  %v2529_v17 = vadd.f32 %v2236_v8, %v10388_v51  ;;  %v10446_v62 = vpop.f32.mrf.mxu0 }
 0x1de   :  { %v2533_v24 = vadd.f32 %v2252_v12, %v10388_v51  ;;  %v2166_v8 = vcombine.high %v2143_v48, %v10400_v61 }
 0x1df   :  { %v2522_v10 = vadd.f32 %v2208_v1, %v10404_v2  ;;  %v2526_v11 = vadd.f32 %v2224_v3, %v10404_v2  ;;  %vm2585_vm0 = vcmp.gt.f32.partialorder %v2521_v4, 0.0  ;;  %vm2589_vm1 = vcmp.gt.f32.partialorder %v2525_v5, 0.0  ;;  %v10448_v1 = vpop.f32.mrf.mxu1 }
 0x1e0   :  { %v2649_v13 = vmul.f32 0.2, %v2521_v4  ;;  %v2653_v14 = vmul.f32 0.2, %v2525_v5  ;;  %v2530_v15 = vadd.f32 %v2240_v6, %v10404_v2  ;;  %v2534_v22 = vadd.f32 %v2256_v7, %v10404_v2 }
 0x1e1   :  { %vm2586_vm2 = vcmp.gt.f32.partialorder %v2522_v10, 0.0  ;;  %vm2590_vm3 = vcmp.gt.f32.partialorder %v2526_v11, 0.0  ;;  %v2650_v16 = vmul.f32 0.2, %v2522_v10  ;;  %v2654_v18 = vmul.f32 0.2, %v2526_v11 }
 0x1e2   :  { %v2713_v19 = vsel %vm2585_vm0, %v2521_v4, %v2649_v13  ;;  %v2717_v26 = vsel %vm2589_vm1, %v2525_v5, %v2653_v14  ;;  %vm2594_vm4 = vcmp.gt.f32.partialorder %v2530_v15, 0.0  ;;  %v2658_v27 = vmul.f32 0.2, %v2530_v15 }
 0x1e3   :  { %v2714_v25 = vsel %vm2586_vm2, %v2522_v10, %v2650_v16  ;;  %v2718_v28 = vsel %vm2590_vm3, %v2526_v11, %v2654_v18  ;;  %vm2598_vm5 = vcmp.gt.f32.partialorder %v2534_v22, 0.0  ;;  %v2662_v29 = vmul.f32 0.2, %v2534_v22  ;;  %v1895_v16 = vpop.f32.mrf.mxu0  ;;  %v1938_v18 = vpop.f32.mrf.mxu1 }
 0x1e4   :  { %v10428_v31 = vpack.c.bf16 %v2718_v28, %v2714_v25  ;;  %v2722_v33 = vsel %vm2594_vm4, %v2530_v15, %v2658_v27  ;;  %v10438_v37 = vpack.c.bf16 %v2717_v26, %v2713_v19  ;;  %v2538_v44 = vadd.f32 %v2272_v9, %v10404_v2  ;;  %v9321_v9 = vld [vmem:[#allocation8 + $0xac] ss:$16 sps:$4 sm:$0xff]   ;;  %v9319_v26 = vld [vmem:[#allocation8 + $0xa8] ss:$16 sps:$4 sm:$0xff]  }
 0x1e5   :  { %v2726_v38 = vsel %vm2598_vm5, %v2534_v22, %v2662_v29  ;;  %v2542_v45 = vadd.f32 %v2288_v30, %v10404_v2  ;;  %v2657_v53 = vmul.f32 0.2, %v2529_v17  ;;  %v2661_v54 = vmul.f32 0.2, %v2533_v24  ;;  %v9327_v29 = vld [vmem:[#allocation8 + $0x8c] ss:$16 sps:$4 sm:$0xff]  }
 0x1e6   :  { %3631 = vmatprep.mubr.bf16.mxu0 %v10428_v31  ;;  %v10444_v52 = vpack.c.bf16 %v2726_v38, %v2722_v33  ;;  %vm2593_vm6 = vcmp.gt.f32.partialorder %v2529_v17, 0.0  ;;  %vm2597_vm7 = vcmp.gt.f32.partialorder %v2533_v24, 0.0  ;;  %v2666_v3 = vmul.f32 0.2, %v2538_v44  ;;  %v9325_v38 = vld [vmem:[#allocation8 + $0x88] ss:$16 sps:$4 sm:$0xff]  }
 0x1e7   :  { %3632 = vmatmul.mubr.bf16.vlgmr.msra.gmra.mxu0 %v10438_v37  ;;  %v2268_v4 = vrot.slane %v10378_v47, %v10347_v59  ;;  %vm2602_vm8 = vcmp.gt.f32.partialorder %v2538_v44, 0.0  ;;  %vm2606_vm9 = vcmp.gt.f32.partialorder %v2542_v45, 0.0  ;;  %v2670_v5 = vmul.f32 0.2, %v2542_v45 }
 0x1e8   :  { %3641 = vmatprep.mubr.bf16.mxu0 %v10444_v52  ;;  %3826 = vmatpush1.bf16.msra.mxu0 %v9307_v32  ;;  %v2284_v6 = vrot.slane %v10397_v60, %v10347_v59  ;;  %v2165_v7 = vcombine.low %v2143_v48, %v10400_v61  ;;  %v2304_v10 = vrot.slane %v10432_v34, %v10349_v0  ;;  %v9333_v48 = vld [vmem:[#allocation8 + $0x6c] ss:$16 sps:$4 sm:$0xff]  }
 0x1e9   :  { %3827 = vmatprep.subr.bf16.mxu0 %v9315_v43  ;;  %v2320_v11 = vrot.slane %v10436_v35, %v10349_v0  ;;  %v2721_v12 = vsel %vm2593_vm6, %v2529_v17, %v2657_v53  ;;  %v2725_v13 = vsel %vm2597_vm7, %v2533_v24, %v2661_v54  ;;  %v2537_v14 = vadd.f32 %v2268_v4, %v10388_v51 }
 0x1ea   :  { %v2541_v15 = vadd.f32 %v2284_v6, %v10388_v51  ;;  %v2730_v61 = vsel %vm2602_vm8, %v2538_v44, %v2666_v3  ;;  %v2734_v19 = vsel %vm2606_vm9, %v2542_v45, %v2670_v5  ;;  %v2546_v22 = vadd.f32 %v2304_v10, %v10404_v2 }
 0x1eb   :  { %v2550_v25 = vadd.f32 %v2320_v11, %v10404_v2  ;;  %v2134_v17 = vcombine.high %v10375_v46, %v10371_v42  ;;  %v10473_v24 = vrot.slane %v2165_v7, %v10355_v21  ;;  %v10476_v27 = vrot.slane %v2166_v8, %v10355_v21 }
 0x1ec   :  { %3828 = vmatpush1.bf16.msra.mxu0 %v9313_v55  ;;  %v10478_v28 = vpack.c.bf16 %v2725_v13, %v2721_v12  ;;  %v10480_v30 = vadd.f32 %v1938_v18, %v1895_v16  ;;  %v10482_v32 = vpack.c.bf16 %v2734_v19, %v2730_v61  ;;  %v2665_v2 = vmul.f32 0.2, %v2537_v14  ;;  %v9339_v12 = vld [vmem:[#allocation8 + $0x4c] ss:$16 sps:$4 sm:$0xff]  }
 0x1ed   :  { %3829 = vmatprep.subr.bf16.mxu0 %v9321_v9  ;;  %v2669_v33 = vmul.f32 0.2, %v2541_v15  ;;  %vm2601_vm10 = vcmp.gt.f32.partialorder %v2537_v14, 0.0  ;;  %vm2605_vm11 = vcmp.gt.f32.partialorder %v2541_v15, 0.0  ;;  %v2674_v42 = vmul.f32 0.2, %v2546_v22 }
 0x1ee   :  { %v2678_v46 = vmul.f32 0.2, %v2550_v25  ;;  %vm2610_vm12 = vcmp.gt.f32.partialorder %v2546_v22, 0.0  ;;  %vm2614_vm13 = vcmp.gt.f32.partialorder %v2550_v25, 0.0  ;;  %v2300_v43 = vrot.slane %v10432_v34, %v10347_v59  ;;  %v9331_v9 = vld [vmem:[#allocation8 + $0x68] ss:$16 sps:$4 sm:$0xff]  }
 0x1ef   :  { %3642 = vmatmul.mubr.bf16.gmra.mxu0 %v10478_v28  ;;  %v2316_v44 = vrot.slane %v10436_v35, %v10347_v59  ;;  %v2136_v45 = vcombine.high %v10369_v41, %v10361_v36  ;;  %v2336_v53 = vrot.slane %v10473_v24, %v10349_v0  ;;  %v2352_v54 = vrot.slane %v10476_v27, %v10349_v0 }
 0x1f0   :  { %3651 = vmatprep.mubr.bf16.mxu0 %v10482_v32  ;;  %3830 = vmatpush1.bf16.msra.mxu0 %v9319_v26  ;;  %v2729_v3 = vsel %vm2601_vm10, %v2537_v14, %v2665_v2  ;;  %v2733_v4 = vsel %vm2605_vm11, %v2541_v15, %v2669_v33  ;;  %v2545_v55 = vadd.f32 %v2300_v43, %v10388_v51 }
 0x1f1   :  { %3831 = vmatprep.subr.bf16.mxu0 %v9327_v29  ;;  %v2549_v5 = vadd.f32 %v2316_v44, %v10388_v51  ;;  %v2738_v6 = vsel %vm2610_vm12, %v2546_v22, %v2674_v42  ;;  %v2742_v7 = vsel %vm2614_vm13, %v2550_v25, %v2678_v46  ;;  %v2554_v36 = vadd.f32 %v2336_v53, %v10480_v30  ;;  %v9337_v22 = vld [vmem:[#allocation8 + $0x48] ss:$16 sps:$4 sm:$0xff]  }
 0x1f2   :  { %v2558_v41 = vadd.f32 %v2352_v54, %v10480_v30  ;;  %v2150_v8 = vrot.slane %v2134_v17, %v10355_v21  ;;  %v2164_v10 = vrot.slane %v2136_v45, %v10355_v21  ;;  %v10504_v11 = vpack.c.bf16 %v2733_v4, %v2729_v3  ;;  %v9345_v17 = vld [vmem:[#allocation8 + $0x2c] ss:$16 sps:$4 sm:$0xff]   ;;  %v9343_v53 = vld [vmem:[#allocation8 + $0x28] ss:$16 sps:$4 sm:$0xff]  }
 0x1f3   :  { %v10508_v13 = vcombine.high %v10473_v24, %v10473_v24  ;;  %v10512_v51 = vcombine.high %v10476_v27, %v10476_v27  ;;  %v10516_v14 = vadd.f32 %v10448_v1, %v10446_v62  ;;  %v10518_v15 = vpack.c.bf16 %v2742_v7, %v2738_v6 }
 0x1f4   :  { %3832 = vmatpush1.bf16.msra.mxu0 %v9325_v38  ;;  %v2673_v16 = vmul.f32 0.2, %v2545_v55  ;;  %v2677_v18 = vmul.f32 0.2, %v2549_v5  ;;  %vm2609_vm14 = vcmp.gt.f32.partialorder %v2545_v55, 0.0  ;;  %vm2613_vm15 = vcmp.gt.f32.partialorder %v2549_v5, 0.0 }
 0x1f5   :  { %3833 = vmatprep.subr.bf16.mxu0 %v9333_v48  ;;  %v2682_v61 = vmul.f32 0.2, %v2554_v36  ;;  %v2686_v19 = vmul.f32 0.2, %v2558_v41  ;;  %vm2618_vm0 = vcmp.gt.f32.partialorder %v2554_v36, 0.0  ;;  %vm2622_vm1 = vcmp.gt.f32.partialorder %v2558_v41, 0.0 }
 0x1f6   :  { %v2332_v62 = vrot.slane %v10473_v24, %v10347_v59  ;;  %v2348_v1 = vrot.slane %v10476_v27, %v10347_v59  ;;  %v2167_v25 = vcombine.low %v2150_v8, %v2164_v10  ;;  %v2168_v26 = vcombine.high %v2150_v8, %v2164_v10  ;;  %v9349_v8 = vld [vmem:[#allocation8 + $0x8] ss:$16 sps:$4 sm:$0xff]   ;;  %v9357_v10 = vld [vmem:[#allocation8 + $0x1ec] ss:$16 sps:$4 sm:$0xff]  }
 0x1f7   :  { %3652 = vmatmul.mubr.bf16.gmra.mxu0 %v10504_v11  ;;  %v2368_v29 = vrot.slane %v10508_v13, %v10349_v0  ;;  %v2384_v2 = vrot.slane %v10512_v51, %v10349_v0  ;;  %v2737_v33 = vsel %vm2609_vm14, %v2545_v55, %v2673_v16  ;;  %v2741_v42 = vsel %vm2613_vm15, %v2549_v5, %v2677_v18  ;;  %v9351_v55 = vld [vmem:[#allocation8 + $0xc] ss:$16 sps:$4 sm:$0xff]  }
 0x1f8   :  { %3661 = vmatprep.mubr.bf16.mxu0 %v10518_v15  ;;  %3834 = vmatpush1.bf16.msra.mxu0 %v9331_v9  ;;  %v2553_v46 = vadd.f32 %v2332_v62, %v10516_v14  ;;  %v2557_v38 = vadd.f32 %v2348_v1, %v10516_v14  ;;  %v2746_v43 = vsel %vm2618_vm0, %v2554_v36, %v2682_v61 }
 0x1f9   :  { %3835 = vmatprep.subr.bf16.mxu0 %v9339_v12  ;;  %v2750_v44 = vsel %vm2622_vm1, %v2558_v41, %v2686_v19  ;;  %v2562_v45 = vadd.f32 %v2368_v29, %v10480_v30  ;;  %v2566_v48 = vadd.f32 %v2384_v2, %v10480_v30  ;;  %v10537_v54 = vrot.slane %v2167_v25, %v10355_v21  ;;  %v9363_v2 = vld [vmem:[#allocation8 + $0x1cc] ss:$16 sps:$4 sm:$0xff]  }
 0x1fa   :  { %v10540_v3 = vrot.slane %v2168_v26, %v10355_v21  ;;  %v10542_v4 = vpack.c.bf16 %v2741_v42, %v2737_v33  ;;  %v10544_v5 = vpack.c.bf16 %v2750_v44, %v2746_v43  ;;  %v2681_v6 = vmul.f32 0.2, %v2553_v46 }
 0x1fb   :  { %v2685_v7 = vmul.f32 0.2, %v2557_v38  ;;  %vm2617_vm2 = vcmp.gt.f32.partialorder %v2553_v46, 0.0  ;;  %vm2621_vm3 = vcmp.gt.f32.partialorder %v2557_v38, 0.0  ;;  %v2690_v36 = vmul.f32 0.2, %v2562_v45 }
 0x1fc   :  { %3836 = vmatpush1.bf16.msra.mxu0 %v9337_v22  ;;  %v2694_v41 = vmul.f32 0.2, %v2566_v48  ;;  %vm2626_vm4 = vcmp.gt.f32.partialorder %v2562_v45, 0.0  ;;  %vm2630_vm5 = vcmp.gt.f32.partialorder %v2566_v48, 0.0  ;;  %v2364_v21 = vrot.slane %v10508_v13, %v10347_v59 }
 0x1fd   :  { %3837 = vmatprep.subr.bf16.mxu0 %v9345_v17  ;;  %v2380_v9 = vrot.slane %v10512_v51, %v10347_v59  ;;  %v2400_v12 = vrot.slane %v10537_v54, %v10349_v0  ;;  %v2416_v16 = vrot.slane %v10540_v3, %v10349_v0  ;;  %v2745_v18 = vsel %vm2617_vm2, %v2553_v46, %v2681_v6  ;;  %v9355_v17 = vld [vmem:[#allocation8 + $0x1e8] ss:$16 sps:$4 sm:$0xff]   ;;  %v9369_v6 = vld [vmem:[#allocation8 + $0x1ac] ss:$16 sps:$4 sm:$0xff]  }
 0x1fe   :  { %v2749_v61 = vsel %vm2621_vm3, %v2557_v38, %v2685_v7  ;;  %v2561_v19 = vadd.f32 %v2364_v21, %v10516_v14  ;;  %v2754_v62 = vsel %vm2626_vm4, %v2562_v45, %v2690_v36  ;;  %v2758_v1 = vsel %vm2630_vm5, %v2566_v48, %v2694_v41  ;;  %v9361_v48 = vld [vmem:[#allocation8 + $0x1c8] ss:$16 sps:$4 sm:$0xff]  }
 0x1ff   :  { %3662 = vmatmul.mubr.bf16.gmra.mxu0 %v10542_v4  ;;  %v2565_v22 = vadd.f32 %v2380_v9, %v10516_v14  ;;  %v2570_v25 = vadd.f32 %v2400_v12, %v10480_v30  ;;  %v2574_v26 = vadd.f32 %v2416_v16, %v10480_v30  ;;  %v10560_v29 = vpack.c.bf16 %v2749_v61, %v2745_v18  ;;  %v9367_v61 = vld [vmem:[#allocation8 + $0x1a8] ss:$16 sps:$4 sm:$0xff]  }
 0x200   :  { %3671 = vmatprep.mubr.bf16.mxu0 %v10544_v5  ;;  %3838 = vmatpush1.bf16.msra.mxu0 %v9343_v53  ;;  %v10564_v33 = vcombine.high %v10537_v54, %v10537_v54  ;;  %v10568_v42 = vcombine.high %v10540_v3, %v10540_v3  ;;  %v10570_v46 = vpack.c.bf16 %v2758_v1, %v2754_v62  ;;  %v2689_v38 = vmul.f32 0.2, %v2561_v19 }
 0x201   :  { %3839 = vmatprep.subr.bf16.mxu0 %v9351_v55  ;;  %v2693_v43 = vmul.f32 0.2, %v2565_v22  ;;  %vm2625_vm6 = vcmp.gt.f32.partialorder %v2561_v19, 0.0  ;;  %vm2629_vm7 = vcmp.gt.f32.partialorder %v2565_v22, 0.0  ;;  %v2698_v44 = vmul.f32 0.2, %v2570_v25 }
 0x202   :  { %v2702_v45 = vmul.f32 0.2, %v2574_v26  ;;  %vm2634_vm8 = vcmp.gt.f32.partialorder %v2570_v25, 0.0  ;;  %vm2638_vm9 = vcmp.gt.f32.partialorder %v2574_v26, 0.0  ;;  %v2396_v53 = vrot.slane %v10537_v54, %v10347_v59 }
 0x203   :  { %v2412_v55 = vrot.slane %v10540_v3, %v10347_v59  ;;  %v2432_v7 = vrot.slane %v10564_v33, %v10349_v0  ;;  %v2448_v36 = vrot.slane %v10568_v42, %v10349_v0  ;;  %v2753_v41 = vsel %vm2625_vm6, %v2561_v19, %v2689_v38  ;;  %v9375_v19 = vld [vmem:[#allocation8 + $0x18c] ss:$16 sps:$4 sm:$0xff]  }
 0x204   :  { %3840 = vmatpush1.bf16.msra.mxu0 %v9349_v8  ;;  %v2757_v8 = vsel %vm2629_vm7, %v2565_v22, %v2693_v43  ;;  %v2569_v21 = vadd.f32 %v2396_v53, %v10516_v14  ;;  %v2766_v12 = vsel %vm2638_vm9, %v2574_v26, %v2702_v45  ;;  %v2428_v62 = vrot.slane %v10564_v33, %v10347_v59  ;;  %v9373_v45 = vld [vmem:[#allocation8 + $0x188] ss:$16 sps:$4 sm:$0xff]  }
 0x205   :  { %3841 = vmatprep.subr.bf16.mxu0 %v9357_v10  ;;  %v2573_v9 = vadd.f32 %v2412_v55, %v10516_v14  ;;  %v2762_v10 = vsel %vm2634_vm8, %v2570_v25, %v2698_v44  ;;  %v2578_v16 = vadd.f32 %v2432_v7, %v10480_v30  ;;  %v2582_v18 = vadd.f32 %v2448_v36, %v10480_v30  ;;  %v9381_v55 = vld [vmem:[#allocation8 + $0x16c] ss:$16 sps:$4 sm:$0xff]   ;;  %v9379_v36 = vld [vmem:[#allocation8 + $0x168] ss:$16 sps:$4 sm:$0xff]  }
 0x206   :  { %v10588_v1 = vpack.c.bf16 %v2757_v8, %v2753_v41  ;;  %v2444_v22 = vrot.slane %v10568_v42, %v10347_v59  ;;  %v2216_v25 = vrot.slane %v10364_v39, %v10345_v57  ;;  %v2232_v26 = vrot.slane %v10367_v40, %v10345_v57 }
 0x207   :  { %3672 = vmatmul.mubr.bf16.gmra.mxu0 %v10560_v29  ;;  %v2697_v30 = vmul.f32 0.2, %v2569_v21  ;;  %v2212_v38 = vrot.slane %v10364_v39, %v10343_v56  ;;  %vm2633_vm10 = vcmp.gt.f32.partialorder %v2569_v21, 0.0  ;;  %vm2637_vm11 = vcmp.gt.f32.partialorder %v2573_v9, 0.0  ;;  %v9397_v39 = vld [vmem:[#allocation8 + $0x108] ss:$16 sps:$4 sm:$0xff]  }
 0x208   :  { %3681 = vmatprep.mubr.bf16.mxu0 %v10570_v46  ;;  %3842 = vmatpush2.bf16.msra.mxu0 %v9355_v17  ;;  %v10596_v17 = vpack.c.bf16 %v2766_v12, %v2762_v10  ;;  %v2706_v43 = vmul.f32 0.2, %v2578_v16  ;;  %v2710_v44 = vmul.f32 0.2, %v2582_v18  ;;  %vm2642_vm12 = vcmp.gt.f32.partialorder %v2578_v16, 0.0 }
 0x209   :  { %3843 = vmatprep.subr.bf16.mxu0 %v9363_v2  ;;  %v2701_v2 = vmul.f32 0.2, %v2573_v9  ;;  %vm2646_vm13 = vcmp.gt.f32.partialorder %v2582_v18, 0.0  ;;  %v2581_v53 = vadd.f32 %v2444_v22, %v10516_v14  ;;  %v2244_v41 = vrot.slane %v10382_v49, %v10343_v56 }
 0x20a   :  { %v2761_v8 = vsel %vm2633_vm10, %v2569_v21, %v2697_v30  ;;  %v2276_v22 = vrot.slane %v10378_v47, %v10343_v56 }
 0x20b   :  { %v2765_v10 = vsel %vm2637_vm11, %v2573_v9, %v2701_v2  ;;  %v2709_v21 = vmul.f32 0.2, %v2581_v53  ;;  %v2292_v9 = vrot.slane %v10397_v60, %v10343_v56  ;;  %vm2645_vm15 = vcmp.gt.f32.partialorder %v2581_v53, 0.0 }
 0x20c   :  { %3844 = vmatpush2.bf16.msra.mxu0 %v9361_v48  ;;  %v2577_v48 = vadd.f32 %v2428_v62, %v10516_v14  ;;  %v2260_v14 = vrot.slane %v10386_v50, %v10343_v56  ;;  %v2774_v62 = vsel %vm2646_vm13, %v2582_v18, %v2710_v44  ;;  %v10626_v2 = vpack.c.bf16 %v2765_v10, %v2761_v8  ;;  %v9393_v8 = vld [vmem:[#allocation8 + $0x12c] ss:$16 sps:$4 sm:$0xff]  }
 0x20d   :  { %3845 = vmatprep.subr.bf16.mxu0 %v9369_v6  ;;  %v2228_v6 = vrot.slane %v10367_v40, %v10343_v56  ;;  %v2308_v44 = vrot.slane %v10432_v34, %v10343_v56  ;;  %v2773_v18 = vsel %vm2645_vm15, %v2581_v53, %v2709_v21 }
 0x20e   :  { %v2705_v7 = vmul.f32 0.2, %v2577_v48  ;;  %vm2641_vm14 = vcmp.gt.f32.partialorder %v2577_v48, 0.0 }
 0x20f   :  { %3682 = vmatmul.mubr.bf16.gmra.mxu0 %v10588_v1 }
 0x210   :  { %3691 = vmatprep.mubr.bf16.mxu0 %v10596_v17  ;;  %3846 = vmatpush2.bf16.msra.mxu0 %v9367_v61  ;;  %v2770_v61 = vsel %vm2642_vm12, %v2578_v16, %v2706_v43  ;;  %v9387_v16 = vld [vmem:[#allocation8 + $0x14c] ss:$16 sps:$4 sm:$0xff]   ;;  %v2769_v30 = vsel %vm2641_vm14, %v2577_v48, %v2705_v7 }
 0x211   :  { %3847 = vmatprep.subr.bf16.mxu0 %v9375_v19  ;;  %v10630_v43 = vpack.c.bf16 %v2774_v62, %v2770_v61  ;;  %v10668_v61 = vpack.c.bf16 %v2773_v18, %v2769_v30 }
 0x214   :  { %3848 = vmatpush2.bf16.msra.mxu0 %v9373_v45  ;;  %v9385_v45 = vld [vmem:[#allocation8 + $0x148] ss:$16 sps:$4 sm:$0xff]  }
 0x215   :  { %3849 = vmatprep.subr.bf16.mxu0 %v9381_v55 }
 0x217   :  { %3692 = vmatmul.mubr.bf16.gmra.mxu0 %v10626_v2 }
 0x218   :  { %3701 = vmatprep.mubr.bf16.mxu0 %v10630_v43  ;;  %3850 = vmatpush2.bf16.msra.mxu0 %v9379_v36  ;;  %v1975_v62 = vpop.f32.mrf.mxu0 }
 0x219   :  { %3851 = vmatprep.subr.bf16.mxu0 %v9387_v16  ;;  %v9391_v16 = vld [vmem:[#allocation8 + $0x128] ss:$16 sps:$4 sm:$0xff]  }
 0x21a   :  { %v2018_v19 = vpop.f32.mrf.mxu1  ;;  %v1977_v53 = vpop.f32.mrf.mxu0 }
 0x21b   :  { %v10660_v7 = vadd.f32 %v2018_v19, %v1975_v62  ;;  %v9399_v19 = vld [vmem:[#allocation8 + $0x10c] ss:$16 sps:$4 sm:$0xff]  }
 0x21c   :  { %v2020_v55 = vpop.f32.mrf.mxu1  ;;  %3852 = vmatpush2.bf16.msra.mxu0 %v9385_v45  ;;  %v1979_v21 = vpop.f32.mrf.mxu0 }
 0x21d   :  { %v10676_v48 = vadd.f32 %v2020_v55, %v1977_v53  ;;  %v2523_v30 = vadd.f32 %v2212_v38, %v10660_v7  ;;  %v2527_v18 = vadd.f32 %v2228_v6, %v10660_v7  ;;  %v2531_v36 = vadd.f32 %v2244_v41, %v10660_v7  ;;  %3853 = vmatprep.subr.bf16.mxu0 %v9393_v8 }
 0x21e   :  { %v2022_v10 = vpop.f32.mrf.mxu1  ;;  %v2535_v12 = vadd.f32 %v2260_v14, %v10660_v7  ;;  %v10686_v55 = vadd.f32 %v2276_v22, %v10660_v7  ;;  %v10689_v45 = vadd.f32 %v2292_v9, %v10660_v7  ;;  %v10692_v53 = vadd.f32 %v2308_v44, %v10660_v7  ;;  %v1981_v38 = vpop.f32.mrf.mxu0 }
 0x21f   :  { %v10694_v62 = vadd.f32 %v2022_v10, %v1979_v21  ;;  %v2524_v6 = vadd.f32 %v2216_v25, %v10676_v48  ;;  %v2528_v41 = vadd.f32 %v2232_v26, %v10676_v48  ;;  %vm2587_vm0 = vcmp.gt.f32.partialorder %v2523_v30, 0.0  ;;  %3702 = vmatmul.mubr.bf16.gmra.mxu0 %v10668_v61 }
 0x220   :  { %v2024_v14 = vpop.f32.mrf.mxu1  ;;  %vm2591_vm1 = vcmp.gt.f32.partialorder %v2527_v18, 0.0  ;;  %v2651_v22 = vmul.f32 0.2, %v2523_v30  ;;  %v2655_v9 = vmul.f32 0.2, %v2527_v18  ;;  %v12158_v44 = vrot.slane %v10382_v49, %v10345_v57  ;;  %3854 = vmatpush2.bf16.msra.mxu0 %v9391_v16  ;;  %3857 = vmatprep.mubr.bf16.mxu0 %v10428_v31 }
 0x221   :  { %v10709_v10 = vadd.f32 %v2024_v14, %v1981_v38  ;;  %vm2588_vm2 = vcmp.gt.f32.partialorder %v2524_v6, 0.0  ;;  %vm2592_vm3 = vcmp.gt.f32.partialorder %v2528_v41, 0.0  ;;  %v2652_v40 = vmul.f32 0.2, %v2524_v6  ;;  %3855 = vmatprep.subr.bf16.mxu0 %v9399_v19 }
 0x222   :  { %v2532_v8 = vadd.f32 %v12158_v44, %v10676_v48  ;;  %v2656_v25 = vmul.f32 0.2, %v2528_v41  ;;  %v2715_v26 = vsel %vm2587_vm0, %v2523_v30, %v2651_v22  ;;  %v2719_v21 = vsel %vm2591_vm1, %v2527_v18, %v2655_v9  ;;  %v9405_v9 = vld [vmem:[#allocation8 + $0x2cc] ss:$16 sps:$4 sm:$0xff]  }
 0x223   :  { %v2536_v49 = vadd.f32 %v12159_v23, %v10676_v48  ;;  %v2716_v44 = vsel %vm2588_vm2, %v2524_v6, %v2652_v40  ;;  %v10717_v38 = vpack.c.bf16 %v2719_v21, %v2715_v26  ;;  %vm2595_vm6 = vcmp.gt.f32.partialorder %v2531_v36, 0.0 }
 0x224   :  { %vm2596_vm4 = vcmp.gt.f32.partialorder %v2532_v8, 0.0  ;;  %v2660_v16 = vmul.f32 0.2, %v2532_v8  ;;  %v2720_v31 = vsel %vm2592_vm3, %v2528_v41, %v2656_v25  ;;  %3856 = vmatpush2.bf16.msra.mxu0 %v9397_v39  ;;  %vm2599_vm7 = vcmp.gt.f32.partialorder %v2535_v12, 0.0 }
 0x225   :  { %vm2600_vm5 = vcmp.gt.f32.partialorder %v2536_v49, 0.0  ;;  %v2664_v14 = vmul.f32 0.2, %v2536_v49  ;;  %v10719_v19 = vpack.c.bf16 %v2720_v31, %v2716_v44  ;;  %v2659_v18 = vmul.f32 0.2, %v2531_v36 }
 0x226   :  { %v2724_v30 = vsel %vm2596_vm4, %v2532_v8, %v2660_v16  ;;  %v2663_v50 = vmul.f32 0.2, %v2535_v12  ;;  %v12160_v23 = vrot.slane %v10378_v47, %v10345_v57  ;;  %v12161_v41 = vrot.slane %v10397_v60, %v10345_v57  ;;  %v9403_v47 = vld [vmem:[#allocation8 + $0x2c8] ss:$16 sps:$4 sm:$0xff]   ;;  %v9408_v44 = vld [vmem:[#allocation8 + $0x2ac] ss:$16 sps:$4 sm:$0xff]  }
 0x227   :  { %v2728_v22 = vsel %vm2600_vm5, %v2536_v49, %v2664_v14  ;;  %3744 = vmatprep.mubr.bf16.mxu1 %v10719_v19  ;;  %v2723_v8 = vsel %vm2595_vm6, %v2531_v36, %v2659_v18  ;;  %vm2603_vm8 = vcmp.gt.f32.partialorder %v10686_v55, 0.0  ;;  %vm2607_vm9 = vcmp.gt.f32.partialorder %v10689_v45, 0.0  ;;  %3858 = vmatmul.mubr.bf16.vlgmr.msra.gmra.mxu0 %v10438_v37 }
 0x228   :  { %v2540_v6 = vadd.f32 %v12160_v23, %v10676_v48  ;;  %v2544_v40 = vadd.f32 %v12161_v41, %v10676_v48  ;;  %v10730_v39 = vpack.c.bf16 %v2728_v22, %v2724_v30  ;;  %3745 = vmatmul.mubr.bf16.vlgmr.msra.gmra.mxu1 %v10717_v38  ;;  %v2727_v25 = vsel %vm2599_vm7, %v2535_v12, %v2663_v50  ;;  %v9406_v22 = vld [vmem:[#allocation8 + $0x2a8] ss:$16 sps:$4 sm:$0xff]  }
 0x229   :  { %3939 = vmatpush1.bf16.msra.mxu1 %v9400_v63  ;;  %v10737_v60 = vpack.c.bf16 %v2727_v25, %v2723_v8  ;;  %v2667_v36 = vmul.f32 0.2, %v10686_v55  ;;  %v2671_v49 = vmul.f32 0.2, %v10689_v45  ;;  %3867 = vmatprep.mubr.bf16.mxu0 %v10444_v52  ;;  %v12162_v12 = vrot.slane %v10432_v34, %v10345_v57 }
 0x22a   :  { %vm2604_vm10 = vcmp.gt.f32.partialorder %v2540_v6, 0.0  ;;  %vm2608_vm11 = vcmp.gt.f32.partialorder %v2544_v40, 0.0  ;;  %v2668_v26 = vmul.f32 0.2, %v2540_v6  ;;  %3754 = vmatprep.mubr.bf16.mxu1 %v10730_v39  ;;  %v2672_v21 = vmul.f32 0.2, %v2544_v40  ;;  %3940 = vmatprep.subr.bf16.mxu1 %v9405_v9 }
 0x22b   :  { %v2548_v16 = vadd.f32 %v12162_v12, %v10676_v48  ;;  %v12163_v63 = vrot.slane %v10436_v35, %v10345_v57  ;;  %vm2611_vm12 = vcmp.gt.f32.partialorder %v10692_v53, 0.0  ;;  %v2731_v52 = vsel %vm2603_vm8, %v10686_v55, %v2667_v36 }
 0x22c   :  { %v2732_v37 = vsel %vm2604_vm10, %v2540_v6, %v2668_v26  ;;  %v2736_v14 = vsel %vm2608_vm11, %v2544_v40, %v2672_v21  ;;  %v2735_v30 = vsel %vm2607_vm9, %v10689_v45, %v2671_v49  ;;  %v12164_v34 = vrot.slane %v10436_v35, %v10343_v56  ;;  %v9411_v6 = vld [vmem:[#allocation8 + $0x28c] ss:$16 sps:$4 sm:$0xff]  }
 0x22d   :  { %v2552_v31 = vadd.f32 %v12163_v63, %v10676_v48  ;;  %v10761_v9 = vpack.c.bf16 %v2736_v14, %v2732_v37  ;;  %v10763_v48 = vpack.c.bf16 %v2735_v30, %v2731_v52  ;;  %vm2612_vm13 = vcmp.gt.f32.partialorder %v2548_v16, 0.0  ;;  %3941 = vmatpush1.bf16.msra.mxu1 %v9403_v47 }
 0x22e   :  { %v2551_v18 = vadd.f32 %v12164_v34, %v10660_v7  ;;  %v2676_v50 = vmul.f32 0.2, %v2548_v16  ;;  %v12165_v55 = vrot.slane %v10473_v24, %v10345_v57  ;;  %3942 = vmatprep.subr.bf16.mxu1 %v9408_v44  ;;  %v2675_v35 = vmul.f32 0.2, %v10692_v53 }
 0x22f   :  { %vm2616_vm14 = vcmp.gt.f32.partialorder %v2552_v31, 0.0  ;;  %v2680_v23 = vmul.f32 0.2, %v2552_v31  ;;  %v12166_v41 = vrot.slane %v10476_v27, %v10345_v57  ;;  %v12167_v8 = vrot.slane %v10473_v24, %v10343_v56  ;;  %3868 = vmatmul.mubr.bf16.gmra.mxu0 %v10478_v28  ;;  %v9409_v24 = vld [vmem:[#allocation8 + $0x288] ss:$16 sps:$4 sm:$0xff]  }
 0x230   :  { %vm2615_vm15 = vcmp.gt.f32.partialorder %v2551_v18, 0.0  ;;  %v2556_v45 = vadd.f32 %v12165_v55, %v10709_v10  ;;  %v2679_v7 = vmul.f32 0.2, %v2551_v18  ;;  %v2740_v25 = vsel %vm2612_vm13, %v2548_v16, %v2676_v50  ;;  %3755 = vmatmul.mubr.bf16.gmra.mxu1 %v10737_v60  ;;  %3877 = vmatprep.mubr.bf16.mxu0 %v10482_v32  ;;  %v9412_v55 = vld [vmem:[#allocation8 + $0x268] ss:$16 sps:$4 sm:$0xff]  }
 0x231   :  { %v2560_v40 = vadd.f32 %v12166_v41, %v10709_v10  ;;  %v2555_v47 = vadd.f32 %v12167_v8, %v10694_v62  ;;  %v2744_v26 = vsel %vm2616_vm14, %v2552_v31, %v2680_v23  ;;  %v2739_v49 = vsel %vm2611_vm12, %v10692_v53, %v2675_v35  ;;  %3943 = vmatpush1.bf16.msra.mxu1 %v9406_v22  ;;  %v9414_v53 = vld [vmem:[#allocation8 + $0x26c] ss:$16 sps:$4 sm:$0xff]  }
 0x232   :  { %vm2620_vm0 = vcmp.gt.f32.partialorder %v2556_v45, 0.0  ;;  %v2684_v21 = vmul.f32 0.2, %v2556_v45  ;;  %v10780_v36 = vpack.c.bf16 %v2744_v26, %v2740_v25  ;;  %v2743_v44 = vsel %vm2615_vm15, %v2551_v18, %v2679_v7  ;;  %3764 = vmatprep.mubr.bf16.mxu1 %v10761_v9  ;;  %3944 = vmatprep.subr.bf16.mxu1 %v9411_v6 }
 0x233   :  { %vm2624_vm1 = vcmp.gt.f32.partialorder %v2560_v40, 0.0  ;;  %v10787_v37 = vpack.c.bf16 %v2743_v44, %v2739_v49  ;;  %v2688_v12 = vmul.f32 0.2, %v2560_v40  ;;  %v12168_v28 = vrot.slane %v10476_v27, %v10343_v56 }
 0x234   :  { %v2748_v16 = vsel %vm2620_vm0, %v2556_v45, %v2684_v21  ;;  %vm2619_vm2 = vcmp.gt.f32.partialorder %v2555_v47, 0.0  ;;  %v2683_v31 = vmul.f32 0.2, %v2555_v47  ;;  %v12169_v14 = vrot.slane %v10508_v13, %v10345_v57 }
 0x235   :  { %v2559_v63 = vadd.f32 %v12168_v28, %v10694_v62  ;;  %v12170_v30 = vrot.slane %v10512_v51, %v10345_v57  ;;  %v2752_v18 = vsel %vm2624_vm1, %v2560_v40, %v2688_v12  ;;  %v12171_v32 = vrot.slane %v10508_v13, %v10343_v56  ;;  %3945 = vmatpush1.bf16.msra.mxu1 %v9409_v24  ;;  %v9417_v40 = vld [vmem:[#allocation8 + $0x24c] ss:$16 sps:$4 sm:$0xff]   ;;  %v9450_v28 = vld [vmem:[#allocation10 + $0xe4] ss:$16 sps:$4 sm:$0xff]  }
 0x236   :  { %v2564_v52 = vadd.f32 %v12169_v14, %v10709_v10  ;;  %v10806_v50 = vpack.c.bf16 %v2752_v18, %v2748_v16  ;;  %v2747_v23 = vsel %vm2619_vm2, %v2555_v47, %v2683_v31  ;;  %v12172_v7 = vrot.slane %v10512_v51, %v10343_v56  ;;  %3946 = vmatprep.subr.bf16.mxu1 %v9414_v53  ;;  %v9448_v16 = vld [vmem:[#allocation10 + $0xe0] ss:$16 sps:$4 sm:$0xff]  }
 0x237   :  { %v2568_v34 = vadd.f32 %v12170_v30, %v10709_v10  ;;  %vm2623_vm3 = vcmp.gt.f32.partialorder %v2559_v63, 0.0  ;;  %v2687_v27 = vmul.f32 0.2, %v2559_v63  ;;  %v2563_v22 = vadd.f32 %v12171_v32, %v10694_v62  ;;  %3878 = vmatmul.mubr.bf16.gmra.mxu0 %v10504_v11  ;;  %5065 = vmatprep.subr.bf16.mxu0 %v9450_v28 }
 0x238   :  { %vm2628_vm4 = vcmp.gt.f32.partialorder %v2564_v52, 0.0  ;;  %v2692_v6 = vmul.f32 0.2, %v2564_v52  ;;  %v2567_v41 = vadd.f32 %v12172_v7, %v10694_v62  ;;  %v12173_v47 = vrot.slane %v10537_v54, %v10345_v57  ;;  %3765 = vmatmul.mubr.bf16.gmra.mxu1 %v10763_v48  ;;  %3887 = vmatprep.mubr.bf16.mxu0 %v10518_v15 }
 0x239   :  { %vm2632_vm5 = vcmp.gt.f32.partialorder %v2568_v34, 0.0  ;;  %v2751_v45 = vsel %vm2623_vm3, %v2559_v63, %v2687_v27  ;;  %v2696_v35 = vmul.f32 0.2, %v2568_v34  ;;  %vm2627_vm6 = vcmp.gt.f32.partialorder %v2563_v22, 0.0  ;;  %3947 = vmatpush1.bf16.msra.mxu1 %v9412_v55  ;;  %3774 = vmatprep.mubr.bf16.mxu1 %v10780_v36  ;;  %v9415_v63 = vld [vmem:[#allocation8 + $0x248] ss:$16 sps:$4 sm:$0xff]  }
 0x23a   :  { %v10812_v8 = vpack.c.bf16 %v2751_v45, %v2747_v23  ;;  %v2691_v13 = vmul.f32 0.2, %v2563_v22  ;;  %v2572_v25 = vadd.f32 %v12173_v47, %v10709_v10  ;;  %v2756_v26 = vsel %vm2628_vm4, %v2564_v52, %v2692_v6  ;;  %3948 = vmatprep.subr.bf16.mxu1 %v9417_v40  ;;  %5066 = vmatpush1.bf16.msra.mxu0 %v9448_v16  ;;  %v9453_v6 = vld [vmem:[#allocation10 + $0xc4] ss:$16 sps:$4 sm:$0xff]  }
 0x23b   :  { %v2760_v21 = vsel %vm2632_vm5, %v2568_v34, %v2696_v35  ;;  %vm2631_vm7 = vcmp.gt.f32.partialorder %v2567_v41, 0.0  ;;  %v2695_v49 = vmul.f32 0.2, %v2567_v41  ;;  %v12174_v24 = vrot.slane %v10540_v3, %v10345_v57  ;;  %v9420_v34 = vld [vmem:[#allocation8 + $0x22c] ss:$16 sps:$4 sm:$0xff]   ;;  %5067 = vmatprep.subr.bf16.mxu0 %v9453_v6 }
 0x23c   :  { %v10820_v51 = vpack.c.bf16 %v2760_v21, %v2756_v26  ;;  %v2755_v44 = vsel %vm2627_vm6, %v2563_v22, %v2691_v13  ;;  %vm2636_vm8 = vcmp.gt.f32.partialorder %v2572_v25, 0.0  ;;  %v2700_v31 = vmul.f32 0.2, %v2572_v25  ;;  %v9418_v35 = vld [vmem:[#allocation8 + $0x228] ss:$16 sps:$4 sm:$0xff]  }
 0x23d   :  { %v2576_v12 = vadd.f32 %v12174_v24, %v10709_v10  ;;  %v2759_v53 = vsel %vm2631_vm7, %v2567_v41, %v2695_v49  ;;  %v12175_v11 = vrot.slane %v10537_v54, %v10343_v56  ;;  %v12176_v52 = vrot.slane %v10540_v3, %v10343_v56  ;;  %3949 = vmatpush1.bf16.msra.mxu1 %v9415_v63  ;;  %v9456_v63 = vld [vmem:[#allocation10 + $0xa4] ss:$16 sps:$4 sm:$0xff]   ;;  %v9441_v6 = vld [vmem:[#allocation8 + $0x34c] ss:$16 sps:$4 sm:$0xff]  }
 0x23e   :  { %v10836_v18 = vpack.c.bf16 %v2759_v53, %v2755_v44  ;;  %v12177_v32 = vrot.slane %v10564_v33, %v10345_v57  ;;  %v2764_v54 = vsel %vm2636_vm8, %v2572_v25, %v2700_v31  ;;  %v12178_v15 = vrot.slane %v10568_v42, %v10345_v57  ;;  %3950 = vmatprep.subr.bf16.mxu1 %v9420_v34  ;;  %v9423_v25 = vld [vmem:[#allocation8 + $0x20c] ss:$16 sps:$4 sm:$0xff]   ;;  %v9459_v34 = vld [vmem:[#allocation10 + $0x84] ss:$16 sps:$4 sm:$0xff]  }
 0x23f   :  { %v2571_v14 = vadd.f32 %v12175_v11, %v10694_v62  ;;  %v2575_v30 = vadd.f32 %v12176_v52, %v10694_v62  ;;  %vm2640_vm9 = vcmp.gt.f32.partialorder %v2576_v12, 0.0  ;;  %v2704_v27 = vmul.f32 0.2, %v2576_v12  ;;  %3888 = vmatmul.mubr.bf16.gmra.mxu0 %v10542_v4  ;;  %v9426_v31 = vld [vmem:[#allocation8 + $0x3ec] ss:$16 sps:$4 sm:$0xff]  }
 0x240   :  { %v2580_v22 = vadd.f32 %v12177_v32, %v10709_v10  ;;  %v2584_v45 = vadd.f32 %v12178_v15, %v10709_v10  ;;  %v12179_v13 = vrot.slane %v10564_v33, %v10343_v56  ;;  %v12180_v21 = vrot.slane %v10568_v42, %v10343_v56  ;;  %v9451_v33 = vld [vmem:[#allocation10 + $0xc0] ss:$16 sps:$4 sm:$0xff]   ;;  %3775 = vmatmul.mubr.bf16.gmra.mxu1 %v10787_v37  ;;  %v9421_v42 = vld [vmem:[#allocation8 + $0x208] ss:$16 sps:$4 sm:$0xff]   ;;  %v9462_v32 = vld [vmem:[#allocation10 + $0x64] ss:$16 sps:$4 sm:$0xff]  }
 0x241   :  { %vm2635_vm10 = vcmp.gt.f32.partialorder %v2571_v14, 0.0  ;;  %vm2639_vm11 = vcmp.gt.f32.partialorder %v2575_v30, 0.0  ;;  %v2699_v23 = vmul.f32 0.2, %v2571_v14  ;;  %v2768_v3 = vsel %vm2640_vm9, %v2576_v12, %v2704_v27  ;;  %3951 = vmatpush1.bf16.msra.mxu1 %v9418_v35  ;;  %3784 = vmatprep.mubr.bf16.mxu1 %v10806_v50  ;;  %v9454_v4 = vld [vmem:[#allocation10 + $0xa0] ss:$16 sps:$4 sm:$0xff]  }
 0x242   :  { %v2703_v55 = vmul.f32 0.2, %v2575_v30  ;;  %vm2644_vm12 = vcmp.gt.f32.partialorder %v2580_v22, 0.0  ;;  %v10847_v7 = vpack.c.bf16 %v2768_v3, %v2764_v54  ;;  %v2708_v40 = vmul.f32 0.2, %v2580_v22  ;;  %3897 = vmatprep.mubr.bf16.mxu0 %v10544_v5  ;;  %3952 = vmatprep.subr.bf16.mxu1 %v9423_v25 }
 0x243   :  { %v2763_v41 = vsel %vm2635_vm10, %v2571_v14, %v2699_v23  ;;  %v2579_v47 = vadd.f32 %v12179_v13, %v10694_v62  ;;  %vm2648_vm13 = vcmp.gt.f32.partialorder %v2584_v45, 0.0  ;;  %v2712_v10 = vmul.f32 0.2, %v2584_v45  ;;  %5068 = vmatpush1.bf16.msra.mxu0 %v9451_v33  ;;  %v9424_v52 = vld [vmem:[#allocation8 + $0x3e8] ss:$16 sps:$4 sm:$0xff]  }
 0x244   :  { %v2767_v26 = vsel %vm2639_vm11, %v2575_v30, %v2703_v55  ;;  %v2583_v49 = vadd.f32 %v12180_v21, %v10694_v62  ;;  %v2772_v24 = vsel %vm2644_vm12, %v2580_v22, %v2708_v40  ;;  %5069 = vmatprep.subr.bf16.mxu0 %v9456_v63  ;;  %v9429_v30 = vld [vmem:[#allocation8 + $0x3cc] ss:$16 sps:$4 sm:$0xff]   ;;  %v9457_v27 = vld [vmem:[#allocation10 + $0x80] ss:$16 sps:$4 sm:$0xff]   ;;  %v9427_v5 = vld [vmem:[#allocation8 + $0x3c8] ss:$16 sps:$4 sm:$0xff]  }
 0x245   :  { %v10858_v44 = vpack.c.bf16 %v2767_v26, %v2763_v41  ;;  %vm2643_vm14 = vcmp.gt.f32.partialorder %v2579_v47, 0.0  ;;  %v2707_v12 = vmul.f32 0.2, %v2579_v47  ;;  %v2776_v16 = vsel %vm2648_vm13, %v2584_v45, %v2712_v10  ;;  %3953 = vmatpush1.bf16.msra.mxu1 %v9421_v42  ;;  %v9432_v22 = vld [vmem:[#allocation8 + $0x3ac] ss:$16 sps:$4 sm:$0xff]  }
 0x246   :  { %vm2647_vm15 = vcmp.gt.f32.partialorder %v2583_v49, 0.0  ;;  %v2711_v28 = vmul.f32 0.2, %v2583_v49  ;;  %v10864_v62 = vpack.c.bf16 %v2776_v16, %v2772_v24  ;;  %3954 = vmatprep.subr.bf16.mxu1 %v9426_v31  ;;  %v9430_v54 = vld [vmem:[#allocation8 + $0x3a8] ss:$16 sps:$4 sm:$0xff]  }
 0x247   :  { %v2771_v53 = vsel %vm2643_vm14, %v2579_v47, %v2707_v12  ;;  %5070 = vmatpush1.bf16.msra.mxu0 %v9454_v4  ;;  %v9435_v23 = vld [vmem:[#allocation8 + $0x38c] ss:$16 sps:$4 sm:$0xff]   ;;  %v9460_v3 = vld [vmem:[#allocation10 + $0x60] ss:$16 sps:$4 sm:$0xff]   ;;  %v9433_v55 = vld [vmem:[#allocation8 + $0x388] ss:$16 sps:$4 sm:$0xff]  }
 0x248   :  { %v2775_v11 = vsel %vm2647_vm15, %v2583_v49, %v2711_v28  ;;  %3785 = vmatmul.mubr.bf16.gmra.mxu1 %v10812_v8  ;;  %3898 = vmatmul.mubr.bf16.gmra.mxu0 %v10560_v29  ;;  %v9465_v29 = vld [vmem:[#allocation10 + $0x44] ss:$16 sps:$4 sm:$0xff]   ;;  %v9463_v15 = vld [vmem:[#allocation10 + $0x40] ss:$16 sps:$4 sm:$0xff]   ;;  %v9436_v45 = vld [vmem:[#allocation8 + $0x368] ss:$16 sps:$4 sm:$0xff]  }
 0x249   :  { %v10867_v14 = vpack.c.bf16 %v2775_v11, %v2771_v53  ;;  %3955 = vmatpush2.bf16.msra.mxu1 %v9424_v52  ;;  %3794 = vmatprep.mubr.bf16.mxu1 %v10820_v51  ;;  %v9468_v35 = vld [vmem:[#allocation10 + $0x24] ss:$16 sps:$4 sm:$0xff]   ;;  %v9444_v40 = vld [vmem:[#allocation8 + $0x32c] ss:$16 sps:$4 sm:$0xff]   ;;  %v9442_v13 = vld [vmem:[#allocation8 + $0x328] ss:$16 sps:$4 sm:$0xff]  }
 0x24a   :  { %3907 = vmatprep.mubr.bf16.mxu0 %v10570_v46  ;;  %3956 = vmatprep.subr.bf16.mxu1 %v9429_v30  ;;  %v9438_v46 = vld [vmem:[#allocation8 + $0x36c] ss:$16 sps:$4 sm:$0xff]   ;;  %v9471_v41 = vld [vmem:[#allocation10 + $0x4] ss:$16 sps:$4 sm:$0xff]   ;;  %v9469_v25 = vld [vmem:[#allocation10] ss:$16 sps:$4 sm:$0xff]  }
 0x24b   :  { %5071 = vmatprep.subr.bf16.mxu0 %v9459_v34  ;;  %v9447_v47 = vld [vmem:[#allocation8 + $0x30c] ss:$16 sps:$4 sm:$0xff]   ;;  %v9474_v26 = vld [vmem:[#allocation10 + $0x1e4] ss:$16 sps:$4 sm:$0xff]   ;;  %v9475_v21 = vld [vmem:[#allocation10 + $0x1c0] ss:$16 sps:$4 sm:$0xff]  }
 0x24c   :  { %5072 = vmatpush1.bf16.msra.mxu0 %v9457_v27  ;;  %v9477_v10 = vld [vmem:[#allocation10 + $0x1c4] ss:$16 sps:$4 sm:$0xff]   ;;  %v9484_v33 = vld [vmem:[#allocation10 + $0x160] ss:$16 sps:$4 sm:$0xff]   ;;  %v9501_v11 = vld [vmem:[#allocation10 + $0xec] ss:$16 sps:$4 sm:$0xff]  }
 0x24d   :  { %3957 = vmatpush2.bf16.msra.mxu1 %v9427_v5  ;;  %5073 = vmatprep.subr.bf16.mxu0 %v9462_v32  ;;  %v9480_v49 = vld [vmem:[#allocation10 + $0x1a4] ss:$16 sps:$4 sm:$0xff]   ;;  %v9496_v28 = vld [vmem:[#allocation10 + $0x2e0] ss:$16 sps:$4 sm:$0xff]  }
 0x24e   :  { %3958 = vmatprep.subr.bf16.mxu1 %v9432_v22  ;;  %v9483_v24 = vld [vmem:[#allocation10 + $0x184] ss:$16 sps:$4 sm:$0xff]   ;;  %v9490_v42 = vld [vmem:[#allocation10 + $0x120] ss:$16 sps:$4 sm:$0xff]  }
 0x24f   :  { %v9486_v12 = vld [vmem:[#allocation10 + $0x164] ss:$16 sps:$4 sm:$0xff]   ;;  %v9493_v31 = vld [vmem:[#allocation10 + $0x100] ss:$16 sps:$4 sm:$0xff]  }
 0x250   :  { %3795 = vmatmul.mubr.bf16.gmra.mxu1 %v10836_v18  ;;  %3908 = vmatmul.mubr.bf16.gmra.mxu0 %v10588_v1  ;;  %v9466_v1 = vld [vmem:[#allocation10 + $0x20] ss:$16 sps:$4 sm:$0xff]   ;;  %v9489_v16 = vld [vmem:[#allocation10 + $0x144] ss:$16 sps:$4 sm:$0xff]  }
 0x251   :  { %3959 = vmatpush2.bf16.msra.mxu1 %v9430_v54  ;;  %3804 = vmatprep.mubr.bf16.mxu1 %v10847_v7  ;;  %v9498_v63 = vld [vmem:[#allocation10 + $0x2e4] ss:$16 sps:$4 sm:$0xff]   ;;  %v9514_v4 = vld [vmem:[#allocation10 + $0x280] ss:$16 sps:$4 sm:$0xff]  }
 0x252   :  { %3917 = vmatprep.mubr.bf16.mxu0 %v10596_v17  ;;  %3960 = vmatprep.subr.bf16.mxu1 %v9435_v23  ;;  %v9439_v17 = vld [vmem:[#allocation8 + $0x348] ss:$16 sps:$4 sm:$0xff]   ;;  %v9504_v53 = vld [vmem:[#allocation10 + $0x2c4] ss:$16 sps:$4 sm:$0xff]   ;;  %v9520_v30 = vld [vmem:[#allocation10 + $0x260] ss:$16 sps:$4 sm:$0xff]  }
 0x253   :  { %5074 = vmatpush1.bf16.msra.mxu0 %v9460_v3  ;;  %v9516_v52 = vld [vmem:[#allocation10 + $0x284] ss:$16 sps:$4 sm:$0xff]   ;;  %v9532_v27 = vld [vmem:[#allocation10 + $0x220] ss:$16 sps:$4 sm:$0xff]  }
 0x254   :  { %5075 = vmatprep.subr.bf16.mxu0 %v9465_v29  ;;  %v9522_v34 = vld [vmem:[#allocation10 + $0x264] ss:$16 sps:$4 sm:$0xff]   ;;  %v9562_v3 = vld [vmem:[#allocation10 + $0x380] ss:$16 sps:$4 sm:$0xff]  }
 0x255   :  { %3961 = vmatpush2.bf16.msra.mxu1 %v9433_v55  ;;  %v9534_v5 = vld [vmem:[#allocation10 + $0x224] ss:$16 sps:$4 sm:$0xff]  }
 0x256   :  { %3962 = vmatprep.subr.bf16.mxu1 %v9438_v46  ;;  %v9540_v32 = vld [vmem:[#allocation10 + $0x204] ss:$16 sps:$4 sm:$0xff]  }
 0x257   :  { %5076 = vmatpush1.bf16.msra.mxu0 %v9463_v15  ;;  %v9546_v22 = vld [vmem:[#allocation10 + $0x3e4] ss:$16 sps:$4 sm:$0xff]  }
 0x258   :  { %3805 = vmatmul.mubr.bf16.gmra.mxu1 %v10858_v44  ;;  %3918 = vmatmul.mubr.bf16.gmra.mxu0 %v10626_v2  ;;  %v9445_v2 = vld [vmem:[#allocation8 + $0x308] ss:$16 sps:$4 sm:$0xff]   ;;  %v9552_v54 = vld [vmem:[#allocation10 + $0x3c4] ss:$16 sps:$4 sm:$0xff]  }
 0x259   :  { %3963 = vmatpush2.bf16.msra.mxu1 %v9436_v45  ;;  %3814 = vmatprep.mubr.bf16.mxu1 %v10864_v62  ;;  %v9558_v23 = vld [vmem:[#allocation10 + $0x3a4] ss:$16 sps:$4 sm:$0xff]   ;;  %v9574_v45 = vld [vmem:[#allocation10 + $0x340] ss:$16 sps:$4 sm:$0xff]  }
 0x25a   :  { %3927 = vmatprep.mubr.bf16.mxu0 %v10630_v43  ;;  %3964 = vmatprep.subr.bf16.mxu1 %v9441_v6  ;;  %v9472_v43 = vld [vmem:[#allocation10 + $0x1e0] ss:$16 sps:$4 sm:$0xff]   ;;  %v9564_v29 = vld [vmem:[#allocation10 + $0x384] ss:$16 sps:$4 sm:$0xff]  }
 0x25b   :  { %5077 = vmatprep.subr.bf16.mxu0 %v9468_v35  ;;  %v9570_v55 = vld [vmem:[#allocation10 + $0x364] ss:$16 sps:$4 sm:$0xff]  }
 0x25c   :  { %5078 = vmatpush1.bf16.msra.mxu0 %v9466_v1  ;;  %v9576_v6 = vld [vmem:[#allocation10 + $0x344] ss:$16 sps:$4 sm:$0xff]  }
 0x25d   :  { %3965 = vmatpush2.bf16.msra.mxu1 %v9439_v17  ;;  %5079 = vmatprep.subr.bf16.mxu0 %v9471_v41  ;;  %v9580_v17 = vld [vmem:[#allocation10 + $0x320] ss:$16 sps:$4 sm:$0xff]   ;;  %v9582_v41 = vld [vmem:[#allocation10 + $0x324] ss:$16 sps:$4 sm:$0xff]  }
 0x25e   :  { %3966 = vmatprep.subr.bf16.mxu1 %v9444_v40 }
 0x260   :  { %3815 = vmatmul.mubr.bf16.gmra.mxu1 %v10867_v14  ;;  %3928 = vmatmul.mubr.bf16.gmra.mxu0 %v10668_v61  ;;  %v9478_v61 = vld [vmem:[#allocation10 + $0x1a0] ss:$16 sps:$4 sm:$0xff]  }
 0x261   :  { %3967 = vmatpush2.bf16.msra.mxu1 %v9442_v13  ;;  %3970 = vmatprep.mubr.bf16.mxu1 %v10719_v19  ;;  %v9481_v19 = vld [vmem:[#allocation10 + $0x180] ss:$16 sps:$4 sm:$0xff]  }
 0x262   :  { %3968 = vmatprep.subr.bf16.mxu1 %v9447_v47  ;;  %5080 = vmatpush1.bf16.msra.mxu0 %v9469_v25  ;;  %v9586_v13 = vld [vmem:[#allocation10 + $0x300] ss:$16 sps:$4 sm:$0xff]   ;;  %v9588_v47 = vld [vmem:[#allocation10 + $0x304] ss:$16 sps:$4 sm:$0xff]  }
 0x263   :  { %5081 = vmatprep.subr.bf16.mxu0 %v9474_v26 }
 0x265   :  { %3969 = vmatpush2.bf16.msra.mxu1 %v9445_v2  ;;  %v9594_v2 = vld [vmem:[#allocation10 + $0x2ec] ss:$16 sps:$4 sm:$0xff]  }
 0x266   :  { %5082 = vmatpush2.bf16.msra.mxu0 %v9472_v43  ;;  %5178 = vmatprep.subr.bf16.mxu1 %v9498_v63 }
 0x267   :  { %5083 = vmatprep.subr.bf16.mxu0 %v9477_v10 }
 0x268   :  { %3971 = vmatmul.mubr.bf16.vlgmr.msra.gmra.mxu1 %v10717_v38  ;;  %v9487_v38 = vld [vmem:[#allocation10 + $0x140] ss:$16 sps:$4 sm:$0xff]  }
 0x269   :  { %3980 = vmatprep.mubr.bf16.mxu1 %v10730_v39  ;;  %v9492_v39 = vld [vmem:[#allocation10 + $0x124] ss:$16 sps:$4 sm:$0xff]   ;;  %5179 = vmatpush1.bf16.msra.mxu1 %v9496_v28 }
 0x26a   :  { %5084 = vmatpush2.bf16.msra.mxu0 %v9475_v21  ;;  %5180 = vmatprep.subr.bf16.mxu1 %v9504_v53 }
 0x26b   :  { %5085 = vmatprep.subr.bf16.mxu0 %v9480_v49 }
 0x26e   :  { %5086 = vmatpush2.bf16.msra.mxu0 %v9478_v61 }
 0x26f   :  { %5087 = vmatprep.subr.bf16.mxu0 %v9483_v24 }
 0x270   :  { %3981 = vmatmul.mubr.bf16.gmra.mxu1 %v10737_v60  ;;  %v9495_v60 = vld [vmem:[#allocation10 + $0x104] ss:$16 sps:$4 sm:$0xff]  }
 0x271   :  { %3990 = vmatprep.mubr.bf16.mxu1 %v10761_v9  ;;  %v9502_v9 = vld [vmem:[#allocation10 + $0x2c0] ss:$16 sps:$4 sm:$0xff]  }
 0x272   :  { %5088 = vmatpush2.bf16.msra.mxu0 %v9481_v19  ;;  %5181 = vmatpush1.bf16.msra.mxu1 %v9502_v9 }
 0x273   :  { %5089 = vmatprep.subr.bf16.mxu0 %v9486_v12 }
 0x276   :  { %5090 = vmatpush2.bf16.msra.mxu0 %v9484_v33 }
 0x277   :  { %5091 = vmatprep.subr.bf16.mxu0 %v9489_v16 }
 0x278   :  { %3991 = vmatmul.mubr.bf16.gmra.mxu1 %v10763_v48  ;;  %v9508_v48 = vld [vmem:[#allocation10 + $0x2a0] ss:$16 sps:$4 sm:$0xff]  }
 0x279   :  { %4000 = vmatprep.mubr.bf16.mxu1 %v10780_v36  ;;  %v9510_v36 = vld [vmem:[#allocation10 + $0x2a4] ss:$16 sps:$4 sm:$0xff]  }
 0x27a   :  { %5092 = vmatpush2.bf16.msra.mxu0 %v9487_v38  ;;  %5182 = vmatprep.subr.bf16.mxu1 %v9510_v36 }
 0x27b   :  { %5093 = vmatprep.subr.bf16.mxu0 %v9492_v39  ;;  %5183 = vmatpush1.bf16.msra.mxu1 %v9508_v48 }
 0x27c   :  { %5184 = vmatprep.subr.bf16.mxu1 %v9516_v52 }
 0x27e   :  { %5094 = vmatpush2.bf16.msra.mxu0 %v9490_v42 }
 0x27f   :  { %5095 = vmatprep.subr.bf16.mxu0 %v9495_v60  ;;  %5185 = vmatpush1.bf16.msra.mxu1 %v9514_v4  ;;  %v10956_v4 = vld [vmem:[%s12125_s4] sm:$0xf] }
 0x280   :  { %4001 = vmatmul.mubr.bf16.gmra.mxu1 %v10787_v37  ;;  %5186 = vmatprep.subr.bf16.mxu1 %v9522_v34  ;;  %v9526_v37 = vld [vmem:[#allocation10 + $0x240] ss:$16 sps:$4 sm:$0xff]   ;;  %v10966_v34 = vrot.slane %v10956_v4, %v10347_v59 }
 0x281   :  { %4010 = vmatprep.mubr.bf16.mxu1 %v10806_v50  ;;  %v9528_v50 = vld [vmem:[#allocation10 + $0x244] ss:$16 sps:$4 sm:$0xff]  }
 0x282   :  { %5096 = vmatpush2.bf16.msra.mxu0 %v9493_v31 }
 0x283   :  { %5291 = vmatprep.subr.bf16.mxu0 %v9501_v11  ;;  %5187 = vmatpush1.bf16.msra.mxu1 %v9520_v30  ;;  %v10962_v30 = vrot.slane %v10956_v4, %v10349_v0 }
 0x284   :  { %5188 = vmatprep.subr.bf16.mxu1 %v9528_v50 }
 0x287   :  { %5189 = vmatpush1.bf16.msra.mxu1 %v9526_v37 }
 0x288   :  { %4011 = vmatmul.mubr.bf16.gmra.mxu1 %v10812_v8  ;;  %5190 = vmatprep.subr.bf16.mxu1 %v9534_v5  ;;  %v9538_v8 = vld [vmem:[#allocation10 + $0x200] ss:$16 sps:$4 sm:$0xff]  }
 0x289   :  { %4020 = vmatprep.mubr.bf16.mxu1 %v10820_v51  ;;  %v9544_v51 = vld [vmem:[#allocation10 + $0x3e0] ss:$16 sps:$4 sm:$0xff]  }
 0x28b   :  { %5191 = vmatpush1.bf16.msra.mxu1 %v9532_v27 }
 0x28c   :  { %5192 = vmatprep.subr.bf16.mxu1 %v9540_v32 }
 0x28f   :  { %5193 = vmatpush1.bf16.msra.mxu1 %v9538_v8 }
 0x290   :  { %4021 = vmatmul.mubr.bf16.gmra.mxu1 %v10836_v18  ;;  %5194 = vmatprep.subr.bf16.mxu1 %v9546_v22  ;;  %v9550_v18 = vld [vmem:[#allocation10 + $0x3c0] ss:$16 sps:$4 sm:$0xff]  }
 0x291   :  { %4030 = vmatprep.mubr.bf16.mxu1 %v10847_v7  ;;  %v9556_v7 = vld [vmem:[#allocation10 + $0x3a0] ss:$16 sps:$4 sm:$0xff]  }
 0x293   :  { %5195 = vmatpush2.bf16.msra.mxu1 %v9544_v51 }
 0x294   :  { %5196 = vmatprep.subr.bf16.mxu1 %v9552_v54 }
 0x297   :  { %5197 = vmatpush2.bf16.msra.mxu1 %v9550_v18 }
 0x298   :  { %4031 = vmatmul.mubr.bf16.gmra.mxu1 %v10858_v44  ;;  %5198 = vmatprep.subr.bf16.mxu1 %v9558_v23 }
 0x299   :  { %4040 = vmatprep.mubr.bf16.mxu1 %v10864_v62  ;;  %v9568_v62 = vld [vmem:[#allocation10 + $0x360] ss:$16 sps:$4 sm:$0xff]  }
 0x29b   :  { %5199 = vmatpush2.bf16.msra.mxu1 %v9556_v7 }
 0x29c   :  { %5200 = vmatprep.subr.bf16.mxu1 %v9564_v29 }
 0x29f   :  { %5201 = vmatpush2.bf16.msra.mxu1 %v9562_v3 }
 0x2a0   :  { %4041 = vmatmul.mubr.bf16.gmra.mxu1 %v10867_v14  ;;  %5202 = vmatprep.subr.bf16.mxu1 %v9570_v55 }
 0x2a3   :  { %5203 = vmatpush2.bf16.msra.mxu1 %v9568_v62 }
 0x2a4   :  { %5204 = vmatprep.subr.bf16.mxu1 %v9576_v6 }
 0x2a7   :  { %v3633_v44 = vpop.f32.mrf.mxu0  ;;  %5205 = vmatpush2.bf16.msra.mxu1 %v9574_v45 }
 0x2a8   :  { %5206 = vmatprep.subr.bf16.mxu1 %v9582_v41  ;;  %v3634_v51 = vadd.f32 %v3633_v44, %v10966_v34 }
 0x2a9   :  { %v3635_v46 = vpop.f32.mrf.mxu0 }
 0x2aa   :  { %v3636_v8 = vadd.f32 %v3635_v46, %v10962_v30 }
 0x2ab   :  { %v3637_v15 = vpop.f32.mrf.mxu0  ;;  %5207 = vmatpush2.bf16.msra.mxu1 %v9580_v17 }
 0x2ac   :  { %5208 = vmatprep.subr.bf16.mxu1 %v9588_v47  ;;  %v3638_v32 = vadd.f32 %v3637_v15, %v10966_v34 }
 0x2ad   :  { %v3639_v35 = vpop.f32.mrf.mxu0 }
 0x2ae   :  { %v3640_v18 = vadd.f32 %v3639_v35, %v10962_v30 }
 0x2af   :  { %v10899_v14 = vpop.f32.mrf.mxu0  ;;  %5209 = vmatpush2.bf16.msra.mxu1 %v9586_v13 }
 0x2b0   :  { %5404 = vmatprep.subr.bf16.mxu1 %v9594_v2  ;;  %v3644_v13 = vadd.f32 %v10899_v14, %v10966_v34 }
 0x2b1   :  { %v10901_v1 = vpop.f32.mrf.mxu0 }
 0x2b2   :  { %v3646_v35 = vadd.f32 %v10901_v1, %v10962_v30 }
 0x2b3   :  { %v10903_v40 = vpop.f32.mrf.mxu0 }
 0x2b4   :  { %v3648_v41 = vadd.f32 %v10903_v40, %v10966_v34  ;;  %v9499_v40 = vld [vmem:[#allocation10 + $0xe8] ss:$16 sps:$4 sm:$0xff]  }
 0x2b5   :  { %v10905_v25 = vpop.f32.mrf.mxu0 }
 0x2b7   :  { %v10907_v26 = vpop.f32.mrf.mxu0 }
 0x2b9   :  { %v10909_v43 = vpop.f32.mrf.mxu0 }
 0x2bb   :  { %v10911_v10 = vpop.f32.mrf.mxu0 }
 0x2bd   :  { %v10913_v21 = vpop.f32.mrf.mxu0 }
 0x2bf   :  { %v10915_v49 = vpop.f32.mrf.mxu0 }
 0x2c1   :  { %v10917_v61 = vpop.f32.mrf.mxu0 }
 0x2c3   :  { %v10919_v24 = vpop.f32.mrf.mxu0 }
 0x2c5   :  { %v10921_v19 = vpop.f32.mrf.mxu0 }
 0x2c7   :  { %v10923_v12 = vpop.f32.mrf.mxu0 }
 0x2c9   :  { %v10925_v33 = vpop.f32.mrf.mxu0 }
 0x2cb   :  { %v10927_v16 = vpop.f32.mrf.mxu0 }
 0x2cd   :  { %v10929_v38 = vpop.f32.mrf.mxu0 }
 0x2cf   :  { %v10931_v39 = vpop.f32.mrf.mxu0 }
 0x2d1   :  { %v10933_v28 = vpop.f32.mrf.mxu0 }
 0x2d3   :  { %v10935_v63 = vpop.f32.mrf.mxu0 }
 0x2d5   :  { %v10937_v42 = vpop.f32.mrf.mxu0 }
 0x2d7   :  { %v10939_v60 = vpop.f32.mrf.mxu0 }
 0x2d9   :  { %v10941_v9 = vpop.f32.mrf.mxu0 }
 0x2db   :  { %v10943_v53 = vpop.f32.mrf.mxu0 }
 0x2dd   :  { %v10945_v31 = vpop.f32.mrf.mxu0 }
 0x2df   :  { %v10947_v11 = vpop.f32.mrf.mxu0 }
 0x2e1   :  { %v10949_v48 = vpop.f32.mrf.mxu0 }
 0x2e3   :  { %v10951_v36 = vpop.f32.mrf.mxu0 }
 0x2e5   :  { %v10958_v52 = vpop.f32.mrf.mxu0 }
 0x2e7   :  { %v10968_v50 = vpop.f32.mrf.mxu0 }
 0x2e8   :  { %v3746_v37 = vpop.f32.mrf.mxu1 }
 0x2e9   :  { %v10970_v5 = vpop.f32.mrf.mxu0  ;;  %v3747_v23 = vadd.f32 %v3746_v37, %v3634_v51 }
 0x2ea   :  { %v3748_v27 = vpop.f32.mrf.mxu1 }
 0x2eb   :  { %v3749_v54 = vadd.f32 %v3748_v27, %v3636_v8  ;;  %v10976_v3 = vpop.f32.mrf.mxu0  ;;  %v4115_v17 = vmul.f32 0.2, %v3747_v23  ;;  %vm4051_vm3 = vcmp.gt.f32.partialorder %v3747_v23, 0.0  ;;  %v3650_v27 = vadd.f32 %v10905_v25, %v10962_v30 }
 0x2ec   :  { %v3750_v22 = vpop.f32.mrf.mxu1 }
 0x2ed   :  { %v3751_v7 = vadd.f32 %v3750_v22, %v3638_v32  ;;  %v4116_v6 = vmul.f32 0.2, %v3749_v54  ;;  %vm4052_vm2 = vcmp.gt.f32.partialorder %v3749_v54, 0.0  ;;  %v10978_v15 = vpop.f32.mrf.mxu0  ;;  %v4179_v22 = vsel %vm4051_vm3, %v3747_v23, %v4115_v17 }
 0x2ee   :  { %v3752_v29 = vpop.f32.mrf.mxu1  ;;  %v3656_v17 = vadd.f32 %v10909_v43, %v10962_v30 }
 0x2ef   :  { %v3753_v62 = vadd.f32 %v3752_v29, %v3640_v18  ;;  %v4119_v55 = vmul.f32 0.2, %v3751_v7  ;;  %vm4055_vm0 = vcmp.gt.f32.partialorder %v3751_v7, 0.0  ;;  %v4180_v51 = vsel %vm4052_vm2, %v3749_v54, %v4116_v6  ;;  %v10988_v29 = vpop.f32.mrf.mxu0 }
 0x2f0   :  { %v3756_v45 = vpop.f32.mrf.mxu1 }
 0x2f1   :  { %vm4056_vm1 = vcmp.gt.f32.partialorder %v3753_v62, 0.0  ;;  %v4120_v46 = vmul.f32 0.2, %v3753_v62  ;;  %v4183_v47 = vsel %vm4055_vm0, %v3751_v7, %v4119_v55  ;;  %v3757_v18 = vadd.f32 %v3756_v45, %v3644_v13  ;;  %v9507_v7 = vld [vmem:[#allocation10 + $0xcc] ss:$16 sps:$4 sm:$0xff]   ;;  %v10996_v45 = vpop.f32.mrf.mxu0 }
 0x2f2   :  { %v3758_v44 = vpop.f32.mrf.mxu1  ;;  %v10992_v58 = vpack.c.bf16 %v4183_v47, %v4179_v22 }
 0x2f3   :  { %v4184_v37 = vsel %vm4056_vm1, %v3753_v62, %v4120_v46  ;;  %v3759_v8 = vadd.f32 %v3758_v44, %v3646_v35  ;;  %v4123_v23 = vmul.f32 0.2, %v3757_v18  ;;  %v9505_v46 = vld [vmem:[#allocation10 + $0xc8] ss:$16 sps:$4 sm:$0xff]   ;;  %v3658_v44 = vadd.f32 %v10911_v10, %v10966_v34  ;;  %v9513_v35 = vld [vmem:[#allocation10 + $0xac] ss:$16 sps:$4 sm:$0xff]   ;;  %v11009_v22 = vpop.f32.mrf.mxu0 }
 0x2f4   :  { %v3760_v2 = vpop.f32.mrf.mxu1  ;;  %v10990_v20 = vpack.c.bf16 %v4184_v37, %v4180_v51  ;;  %vm4059_vm7 = vcmp.gt.f32.partialorder %v3757_v18, 0.0  ;;  %v3660_v37 = vadd.f32 %v10913_v21, %v10962_v30 }
 0x2f5   :  { %v3761_v32 = vadd.f32 %v3760_v2, %v3648_v41  ;;  %v4124_v25 = vmul.f32 0.2, %v3759_v8  ;;  %vm4060_vm6 = vcmp.gt.f32.partialorder %v3759_v8, 0.0  ;;  %v3654_v41 = vadd.f32 %v10907_v26, %v10966_v34 }
 0x2f6   :  { %v3762_v1 = vpop.f32.mrf.mxu1  ;;  %5097 = vmatprep.mubr.bf16.mxu0 %v10990_v20  ;;  %v4187_v26 = vsel %vm4059_vm7, %v3757_v18, %v4123_v23  ;;  %v9517_v23 = vld [vmem:[#allocation10 + $0x88] ss:$16 sps:$4 sm:$0xff]  }
 0x2f7   :  { %v3763_v14 = vadd.f32 %v3762_v1, %v3650_v27  ;;  %v4127_v55 = vmul.f32 0.2, %v3761_v32  ;;  %vm4063_vm4 = vcmp.gt.f32.partialorder %v3761_v32, 0.0  ;;  %5098 = vmatmul.mubr.bf16.vlgmr.msra.gmra.mxu0 %v10992_v58  ;;  %v4188_v43 = vsel %vm4060_vm6, %v3759_v8, %v4124_v25  ;;  %v11018_v25 = vpop.f32.mrf.mxu0 }
 0x2f8   :  { %v3766_v62 = vpop.f32.mrf.mxu1  ;;  %5292 = vmatpush1.bf16.msra.mxu0 %v9499_v40 }
 0x2f9   :  { %vm4064_vm5 = vcmp.gt.f32.partialorder %v3763_v14, 0.0  ;;  %v4128_v54 = vmul.f32 0.2, %v3763_v14  ;;  %5293 = vmatprep.subr.bf16.mxu0 %v9507_v7  ;;  %v4191_v2 = vsel %vm4063_vm4, %v3761_v32, %v4127_v55  ;;  %v3767_v10 = vadd.f32 %v3766_v62, %v3654_v41  ;;  %v9511_v7 = vld [vmem:[#allocation10 + $0xa8] ss:$16 sps:$4 sm:$0xff]  }
 0x2fa   :  { %v3768_v6 = vpop.f32.mrf.mxu1  ;;  %v9519_v32 = vld [vmem:[#allocation10 + $0x8c] ss:$16 sps:$4 sm:$0xff]  }
 0x2fb   :  { %v4192_v47 = vsel %vm4064_vm5, %v3763_v14, %v4128_v54  ;;  %v3769_v27 = vadd.f32 %v3768_v6, %v3656_v17  ;;  %v11014_v54 = vpack.c.bf16 %v4191_v2, %v4187_v26  ;;  %v4131_v6 = vmul.f32 0.2, %v3767_v10 }
 0x2fc   :  { %v3770_v13 = vpop.f32.mrf.mxu1  ;;  %5294 = vmatpush1.bf16.msra.mxu0 %v9505_v46  ;;  %v11011_v40 = vpack.c.bf16 %v4192_v47, %v4188_v43  ;;  %v3666_v46 = vadd.f32 %v10917_v61, %v10962_v30  ;;  %v3668_v17 = vadd.f32 %v10919_v24, %v10966_v34  ;;  %vm4067_vm11 = vcmp.gt.f32.partialorder %v3767_v10, 0.0 }
 0x2fd   :  { %v3771_v51 = vadd.f32 %v3770_v13, %v3658_v44  ;;  %5295 = vmatprep.subr.bf16.mxu0 %v9513_v35  ;;  %v4132_v8 = vmul.f32 0.2, %v3769_v27  ;;  %vm4068_vm10 = vcmp.gt.f32.partialorder %v3769_v27, 0.0  ;;  %v9525_v44 = vld [vmem:[#allocation10 + $0x6c] ss:$16 sps:$4 sm:$0xff]   ;;  %v3664_v35 = vadd.f32 %v10915_v49, %v10966_v34 }
 0x2fe   :  { %v3772_v1 = vpop.f32.mrf.mxu1  ;;  %5107 = vmatprep.mubr.bf16.mxu0 %v11011_v40  ;;  %v3670_v2 = vadd.f32 %v10921_v19, %v10962_v30  ;;  %v4195_v49 = vsel %vm4067_vm11, %v3767_v10, %v4131_v6  ;;  %v9529_v6 = vld [vmem:[#allocation10 + $0x48] ss:$16 sps:$4 sm:$0xff]  }
 0x2ff   :  { %v3773_v14 = vadd.f32 %v3772_v1, %v3660_v37  ;;  %v4135_v21 = vmul.f32 0.2, %v3771_v51  ;;  %vm4071_vm8 = vcmp.gt.f32.partialorder %v3771_v51, 0.0  ;;  %5108 = vmatmul.mubr.bf16.gmra.mxu0 %v11014_v54  ;;  %v4196_v61 = vsel %vm4068_vm10, %v3769_v27, %v4132_v8  ;;  %v11031_v1 = vpop.f32.mrf.mxu0 }
 0x300   :  { %v3776_v55 = vpop.f32.mrf.mxu1  ;;  %5296 = vmatpush1.bf16.msra.mxu0 %v9511_v7 }
 0x301   :  { %vm4072_vm9 = vcmp.gt.f32.partialorder %v3773_v14, 0.0  ;;  %v4136_v62 = vmul.f32 0.2, %v3773_v14  ;;  %5297 = vmatprep.subr.bf16.mxu0 %v9519_v32  ;;  %v4199_v47 = vsel %vm4071_vm8, %v3771_v51, %v4135_v21  ;;  %v3777_v24 = vadd.f32 %v3776_v55, %v3664_v35  ;;  %v9523_v32 = vld [vmem:[#allocation10 + $0x68] ss:$16 sps:$4 sm:$0xff]   ;;  %v11040_v8 = vpop.f32.mrf.mxu0 }
 0x302   :  { %v3778_v18 = vpop.f32.mrf.mxu1  ;;  %v9531_v51 = vld [vmem:[#allocation10 + $0x4c] ss:$16 sps:$4 sm:$0xff]  }
 0x303   :  { %v4200_v13 = vsel %vm4072_vm9, %v3773_v14, %v4136_v62  ;;  %v3779_v37 = vadd.f32 %v3778_v18, %v3666_v46  ;;  %v11036_v62 = vpack.c.bf16 %v4199_v47, %v4195_v49  ;;  %v4139_v18 = vmul.f32 0.2, %v3777_v24 }
 0x304   :  { %v3780_v41 = vpop.f32.mrf.mxu1  ;;  %5298 = vmatpush1.bf16.msra.mxu0 %v9517_v23  ;;  %v11033_v7 = vpack.c.bf16 %v4200_v13, %v4196_v61  ;;  %v3676_v23 = vadd.f32 %v10925_v33, %v10962_v30  ;;  %v3678_v46 = vadd.f32 %v10927_v16, %v10966_v34  ;;  %vm4075_vm15 = vcmp.gt.f32.partialorder %v3777_v24, 0.0 }
 0x305   :  { %v3781_v43 = vadd.f32 %v3780_v41, %v3668_v17  ;;  %5299 = vmatprep.subr.bf16.mxu0 %v9525_v44  ;;  %v4140_v27 = vmul.f32 0.2, %v3779_v37  ;;  %vm4076_vm14 = vcmp.gt.f32.partialorder %v3779_v37, 0.0  ;;  %v9537_v17 = vld [vmem:[#allocation10 + $0x2c] ss:$16 sps:$4 sm:$0xff]   ;;  %v3674_v44 = vadd.f32 %v10923_v12, %v10966_v34 }
 0x306   :  { %v3782_v26 = vpop.f32.mrf.mxu1  ;;  %5117 = vmatprep.mubr.bf16.mxu0 %v11033_v7  ;;  %v3680_v47 = vadd.f32 %v10929_v38, %v10962_v30  ;;  %v4203_v12 = vsel %vm4075_vm15, %v3777_v24, %v4139_v18  ;;  %v9541_v18 = vld [vmem:[#allocation10 + $0x8] ss:$16 sps:$4 sm:$0xff]  }
 0x307   :  { %v3783_v14 = vadd.f32 %v3782_v26, %v3670_v2  ;;  %v4143_v19 = vmul.f32 0.2, %v3781_v43  ;;  %vm4079_vm12 = vcmp.gt.f32.partialorder %v3781_v43, 0.0  ;;  %5118 = vmatmul.mubr.bf16.gmra.mxu0 %v11036_v62  ;;  %v4204_v33 = vsel %vm4076_vm14, %v3779_v37, %v4140_v27  ;;  %v11053_v26 = vpop.f32.mrf.mxu0 }
 0x308   :  { %v3786_v21 = vpop.f32.mrf.mxu1  ;;  %5300 = vmatpush1.bf16.msra.mxu0 %v9523_v32 }
 0x309   :  { %vm4080_vm13 = vcmp.gt.f32.partialorder %v3783_v14, 0.0  ;;  %v4144_v55 = vmul.f32 0.2, %v3783_v14  ;;  %5301 = vmatprep.subr.bf16.mxu0 %v9531_v51  ;;  %v4207_v13 = vsel %vm4079_vm12, %v3781_v43, %v4143_v19  ;;  %v3787_v16 = vadd.f32 %v3786_v21, %v3674_v44  ;;  %v9535_v51 = vld [vmem:[#allocation10 + $0x28] ss:$16 sps:$4 sm:$0xff]   ;;  %v11062_v27 = vpop.f32.mrf.mxu0 }
 0x30a   :  { %v3788_v10 = vpop.f32.mrf.mxu1  ;;  %v9543_v43 = vld [vmem:[#allocation10 + $0xc] ss:$16 sps:$4 sm:$0xff]  }
 0x30b   :  { %v4208_v41 = vsel %vm4080_vm13, %v3783_v14, %v4144_v55  ;;  %v3789_v2 = vadd.f32 %v3788_v10, %v3676_v23  ;;  %v11058_v55 = vpack.c.bf16 %v4207_v13, %v4203_v12  ;;  %v4147_v10 = vmul.f32 0.2, %v3787_v16 }
 0x30c   :  { %v3790_v35 = vpop.f32.mrf.mxu1  ;;  %5302 = vmatpush1.bf16.msra.mxu0 %v9529_v6  ;;  %v11055_v32 = vpack.c.bf16 %v4208_v41, %v4204_v33  ;;  %v3686_v6 = vadd.f32 %v10933_v28, %v10962_v30  ;;  %v3688_v23 = vadd.f32 %v10935_v63, %v10966_v34  ;;  %vm4083_vm3 = vcmp.gt.f32.partialorder %v3787_v16, 0.0 }
 0x30d   :  { %v3791_v61 = vadd.f32 %v3790_v35, %v3678_v46  ;;  %5303 = vmatprep.subr.bf16.mxu0 %v9537_v17  ;;  %v4148_v37 = vmul.f32 0.2, %v3789_v2  ;;  %vm4084_vm2 = vcmp.gt.f32.partialorder %v3789_v2, 0.0  ;;  %v9549_v46 = vld [vmem:[#allocation10 + $0x1ec] ss:$16 sps:$4 sm:$0xff]   ;;  %v3684_v17 = vadd.f32 %v10931_v39, %v10966_v34 }
 0x30e   :  { %v3792_v49 = vpop.f32.mrf.mxu1  ;;  %5127 = vmatprep.mubr.bf16.mxu0 %v11055_v32  ;;  %v3690_v13 = vadd.f32 %v10937_v42, %v10962_v30  ;;  %v4211_v39 = vsel %vm4083_vm3, %v3787_v16, %v4147_v10  ;;  %v9553_v10 = vld [vmem:[#allocation10 + $0x1c8] ss:$16 sps:$4 sm:$0xff]  }
 0x30f   :  { %v3793_v14 = vadd.f32 %v3792_v49, %v3680_v47  ;;  %v4151_v38 = vmul.f32 0.2, %v3791_v61  ;;  %vm4087_vm0 = vcmp.gt.f32.partialorder %v3791_v61, 0.0  ;;  %5128 = vmatmul.mubr.bf16.gmra.mxu0 %v11058_v55  ;;  %v4212_v28 = vsel %vm4084_vm2, %v3789_v2, %v4148_v37  ;;  %v11075_v49 = vpop.f32.mrf.mxu0 }
 0x310   :  { %v3796_v19 = vpop.f32.mrf.mxu1  ;;  %5304 = vmatpush1.bf16.msra.mxu0 %v9535_v51 }
 0x311   :  { %vm4088_vm1 = vcmp.gt.f32.partialorder %v3793_v14, 0.0  ;;  %v4152_v21 = vmul.f32 0.2, %v3793_v14  ;;  %5305 = vmatprep.subr.bf16.mxu0 %v9543_v43  ;;  %v4215_v41 = vsel %vm4087_vm0, %v3791_v61, %v4151_v38  ;;  %v3797_v63 = vadd.f32 %v3796_v19, %v3684_v17  ;;  %v9547_v43 = vld [vmem:[#allocation10 + $0x1e8] ss:$16 sps:$4 sm:$0xff]   ;;  %v11084_v37 = vpop.f32.mrf.mxu0 }
 0x312   :  { %v3798_v24 = vpop.f32.mrf.mxu1  ;;  %v9555_v61 = vld [vmem:[#allocation10 + $0x1cc] ss:$16 sps:$4 sm:$0xff]  }
 0x313   :  { %v4216_v35 = vsel %vm4088_vm1, %v3793_v14, %v4152_v21  ;;  %v3799_v47 = vadd.f32 %v3798_v24, %v3686_v6  ;;  %v11080_v21 = vpack.c.bf16 %v4215_v41, %v4211_v39  ;;  %v4155_v24 = vmul.f32 0.2, %v3797_v63 }
 0x314   :  { %v3800_v44 = vpop.f32.mrf.mxu1  ;;  %5306 = vmatpush1.bf16.msra.mxu0 %v9541_v18  ;;  %v11077_v51 = vpack.c.bf16 %v4216_v35, %v4212_v28  ;;  %v3696_v18 = vadd.f32 %v10941_v9, %v10962_v30  ;;  %v3698_v6 = vadd.f32 %v10943_v53, %v10966_v34  ;;  %vm4091_vm7 = vcmp.gt.f32.partialorder %v3797_v63, 0.0 }
 0x315   :  { %v3801_v33 = vadd.f32 %v3800_v44, %v3688_v23  ;;  %5307 = vmatprep.subr.bf16.mxu0 %v9549_v46  ;;  %v4156_v2 = vmul.f32 0.2, %v3799_v47  ;;  %vm4092_vm6 = vcmp.gt.f32.partialorder %v3799_v47, 0.0  ;;  %v9561_v23 = vld [vmem:[#allocation10 + $0x1ac] ss:$16 sps:$4 sm:$0xff]   ;;  %v3694_v46 = vadd.f32 %v10939_v60, %v10966_v34 }
 0x316   :  { %v3802_v12 = vpop.f32.mrf.mxu1  ;;  %5137 = vmatprep.mubr.bf16.mxu0 %v11077_v51  ;;  %v3700_v41 = vadd.f32 %v10945_v31, %v10962_v30  ;;  %v4219_v60 = vsel %vm4091_vm7, %v3797_v63, %v4155_v24  ;;  %v3706_v31 = vadd.f32 %v10949_v48, %v10962_v30  ;;  %v3704_v48 = vadd.f32 %v10947_v11, %v10966_v34 }
 0x317   :  { %v3803_v14 = vadd.f32 %v3802_v12, %v3690_v13  ;;  %v4159_v42 = vmul.f32 0.2, %v3801_v33  ;;  %vm4095_vm4 = vcmp.gt.f32.partialorder %v3801_v33, 0.0  ;;  %5138 = vmatmul.mubr.bf16.gmra.mxu0 %v11080_v21  ;;  %v4220_v9 = vsel %vm4092_vm6, %v3799_v47, %v4156_v2  ;;  %v11097_v12 = vpop.f32.mrf.mxu0 }
 0x318   :  { %v3806_v38 = vpop.f32.mrf.mxu1  ;;  %5308 = vmatpush2.bf16.msra.mxu0 %v9547_v43 }
 0x319   :  { %vm4096_vm5 = vcmp.gt.f32.partialorder %v3803_v14, 0.0  ;;  %v4160_v19 = vmul.f32 0.2, %v3803_v14  ;;  %5309 = vmatprep.subr.bf16.mxu0 %v9555_v61  ;;  %v4223_v35 = vsel %vm4095_vm4, %v3801_v33, %v4159_v42  ;;  %v3807_v53 = vadd.f32 %v3806_v38, %v3694_v46  ;;  %v9559_v61 = vld [vmem:[#allocation10 + $0x1a8] ss:$16 sps:$4 sm:$0xff]   ;;  %v11108_v63 = vpop.f32.mrf.mxu0 }
 0x31a   :  { %v3808_v16 = vpop.f32.mrf.mxu1  ;;  %v9567_v33 = vld [vmem:[#allocation10 + $0x18c] ss:$16 sps:$4 sm:$0xff]   ;;  %v11116_v46 = vrot.slane %v10956_v4, %v10345_v57 }
 0x31b   :  { %v4224_v44 = vsel %vm4096_vm5, %v3803_v14, %v4160_v19  ;;  %v3809_v13 = vadd.f32 %v3808_v16, %v3696_v18  ;;  %v11102_v19 = vpack.c.bf16 %v4223_v35, %v4219_v60  ;;  %v4163_v24 = vmul.f32 0.2, %v3807_v53 }
 0x31c   :  { %v3810_v17 = vpop.f32.mrf.mxu1  ;;  %5310 = vmatpush2.bf16.msra.mxu0 %v9553_v10  ;;  %v11099_v43 = vpack.c.bf16 %v4224_v44, %v4220_v9  ;;  %v9565_v10 = vld [vmem:[#allocation10 + $0x188] ss:$16 sps:$4 sm:$0xff]   ;;  %v3708_v18 = vadd.f32 %v10951_v36, %v10966_v34  ;;  %vm4099_vm11 = vcmp.gt.f32.partialorder %v3807_v53, 0.0  ;;  %v11125_v34 = vrot.slane %v10956_v4, %v10343_v56 }
 0x31d   :  { %v3811_v28 = vadd.f32 %v3810_v17, %v3698_v6  ;;  %5311 = vmatprep.subr.bf16.mxu0 %v9561_v23  ;;  %v4164_v38 = vmul.f32 0.2, %v3809_v13  ;;  %vm4100_vm10 = vcmp.gt.f32.partialorder %v3809_v13, 0.0  ;;  %v9573_v23 = vld [vmem:[#allocation10 + $0x16c] ss:$16 sps:$4 sm:$0xff]  }
 0x31e   :  { %v3812_v39 = vpop.f32.mrf.mxu1  ;;  %5147 = vmatprep.mubr.bf16.mxu0 %v11099_v43 }
 0x31f   :  { %v3813_v14 = vadd.f32 %v3812_v39, %v3700_v41  ;;  %v4167_v42 = vmul.f32 0.2, %v3811_v28  ;;  %vm4103_vm8 = vcmp.gt.f32.partialorder %v3811_v28, 0.0  ;;  %5148 = vmatmul.mubr.bf16.gmra.mxu0 %v11102_v19  ;;  %v3710_v41 = vadd.f32 %v10958_v52, %v10962_v30  ;;  %v11127_v39 = vpop.f32.mrf.mxu0 }
 0x320   :  { %v3816_v47 = vpop.f32.mrf.mxu1  ;;  %5312 = vmatpush2.bf16.msra.mxu0 %v9559_v61  ;;  %v4228_v36 = vsel %vm4100_vm10, %v3809_v13, %v4164_v38  ;;  %v9579_v13 = vld [vmem:[#allocation10 + $0x14c] ss:$16 sps:$4 sm:$0xff]  }
 0x321   :  { %vm4104_vm9 = vcmp.gt.f32.partialorder %v3813_v14, 0.0  ;;  %v4168_v2 = vmul.f32 0.2, %v3813_v14  ;;  %5313 = vmatprep.subr.bf16.mxu0 %v9567_v33  ;;  %v4231_v35 = vsel %vm4103_vm8, %v3811_v28, %v4167_v42  ;;  %v3817_v11 = vadd.f32 %v3816_v47, %v3704_v48  ;;  %v9571_v28 = vld [vmem:[#allocation10 + $0x168] ss:$16 sps:$4 sm:$0xff]  }
 0x322   :  { %v3818_v16 = vpop.f32.mrf.mxu1  ;;  %v3862_v42 = vadd.f32 %v10970_v5, %v11116_v46 }
 0x323   :  { %v3819_v6 = vadd.f32 %v3818_v16, %v3706_v31  ;;  %v4232_v44 = vsel %vm4104_vm9, %v3813_v14, %v4168_v2  ;;  %v4227_v14 = vsel %vm4099_vm11, %v3807_v53, %v4163_v24  ;;  %v4171_v47 = vmul.f32 0.2, %v3817_v11  ;;  %v11142_v24 = vpop.f32.mrf.mxu0 }
 0x324   :  { %v3820_v17 = vpop.f32.mrf.mxu1  ;;  %5314 = vmatpush2.bf16.msra.mxu0 %v9565_v10  ;;  %v11129_v61 = vpack.c.bf16 %v4232_v44, %v4228_v36  ;;  %v11132_v30 = vpack.c.bf16 %v4231_v35, %v4227_v14  ;;  %v3860_v53 = vadd.f32 %v10968_v50, %v11125_v34  ;;  %v3864_v2 = vadd.f32 %v10976_v3, %v11125_v34  ;;  %v9577_v10 = vld [vmem:[#allocation10 + $0x148] ss:$16 sps:$4 sm:$0xff]  }
 0x325   :  { %v3821_v9 = vadd.f32 %v3820_v17, %v3708_v18  ;;  %v4172_v33 = vmul.f32 0.2, %v3819_v6  ;;  %5315 = vmatprep.subr.bf16.mxu0 %v9573_v23  ;;  %vm4108_vm12 = vcmp.gt.f32.partialorder %v3819_v6, 0.0  ;;  %vm4107_vm15 = vcmp.gt.f32.partialorder %v3817_v11, 0.0  ;;  %v9585_v17 = vld [vmem:[#allocation10 + $0x12c] ss:$16 sps:$4 sm:$0xff]  }
 0x326   :  { %v3822_v60 = vpop.f32.mrf.mxu1  ;;  %5157 = vmatprep.mubr.bf16.mxu0 %v11129_v61  ;;  %v3866_v3 = vadd.f32 %v10978_v15, %v11116_v46  ;;  %v4235_v36 = vsel %vm4107_vm15, %v3817_v11, %v4171_v47  ;;  %v3872_v11 = vadd.f32 %v10996_v45, %v11116_v46 }
 0x327   :  { %v4175_v31 = vmul.f32 0.2, %v3821_v9  ;;  %v3823_v52 = vadd.f32 %v3822_v60, %v3710_v41  ;;  %vm4111_vm13 = vcmp.gt.f32.partialorder %v3821_v9, 0.0  ;;  %5158 = vmatmul.mubr.bf16.gmra.mxu0 %v11132_v30  ;;  %v4236_v5 = vsel %vm4108_vm12, %v3819_v6, %v4172_v33  ;;  %v11150_v60 = vpop.f32.mrf.mxu0 }
 0x328   :  { %v3972_v4 = vpop.f32.mrf.mxu1  ;;  %5316 = vmatpush2.bf16.msra.mxu0 %v9571_v28  ;;  %v9583_v28 = vld [vmem:[#allocation10 + $0x128] ss:$16 sps:$4 sm:$0xff]  }
 0x329   :  { %vm4112_vm14 = vcmp.gt.f32.partialorder %v3823_v52, 0.0  ;;  %v4176_v38 = vmul.f32 0.2, %v3823_v52  ;;  %5317 = vmatprep.subr.bf16.mxu0 %v9579_v13  ;;  %v4239_v23 = vsel %vm4111_vm13, %v3821_v9, %v4175_v31  ;;  %v3973_v44 = vadd.f32 %v3972_v4, %v3860_v53  ;;  %v9591_v9 = vld [vmem:[#allocation10 + $0x10c] ss:$16 sps:$4 sm:$0xff]   ;;  %v11160_v47 = vpop.f32.mrf.mxu0 }
 0x32a   :  { %v3974_v16 = vpop.f32.mrf.mxu1  ;;  %v11153_v6 = vpack.c.bf16 %v4239_v23, %v4235_v36  ;;  %v9597_v36 = vld [vmem:[#allocation10 + $0x2cc] ss:$16 sps:$4 sm:$0xff]  }
 0x32b   :  { %v3975_v48 = vadd.f32 %v3974_v16, %v3862_v42  ;;  %v4240_v18 = vsel %vm4112_vm14, %v3823_v52, %v4176_v38  ;;  %v4117_v13 = vmul.f32 0.2, %v3973_v44  ;;  %vm4053_vm2 = vcmp.gt.f32.partialorder %v3973_v44, 0.0 }
 0x32c   :  { %v3976_v35 = vpop.f32.mrf.mxu1  ;;  %v11146_v50 = vpack.c.bf16 %v4240_v18, %v4236_v5  ;;  %5318 = vmatpush2.bf16.msra.mxu0 %v9577_v10  ;;  %v3870_v42 = vadd.f32 %v10988_v29, %v11125_v34  ;;  %v3874_v16 = vadd.f32 %v11009_v22, %v11125_v34  ;;  %v11173_v22 = vpop.f32.mrf.mxu0 }
 0x32d   :  { %v3977_v41 = vadd.f32 %v3976_v35, %v3864_v2  ;;  %v4118_v33 = vmul.f32 0.2, %v3975_v48  ;;  %5319 = vmatprep.subr.bf16.mxu0 %v9585_v17  ;;  %vm4054_vm1 = vcmp.gt.f32.partialorder %v3975_v48, 0.0  ;;  %v9589_v2 = vld [vmem:[#allocation10 + $0x108] ss:$16 sps:$4 sm:$0xff]   ;;  %v4181_v18 = vsel %vm4053_vm2, %v3973_v44, %v4117_v13 }
 0x32e   :  { %v3978_v14 = vpop.f32.mrf.mxu1  ;;  %5167 = vmatprep.mubr.bf16.mxu0 %v11146_v50  ;;  %v9592_v35 = vld [vmem:[#allocation10 + $0x2e8] ss:$16 sps:$4 sm:$0xff]   ;;  %v9600_v13 = vld [vmem:[#allocation10 + $0x2ac] ss:$16 sps:$4 sm:$0xff]  }
 0x32f   :  { %vm4057_vm0 = vcmp.gt.f32.partialorder %v3977_v41, 0.0  ;;  %v4121_v31 = vmul.f32 0.2, %v3977_v41  ;;  %v3979_v52 = vadd.f32 %v3978_v14, %v3866_v3  ;;  %5168 = vmatmul.mubr.bf16.gmra.mxu0 %v11153_v6  ;;  %v4182_v10 = vsel %vm4054_vm1, %v3975_v48, %v4118_v33  ;;  %v9595_v33 = vld [vmem:[#allocation10 + $0x2c8] ss:$16 sps:$4 sm:$0xff]  }
 0x330   :  { %v3982_v15 = vpop.f32.mrf.mxu1  ;;  %5320 = vmatpush2.bf16.msra.mxu0 %v9583_v28  ;;  %5323 = vmatprep.mubr.bf16.mxu0 %v10990_v20  ;;  %v3876_v20 = vadd.f32 %v11018_v25, %v11116_v46 }
 0x331   :  { %vm4058_vm3 = vcmp.gt.f32.partialorder %v3979_v52, 0.0  ;;  %v4122_v4 = vmul.f32 0.2, %v3979_v52  ;;  %v4185_v38 = vsel %vm4057_vm0, %v3977_v41, %v4121_v31  ;;  %5321 = vmatprep.subr.bf16.mxu0 %v9591_v9  ;;  %v3983_v23 = vadd.f32 %v3982_v15, %v3870_v42 }
 0x332   :  { %v3984_v53 = vpop.f32.mrf.mxu1  ;;  %v11171_v3 = vpack.c.bf16 %v4185_v38, %v4181_v18  ;;  %v3882_v31 = vadd.f32 %v11040_v8, %v11116_v46  ;;  %v3880_v15 = vadd.f32 %v11031_v1, %v11125_v34  ;;  %v3884_v8 = vadd.f32 %v11053_v26, %v11125_v34  ;;  %v9598_v1 = vld [vmem:[#allocation10 + $0x2a8] ss:$16 sps:$4 sm:$0xff]   ;;  %v9603_v26 = vld [vmem:[#allocation10 + $0x28c] ss:$16 sps:$4 sm:$0xff]  }
 0x333   :  { %v3985_v45 = vadd.f32 %v3984_v53, %v3872_v11  ;;  %v4186_v5 = vsel %vm4058_vm3, %v3979_v52, %v4122_v4  ;;  %v4125_v9 = vmul.f32 0.2, %v3983_v23  ;;  %vm4061_vm6 = vcmp.gt.f32.partialorder %v3983_v23, 0.0  ;;  %v11182_v11 = vpop.f32.mrf.mxu0 }
 0x334   :  { %v3986_v29 = vpop.f32.mrf.mxu1  ;;  %v11167_v17 = vpack.c.bf16 %v4186_v5, %v4182_v10  ;;  %5322 = vmatpush2.bf16.msra.mxu0 %v9589_v2 }
 0x335   :  { %v3987_v41 = vadd.f32 %v3986_v29, %v3874_v16  ;;  %v4126_v48 = vmul.f32 0.2, %v3985_v45  ;;  %vm4062_vm5 = vcmp.gt.f32.partialorder %v3985_v45, 0.0  ;;  %v4189_v5 = vsel %vm4061_vm6, %v3983_v23, %v4125_v9 }
 0x336   :  { %v3988_v14 = vpop.f32.mrf.mxu1  ;;  %5210 = vmatprep.mubr.bf16.mxu1 %v11167_v17  ;;  %v3890_v9 = vadd.f32 %v11075_v49, %v11125_v34  ;;  %v9604_v49 = vld [vmem:[#allocation10 + $0x268] ss:$16 sps:$4 sm:$0xff]  }
 0x337   :  { %vm4065_vm4 = vcmp.gt.f32.partialorder %v3987_v41, 0.0  ;;  %v4129_v44 = vmul.f32 0.2, %v3987_v41  ;;  %v3989_v28 = vadd.f32 %v3988_v14, %v3876_v20  ;;  %5211 = vmatmul.mubr.bf16.vlgmr.msra.gmra.mxu1 %v11171_v3  ;;  %5324 = vmatmul.mubr.bf16.vlgmr.msra.gmra.mxu0 %v10992_v58  ;;  %v4190_v53 = vsel %vm4062_vm5, %v3985_v45, %v4126_v48  ;;  %v9601_v14 = vld [vmem:[#allocation10 + $0x288] ss:$16 sps:$4 sm:$0xff]  }
 0x338   :  { %5405 = vmatpush1.bf16.msra.mxu1 %v9592_v35  ;;  %v3992_v25 = vpop.f32.mrf.mxu1  ;;  %5333 = vmatprep.mubr.bf16.mxu0 %v11011_v40  ;;  %v3886_v40 = vadd.f32 %v11062_v27, %v11116_v46  ;;  %v11196_v35 = vpop.f32.mrf.mxu0  ;;  %v3892_v48 = vadd.f32 %v11084_v37, %v11116_v46  ;;  %v3894_v37 = vadd.f32 %v11097_v12, %v11125_v34  ;;  %v9609_v12 = vld [vmem:[#allocation10 + $0x24c] ss:$16 sps:$4 sm:$0xff]  }
 0x339   :  { %vm4066_vm7 = vcmp.gt.f32.partialorder %v3989_v28, 0.0  ;;  %v4130_v52 = vmul.f32 0.2, %v3989_v28  ;;  %5406 = vmatprep.subr.bf16.mxu1 %v9597_v36  ;;  %v4193_v42 = vsel %vm4065_vm4, %v3987_v41, %v4129_v44  ;;  %v3993_v58 = vadd.f32 %v3992_v25, %v3880_v15 }
 0x33a   :  { %v3994_v4 = vpop.f32.mrf.mxu1  ;;  %v11194_v29 = vpack.c.bf16 %v4193_v42, %v4189_v5  ;;  %v11205_v25 = vpop.f32.mrf.mxu0 }
 0x33b   :  { %v3995_v38 = vadd.f32 %v3994_v4, %v3882_v31  ;;  %v4194_v2 = vsel %vm4066_vm7, %v3989_v28, %v4130_v52  ;;  %v4133_v23 = vmul.f32 0.2, %v3993_v58  ;;  %vm4069_vm10 = vcmp.gt.f32.partialorder %v3993_v58, 0.0  ;;  %v9606_v28 = vld [vmem:[#allocation10 + $0x26c] ss:$16 sps:$4 sm:$0xff]  }
 0x33c   :  { %5407 = vmatpush1.bf16.msra.mxu1 %v9595_v33  ;;  %v3996_v16 = vpop.f32.mrf.mxu1  ;;  %v11189_v10 = vpack.c.bf16 %v4194_v2, %v4190_v53 }
 0x33d   :  { %v3997_v18 = vadd.f32 %v3996_v16, %v3884_v8  ;;  %5408 = vmatprep.subr.bf16.mxu1 %v9600_v13  ;;  %v4134_v20 = vmul.f32 0.2, %v3995_v38  ;;  %vm4070_vm9 = vcmp.gt.f32.partialorder %v3995_v38, 0.0  ;;  %v4197_v8 = vsel %vm4069_vm10, %v3993_v58, %v4133_v23  ;;  %v11219_v16 = vpop.f32.mrf.mxu0 }
 0x33e   :  { %v3998_v45 = vpop.f32.mrf.mxu1  ;;  %5220 = vmatprep.mubr.bf16.mxu1 %v11189_v10 }
 0x33f   :  { %vm4073_vm8 = vcmp.gt.f32.partialorder %v3997_v18, 0.0  ;;  %v4137_v41 = vmul.f32 0.2, %v3997_v18  ;;  %v3999_v36 = vadd.f32 %v3998_v45, %v3886_v40  ;;  %5221 = vmatmul.mubr.bf16.gmra.mxu1 %v11194_v29  ;;  %5334 = vmatmul.mubr.bf16.gmra.mxu0 %v11014_v54  ;;  %v4198_v13 = vsel %vm4070_vm9, %v3995_v38, %v4134_v20  ;;  %v9612_v20 = vld [vmem:[#allocation10 + $0x22c] ss:$16 sps:$4 sm:$0xff]  }
 0x340   :  { %5409 = vmatpush1.bf16.msra.mxu1 %v9598_v1  ;;  %v4002_v27 = vpop.f32.mrf.mxu1  ;;  %5343 = vmatprep.mubr.bf16.mxu0 %v11033_v7  ;;  %v3896_v7 = vadd.f32 %v11108_v63, %v11116_v46 }
 0x341   :  { %vm4074_vm11 = vcmp.gt.f32.partialorder %v3999_v36, 0.0  ;;  %v4138_v44 = vmul.f32 0.2, %v3999_v36  ;;  %5410 = vmatprep.subr.bf16.mxu1 %v9603_v26  ;;  %v4201_v31 = vsel %vm4073_vm8, %v3997_v18, %v4137_v41  ;;  %v4003_v54 = vadd.f32 %v4002_v27, %v3890_v9  ;;  %v9607_v18 = vld [vmem:[#allocation10 + $0x248] ss:$16 sps:$4 sm:$0xff]  }
 0x342   :  { %v4004_v33 = vpop.f32.mrf.mxu1  ;;  %v11217_v2 = vpack.c.bf16 %v4201_v31, %v4197_v8  ;;  %v3902_v26 = vadd.f32 %v11142_v24, %v11116_v46  ;;  %v3900_v41 = vadd.f32 %v11127_v39, %v11125_v34  ;;  %v3904_v24 = vadd.f32 %v11150_v60, %v11125_v34  ;;  %v9610_v39 = vld [vmem:[#allocation10 + $0x228] ss:$16 sps:$4 sm:$0xff]   ;;  %v9615_v60 = vld [vmem:[#allocation10 + $0x20c] ss:$16 sps:$4 sm:$0xff]  }
 0x343   :  { %v4005_v52 = vadd.f32 %v4004_v33, %v3892_v48  ;;  %v4202_v15 = vsel %vm4074_vm11, %v3999_v36, %v4138_v44  ;;  %v4141_v58 = vmul.f32 0.2, %v4003_v54  ;;  %vm4077_vm14 = vcmp.gt.f32.partialorder %v4003_v54, 0.0  ;;  %v11228_v36 = vpop.f32.mrf.mxu0  ;;  %v9613_v8 = vld [vmem:[#allocation10 + $0x208] ss:$16 sps:$4 sm:$0xff]  }
 0x344   :  { %5411 = vmatpush1.bf16.msra.mxu1 %v9601_v14  ;;  %v4006_v4 = vpop.f32.mrf.mxu1  ;;  %v11212_v42 = vpack.c.bf16 %v4202_v15, %v4198_v13 }
 0x345   :  { %v4007_v53 = vadd.f32 %v4006_v4, %v3894_v37  ;;  %5412 = vmatprep.subr.bf16.mxu1 %v9606_v28  ;;  %v4142_v1 = vmul.f32 0.2, %v4005_v52  ;;  %vm4078_vm13 = vcmp.gt.f32.partialorder %v4005_v52, 0.0  ;;  %v4205_v33 = vsel %vm4077_vm14, %v4003_v54, %v4141_v58  ;;  %v11242_v13 = vpop.f32.mrf.mxu0 }
 0x346   :  { %v4008_v38 = vpop.f32.mrf.mxu1  ;;  %5230 = vmatprep.mubr.bf16.mxu1 %v11212_v42  ;;  %v3914_v58 = vadd.f32 %v11196_v35, %v11125_v34  ;;  %v9621_v35 = vld [vmem:[#allocation10 + $0x3cc] ss:$16 sps:$4 sm:$0xff]  }
 0x347   :  { %vm4081_vm12 = vcmp.gt.f32.partialorder %v4007_v53, 0.0  ;;  %v4145_v5 = vmul.f32 0.2, %v4007_v53  ;;  %v4009_v40 = vadd.f32 %v4008_v38, %v3896_v7  ;;  %5231 = vmatmul.mubr.bf16.gmra.mxu1 %v11217_v2  ;;  %5344 = vmatmul.mubr.bf16.gmra.mxu0 %v11036_v62  ;;  %v4206_v48 = vsel %vm4078_vm13, %v4005_v52, %v4142_v1  ;;  %v3925_v1 = vpop.f32.mrf.mxu0 }
 0x348   :  { %5413 = vmatpush1.bf16.msra.mxu1 %v9604_v49  ;;  %v4012_v63 = vpop.f32.mrf.mxu1  ;;  %5353 = vmatprep.mubr.bf16.mxu0 %v11055_v32  ;;  %v3906_v32 = vadd.f32 %v11160_v47, %v11116_v46  ;;  %v3912_v7 = vadd.f32 %v11182_v11, %v11116_v46  ;;  %v3910_v38 = vadd.f32 %v11173_v22, %v11125_v34 }
 0x349   :  { %vm4082_vm15 = vcmp.gt.f32.partialorder %v4009_v40, 0.0  ;;  %v4146_v45 = vmul.f32 0.2, %v4009_v40  ;;  %5414 = vmatprep.subr.bf16.mxu1 %v9609_v12  ;;  %v4209_v27 = vsel %vm4081_vm12, %v4007_v53, %v4145_v5  ;;  %v4013_v62 = vadd.f32 %v4012_v63, %v3900_v41  ;;  %v9618_v12 = vld [vmem:[#allocation10 + $0x3ec] ss:$16 sps:$4 sm:$0xff]  }
 0x34a   :  { %v4014_v23 = vpop.f32.mrf.mxu1  ;;  %v11240_v37 = vpack.c.bf16 %v4209_v27, %v4205_v33  ;;  %v3929_v27 = vpop.f32.mrf.mxu0 }
 0x34b   :  { %v4015_v14 = vadd.f32 %v4014_v23, %v3902_v26  ;;  %v4210_v44 = vsel %vm4082_vm15, %v4009_v40, %v4146_v45  ;;  %v4149_v54 = vmul.f32 0.2, %v4013_v62  ;;  %vm4085_vm2 = vcmp.gt.f32.partialorder %v4013_v62, 0.0 }
 0x34c   :  { %5415 = vmatpush1.bf16.msra.mxu1 %v9607_v18  ;;  %v4016_v28 = vpop.f32.mrf.mxu1  ;;  %v11235_v9 = vpack.c.bf16 %v4210_v44, %v4206_v48 }
 0x34d   :  { %v4017_v31 = vadd.f32 %v4016_v28, %v3904_v24  ;;  %5416 = vmatprep.subr.bf16.mxu1 %v9612_v20  ;;  %v4150_v15 = vmul.f32 0.2, %v4015_v14  ;;  %vm4086_vm1 = vcmp.gt.f32.partialorder %v4015_v14, 0.0  ;;  %v9616_v20 = vld [vmem:[#allocation10 + $0x3e8] ss:$16 sps:$4 sm:$0xff]   ;;  %v4213_v22 = vsel %vm4085_vm2, %v4013_v62, %v4149_v54 }
 0x34e   :  { %v4018_v52 = vpop.f32.mrf.mxu1  ;;  %5240 = vmatprep.mubr.bf16.mxu1 %v11235_v9 }
 0x34f   :  { %vm4089_vm0 = vcmp.gt.f32.partialorder %v4017_v31, 0.0  ;;  %v4153_v4 = vmul.f32 0.2, %v4017_v31  ;;  %v4019_v49 = vadd.f32 %v4018_v52, %v3906_v32  ;;  %5241 = vmatmul.mubr.bf16.gmra.mxu1 %v11240_v37  ;;  %5354 = vmatmul.mubr.bf16.gmra.mxu0 %v11058_v55  ;;  %v4214_v63 = vsel %vm4086_vm1, %v4015_v14, %v4150_v15  ;;  %v9624_v32 = vld [vmem:[#allocation10 + $0x3ac] ss:$16 sps:$4 sm:$0xff]  }
 0x350   :  { %5417 = vmatpush1.bf16.msra.mxu1 %v9610_v39  ;;  %v4022_v47 = vpop.f32.mrf.mxu1  ;;  %5363 = vmatprep.mubr.bf16.mxu0 %v11077_v51  ;;  %v3916_v51 = vadd.f32 %v11205_v25, %v11116_v46  ;;  %v9619_v25 = vld [vmem:[#allocation10 + $0x3c8] ss:$16 sps:$4 sm:$0xff]   ;;  %v3922_v39 = vadd.f32 %v11228_v36, %v11116_v46 }
 0x351   :  { %vm4090_vm3 = vcmp.gt.f32.partialorder %v4019_v49, 0.0  ;;  %v4154_v53 = vmul.f32 0.2, %v4019_v49  ;;  %5418 = vmatprep.subr.bf16.mxu1 %v9615_v60  ;;  %v4217_v40 = vsel %vm4089_vm0, %v4017_v31, %v4153_v4  ;;  %v4023_v26 = vadd.f32 %v4022_v47, %v3910_v38  ;;  %v3931_v60 = vpop.f32.mrf.mxu0  ;;  %v9627_v38 = vld [vmem:[#allocation10 + $0x38c] ss:$16 sps:$4 sm:$0xff]  }
 0x352   :  { %v4024_v5 = vpop.f32.mrf.mxu1  ;;  %v11261_v23 = vpack.c.bf16 %v4217_v40, %v4213_v22  ;;  %v3920_v31 = vadd.f32 %v11219_v16, %v11125_v34  ;;  %v3924_v4 = vadd.f32 %v11242_v13, %v11125_v34  ;;  %v3930_v22 = vadd.f32 %v3929_v27, %v11125_v34 }
 0x353   :  { %v4025_v11 = vadd.f32 %v4024_v5, %v3912_v7  ;;  %v4218_v18 = vsel %vm4090_vm3, %v4019_v49, %v4154_v53  ;;  %v4157_v28 = vmul.f32 0.2, %v4023_v26  ;;  %vm4093_vm6 = vcmp.gt.f32.partialorder %v4023_v26, 0.0  ;;  %v9622_v7 = vld [vmem:[#allocation10 + $0x3a8] ss:$16 sps:$4 sm:$0xff]   ;;  %v3933_v13 = vpop.f32.mrf.mxu0 }
 0x354   :  { %5419 = vmatpush1.bf16.msra.mxu1 %v9613_v8  ;;  %v4026_v55 = vpop.f32.mrf.mxu1  ;;  %v11256_v45 = vpack.c.bf16 %v4218_v18, %v4214_v63 }
 0x355   :  { %v4027_v41 = vadd.f32 %v4026_v55, %v3914_v58  ;;  %5420 = vmatprep.subr.bf16.mxu1 %v9618_v12  ;;  %v4158_v14 = vmul.f32 0.2, %v4025_v11  ;;  %vm4094_vm5 = vcmp.gt.f32.partialorder %v4025_v11, 0.0  ;;  %v4221_v16 = vsel %vm4093_vm6, %v4023_v26, %v4157_v28 }
 0x356   :  { %v4028_v24 = vpop.f32.mrf.mxu1  ;;  %5250 = vmatprep.mubr.bf16.mxu1 %v11256_v45  ;;  %v3932_v26 = vadd.f32 %v3931_v60, %v11116_v46 }
 0x357   :  { %vm4097_vm4 = vcmp.gt.f32.partialorder %v4027_v41, 0.0  ;;  %v4161_v48 = vmul.f32 0.2, %v4027_v41  ;;  %v4029_v44 = vadd.f32 %v4028_v24, %v3916_v51  ;;  %5251 = vmatmul.mubr.bf16.gmra.mxu1 %v11261_v23  ;;  %5364 = vmatmul.mubr.bf16.gmra.mxu0 %v11080_v21  ;;  %v4222_v49 = vsel %vm4094_vm5, %v4025_v11, %v4158_v14  ;;  %v3935_v51 = vpop.f32.mrf.mxu0 }
 0x358   :  { %5421 = vmatpush2.bf16.msra.mxu1 %v9616_v20  ;;  %v4032_v62 = vpop.f32.mrf.mxu1  ;;  %5373 = vmatprep.mubr.bf16.mxu0 %v11099_v43  ;;  %v3926_v43 = vadd.f32 %v3925_v1, %v11116_v46  ;;  %v9625_v1 = vld [vmem:[#allocation10 + $0x388] ss:$16 sps:$4 sm:$0xff]   ;;  %v9630_v20 = vld [vmem:[#allocation10 + $0x36c] ss:$16 sps:$4 sm:$0xff]   ;;  %v3934_v24 = vadd.f32 %v3933_v13, %v11125_v34  ;;  %v3936_v27 = vadd.f32 %v3935_v51, %v11116_v46  ;;  %v9666_v51 = vld [vmem:[#allocation13 + $0x1e4] ss:$16 sps:$4 sm:$0xff]  }
 0x359   :  { %vm4098_vm7 = vcmp.gt.f32.partialorder %v4029_v44, 0.0  ;;  %v4162_v33 = vmul.f32 0.2, %v4029_v44  ;;  %5422 = vmatprep.subr.bf16.mxu1 %v9621_v35  ;;  %v4225_v15 = vsel %vm4097_vm4, %v4027_v41, %v4161_v48  ;;  %v4033_v47 = vadd.f32 %v4032_v62, %v3920_v31  ;;  %v9636_v46 = vld [vmem:[#allocation10 + $0x32c] ss:$16 sps:$4 sm:$0xff]  }
 0x35a   :  { %v4034_v52 = vpop.f32.mrf.mxu1  ;;  %v11279_v12 = vpack.c.bf16 %v4225_v15, %v4221_v16 }
 0x35b   :  { %v4035_v36 = vadd.f32 %v4034_v52, %v3922_v39  ;;  %v4226_v54 = vsel %vm4098_vm7, %v4029_v44, %v4162_v33  ;;  %v4165_v63 = vmul.f32 0.2, %v4033_v47  ;;  %vm4101_vm10 = vcmp.gt.f32.partialorder %v4033_v47, 0.0 }
 0x35c   :  { %5423 = vmatpush2.bf16.msra.mxu1 %v9619_v25  ;;  %v4036_v21 = vpop.f32.mrf.mxu1  ;;  %v11275_v8 = vpack.c.bf16 %v4226_v54, %v4222_v49  ;;  %v9628_v25 = vld [vmem:[#allocation10 + $0x368] ss:$16 sps:$4 sm:$0xff]  }
 0x35d   :  { %v4037_v53 = vadd.f32 %v4036_v21, %v3924_v4  ;;  %5424 = vmatprep.subr.bf16.mxu1 %v9624_v32  ;;  %v4166_v40 = vmul.f32 0.2, %v4035_v36  ;;  %vm4102_vm9 = vcmp.gt.f32.partialorder %v4035_v36, 0.0  ;;  %v4229_v39 = vsel %vm4101_vm10, %v4033_v47, %v4165_v63  ;;  %v9633_v32 = vld [vmem:[#allocation10 + $0x34c] ss:$16 sps:$4 sm:$0xff]  }
 0x35e   :  { %v4038_v5 = vpop.f32.mrf.mxu1  ;;  %5260 = vmatprep.mubr.bf16.mxu1 %v11275_v8  ;;  %v9631_v4 = vld [vmem:[#allocation10 + $0x348] ss:$16 sps:$4 sm:$0xff]  }
 0x35f   :  { %vm4105_vm8 = vcmp.gt.f32.partialorder %v4037_v53, 0.0  ;;  %v4169_v58 = vmul.f32 0.2, %v4037_v53  ;;  %v4039_v11 = vadd.f32 %v4038_v5, %v3926_v43  ;;  %5261 = vmatmul.mubr.bf16.gmra.mxu1 %v11279_v12  ;;  %5374 = vmatmul.mubr.bf16.gmra.mxu0 %v11102_v19  ;;  %v4230_v48 = vsel %vm4102_vm9, %v4035_v36, %v4166_v40  ;;  %v9660_v5 = vld [vmem:[#allocation13 + $0x24] ss:$16 sps:$4 sm:$0xff]  }
 0x360   :  { %5425 = vmatpush2.bf16.msra.mxu1 %v9622_v7  ;;  %v4042_v18 = vpop.f32.mrf.mxu1  ;;  %5383 = vmatprep.mubr.bf16.mxu0 %v11129_v61  ;;  %v9634_v7 = vld [vmem:[#allocation10 + $0x328] ss:$16 sps:$4 sm:$0xff]  }
 0x361   :  { %vm4106_vm11 = vcmp.gt.f32.partialorder %v4039_v11, 0.0  ;;  %v4170_v55 = vmul.f32 0.2, %v4039_v11  ;;  %5426 = vmatprep.subr.bf16.mxu1 %v9627_v38  ;;  %v4233_v35 = vsel %vm4105_vm8, %v4037_v53, %v4169_v58  ;;  %v4043_v28 = vadd.f32 %v4042_v18, %v3930_v22  ;;  %v9639_v53 = vld [vmem:[#allocation10 + $0x30c] ss:$16 sps:$4 sm:$0xff]  }
 0x362   :  { %v4044_v41 = vpop.f32.mrf.mxu1  ;;  %v4269_v61 = vpack.c.bf16 %v4233_v35, %v4229_v39  ;;  %v9655_v38 = vld [vmem:[#allocation13 + $0x40] ss:$16 sps:$4 sm:$0xff]   ;;  %v9672_v39 = vld [vmem:[#allocation13 + $0x1a4] ss:$16 sps:$4 sm:$0xff]  }
 0x363   :  { %v4045_v14 = vadd.f32 %v4044_v41, %v3932_v26  ;;  %v4234_v44 = vsel %vm4106_vm11, %v4039_v11, %v4170_v55  ;;  %v4173_v15 = vmul.f32 0.2, %v4043_v28  ;;  %vm4109_vm14 = vcmp.gt.f32.partialorder %v4043_v28, 0.0  ;;  %v9658_v58 = vld [vmem:[#allocation13 + $0x20] ss:$16 sps:$4 sm:$0xff]  }
 0x364   :  { %5427 = vmatpush2.bf16.msra.mxu1 %v9625_v1  ;;  %v4046_v62 = vpop.f32.mrf.mxu1  ;;  %v4270_v19 = vpack.c.bf16 %v4234_v44, %v4230_v48  ;;  %v9663_v1 = vld [vmem:[#allocation13 + $0x4] ss:$16 sps:$4 sm:$0xff]   ;;  %v9661_v26 = vld [vmem:[#allocation13] ss:$16 sps:$4 sm:$0xff]  }
 0x365   :  { %v4047_v33 = vadd.f32 %v4046_v62, %v3934_v24  ;;  %5428 = vmatprep.subr.bf16.mxu1 %v9630_v20  ;;  %v4174_v34 = vmul.f32 0.2, %v4045_v14  ;;  %vm4110_vm13 = vcmp.gt.f32.partialorder %v4045_v14, 0.0  ;;  %v4237_v16 = vsel %vm4109_vm14, %v4043_v28, %v4173_v15  ;;  %v9664_v35 = vld [vmem:[#allocation13 + $0x1e0] ss:$16 sps:$4 sm:$0xff]  }
 0x366   :  { %v4048_v31 = vpop.f32.mrf.mxu1  ;;  %5270 = vmatprep.mubr.bf16.mxu1 %v4270_v19  ;;  %v9669_v44 = vld [vmem:[#allocation13 + $0x1c4] ss:$16 sps:$4 sm:$0xff]   ;;  %v9667_v28 = vld [vmem:[#allocation13 + $0x1c0] ss:$16 sps:$4 sm:$0xff]   ;;  %vm6543_vm14 = vcmask 1042434  }
 0x367   :  { %vm4113_vm12 = vcmp.gt.f32.partialorder %v4047_v33, 0.0  ;;  %v4177_v60 = vmul.f32 0.2, %v4047_v33  ;;  %v4049_v52 = vadd.f32 %v4048_v31, %v3936_v27  ;;  %5271 = vmatmul.mubr.bf16.gmra.mxu1 %v4269_v61  ;;  %5384 = vmatmul.mubr.bf16.gmra.mxu0 %v11132_v30  ;;  %v4238_v54 = vsel %vm4110_vm13, %v4045_v14, %v4174_v34  ;;  %v9637_v30 = vld [vmem:[#allocation10 + $0x308] ss:$16 sps:$4 sm:$0xff]  }
 0x368   :  { %5429 = vmatpush2.bf16.msra.mxu1 %v9628_v25  ;;  %5393 = vmatprep.mubr.bf16.mxu0 %v11146_v50  ;;  %v9642_v50 = vld [vmem:[#allocation13 + $0xe4] ss:$16 sps:$4 sm:$0xff]  }
 0x369   :  { %vm4114_vm15 = vcmp.gt.f32.partialorder %v4049_v52, 0.0  ;;  %v4178_v36 = vmul.f32 0.2, %v4049_v52  ;;  %5430 = vmatprep.subr.bf16.mxu1 %v9633_v32  ;;  %v4241_v49 = vsel %vm4113_vm12, %v4047_v33, %v4177_v60  ;;  %7252 = vmatprep.subr.bf16.mxu0 %v9642_v50  ;;  %v9670_v33 = vld [vmem:[#allocation13 + $0x1a0] ss:$16 sps:$4 sm:$0xff]   ;;  %vm6541_vm12 = vcmask 1041409  }
 0x36a   :  { %v4273_v43 = vpack.c.bf16 %v4241_v49, %v4237_v16  ;;  %v9675_v31 = vld [vmem:[#allocation13 + $0x184] ss:$16 sps:$4 sm:$0xff]   ;;  %v9673_v60 = vld [vmem:[#allocation13 + $0x180] ss:$16 sps:$4 sm:$0xff]  }
 0x36b   :  { %v4242_v47 = vsel %vm4114_vm15, %v4049_v52, %v4178_v36  ;;  %v9676_v36 = vld [vmem:[#allocation13 + $0x160] ss:$16 sps:$4 sm:$0xff]  }
 0x36c   :  { %5431 = vmatpush2.bf16.msra.mxu1 %v9631_v4  ;;  %v4274_v21 = vpack.c.bf16 %v4242_v47, %v4238_v54  ;;  %v9678_v4 = vld [vmem:[#allocation13 + $0x164] ss:$16 sps:$4 sm:$0xff]  }
 0x36d   :  { %5432 = vmatprep.subr.bf16.mxu1 %v9636_v46  ;;  %v9681_v47 = vld [vmem:[#allocation13 + $0x144] ss:$16 sps:$4 sm:$0xff]  }
 0x36e   :  { %5280 = vmatprep.mubr.bf16.mxu1 %v4274_v21 }
 0x36f   :  { %5281 = vmatmul.mubr.bf16.gmra.mxu1 %v4273_v43  ;;  %5394 = vmatmul.mubr.bf16.gmra.mxu0 %v11153_v6  ;;  %v9640_v6 = vld [vmem:[#allocation13 + $0xe0] ss:$16 sps:$4 sm:$0xff]  }
 0x370   :  { %5433 = vmatpush2.bf16.msra.mxu1 %v9634_v7  ;;  %5436 = vmatprep.mubr.bf16.mxu1 %v11167_v17  ;;  %v9645_v17 = vld [vmem:[#allocation13 + $0xc4] ss:$16 sps:$4 sm:$0xff]   ;;  %v4403_v7 = vld [vmem:[%s12127_s6] sm:$0xf] }
 0x371   :  { %5434 = vmatprep.subr.bf16.mxu1 %v9639_v53  ;;  %7253 = vmatpush1.bf16.msra.mxu0 %v9640_v6  ;;  %v11369_v53 = vrot.slane %v4403_v7, %v10347_v59  ;;  %v11374_v50 = vrot.slane %v4403_v7, %v10349_v0  ;;  %v9684_v6 = vld [vmem:[#allocation13 + $0x124] ss:$16 sps:$4 sm:$0xff]  }
 0x372   :  { %7254 = vmatprep.subr.bf16.mxu0 %v9645_v17 }
 0x374   :  { %5435 = vmatpush2.bf16.msra.mxu1 %v9637_v30 }
 0x377   :  { %5437 = vmatmul.mubr.bf16.vlgmr.msra.gmra.mxu1 %v11171_v3  ;;  %v9643_v3 = vld [vmem:[#allocation13 + $0xc0] ss:$16 sps:$4 sm:$0xff]  }
 0x378   :  { %5446 = vmatprep.mubr.bf16.mxu1 %v11189_v10  ;;  %7255 = vmatpush1.bf16.msra.mxu0 %v9643_v3  ;;  %v9648_v10 = vld [vmem:[#allocation13 + $0xa4] ss:$16 sps:$4 sm:$0xff]   ;;  %v9682_v3 = vld [vmem:[#allocation13 + $0x120] ss:$16 sps:$4 sm:$0xff]  }
 0x379   :  { %7256 = vmatprep.subr.bf16.mxu0 %v9648_v10 }
 0x37f   :  { %5447 = vmatmul.mubr.bf16.gmra.mxu1 %v11194_v29  ;;  %v9646_v29 = vld [vmem:[#allocation13 + $0xa0] ss:$16 sps:$4 sm:$0xff]  }
 0x380   :  { %5456 = vmatprep.mubr.bf16.mxu1 %v11212_v42  ;;  %7257 = vmatpush1.bf16.msra.mxu0 %v9646_v29  ;;  %v9651_v42 = vld [vmem:[#allocation13 + $0x84] ss:$16 sps:$4 sm:$0xff]  }
 0x381   :  { %7258 = vmatprep.subr.bf16.mxu0 %v9651_v42 }
 0x387   :  { %5457 = vmatmul.mubr.bf16.gmra.mxu1 %v11217_v2  ;;  %v9649_v2 = vld [vmem:[#allocation13 + $0x80] ss:$16 sps:$4 sm:$0xff]  }
 0x388   :  { %5466 = vmatprep.mubr.bf16.mxu1 %v11235_v9  ;;  %7259 = vmatpush1.bf16.msra.mxu0 %v9649_v2  ;;  %v9654_v9 = vld [vmem:[#allocation13 + $0x64] ss:$16 sps:$4 sm:$0xff]  }
 0x389   :  { %7260 = vmatprep.subr.bf16.mxu0 %v9654_v9 }
 0x38f   :  { %5467 = vmatmul.mubr.bf16.gmra.mxu1 %v11240_v37 }
 0x390   :  { %5476 = vmatprep.mubr.bf16.mxu1 %v11256_v45  ;;  %v9652_v45 = vld [vmem:[#allocation13 + $0x60] ss:$16 sps:$4 sm:$0xff]  }
 0x391   :  { %7261 = vmatpush1.bf16.msra.mxu0 %v9652_v45 }
 0x397   :  { %5477 = vmatmul.mubr.bf16.gmra.mxu1 %v11261_v23 }
 0x398   :  { %5486 = vmatprep.mubr.bf16.mxu1 %v11275_v8  ;;  %v9657_v8 = vld [vmem:[#allocation13 + $0x44] ss:$16 sps:$4 sm:$0xff]  }
 0x399   :  { %7262 = vmatprep.subr.bf16.mxu0 %v9657_v8 }
 0x39a   :  { %7263 = vmatpush1.bf16.msra.mxu0 %v9655_v38  ;;  %v9687_v38 = vld [vmem:[#allocation13 + $0x104] ss:$16 sps:$4 sm:$0xff]  }
 0x39b   :  { %7264 = vmatprep.subr.bf16.mxu0 %v9660_v5 }
 0x39e   :  { %7265 = vmatpush1.bf16.msra.mxu0 %v9658_v58 }
 0x39f   :  { %5487 = vmatmul.mubr.bf16.gmra.mxu1 %v11279_v12  ;;  %7266 = vmatprep.subr.bf16.mxu0 %v9663_v1  ;;  %v9685_v1 = vld [vmem:[#allocation13 + $0x100] ss:$16 sps:$4 sm:$0xff]  }
 0x3a0   :  { %5496 = vmatprep.mubr.bf16.mxu1 %v4270_v19 }
 0x3a2   :  { %7267 = vmatpush1.bf16.msra.mxu0 %v9661_v26 }
 0x3a3   :  { %7268 = vmatprep.subr.bf16.mxu0 %v9666_v51 }
 0x3a6   :  { %7269 = vmatpush2.bf16.msra.mxu0 %v9664_v35 }
 0x3a7   :  { %5497 = vmatmul.mubr.bf16.gmra.mxu1 %v4269_v61  ;;  %7270 = vmatprep.subr.bf16.mxu0 %v9669_v44 }
 0x3a8   :  { %5506 = vmatprep.mubr.bf16.mxu1 %v4274_v21  ;;  %v9679_v21 = vld [vmem:[#allocation13 + $0x140] ss:$16 sps:$4 sm:$0xff]  }
 0x3aa   :  { %7271 = vmatpush2.bf16.msra.mxu0 %v9667_v28 }
 0x3ab   :  { %7272 = vmatprep.subr.bf16.mxu0 %v9672_v39 }
 0x3ae   :  { %7273 = vmatpush2.bf16.msra.mxu0 %v9670_v33 }
 0x3af   :  { %5507 = vmatmul.mubr.bf16.gmra.mxu1 %v4273_v43  ;;  %7274 = vmatprep.subr.bf16.mxu0 %v9675_v31 }
 0x3b2   :  { %7275 = vmatpush2.bf16.msra.mxu0 %v9673_v60 }
 0x3b3   :  { %7276 = vmatprep.subr.bf16.mxu0 %v9678_v4 }
 0x3b6   :  { %7277 = vmatpush2.bf16.msra.mxu0 %v9676_v36 }
 0x3b7   :  { %v11307_v37 = vpop.f32.mrf.mxu0  ;;  %7278 = vmatprep.subr.bf16.mxu0 %v9681_v47 }
 0x3b8   :  { %v5100_v10 = vadd.f32 %v11307_v37, %v11369_v53 }
 0x3b9   :  { %v11309_v23 = vpop.f32.mrf.mxu0 }
 0x3ba   :  { %7279 = vmatpush2.bf16.msra.mxu0 %v9679_v21  ;;  %v5102_v2 = vadd.f32 %v11309_v23, %v11374_v50  ;;  %v11404_v21 = vrot.slane %v4403_v7, %v10345_v57 }
 0x3bb   :  { %v11311_v12 = vpop.f32.mrf.mxu0  ;;  %7280 = vmatprep.subr.bf16.mxu0 %v9684_v6 }
 0x3bc   :  { %v5104_v37 = vadd.f32 %v11311_v12, %v11369_v53  ;;  %v11397_v12 = vrot.slane %v4403_v7, %v10343_v56 }
 0x3bd   :  { %v11313_v13 = vpop.f32.mrf.mxu0 }
 0x3be   :  { %7281 = vmatpush2.bf16.msra.mxu0 %v9682_v3  ;;  %v5106_v35 = vadd.f32 %v11313_v13, %v11374_v50 }
 0x3bf   :  { %v11315_v40 = vpop.f32.mrf.mxu0  ;;  %7282 = vmatprep.subr.bf16.mxu0 %v9687_v38 }
 0x3c0   :  { %v5110_v60 = vadd.f32 %v11315_v40, %v11369_v53 }
 0x3c1   :  { %v11317_v11 = vpop.f32.mrf.mxu0 }
 0x3c2   :  { %7283 = vmatpush2.bf16.msra.mxu0 %v9685_v1  ;;  %v5112_v36 = vadd.f32 %v11317_v11, %v11374_v50 }
 0x3c3   :  { %v11319_v63 = vpop.f32.mrf.mxu0 }
 0x3c4   :  { %v5114_v13 = vadd.f32 %v11319_v63, %v11369_v53 }
 0x3c5   :  { %v11321_v18 = vpop.f32.mrf.mxu0 }
 0x3c6   :  { %v5116_v40 = vadd.f32 %v11321_v18, %v11374_v50 }
 0x3c7   :  { %v11323_v55 = vpop.f32.mrf.mxu0 }
 0x3c9   :  { %v11325_v20 = vpop.f32.mrf.mxu0 }
 0x3ca   :  { %v11416_v11 = vadd.f32 %v11325_v20, %v11374_v50 }
 0x3cb   :  { %v11327_v22 = vpop.f32.mrf.mxu0 }
 0x3cd   :  { %v11329_v41 = vpop.f32.mrf.mxu0 }
 0x3cf   :  { %v11331_v24 = vpop.f32.mrf.mxu0 }
 0x3d0   :  { %v11430_v20 = vadd.f32 %v11331_v24, %v11369_v53 }
 0x3d1   :  { %v11333_v14 = vpop.f32.mrf.mxu0 }
 0x3d3   :  { %v11335_v48 = vpop.f32.mrf.mxu0 }
 0x3d5   :  { %v11337_v62 = vpop.f32.mrf.mxu0 }
 0x3d7   :  { %v11339_v19 = vpop.f32.mrf.mxu0 }
 0x3d8   :  { %v11449_v24 = vadd.f32 %v11339_v19, %v11369_v53 }
 0x3d9   :  { %v11341_v25 = vpop.f32.mrf.mxu0 }
 0x3db   :  { %v11343_v27 = vpop.f32.mrf.mxu0 }
 0x3dd   :  { %v11345_v61 = vpop.f32.mrf.mxu0 }
 0x3de   :  { %v11463_v19 = vadd.f32 %v11345_v61, %v11374_v50 }
 0x3df   :  { %v11347_v32 = vpop.f32.mrf.mxu0 }
 0x3e1   :  { %v11349_v34 = vpop.f32.mrf.mxu0 }
 0x3e3   :  { %v11351_v52 = vpop.f32.mrf.mxu0 }
 0x3e4   :  { %v11477_v61 = vadd.f32 %v11351_v52, %v11369_v53 }
 0x3e5   :  { %v11353_v15 = vpop.f32.mrf.mxu0 }
 0x3e7   :  { %v11355_v46 = vpop.f32.mrf.mxu0 }
 0x3e9   :  { %v11357_v49 = vpop.f32.mrf.mxu0 }
 0x3eb   :  { %v11359_v54 = vpop.f32.mrf.mxu0 }
 0x3ec   :  { %v11493_v52 = vadd.f32 %v11359_v54, %v11369_v53 }
 0x3ed   :  { %v11364_v16 = vpop.f32.mrf.mxu0 }
 0x3ee   :  { %12182 = vst [vmem:[#allocation29_spill] sm:$0xff] %v11493_v52 }
 0x3ef   :  { %v11366_v43 = vpop.f32.mrf.mxu0 }
 0x3f1   :  { %v11371_v30 = vpop.f32.mrf.mxu0 }
 0x3f2   :  { %v11507_v54 = vadd.f32 %v11371_v30, %v11374_v50 }
 0x3f3   :  { %v11376_v17 = vpop.f32.mrf.mxu0 }
 0x3f4   :  { %12185 = vst [vmem:[#allocation32_spill] sm:$0xff] %v11507_v54 }
 0x3f5   :  { %v11380_v29 = vpop.f32.mrf.mxu0 }
 0x3f7   :  { %v5212_v42 = vpop.f32.mrf.mxu1  ;;  %v11384_v45 = vpop.f32.mrf.mxu0 }
 0x3f8   :  { %v5213_v9 = vadd.f32 %v5212_v42, %v5100_v10  ;;  %v11412_v10 = vadd.f32 %v11323_v55, %v11369_v53  ;;  %v11422_v55 = vadd.f32 %v11327_v22, %v11369_v53  ;;  %v11444_v22 = vadd.f32 %v11337_v62, %v11374_v50 }
 0x3f9   :  { %v5214_v8 = vpop.f32.mrf.mxu1  ;;  %v11388_v26 = vpop.f32.mrf.mxu0 }
 0x3fa   :  { %vm5517_vm0 = vcmp.gt.f32.partialorder %v5213_v9, 0.0  ;;  %v5581_v5 = vmul.f32 0.2, %v5213_v9  ;;  %v5215_v58 = vadd.f32 %v5214_v8, %v5102_v2 }
 0x3fb   :  { %v5216_v51 = vpop.f32.mrf.mxu1  ;;  %v11392_v33 = vpop.f32.mrf.mxu0 }
 0x3fc   :  { %v5645_v23 = vsel %vm5517_vm0, %v5213_v9, %v5581_v5  ;;  %vm5518_vm1 = vcmp.gt.f32.partialorder %v5215_v58, 0.0  ;;  %v5582_v44 = vmul.f32 0.2, %v5215_v58  ;;  %v5217_v39 = vadd.f32 %v5216_v51, %v5104_v37 }
 0x3fd   :  { %v5709_v28 = vrot.slane %v5645_v23, 4  ;;  %v5218_v31 = vpop.f32.mrf.mxu1  ;;  %v11406_v6 = vpop.f32.mrf.mxu0  ;;  %v11426_v5 = vadd.f32 %v11329_v41, %v11374_v50  ;;  %v11440_v51 = vadd.f32 %v11335_v48, %v11369_v53  ;;  %vm6545_vm0 = vcmask 1043459  }
 0x3fe   :  { %v5219_v4 = vadd.f32 %v5218_v31, %v5106_v35  ;;  %v5646_v47 = vsel %vm5518_vm1, %v5215_v58, %v5582_v44  ;;  %v5585_v42 = vmul.f32 0.2, %v5217_v39  ;;  %vm5521_vm2 = vcmp.gt.f32.partialorder %v5217_v39, 0.0 }
 0x3ff   :  { %v5222_v3 = vpop.f32.mrf.mxu1  ;;  %v5710_v63 = vadd.f32 %v5709_v28, %v5645_v23  ;;  %v11418_v9 = vpop.f32.mrf.mxu0  ;;  %v5715_v38 = vrot.slane %v5646_v47, 4  ;;  %v11434_v58 = vadd.f32 %v11333_v14, %v11374_v50  ;;  %v11453_v14 = vadd.f32 %v11341_v25, %v11374_v50 }
 0x400   :  { %v5223_v2 = vadd.f32 %v5222_v3, %v5110_v60  ;;  %v5586_v7 = vmul.f32 0.2, %v5219_v4  ;;  %vm5522_vm3 = vcmp.gt.f32.partialorder %v5219_v4, 0.0  ;;  %v5649_v41 = vsel %vm5521_vm2, %v5217_v39, %v5585_v42 }
 0x401   :  { %v5224_v8 = vpop.f32.mrf.mxu1  ;;  %v11436_v1 = vpop.f32.mrf.mxu0  ;;  %v5711_v31 = vrot.slane %v5710_v63, 2  ;;  %v5716_v60 = vadd.f32 %v5715_v38, %v5646_v47  ;;  %v11459_v39 = vadd.f32 %v11343_v27, %v11369_v53  ;;  %v11473_v27 = vadd.f32 %v11349_v34, %v11374_v50 }
 0x402   :  { %vm5525_vm4 = vcmp.gt.f32.partialorder %v5223_v2, 0.0  ;;  %v5589_v18 = vmul.f32 0.2, %v5223_v2  ;;  %v5225_v35 = vadd.f32 %v5224_v8, %v5112_v36  ;;  %v5650_v23 = vsel %vm5522_vm3, %v5219_v4, %v5586_v7 }
 0x403   :  { %v5226_v37 = vpop.f32.mrf.mxu1  ;;  %v11455_v28 = vpop.f32.mrf.mxu0  ;;  %v5733_v36 = vrot.slane %v5649_v41, 4  ;;  %v5739_v42 = vrot.slane %v5650_v23, 4  ;;  %v11481_v47 = vadd.f32 %v11353_v15, %v11374_v50  ;;  %v11485_v38 = vadd.f32 %v11355_v46, %v11369_v53 }
 0x404   :  { %v5653_v44 = vsel %vm5525_vm4, %v5223_v2, %v5589_v18  ;;  %v5590_v62 = vmul.f32 0.2, %v5225_v35  ;;  %v5227_v3 = vadd.f32 %v5226_v37, %v5114_v13  ;;  %vm5526_vm5 = vcmp.gt.f32.partialorder %v5225_v35, 0.0 }
 0x405   :  { %v5228_v48 = vpop.f32.mrf.mxu1  ;;  %v11465_v25 = vpop.f32.mrf.mxu0  ;;  %v5757_v2 = vrot.slane %v5653_v44, 4  ;;  %v11469_v13 = vadd.f32 %v11347_v32, %v11369_v53  ;;  %v5712_v18 = vadd.f32 %v5711_v31, %v5710_v63  ;;  %v5717_v32 = vrot.slane %v5716_v60, 2 }
 0x406   :  { %vm5529_vm6 = vcmp.gt.f32.partialorder %v5227_v3, 0.0  ;;  %v5593_v7 = vmul.f32 0.2, %v5227_v3  ;;  %v5654_v37 = vsel %vm5526_vm5, %v5225_v35, %v5590_v62  ;;  %v11489_v34 = vadd.f32 %v11357_v49, %v11374_v50 }
 0x407   :  { %v5232_v4 = vpop.f32.mrf.mxu1  ;;  %v5734_v57 = vadd.f32 %v5733_v36, %v5649_v41  ;;  %v11495_v15 = vpop.f32.mrf.mxu0  ;;  %v11499_v46 = vadd.f32 %v11364_v16, %v11374_v50  ;;  %v5740_v63 = vadd.f32 %v5739_v42, %v5650_v23  ;;  %v5758_v31 = vadd.f32 %v5757_v2, %v5653_v44 }
 0x408   :  { %12181 = vst [vmem:[#allocation28_spill] sm:$0xff] %v11489_v34  ;;  %v5657_v56 = vsel %vm5529_vm6, %v5227_v3, %v5593_v7  ;;  %v5229_v35 = vadd.f32 %v5228_v48, %v5116_v40  ;;  %v11503_v49 = vadd.f32 %v11366_v43, %v11369_v53  ;;  %v11511_v41 = vadd.f32 %v11376_v17, %v11369_v53 }
 0x409   :  { %v5234_v8 = vpop.f32.mrf.mxu1  ;;  %12183 = vst [vmem:[#allocation30_spill] sm:$0xff] %v11499_v46  ;;  %v5763_v62 = vrot.slane %v5654_v37, 4  ;;  %v5713_v36 = vrot.slane %v5712_v18, 1  ;;  %v5718_v16 = vadd.f32 %v5717_v32, %v5716_v60  ;;  %v5781_v7 = vrot.slane %v5657_v56, 4  ;;  %v11518_v30 = vpop.f32.mrf.mxu0 }
 0x40a   :  { %12184 = vst [vmem:[#allocation31_spill] sm:$0xff] %v11503_v49  ;;  %12186 = vst [vmem:[#allocation33_spill] sm:$0xff] %v11511_v41  ;;  %vm5530_vm7 = vcmp.gt.f32.partialorder %v5229_v35, 0.0  ;;  %v11515_v40 = vadd.f32 %v11380_v29, %v11374_v50  ;;  %v5735_v43 = vrot.slane %v5734_v57, 2  ;;  %v5594_v23 = vmul.f32 0.2, %v5229_v35 }
 0x40b   :  { %v5236_v0 = vpop.f32.mrf.mxu1  ;;  %v5233_v44 = vadd.f32 %v5232_v4, %v11412_v10  ;;  %v11524_v53 = vadd.f32 %v11384_v45, %v11397_v12  ;;  %v11528_v17 = vadd.f32 %v11388_v26, %v11404_v21  ;;  %v5741_v60 = vrot.slane %v5740_v63, 2 }
 0x40c   :  { %12187 = vst [vmem:[#allocation34_spill] sm:$0xff] %v11515_v40  ;;  %v5759_v42 = vrot.slane %v5758_v31, 2  ;;  %v11532_v50 = vadd.f32 %v11392_v33, %v11397_v12  ;;  %v11536_v29 = vadd.f32 %v11406_v6, %v11404_v21  ;;  %v5764_v10 = vadd.f32 %v5763_v62, %v5654_v37 }
 0x40d   :  { %v5238_v3 = vpop.f32.mrf.mxu1  ;;  %12188 = vst [vmem:[#allocation35_spill] sm:$0xff] %v11524_v53  ;;  %12189 = vst [vmem:[#allocation36_spill] sm:$0xff] %v11528_v17  ;;  %v5658_v4 = vsel %vm5530_vm7, %v5229_v35, %v5594_v23  ;;  %v11540_v45 = vadd.f32 %v5713_v36, %v5712_v18  ;;  %v5719_v32 = vrot.slane %v5718_v16, 1  ;;  %v5782_v59 = vadd.f32 %v5781_v7, %v5657_v56  ;;  %v11547_v53 = vpop.f32.mrf.mxu0  ;;  %v9688_v23 = vld [vmem:[#allocation13 + $0x2e0] ss:$16 sps:$4 sm:$0xff]  }
 0x40e   :  { %12190 = vst [vmem:[#allocation37_spill] sm:$0xff] %v11532_v50  ;;  %12191 = vst [vmem:[#allocation38_spill] sm:$0xff] %v11536_v29  ;;  %vm5533_vm8 = vcmp.gt.f32.partialorder %v5233_v44, 0.0  ;;  %v5736_v26 = vadd.f32 %v5735_v43, %v5734_v57  ;;  %v11544_v17 = vadd.f32 %v11418_v9, %v11397_v12  ;;  %v5597_v33 = vmul.f32 0.2, %v5233_v44 }
 0x40f   :  { %v11520_v48 = vpop.f32.mrf.mxu1  ;;  %v5235_v50 = vadd.f32 %v5234_v8, %v11416_v11  ;;  %v5742_v37 = vadd.f32 %v5741_v60, %v5740_v63  ;;  %v5760_v35 = vadd.f32 %v5759_v42, %v5758_v31  ;;  %v11553_v18 = vadd.f32 %v11436_v1, %v11404_v21  ;;  %v9690_v63 = vld [vmem:[#allocation13 + $0x2e4] ss:$16 sps:$4 sm:$0xff]  }
 0x410   :  { %12192 = vst [vmem:[#allocation39_spill] sm:$0xff] %v11544_v17  ;;  %v5787_v56 = vrot.slane %v5658_v4, 4  ;;  %v5765_v62 = vrot.slane %v5764_v10, 2  ;;  %v5661_v57 = vsel %vm5533_vm8, %v5233_v44, %v5597_v33  ;;  %v6221_v11 = vpack.c.bf16 %v11540_v45, %v11540_v45  ;;  %v9693_v33 = vld [vmem:[#allocation13 + $0xec] ss:$16 sps:$4 sm:$0xff]   ;;  %7295 = vmatprep.subr.bf16.mxu1 %v9690_v63 }
 0x411   :  { %v11538_v2 = vpop.f32.mrf.mxu1  ;;  %12193 = vst [vmem:[#allocation40_spill] sm:$0xff] %v11553_v18  ;;  %vm5534_vm9 = vcmp.gt.f32.partialorder %v5235_v50, 0.0  ;;  %v5598_v36 = vmul.f32 0.2, %v5235_v50  ;;  %v5720_v8 = vadd.f32 %v5719_v32, %v5718_v16  ;;  %v5783_v7 = vrot.slane %v5782_v59, 2  ;;  %v11561_v18 = vpop.f32.mrf.mxu0  ;;  %7338 = vmatprep.subr.bf16.mxu0 %v9693_v33  ;;  %7296 = vmatpush1.bf16.msra.mxu1 %v9688_v23 }
 0x412   :  { %v5805_v43 = vrot.slane %v5661_v57, 4  ;;  %v5737_v31 = vrot.slane %v5736_v26, 1  ;;  %v5237_v1 = vadd.f32 %v5236_v0, %v11422_v55  ;;  %v5239_v42 = vadd.f32 %v5238_v3, %v11426_v5 }
 0x413   :  { %v11549_v6 = vpop.f32.mrf.mxu1  ;;  %v5662_v60 = vsel %vm5534_vm9, %v5235_v50, %v5598_v36  ;;  %v5743_v17 = vrot.slane %v5742_v37, 1  ;;  %v11567_v45 = vadd.f32 %v11455_v28, %v11397_v12  ;;  %v5788_v16 = vadd.f32 %v5787_v56, %v5658_v4 }
 0x414   :  { %v5806_v32 = vadd.f32 %v5805_v43, %v5661_v57  ;;  %v5761_v29 = vrot.slane %v5760_v35, 1  ;;  %v5811_v40 = vrot.slane %v5662_v60, 4  ;;  %vm5537_vm10 = vcmp.gt.f32.partialorder %v5237_v1, 0.0 }
 0x415   :  { %v11555_v9 = vpop.f32.mrf.mxu1  ;;  %12194 = vst [vmem:[#allocation41_spill] sm:$0xff] %v11567_v45  ;;  %v5601_v50 = vmul.f32 0.2, %v5237_v1  ;;  %v5766_v55 = vadd.f32 %v5765_v62, %v5764_v10  ;;  %v5784_v5 = vadd.f32 %v5783_v7, %v5782_v59  ;;  %vm5538_vm11 = vcmp.gt.f32.partialorder %v5239_v42, 0.0  ;;  %v11571_v45 = vpop.f32.mrf.mxu0 }
 0x416   :  { %v5807_v3 = vrot.slane %v5806_v32, 2  ;;  %v6222_v36 = vpack.c.bf16 %v5720_v8, %v5720_v8  ;;  %v5812_v54 = vadd.f32 %v5811_v40, %v5662_v60  ;;  %v5602_v28 = vmul.f32 0.2, %v5239_v42 }
 0x417   :  { %v11563_v44 = vpop.f32.mrf.mxu1  ;;  %v5665_v41 = vsel %vm5537_vm10, %v5237_v1, %v5601_v50  ;;  %v5738_v56 = vadd.f32 %v5737_v31, %v5736_v26  ;;  %v5744_v57 = vadd.f32 %v5743_v17, %v5742_v37  ;;  %v5789_v43 = vrot.slane %v5788_v16, 2  ;;  %v11581_v26 = vpop.f32.mrf.mxu0 }
 0x418   :  { %v5829_v63 = vrot.slane %v5665_v41, 4  ;;  %v5762_v49 = vadd.f32 %v5761_v29, %v5760_v35  ;;  %v5808_v46 = vadd.f32 %v5807_v3, %v5806_v32  ;;  %v5666_v33 = vsel %vm5538_vm11, %v5239_v42, %v5602_v28 }
 0x419   :  { %v11569_v0 = vpop.f32.mrf.mxu1  ;;  %v5243_v59 = vadd.f32 %v11520_v48, %v11430_v20  ;;  %v5767_v40 = vrot.slane %v5766_v55, 1  ;;  %v5785_v62 = vrot.slane %v5784_v5, 1  ;;  %v5835_v7 = vrot.slane %v5666_v33, 4 }
 0x41a   :  { %v5830_v8 = vadd.f32 %v5829_v63, %v5665_v41  ;;  %v5813_v23 = vrot.slane %v5812_v54, 2  ;;  %v5245_v17 = vadd.f32 %v11538_v2, %v11434_v58  ;;  %v6477_v37 = vunpack.c.l.b16 %v6221_v11  ;;  %v9694_v58 = vld [vmem:[#allocation13 + $0x2c0] ss:$16 sps:$4 sm:$0xff]   ;;  %v9696_v2 = vld [vmem:[#allocation13 + $0x2c4] ss:$16 sps:$4 sm:$0xff]  }
 0x41b   :  { %v11573_v4 = vpop.f32.mrf.mxu1  ;;  %vm5541_vm13 = vcmp.gt.f32.partialorder %v5243_v59, 0.0  ;;  %v5605_v60 = vmul.f32 0.2, %v5243_v59  ;;  %v6478_v35 = vunpack.c.l.b16 %v6222_v36  ;;  %v5790_v20 = vadd.f32 %v5789_v43, %v5788_v16  ;;  %v11589_v16 = vpop.f32.mrf.mxu0  ;;  %7297 = vmatprep.subr.bf16.mxu1 %v9696_v2 }
 0x41c   :  { %v5831_v48 = vrot.slane %v5830_v8, 2  ;;  %v6225_v31 = vpack.c.bf16 %v5738_v56, %v5738_v56  ;;  %v6226_v1 = vpack.c.bf16 %v5744_v57, %v5744_v57  ;;  %v5809_v42 = vrot.slane %v5808_v46, 1  ;;  %7298 = vmatpush1.bf16.msra.mxu1 %v9694_v58 }
 0x41d   :  { %v11577_v10 = vpop.f32.mrf.mxu1  ;;  %v5669_v41 = vsel %vm5541_vm13, %v5243_v59, %v5605_v60  ;;  %v6229_v50 = vpack.c.bf16 %v5762_v49, %v5762_v49  ;;  %v5768_v3 = vadd.f32 %v5767_v40, %v5766_v55  ;;  %v5836_v28 = vadd.f32 %v5835_v7, %v5666_v33  ;;  %v9702_v7 = vld [vmem:[#allocation13 + $0x2a4] ss:$16 sps:$4 sm:$0xff]  }
 0x41e   :  { %v5606_v63 = vmul.f32 0.2, %v5245_v17  ;;  %v5786_v52 = vadd.f32 %v5785_v62, %v5784_v5  ;;  %v5814_v34 = vadd.f32 %v5813_v23, %v5812_v54  ;;  %vm5542_vm15 = vcmp.gt.f32.partialorder %v5245_v17, 0.0  ;;  %v9700_v62 = vld [vmem:[#allocation13 + $0x2a0] ss:$16 sps:$4 sm:$0xff]   ;;  %7299 = vmatprep.subr.bf16.mxu1 %v9702_v7 }
 0x41f   :  { %v11583_v29 = vpop.f32.mrf.mxu1  ;;  %v5247_v11 = vadd.f32 %v11549_v6, %v11440_v51  ;;  %v5791_v56 = vrot.slane %v5790_v20, 1  ;;  %v11595_v49 = vadd.f32 %v11465_v25, %v11404_v21  ;;  %v5832_v55 = vadd.f32 %v5831_v48, %v5830_v8  ;;  %v11600_v48 = vpop.f32.mrf.mxu0 }
 0x420   :  { %v5853_v57 = vrot.slane %v5669_v41, 4  ;;  %v6481_v43 = vunpack.c.l.b16 %v6225_v31  ;;  %v6482_v5 = vunpack.c.l.b16 %v6226_v1  ;;  %v6230_v51 = vpack.c.bf16 %v5768_v3, %v5768_v3  ;;  %7300 = vmatpush1.bf16.msra.mxu1 %v9700_v62 }
 0x421   :  { %v11585_v32 = vpop.f32.mrf.mxu1  ;;  %vm5545_vm1 = vcmp.gt.f32.partialorder %v5247_v11, 0.0  ;;  %v5609_v54 = vmul.f32 0.2, %v5247_v11  ;;  %v5810_v6 = vadd.f32 %v5809_v42, %v5808_v46  ;;  %v5837_v59 = vrot.slane %v5836_v28, 2 }
 0x422   :  { %v5670_v40 = vsel %vm5542_vm15, %v5245_v17, %v5606_v63  ;;  %v6485_v23 = vunpack.c.l.b16 %v6229_v50  ;;  %v6233_v25 = vpack.c.bf16 %v5786_v52, %v5786_v52  ;;  %vm6547_vm2 = vcmask 1044484  }
 0x423   :  { %v11591_v36 = vpop.f32.mrf.mxu1  ;;  %v5815_v8 = vrot.slane %v5814_v34, 1  ;;  %v5673_v60 = vsel %vm5545_vm1, %v5247_v11, %v5609_v54  ;;  %v5792_v1 = vadd.f32 %v5791_v56, %v5790_v20  ;;  %v11606_v58 = vadd.f32 %v11495_v15, %v11397_v12 }
 0x424   :  { %v5833_v46 = vrot.slane %v5832_v55, 1  ;;  %v5854_v42 = vadd.f32 %v5853_v57, %v5669_v41  ;;  %v6542_v17 = vsel %vm6541_vm12, %v6481_v43, %v6477_v37  ;;  %v6555_v50 = vsel %vm6541_vm12, %v6482_v5, %v6478_v35  ;;  %v11619_v35 = vpop.f32.mrf.mxu0 }
 0x425   :  { %v11597_v33 = vpop.f32.mrf.mxu1  ;;  %v5859_v52 = vrot.slane %v5670_v40, 4  ;;  %v5253_v3 = vadd.f32 %v11563_v44, %v11449_v24  ;;  %v6486_v2 = vunpack.c.l.b16 %v6230_v51  ;;  %v6237_v20 = vpack.c.bf16 %v5810_v6, %v5810_v6  ;;  %v9706_v24 = vld [vmem:[#allocation13 + $0x280] ss:$16 sps:$4 sm:$0xff]   ;;  %v9708_v51 = vld [vmem:[#allocation13 + $0x284] ss:$16 sps:$4 sm:$0xff]  }
 0x426   :  { %v5838_v11 = vadd.f32 %v5837_v59, %v5836_v28  ;;  %v5877_v56 = vrot.slane %v5673_v60, 4  ;;  %v6544_v15 = vsel %vm6543_vm14, %v6485_v23, %v6542_v17  ;;  %v6489_v54 = vunpack.c.l.b16 %v6233_v25  ;;  %7301 = vmatprep.subr.bf16.mxu1 %v9708_v51 }
 0x427   :  { %v11602_v31 = vpop.f32.mrf.mxu1  ;;  %v5816_v41 = vadd.f32 %v5815_v8, %v5814_v34  ;;  %v11617_v37 = vadd.f32 %v11518_v30, %v11404_v21  ;;  %v6234_v44 = vpack.c.bf16 %v5792_v1, %v5792_v1  ;;  %v5834_v43 = vadd.f32 %v5833_v46, %v5832_v55  ;;  %v11639_v8 = vpop.f32.mrf.mxu0  ;;  %7302 = vmatpush1.bf16.msra.mxu1 %v9706_v24 }
 0x428   :  { %v11625_v5 = vadd.f32 %v11547_v53, %v11397_v12  ;;  %v5855_v28 = vrot.slane %v5854_v42, 2  ;;  %vm6549_vm3 = vcmask 1045509   ;;  %v5860_v6 = vadd.f32 %v5859_v52, %v5670_v40 }
 0x429   :  { %v11612_v63 = vpop.f32.mrf.mxu1  ;;  %v5249_v34 = vadd.f32 %v11555_v9, %v11444_v22  ;;  %vm5549_vm4 = vcmp.gt.f32.partialorder %v5253_v3, 0.0  ;;  %v5613_v30 = vmul.f32 0.2, %v5253_v3  ;;  %v11630_v59 = vsel %vm6543_vm14, %v6486_v2, %v6555_v50 }
 0x42a   :  { %v6493_v62 = vunpack.c.l.b16 %v6237_v20  ;;  %v5839_v7 = vrot.slane %v5838_v11, 1  ;;  %v5878_v23 = vadd.f32 %v5877_v56, %v5673_v60  ;;  %v6546_v53 = vsel %vm6545_vm0, %v6489_v54, %v6544_v15  ;;  %v9714_v56 = vld [vmem:[#allocation13 + $0x264] ss:$16 sps:$4 sm:$0xff]  }
 0x42b   :  { %v11621_v57 = vpop.f32.mrf.mxu1  ;;  %v6238_v25 = vpack.c.bf16 %v5816_v41, %v5816_v41  ;;  %v11637_v40 = vadd.f32 %v11561_v18, %v11404_v21  ;;  %v5257_v22 = vadd.f32 %v11573_v4, %v11459_v39  ;;  %v6241_v9 = vpack.c.bf16 %v5834_v43, %v5834_v43  ;;  %v11661_v41 = vpop.f32.mrf.mxu0  ;;  %7303 = vmatprep.subr.bf16.mxu1 %v9714_v56 }
 0x42c   :  { %v5856_v1 = vadd.f32 %v5855_v28, %v5854_v42  ;;  %v11645_v60 = vadd.f32 %v11571_v45, %v11397_v12  ;;  %v5677_v46 = vsel %vm5549_vm4, %v5253_v3, %v5613_v30  ;;  %v11648_v17 = vunpack.c.l.b16 %v6234_v44  ;;  %v9712_v45 = vld [vmem:[#allocation13 + $0x260] ss:$16 sps:$4 sm:$0xff]  }
 0x42d   :  { %v11632_v55 = vpop.f32.mrf.mxu1  ;;  %v5861_v50 = vrot.slane %v5860_v6, 2  ;;  %v5610_v52 = vmul.f32 0.2, %v5249_v34  ;;  %v5255_v18 = vadd.f32 %v11569_v0, %v11453_v14  ;;  %v6548_v2 = vsel %vm6547_vm2, %v6493_v62, %v6546_v53  ;;  %7304 = vmatpush1.bf16.msra.mxu1 %v9712_v45  ;;  %v9720_v45 = vld [vmem:[#allocation13 + $0x244] ss:$16 sps:$4 sm:$0xff]  }
 0x42e   :  { %v5840_v20 = vadd.f32 %v5839_v7, %v5838_v11  ;;  %v11655_v39 = vadd.f32 %v11581_v26, %v11404_v21  ;;  %v5879_v4 = vrot.slane %v5878_v23, 2  ;;  %v11659_v3 = vunpack.c.l.b16 %v6238_v25  ;;  %7305 = vmatprep.subr.bf16.mxu1 %v9720_v45 }
 0x42f   :  { %v11657_v42 = vpop.f32.mrf.mxu1  ;;  %vm5546_vm5 = vcmp.gt.f32.partialorder %v5249_v34, 0.0  ;;  %v5901_v15 = vrot.slane %v5677_v46, 4  ;;  %v5617_v54 = vmul.f32 0.2, %v5257_v22  ;;  %v6497_v14 = vunpack.c.l.b16 %v6241_v9 }
 0x430   :  { %v5857_v0 = vrot.slane %v5856_v1, 1  ;;  %v11665_v11 = vadd.f32 %v11589_v16, %v11397_v12  ;;  %vm5553_vm6 = vcmp.gt.f32.partialorder %v5257_v22, 0.0  ;;  %v5862_v26 = vadd.f32 %v5861_v50, %v5860_v6  ;;  %v11674_v6 = vpop.f32.mrf.mxu0 }
 0x431   :  { %v5614_v24 = vmul.f32 0.2, %v5255_v18  ;;  %v5259_v44 = vadd.f32 %v11577_v10, %v11463_v19  ;;  %v5263_v43 = vadd.f32 %v11583_v29, %v11469_v13  ;;  %v6242_v28 = vpack.c.bf16 %v5840_v20, %v5840_v20  ;;  %v11672_v62 = vpop.f32.mrf.mxu1 }
 0x432   :  { %v5880_v51 = vadd.f32 %v5879_v4, %v5878_v23  ;;  %v5674_v30 = vsel %vm5546_vm5, %v5249_v34, %v5610_v52  ;;  %vm5550_vm7 = vcmp.gt.f32.partialorder %v5255_v18, 0.0  ;;  %v5902_v16 = vadd.f32 %v5901_v15, %v5677_v46 }
 0x433   :  { %v5681_v7 = vsel %vm5553_vm6, %v5257_v22, %v5617_v54  ;;  %vm5554_vm8 = vcmp.gt.f32.partialorder %v5259_v44, 0.0  ;;  %v5618_v53 = vmul.f32 0.2, %v5259_v44  ;;  %v11677_v25 = vsel %vm6549_vm3, %v6497_v14, %v6548_v2  ;;  %v11685_v52 = vpop.f32.mrf.mxu1 }
 0x434   :  { %v5858_v19 = vadd.f32 %v5857_v0, %v5856_v1  ;;  %v11681_v13 = vadd.f32 %v11600_v48, %v11404_v21  ;;  %vm5557_vm9 = vcmp.gt.f32.partialorder %v5263_v43, 0.0  ;;  %vm6551_vm10 = vcmask 1046534   ;;  %v11689_v48 = vpop.f32.mrf.mxu0 }
 0x435   :  { %v5863_v10 = vrot.slane %v5862_v26, 1  ;;  %v5678_v29 = vsel %vm5550_vm7, %v5255_v18, %v5614_v24  ;;  %v5682_v34 = vsel %vm5554_vm8, %v5259_v44, %v5618_v53  ;;  %v5621_v23 = vmul.f32 0.2, %v5263_v43  ;;  %v9718_v18 = vld [vmem:[#allocation13 + $0x240] ss:$16 sps:$4 sm:$0xff]  }
 0x436   :  { %12195 = vst [vmem:[#allocation42_spill] sm:$0xff] %v11681_v13  ;;  %v5881_v9 = vrot.slane %v5880_v51, 1  ;;  %v5883_v22 = vrot.slane %v5674_v30, 4  ;;  %v5925_v46 = vrot.slane %v5681_v7, 4  ;;  %v5265_v50 = vadd.f32 %v11585_v32, %v11473_v27  ;;  %7306 = vmatpush1.bf16.msra.mxu1 %v9718_v18 }
 0x437   :  { %v11687_v2 = vunpack.c.l.b16 %v6242_v28  ;;  %v5903_v1 = vrot.slane %v5902_v16, 2  ;;  %v5685_v20 = vsel %vm5557_vm9, %v5263_v43, %v5621_v23  ;;  %v5267_v4 = vadd.f32 %v11591_v36, %v11477_v61  ;;  %v11697_v28 = vpop.f32.mrf.mxu1  ;;  %v9724_v61 = vld [vmem:[#allocation13 + $0x220] ss:$16 sps:$4 sm:$0xff]   ;;  %v9726_v36 = vld [vmem:[#allocation13 + $0x224] ss:$16 sps:$4 sm:$0xff]  }
 0x438   :  { %v6245_v56 = vpack.c.bf16 %v5858_v19, %v5858_v19  ;;  %v11695_v15 = vadd.f32 %v11619_v35, %v11397_v12  ;;  %v5907_v54 = vrot.slane %v5678_v29, 4  ;;  %v5931_v27 = vrot.slane %v5682_v34, 4  ;;  %7307 = vmatprep.subr.bf16.mxu1 %v9726_v36 }
 0x439   :  { %v5864_v32 = vadd.f32 %v5863_v10, %v5862_v26  ;;  %v5949_v14 = vrot.slane %v5685_v20, 4  ;;  %vm5558_vm11 = vcmp.gt.f32.partialorder %v5265_v50, 0.0  ;;  %v5622_v0 = vmul.f32 0.2, %v5265_v50  ;;  %v11703_v26 = vpop.f32.mrf.mxu0  ;;  %v11708_v45 = vpop.f32.mrf.mxu1 }
 0x43a   :  { %12196 = vst [vmem:[#allocation43_spill] sm:$0xff] %v11695_v15  ;;  %v5882_v24 = vadd.f32 %v5881_v9, %v5880_v51  ;;  %v5884_v44 = vadd.f32 %v5883_v22, %v5674_v30  ;;  %v5926_v43 = vadd.f32 %v5925_v46, %v5681_v7  ;;  %vm5561_vm13 = vcmp.gt.f32.partialorder %v5267_v4, 0.0  ;;  %7308 = vmatpush1.bf16.msra.mxu1 %v9724_v61 }
 0x43b   :  { %v5904_v53 = vadd.f32 %v5903_v1, %v5902_v16  ;;  %v11701_v35 = vadd.f32 %v11639_v8, %v11404_v21  ;;  %v5686_v19 = vsel %vm5558_vm11, %v5265_v50, %v5622_v0  ;;  %v5625_v10 = vmul.f32 0.2, %v5267_v4  ;;  %v11718_v13 = vpop.f32.mrf.mxu1 }
 0x43c   :  { %v6501_v23 = vunpack.c.l.b16 %v6245_v56  ;;  %vm6553_vm15 = vcmask 1047559   ;;  %v5908_v51 = vadd.f32 %v5907_v54, %v5678_v29  ;;  %v5932_v30 = vadd.f32 %v5931_v27, %v5682_v34  ;;  %v11710_v29 = vpop.f32.mrf.mxu0  ;;  %v9732_v27 = vld [vmem:[#allocation13 + $0x204] ss:$16 sps:$4 sm:$0xff]  }
 0x43d   :  { %12197 = vst [vmem:[#allocation44_spill] sm:$0xff] %v11701_v35  ;;  %v5955_v7 = vrot.slane %v5686_v19, 4  ;;  %v6246_v9 = vpack.c.bf16 %v5864_v32, %v5864_v32  ;;  %v5950_v22 = vadd.f32 %v5949_v14, %v5685_v20  ;;  %v5689_v46 = vsel %vm5561_vm13, %v5267_v4, %v5625_v10  ;;  %7309 = vmatprep.subr.bf16.mxu1 %v9732_v27  ;;  %v11732_v35 = vpop.f32.mrf.mxu1 }
 0x43e   :  { %v5269_v16 = vadd.f32 %v11597_v33, %v11481_v47  ;;  %v6249_v1 = vpack.c.bf16 %v5882_v24, %v5882_v24  ;;  %v5885_v8 = vrot.slane %v5884_v44, 2  ;;  %v5927_v18 = vrot.slane %v5926_v43, 2  ;;  %v9730_v33 = vld [vmem:[#allocation13 + $0x200] ss:$16 sps:$4 sm:$0xff]  }
 0x43f   :  { %v5956_v50 = vadd.f32 %v5955_v7, %v5686_v19  ;;  %v5905_v56 = vrot.slane %v5904_v53, 1  ;;  %v5973_v0 = vrot.slane %v5689_v46, 4  ;;  %v6552_v20 = vsel %vm6551_vm10, %v6501_v23, %v11677_v25  ;;  %7310 = vmatpush1.bf16.msra.mxu1 %v9730_v33  ;;  %v9738_v33 = vld [vmem:[#allocation13 + $0x3e4] ss:$16 sps:$4 sm:$0xff]  }
 0x440   :  { %vm5562_vm1 = vcmp.gt.f32.partialorder %v5269_v16, 0.0  ;;  %v5626_v34 = vmul.f32 0.2, %v5269_v16  ;;  %v5909_v4 = vrot.slane %v5908_v51, 2  ;;  %v5933_v54 = vrot.slane %v5932_v30, 2  ;;  %7311 = vmatprep.subr.bf16.mxu1 %v9738_v33 }
 0x441   :  { %v5273_v47 = vadd.f32 %v11602_v31, %v11485_v38  ;;  %v11716_v32 = vunpack.c.l.b16 %v6246_v9  ;;  %v5951_v14 = vrot.slane %v5950_v22, 2  ;;  %v5974_v24 = vadd.f32 %v5973_v0, %v5689_v46  ;;  %v11724_v38 = vpop.f32.mrf.mxu0 }
 0x442   :  { %v5690_v61 = vsel %vm5562_vm1, %v5269_v16, %v5626_v34  ;;  %v5886_v36 = vadd.f32 %v5885_v8, %v5884_v44  ;;  %v5928_v19 = vadd.f32 %v5927_v18, %v5926_v43  ;;  %v5957_v10 = vrot.slane %v5956_v50, 2 }
 0x443   :  { %v5979_v7 = vrot.slane %v5690_v61, 4  ;;  %v6505_v25 = vunpack.c.l.b16 %v6249_v1  ;;  %v11722_v23 = vadd.f32 %v11661_v41, %v11397_v12  ;;  %vm5565_vm4 = vcmp.gt.f32.partialorder %v5273_v47, 0.0  ;;  %v12200_v1 = vld [vmem:[#allocation28_spill] sm:$0xff] }
 0x444   :  { %v5629_v31 = vmul.f32 0.2, %v5273_v47  ;;  %v5906_v9 = vadd.f32 %v5905_v56, %v5904_v53  ;;  %v5910_v46 = vadd.f32 %v5909_v4, %v5908_v51  ;;  %v5934_v16 = vadd.f32 %v5933_v54, %v5932_v30  ;;  %v11737_v30 = vpop.f32.mrf.mxu0  ;;  %v12201_v54 = vld [vmem:[#allocation29_spill] sm:$0xff] }
 0x445   :  { %12198 = vst [vmem:[#allocation45_spill] sm:$0xff] %v11722_v23  ;;  %v11728_v44 = vadd.f32 %v11674_v6, %v11404_v21  ;;  %v5952_v43 = vadd.f32 %v5951_v14, %v5950_v22  ;;  %v5975_v8 = vrot.slane %v5974_v24, 2  ;;  %v5275_v0 = vadd.f32 %v11612_v63, %v12200_v1  ;;  %v11743_v1 = vpop.f32.mrf.mxu1 }
 0x446   :  { %v5693_v18 = vsel %vm5565_vm4, %v5273_v47, %v5629_v31  ;;  %v5887_v41 = vrot.slane %v5886_v36, 1  ;;  %v5929_v34 = vrot.slane %v5928_v19, 1  ;;  %v5958_v27 = vadd.f32 %v5957_v10, %v5956_v50  ;;  %v9736_v47 = vld [vmem:[#allocation13 + $0x3e0] ss:$16 sps:$4 sm:$0xff]  }
 0x447   :  { %12199 = vst [vmem:[#allocation46_spill] sm:$0xff] %v11728_v44  ;;  %v5980_v23 = vadd.f32 %v5979_v7, %v5690_v61  ;;  %v11735_v53 = vsel %vm6553_vm15, %v6505_v25, %v6552_v20  ;;  %v5997_v51 = vrot.slane %v5693_v18, 4  ;;  %vm5566_vm5 = vcmp.gt.f32.partialorder %v5275_v0, 0.0  ;;  %v11745_v44 = vpop.f32.mrf.mxu0  ;;  %7312 = vmatpush2.bf16.msra.mxu1 %v9736_v47 }
 0x448   :  { %v5630_v6 = vmul.f32 0.2, %v5275_v0  ;;  %v6253_v22 = vpack.c.bf16 %v5906_v9, %v5906_v9  ;;  %v5911_v56 = vrot.slane %v5910_v46, 1  ;;  %v5935_v4 = vrot.slane %v5934_v16, 1 }
 0x449   :  { %v5277_v63 = vadd.f32 %v11621_v57, %v12201_v54  ;;  %v5953_v50 = vrot.slane %v5952_v43, 1  ;;  %v5976_v14 = vadd.f32 %v5975_v8, %v5974_v24  ;;  %v5998_v61 = vadd.f32 %v5997_v51, %v5693_v18  ;;  %v12202_v57 = vld [vmem:[#allocation30_spill] sm:$0xff]  ;;  %v5389_v47 = vpop.f32.mrf.mxu0 }
 0x44a   :  { %v5694_v10 = vsel %vm5566_vm5, %v5275_v0, %v5630_v6  ;;  %v11741_v7 = vadd.f32 %v5887_v41, %v5886_v36  ;;  %v5930_v20 = vadd.f32 %v5929_v34, %v5928_v19  ;;  %v5959_v25 = vrot.slane %v5958_v27, 1 }
 0x44b   :  { %v5981_v31 = vrot.slane %v5980_v23, 2  ;;  %v6003_v9 = vrot.slane %v5694_v10, 4  ;;  %vm5569_vm6 = vcmp.gt.f32.partialorder %v5277_v63, 0.0  ;;  %v5633_v15 = vmul.f32 0.2, %v5277_v63 }
 0x44c   :  { %v5279_v54 = vadd.f32 %v11632_v55, %v12202_v57  ;;  %v5912_v24 = vadd.f32 %v5911_v56, %v5910_v46  ;;  %v5936_v8 = vadd.f32 %v5935_v4, %v5934_v16  ;;  %v11751_v36 = vadd.f32 %v11689_v48, %v11397_v12  ;;  %v11761_v16 = vpop.f32.mrf.mxu1  ;;  %v9742_v56 = vld [vmem:[#allocation13 + $0x3c0] ss:$16 sps:$4 sm:$0xff]  }
 0x44d   :  { %v5999_v19 = vrot.slane %v5998_v61, 2  ;;  %v6509_v18 = vunpack.c.l.b16 %v6253_v22  ;;  %v5954_v0 = vadd.f32 %v5953_v50, %v5952_v43  ;;  %v11755_v41 = vadd.f32 %v11703_v26, %v11404_v21  ;;  %v12206_v43 = vld [vmem:[#allocation31_spill] sm:$0xff]  ;;  %v9744_v26 = vld [vmem:[#allocation13 + $0x3c4] ss:$16 sps:$4 sm:$0xff]  }
 0x44e   :  { %12203 = vst [vmem:[#allocation28_spill] sm:$0xff] %v11751_v36  ;;  %v5977_v34 = vrot.slane %v5976_v14, 1  ;;  %v6257_v51 = vpack.c.bf16 %v5930_v20, %v5930_v20  ;;  %v11759_v6 = vadd.f32 %v11710_v29, %v11397_v12  ;;  %v5982_v55 = vadd.f32 %v5981_v31, %v5980_v23  ;;  %7313 = vmatprep.subr.bf16.mxu1 %v9744_v26 }
 0x44f   :  { %12204 = vst [vmem:[#allocation29_spill] sm:$0xff] %v11755_v41  ;;  %v5697_v46 = vsel %vm5569_vm6, %v5277_v63, %v5633_v15  ;;  %v5960_v48 = vadd.f32 %v5959_v25, %v5958_v27  ;;  %v6004_v4 = vadd.f32 %v6003_v9, %v5694_v10  ;;  %v5634_v22 = vmul.f32 0.2, %v5279_v54  ;;  %v11769_v10 = vpop.f32.mrf.mxu1  ;;  %7314 = vmatpush2.bf16.msra.mxu1 %v9742_v56  ;;  %v9750_v25 = vld [vmem:[#allocation13 + $0x3a4] ss:$16 sps:$4 sm:$0xff]  }
 0x450   :  { %12205 = vst [vmem:[#allocation30_spill] sm:$0xff] %v11759_v6  ;;  %v5283_v33 = vadd.f32 %v11657_v42, %v12206_v43  ;;  %v6254_v50 = vpack.c.bf16 %v5912_v24, %v5912_v24  ;;  %v6258_v57 = vpack.c.bf16 %v5936_v8, %v5936_v8  ;;  %v6000_v20 = vadd.f32 %v5999_v19, %v5998_v61  ;;  %v9748_v42 = vld [vmem:[#allocation13 + $0x3a0] ss:$16 sps:$4 sm:$0xff]   ;;  %v12208_v24 = vld [vmem:[#allocation33_spill] sm:$0xff] }
 0x451   :  { %vm5570_vm7 = vcmp.gt.f32.partialorder %v5279_v54, 0.0  ;;  %v6261_v41 = vpack.c.bf16 %v5954_v0, %v5954_v0  ;;  %v5978_v29 = vadd.f32 %v5977_v34, %v5976_v14  ;;  %v6021_v6 = vrot.slane %v5697_v46, 4  ;;  %v5391_v14 = vpop.f32.mrf.mxu0  ;;  %7315 = vmatprep.subr.bf16.mxu1 %v9750_v25  ;;  %v11779_v36 = vpop.f32.mrf.mxu1  ;;  %v12209_v25 = vld [vmem:[#allocation32_spill] sm:$0xff] }
 0x452   :  { %v5637_v23 = vmul.f32 0.2, %v5283_v33  ;;  %v6513_v15 = vunpack.c.l.b16 %v6257_v51  ;;  %v5983_v63 = vrot.slane %v5982_v55, 1  ;;  %v11767_v27 = vadd.f32 %v11724_v38, %v11404_v21  ;;  %v9756_v51 = vld [vmem:[#allocation13 + $0x384] ss:$16 sps:$4 sm:$0xff]  }
 0x453   :  { %vm5573_vm8 = vcmp.gt.f32.partialorder %v5283_v33, 0.0  ;;  %v6262_v31 = vpack.c.bf16 %v5960_v48, %v5960_v48  ;;  %v6005_v61 = vrot.slane %v6004_v4, 2  ;;  %v5698_v9 = vsel %vm5570_vm7, %v5279_v54, %v5634_v22  ;;  %7316 = vmatpush2.bf16.msra.mxu1 %v9748_v42 }
 0x454   :  { %12207 = vst [vmem:[#allocation31_spill] sm:$0xff] %v11767_v27  ;;  %v5287_v8 = vadd.f32 %v11685_v52, %v12208_v24  ;;  %v6510_v19 = vunpack.c.l.b16 %v6254_v50  ;;  %v6514_v0 = vunpack.c.l.b16 %v6258_v57  ;;  %v6001_v34 = vrot.slane %v6000_v20, 1  ;;  %v9754_v52 = vld [vmem:[#allocation13 + $0x380] ss:$16 sps:$4 sm:$0xff]   ;;  %v5395_v24 = vpop.f32.mrf.mxu0  ;;  %7317 = vmatprep.subr.bf16.mxu1 %v9756_v51 }
 0x455   :  { %v11776_v38 = vadd.f32 %v11737_v30, %v11397_v12  ;;  %v6517_v56 = vunpack.c.l.b16 %v6261_v41  ;;  %v6265_v43 = vpack.c.bf16 %v5978_v29, %v5978_v29  ;;  %v6022_v26 = vadd.f32 %v6021_v6, %v5697_v46  ;;  %v9762_v6 = vld [vmem:[#allocation13 + $0x364] ss:$16 sps:$4 sm:$0xff]  }
 0x456   :  { %v5701_v48 = vsel %vm5573_vm8, %v5283_v33, %v5637_v23  ;;  %v5984_v27 = vadd.f32 %v5983_v63, %v5982_v55  ;;  %v6027_v54 = vrot.slane %v5698_v9, 4  ;;  %vm5577_vm9 = vcmp.gt.f32.partialorder %v5287_v8, 0.0  ;;  %v12212_v51 = vld [vmem:[#allocation34_spill] sm:$0xff] }
 0x457   :  { %v5641_v22 = vmul.f32 0.2, %v5287_v8  ;;  %v6576_v50 = vsel %vm6541_vm12, %v6513_v15, %v6509_v18  ;;  %v6518_v57 = vunpack.c.l.b16 %v6262_v31  ;;  %v6006_v30 = vadd.f32 %v6005_v61, %v6004_v4  ;;  %v11794_v61 = vpop.f32.mrf.mxu1  ;;  %7318 = vmatpush2.bf16.msra.mxu1 %v9754_v52 }
 0x458   :  { %v5285_v41 = vadd.f32 %v11672_v62, %v12209_v25  ;;  %v6583_v46 = vsel %vm6541_vm12, %v6514_v0, %v6510_v19  ;;  %v6002_v55 = vadd.f32 %v6001_v34, %v6000_v20  ;;  %v11787_v33 = vadd.f32 %v11745_v44, %v11404_v21  ;;  %v9760_v20 = vld [vmem:[#allocation13 + $0x360] ss:$16 sps:$4 sm:$0xff]   ;;  %v5397_v34 = vpop.f32.mrf.mxu0  ;;  %7319 = vmatprep.subr.bf16.mxu1 %v9762_v6 }
 0x459   :  { %v6045_v29 = vrot.slane %v5701_v48, 4  ;;  %v6577_v23 = vsel %vm6543_vm14, %v6517_v56, %v6576_v50  ;;  %v6521_v63 = vunpack.c.l.b16 %v6265_v43  ;;  %v6023_v18 = vrot.slane %v6022_v26, 2  ;;  %v11815_v6 = vpop.f32.mrf.mxu1 }
 0x45a   :  { %12210 = vst [vmem:[#allocation33_spill] sm:$0xff] %v11787_v33  ;;  %v5705_v4 = vsel %vm5577_vm9, %v5287_v8, %v5641_v22  ;;  %v6266_v15 = vpack.c.bf16 %v5984_v27, %v5984_v27  ;;  %v11792_v42 = vadd.f32 %v5389_v47, %v11397_v12  ;;  %v6028_v62 = vadd.f32 %v6027_v54, %v5698_v9  ;;  %v9768_v27 = vld [vmem:[#allocation13 + $0x344] ss:$16 sps:$4 sm:$0xff]   ;;  %v12213_v9 = vld [vmem:[#allocation35_spill] sm:$0xff] }
 0x45b   :  { %v6069_v31 = vrot.slane %v5705_v4, 4  ;;  %v11797_v44 = vsel %vm6543_vm14, %v6518_v57, %v6583_v46  ;;  %v6007_v19 = vrot.slane %v6006_v30, 1  ;;  %v5638_v0 = vmul.f32 0.2, %v5285_v41  ;;  %7320 = vmatpush2.bf16.msra.mxu1 %v9760_v20 }
 0x45c   :  { %12211 = vst [vmem:[#allocation32_spill] sm:$0xff] %v11792_v42  ;;  %v5289_v56 = vadd.f32 %v11697_v28, %v12212_v51  ;;  %v6269_v8 = vpack.c.bf16 %v6002_v55, %v6002_v55  ;;  %v6046_v47 = vadd.f32 %v6045_v29, %v5701_v48  ;;  %vm5574_vm11 = vcmp.gt.f32.partialorder %v5285_v41, 0.0  ;;  %v12217_v29 = vld [vmem:[#allocation36_spill] sm:$0xff]  ;;  %7321 = vmatprep.subr.bf16.mxu1 %v9768_v27 }
 0x45d   :  { %v5439_v43 = vadd.f32 %v11708_v45, %v12213_v9  ;;  %v6578_v54 = vsel %vm6545_vm0, %v6521_v63, %v6577_v23  ;;  %v6024_v22 = vadd.f32 %v6023_v18, %v6022_v26  ;;  %v11805_v52 = vadd.f32 %v5391_v14, %v11404_v21  ;;  %v9766_v45 = vld [vmem:[#allocation13 + $0x340] ss:$16 sps:$4 sm:$0xff]   ;;  %v9780_v9 = vld [vmem:[#allocation13 + $0x304] ss:$16 sps:$4 sm:$0xff]  }
 0x45e   :  { %v11808_v50 = vadd.f32 %v5395_v24, %v11397_v12  ;;  %v11810_v57 = vunpack.c.l.b16 %v6266_v15  ;;  %v6029_v28 = vrot.slane %v6028_v62, 2  ;;  %v11813_v25 = vadd.f32 %v5397_v34, %v11404_v21  ;;  %v9774_v24 = vld [vmem:[#allocation13 + $0x324] ss:$16 sps:$4 sm:$0xff]   ;;  %v5399_v34 = vpop.f32.mrf.mxu0 }
 0x45f   :  { %12214 = vst [vmem:[#allocation34_spill] sm:$0xff] %v11805_v52  ;;  %v6070_v48 = vadd.f32 %v6069_v31, %v5705_v4  ;;  %v6008_v46 = vadd.f32 %v6007_v19, %v6006_v30  ;;  %v5702_v55 = vsel %vm5574_vm11, %v5285_v41, %v5638_v0  ;;  %v5642_v26 = vmul.f32 0.2, %v5289_v56  ;;  %v12218_v31 = vld [vmem:[#allocation37_spill] sm:$0xff]  ;;  %v11821_v19 = vpop.f32.mrf.mxu1  ;;  %7322 = vmatpush2.bf16.msra.mxu1 %v9766_v45  ;;  %v12219_v45 = vld [vmem:[#allocation38_spill] sm:$0xff] }
 0x460   :  { %12215 = vst [vmem:[#allocation35_spill] sm:$0xff] %v11808_v50  ;;  %12216 = vst [vmem:[#allocation47_spill] sm:$0xff] %v11813_v25  ;;  %v5441_v14 = vadd.f32 %v11718_v13, %v12217_v29  ;;  %v6525_v23 = vunpack.c.l.b16 %v6269_v8  ;;  %v6047_v63 = vrot.slane %v6046_v47, 2  ;;  %vm5578_vm13 = vcmp.gt.f32.partialorder %v5289_v56, 0.0  ;;  %v9772_v13 = vld [vmem:[#allocation13 + $0x320] ss:$16 sps:$4 sm:$0xff]   ;;  %7323 = vmatprep.subr.bf16.mxu1 %v9774_v24  ;;  %v5401_v42 = vpop.f32.mrf.mxu0 }
 0x461   :  { %v5583_v18 = vmul.f32 0.2, %v5439_v43  ;;  %v6025_v15 = vrot.slane %v6024_v22, 1  ;;  %vm5519_vm1 = vcmp.gt.f32.partialorder %v5439_v43, 0.0  ;;  %v5443_v20 = vadd.f32 %v11732_v35, %v12218_v31  ;;  %v11832_v33 = vpop.f32.mrf.mxu1 }
 0x462   :  { %v5584_v4 = vmul.f32 0.2, %v5441_v14  ;;  %v6030_v51 = vadd.f32 %v6029_v28, %v6028_v62  ;;  %v6051_v30 = vrot.slane %v5702_v55, 4  ;;  %v6071_v41 = vrot.slane %v6070_v48, 2 }
 0x463   :  { %vm5520_vm4 = vcmp.gt.f32.partialorder %v5441_v14, 0.0  ;;  %v6270_v0 = vpack.c.bf16 %v6008_v46, %v6008_v46  ;;  %v5706_v27 = vsel %vm5578_vm13, %v5289_v56, %v5642_v26  ;;  %vm5523_vm5 = vcmp.gt.f32.partialorder %v5443_v20, 0.0  ;;  %7324 = vmatpush2.bf16.msra.mxu1 %v9772_v13 }
 0x464   :  { %v5587_v8 = vmul.f32 0.2, %v5443_v20  ;;  %v11824_v29 = vsel %vm6547_vm2, %v6525_v23, %v6578_v54  ;;  %v6048_v25 = vadd.f32 %v6047_v63, %v6046_v47  ;;  %v11827_v35 = vadd.f32 %v5399_v34, %v11397_v12  ;;  %v9778_v47 = vld [vmem:[#allocation13 + $0x300] ss:$16 sps:$4 sm:$0xff]   ;;  %7325 = vmatprep.subr.bf16.mxu1 %v9780_v9 }
 0x465   :  { %v5647_v62 = vsel %vm5519_vm1, %v5439_v43, %v5583_v18  ;;  %v6026_v28 = vadd.f32 %v6025_v15, %v6024_v22  ;;  %v5648_v31 = vsel %vm5520_vm4, %v5441_v14, %v5584_v4  ;;  %v5445_v46 = vadd.f32 %v11743_v1, %v12219_v45  ;;  %v9786_v22 = vld [vmem:[#allocation13 + $0x2ec] ss:$16 sps:$4 sm:$0xff]   ;;  %v12222_v34 = vld [vmem:[#allocation40_spill] sm:$0xff] }
 0x466   :  { %v5651_v50 = vsel %vm5523_vm5, %v5443_v20, %v5587_v8  ;;  %v6031_v56 = vrot.slane %v6030_v51, 1  ;;  %v6052_v26 = vadd.f32 %v6051_v30, %v5702_v55  ;;  %v6072_v52 = vadd.f32 %v6071_v41, %v6070_v48  ;;  %v12220_v1 = vld [vmem:[#allocation39_spill] sm:$0xff] }
 0x467   :  { %v6075_v24 = vrot.slane %v5706_v27, 4  ;;  %v11834_v54 = vunpack.c.l.b16 %v6270_v0  ;;  %v5721_v12 = vrot.slane %v5647_v62, 4  ;;  %vm5524_vm6 = vcmp.gt.f32.partialorder %v5445_v46, 0.0  ;;  %v11843_v0 = vpop.f32.mrf.mxu1  ;;  %7326 = vmatpush2.bf16.msra.mxu1 %v9778_v47 }
 0x468   :  { %v5588_v43 = vmul.f32 0.2, %v5445_v46  ;;  %v6049_v14 = vrot.slane %v6048_v25, 1  ;;  %v5727_v23 = vrot.slane %v5648_v31, 4  ;;  %v5745_v63 = vrot.slane %v5651_v50, 4  ;;  %7381 = vmatprep.subr.bf16.mxu1 %v9786_v22 }
 0x469   :  { %v5449_v55 = vadd.f32 %v11761_v16, %v12220_v1  ;;  %v6273_v48 = vpack.c.bf16 %v6026_v28, %v6026_v28  ;;  %v11839_v18 = vadd.f32 %v5401_v42, %v11404_v21  ;;  %v5451_v4 = vadd.f32 %v11769_v10, %v12222_v34  ;;  %v12223_v10 = vld [vmem:[#allocation41_spill] sm:$0xff]  ;;  %v11847_v47 = vpop.f32.mrf.mxu1 }
 0x46a   :  { %v5652_v15 = vsel %vm5524_vm6, %v5445_v46, %v5588_v43  ;;  %v6053_v20 = vrot.slane %v6052_v26, 2  ;;  %v6073_v30 = vrot.slane %v6072_v52, 1  ;;  %v6076_v41 = vadd.f32 %v6075_v24, %v5706_v27 }
 0x46b   :  { %12221 = vst [vmem:[#allocation36_spill] sm:$0xff] %v11839_v18  ;;  %v5751_v13 = vrot.slane %v5652_v15, 4  ;;  %v6032_v8 = vadd.f32 %v6031_v56, %v6030_v51  ;;  %v5722_v9 = vadd.f32 %v5721_v12, %v5647_v62  ;;  %vm5527_vm7 = vcmp.gt.f32.partialorder %v5449_v55, 0.0 }
 0x46c   :  { %v5591_v45 = vmul.f32 0.2, %v5449_v55  ;;  %v6050_v16 = vadd.f32 %v6049_v14, %v6048_v25  ;;  %v5728_v28 = vadd.f32 %v5727_v23, %v5648_v31  ;;  %v5746_v21 = vadd.f32 %v5745_v63, %v5651_v50 }
 0x46d   :  { %vm5528_vm8 = vcmp.gt.f32.partialorder %v5451_v4, 0.0  ;;  %v5752_v42 = vadd.f32 %v5751_v13, %v5652_v15  ;;  %v5592_v43 = vmul.f32 0.2, %v5451_v4  ;;  %v5453_v1 = vadd.f32 %v11779_v36, %v12223_v10  ;;  %v11853_v15 = vpop.f32.mrf.mxu1 }
 0x46e   :  { %v5655_v46 = vsel %vm5527_vm7, %v5449_v55, %v5591_v45  ;;  %v6054_v27 = vadd.f32 %v6053_v20, %v6052_v26  ;;  %v6074_v24 = vadd.f32 %v6073_v30, %v6072_v52  ;;  %v6077_v34 = vrot.slane %v6076_v41, 2 }
 0x46f   :  { %v5769_v18 = vrot.slane %v5655_v46, 4  ;;  %v5723_v51 = vrot.slane %v5722_v9, 2  ;;  %v5656_v62 = vsel %vm5528_vm8, %v5451_v4, %v5592_v43  ;;  %vm5531_vm9 = vcmp.gt.f32.partialorder %v5453_v1, 0.0 }
 0x470   :  { %v5595_v56 = vmul.f32 0.2, %v5453_v1  ;;  %v5729_v25 = vrot.slane %v5728_v28, 2  ;;  %v5747_v31 = vrot.slane %v5746_v21, 2  ;;  %v5775_v12 = vrot.slane %v5656_v62, 4 }
 0x471   :  { %v5770_v50 = vadd.f32 %v5769_v18, %v5655_v46  ;;  %v5753_v22 = vrot.slane %v5752_v42, 2  ;;  %v5455_v23 = vadd.f32 %v11794_v61, %v11595_v49  ;;  %v5459_v36 = vadd.f32 %v11815_v6, %v11606_v58 }
 0x472   :  { %v5659_v14 = vsel %vm5531_vm9, %v5453_v1, %v5595_v56  ;;  %v6529_v52 = vunpack.c.l.b16 %v6273_v48  ;;  %v6274_v26 = vpack.c.bf16 %v6032_v8, %v6032_v8  ;;  %v5776_v55 = vadd.f32 %v5775_v12, %v5656_v62  ;;  %v11855_v48 = vpop.f32.mrf.mxu1 }
 0x473   :  { %v5771_v63 = vrot.slane %v5770_v50, 2  ;;  %v6277_v4 = vpack.c.bf16 %v6050_v16, %v6050_v16  ;;  %v6055_v20 = vrot.slane %v6054_v27, 1  ;;  %v6078_v30 = vadd.f32 %v6077_v34, %v6076_v41 }
 0x474   :  { %v5793_v13 = vrot.slane %v5659_v14, 4  ;;  %v6281_v18 = vpack.c.bf16 %v6074_v24, %v6074_v24  ;;  %v5724_v45 = vadd.f32 %v5723_v51, %v5722_v9  ;;  %v5730_v46 = vadd.f32 %v5729_v25, %v5728_v28 }
 0x475   :  { %v5596_v43 = vmul.f32 0.2, %v5455_v23  ;;  %v5748_v10 = vadd.f32 %v5747_v31, %v5746_v21  ;;  %v5754_v1 = vadd.f32 %v5753_v22, %v5752_v42  ;;  %vm5532_vm11 = vcmp.gt.f32.partialorder %v5455_v23, 0.0  ;;  %v11863_v22 = vpop.f32.mrf.mxu1 }
 0x476   :  { %v5599_v49 = vmul.f32 0.2, %v5459_v36  ;;  %v5772_v61 = vadd.f32 %v5771_v63, %v5770_v50  ;;  %v5777_v58 = vrot.slane %v5776_v55, 2  ;;  %v5794_v6 = vadd.f32 %v5793_v13, %v5659_v14 }
 0x477   :  { %vm5535_vm13 = vcmp.gt.f32.partialorder %v5459_v36, 0.0  ;;  %v6580_v8 = vsel %vm6549_vm3, %v6529_v52, %v11824_v29  ;;  %v11859_v16 = vunpack.c.l.b16 %v6274_v26  ;;  %v6533_v41 = vunpack.c.l.b16 %v6277_v4 }
 0x478   :  { %v5461_v9 = vadd.f32 %v11821_v19, %v11617_v37  ;;  %v6056_v28 = vadd.f32 %v6055_v20, %v6054_v27  ;;  %v5725_v21 = vrot.slane %v5724_v45, 1  ;;  %v5731_v42 = vrot.slane %v5730_v46, 1 }
 0x479   :  { %v5660_v24 = vsel %vm5532_vm11, %v5455_v23, %v5596_v43  ;;  %v6079_v34 = vrot.slane %v6078_v30, 1  ;;  %v5749_v51 = vrot.slane %v5748_v10, 1  ;;  %v5755_v62 = vrot.slane %v5754_v1, 1  ;;  %v11869_v43 = vpop.f32.mrf.mxu1 }
 0x47a   :  { %v5663_v56 = vsel %vm5535_vm13, %v5459_v36, %v5599_v49  ;;  %v6537_v25 = vunpack.c.l.b16 %v6281_v18  ;;  %v5773_v31 = vrot.slane %v5772_v61, 1  ;;  %v5778_v50 = vadd.f32 %v5777_v58, %v5776_v55 }
 0x47b   :  { %v5795_v12 = vrot.slane %v5794_v6, 2  ;;  %v6581_v29 = vsel %vm6551_vm10, %v6533_v41, %v6580_v8  ;;  %v5799_v14 = vrot.slane %v5660_v24, 4  ;;  %v5600_v52 = vmul.f32 0.2, %v5461_v9 }
 0x47c   :  { %v5463_v37 = vadd.f32 %v11832_v33, %v11625_v5  ;;  %v5726_v19 = vadd.f32 %v5725_v21, %v5724_v45  ;;  %v5732_v27 = vadd.f32 %v5731_v42, %v5730_v46  ;;  %v5817_v23 = vrot.slane %v5663_v56, 4  ;;  %v11873_v21 = vpop.f32.mrf.mxu1 }
 0x47d   :  { %vm5536_vm1 = vcmp.gt.f32.partialorder %v5461_v9, 0.0  ;;  %v6278_v26 = vpack.c.bf16 %v6056_v28, %v6056_v28  ;;  %v6080_v63 = vadd.f32 %v6079_v34, %v6078_v30  ;;  %v5750_v36 = vadd.f32 %v5749_v51, %v5748_v10 }
 0x47e   :  { %v5756_v4 = vadd.f32 %v5755_v62, %v5754_v1  ;;  %v6582_v55 = vsel %vm6553_vm15, %v6537_v25, %v6581_v29  ;;  %v5774_v20 = vadd.f32 %v5773_v31, %v5772_v61  ;;  %v5779_v13 = vrot.slane %v5778_v50, 1 }
 0x47f   :  { %v5796_v18 = vadd.f32 %v5795_v12, %v5794_v6  ;;  %v5800_v49 = vadd.f32 %v5799_v14, %v5660_v24  ;;  %v5664_v58 = vsel %vm5536_vm1, %v5461_v9, %v5600_v52  ;;  %v5603_v8 = vmul.f32 0.2, %v5463_v37 }
 0x480   :  { %v5465_v5 = vadd.f32 %v11843_v0, %v11637_v40  ;;  %v6223_v33 = vpack.c.bf16 %v5726_v19, %v5726_v19  ;;  %v6224_v45 = vpack.c.bf16 %v5732_v27, %v5732_v27  ;;  %v5818_v46 = vadd.f32 %v5817_v23, %v5663_v56  ;;  %v11880_v19 = vpop.f32.mrf.mxu1 }
 0x481   :  { %vm5539_vm4 = vcmp.gt.f32.partialorder %v5463_v37, 0.0  ;;  %v6227_v30 = vpack.c.bf16 %v5750_v36, %v5750_v36  ;;  %v6228_v10 = vpack.c.bf16 %v5756_v4, %v5756_v4  ;;  %v6534_v41 = vunpack.c.l.b16 %v6278_v26 }
 0x482   :  { %vm5540_vm5 = vcmp.gt.f32.partialorder %v5465_v5, 0.0  ;;  %v5604_v1 = vmul.f32 0.2, %v5465_v5  ;;  %v6231_v61 = vpack.c.bf16 %v5774_v20, %v5774_v20  ;;  %v5780_v28 = vadd.f32 %v5779_v13, %v5778_v50 }
 0x483   :  { %v5823_v6 = vrot.slane %v5664_v58, 4  ;;  %v11876_v9 = vpack.c.b16 %v6582_v55, %v11735_v53  ;;  %v5797_v42 = vrot.slane %v5796_v18, 1  ;;  %v5801_v24 = vrot.slane %v5800_v49, 2 }
 0x484   :  { %v5667_v40 = vsel %vm5539_vm4, %v5463_v37, %v5603_v8  ;;  %v5819_v0 = vrot.slane %v5818_v46, 2  ;;  %v5668_v34 = vsel %vm5540_vm5, %v5465_v5, %v5604_v1  ;;  %v6250_v51 = vpack.c.bf16 %v11741_v7, %v11741_v7 }
 0x485   :  { %v6282_v62 = vpack.c.bf16 %v6080_v63, %v6080_v63  ;;  %v6479_v56 = vunpack.c.l.b16 %v6223_v33  ;;  %v6480_v25 = vunpack.c.l.b16 %v6224_v45  ;;  %v6483_v31 = vunpack.c.l.b16 %v6227_v30  ;;  %v9691_v45 = vld [vmem:[#allocation13 + $0xe8] ss:$16 sps:$4 sm:$0xff]  }
 0x486   :  { %v6484_v12 = vunpack.c.l.b16 %v6228_v10  ;;  %v6487_v50 = vunpack.c.l.b16 %v6231_v61  ;;  %v6232_v29 = vpack.c.bf16 %v5780_v28, %v5780_v28  ;;  %v5824_v14 = vadd.f32 %v5823_v6, %v5664_v58  ;;  %v9699_v61 = vld [vmem:[#allocation13 + $0xcc] ss:$16 sps:$4 sm:$0xff]  }
 0x487   :  { %v5841_v52 = vrot.slane %v5667_v40, 4  ;;  %v11882_v53 = vadd.f32 %v5797_v42, %v5796_v18  ;;  %v5802_v27 = vadd.f32 %v5801_v24, %v5800_v49  ;;  %v5847_v37 = vrot.slane %v5668_v34, 4  ;;  %v11898_v49 = vpop.f32.mrf.mxu1 }
 0x488   :  { %v5469_v23 = vadd.f32 %v11847_v47, %v11645_v60  ;;  %v5820_v26 = vadd.f32 %v5819_v0, %v5818_v46  ;;  %v6506_v7 = vunpack.c.l.b16 %v6250_v51  ;;  %v6538_v63 = vunpack.c.l.b16 %v6282_v62 }
 0x489   :  { %v5471_v36 = vadd.f32 %v11853_v15, %v11655_v39  ;;  %v6557_v4 = vsel %vm6545_vm0, %v11648_v17, %v11630_v59  ;;  %v6585_v55 = vsel %vm6545_vm0, %v11810_v57, %v11797_v44  ;;  %v5825_v13 = vrot.slane %v5824_v14, 2  ;;  %v11915_v46 = vpop.f32.mrf.mxu1 }
 0x48a   :  { %vm5543_vm6 = vcmp.gt.f32.partialorder %v5469_v23, 0.0  ;;  %v5607_v20 = vmul.f32 0.2, %v5469_v23  ;;  %v5842_v18 = vadd.f32 %v5841_v52, %v5667_v40  ;;  %v6558_v60 = vsel %vm6547_vm2, %v11659_v3, %v6557_v4  ;;  %v12224_v40 = vld [vmem:[#allocation43_spill] sm:$0xff] }
 0x48b   :  { %v6586_v47 = vsel %vm6547_vm2, %v11834_v54, %v6585_v55  ;;  %v5848_v39 = vadd.f32 %v5847_v37, %v5668_v34  ;;  %v6559_v59 = vsel %vm6549_vm3, %v11687_v2, %v6558_v60  ;;  %vm5544_vm7 = vcmp.gt.f32.partialorder %v5471_v36, 0.0  ;;  %v12225_v34 = vld [vmem:[#allocation44_spill] sm:$0xff]  ;;  %v9705_v52 = vld [vmem:[#allocation13 + $0xac] ss:$16 sps:$4 sm:$0xff]  }
 0x48c   :  { %v6587_v17 = vsel %vm6549_vm3, %v11859_v16, %v6586_v47  ;;  %v5671_v44 = vsel %vm5543_vm6, %v5469_v23, %v5607_v20  ;;  %v6560_v57 = vsel %vm6551_vm10, %v11716_v32, %v6559_v59  ;;  %v5608_v8 = vmul.f32 0.2, %v5471_v36  ;;  %v9711_v60 = vld [vmem:[#allocation13 + $0x8c] ss:$16 sps:$4 sm:$0xff]   ;;  %v12228_v47 = vld [vmem:[#allocation46_spill] sm:$0xff] }
 0x48d   :  { %v6588_v15 = vsel %vm6551_vm10, %v6534_v41, %v6587_v17  ;;  %v5865_v58 = vrot.slane %v5671_v44, 4  ;;  %v6561_v3 = vsel %vm6553_vm15, %v6506_v7, %v6560_v57  ;;  %v5473_v5 = vadd.f32 %v11855_v48, %v11665_v11 }
 0x48e   :  { %v6589_v54 = vsel %vm6553_vm15, %v6538_v63, %v6588_v15  ;;  %v6562_v2 = vsel %vm6541_vm12, %v6483_v31, %v6479_v56  ;;  %v11913_v16 = vsel %vm6541_vm12, %v6484_v12, %v6480_v25  ;;  %v5803_v10 = vrot.slane %v5802_v27, 1  ;;  %v9697_v25 = vld [vmem:[#allocation13 + $0xc8] ss:$16 sps:$4 sm:$0xff]   ;;  %v12226_v31 = vld [vmem:[#allocation42_spill] sm:$0xff] }
 0x48f   :  { %v6605_v33 = vpack.c.b16 %v6589_v54, %v6561_v3  ;;  %v5866_v32 = vadd.f32 %v5865_v58, %v5671_v44  ;;  %v11918_v30 = vsel %vm6543_vm14, %v6487_v50, %v6562_v2  ;;  %v5821_v1 = vrot.slane %v5820_v26, 1  ;;  %v11931_v50 = vpop.f32.mrf.mxu1  ;;  %v9709_v3 = vld [vmem:[#allocation13 + $0x88] ss:$16 sps:$4 sm:$0xff]  }
 0x490   :  { %v5672_v41 = vsel %vm5544_vm7, %v5471_v36, %v5608_v8  ;;  %v11920_v28 = vunpack.c.l.b16 %v6232_v29  ;;  %v5826_v11 = vadd.f32 %v5825_v13, %v5824_v14  ;;  %v5843_v48 = vrot.slane %v5842_v18, 2  ;;  %v12227_v36 = vld [vmem:[#allocation45_spill] sm:$0xff] }
 0x491   :  { %v5849_v6 = vrot.slane %v5848_v39, 2  ;;  %7284 = vmatprep.mubr.bf16.mxu0 %v6605_v33  ;;  %v6235_v42 = vpack.c.bf16 %v11882_v53, %v11882_v53  ;;  %v5611_v24 = vmul.f32 0.2, %v5473_v5  ;;  %v5479_v0 = vadd.f32 %v11869_v43, %v12224_v40  ;;  %v5492_v20 = vpop.f32.mrf.mxu1 }
 0x492   :  { %7285 = vmatmul.mubr.bf16.vlgmr.msra.gmra.mxu0 %v11876_v9  ;;  %v5481_v51 = vadd.f32 %v11873_v21, %v12225_v34  ;;  %v5867_v62 = vrot.slane %v5866_v32, 2  ;;  %v5871_v56 = vrot.slane %v5672_v41, 4  ;;  %vm5547_vm8 = vcmp.gt.f32.partialorder %v5473_v5, 0.0 }
 0x493   :  { %7339 = vmatpush1.bf16.msra.mxu0 %v9691_v45  ;;  %7370 = vmatprep.mubr.bf16.mxu0 %v6605_v33  ;;  %v5475_v12 = vadd.f32 %v11863_v22, %v12226_v31  ;;  %v5804_v29 = vadd.f32 %v5803_v10, %v5802_v27  ;;  %v5822_v14 = vadd.f32 %v5821_v1, %v5820_v26  ;;  %vm5551_vm9 = vcmp.gt.f32.partialorder %v5479_v0, 0.0  ;;  %v9703_v26 = vld [vmem:[#allocation13 + $0xa8] ss:$16 sps:$4 sm:$0xff]   ;;  %v9717_v45 = vld [vmem:[#allocation13 + $0x6c] ss:$16 sps:$4 sm:$0xff]  }
 0x494   :  { %7340 = vmatprep.subr.bf16.mxu0 %v9699_v61  ;;  %v5615_v43 = vmul.f32 0.2, %v5479_v0  ;;  %v5827_v53 = vrot.slane %v5826_v11, 1  ;;  %v5844_v37 = vadd.f32 %v5843_v48, %v5842_v18  ;;  %v5850_v21 = vadd.f32 %v5849_v6, %v5848_v39 }
 0x495   :  { %vm5552_vm11 = vcmp.gt.f32.partialorder %v5481_v51, 0.0  ;;  %v5675_v23 = vsel %vm5547_vm8, %v5473_v5, %v5611_v24  ;;  %v5616_v63 = vmul.f32 0.2, %v5481_v51  ;;  %v5483_v4 = vadd.f32 %v11880_v19, %v12227_v36 }
 0x496   :  { %v5679_v7 = vsel %vm5551_vm9, %v5479_v0, %v5615_v43  ;;  %v5868_v55 = vadd.f32 %v5867_v62, %v5866_v32  ;;  %v5872_v22 = vadd.f32 %v5871_v56, %v5672_v41  ;;  %vm5548_vm13 = vcmp.gt.f32.partialorder %v5475_v12, 0.0  ;;  %v5494_v32 = vpop.f32.mrf.mxu1  ;;  %v9715_v56 = vld [vmem:[#allocation13 + $0x68] ss:$16 sps:$4 sm:$0xff]  }
 0x497   :  { %7341 = vmatpush1.bf16.msra.mxu0 %v9697_v25  ;;  %v5612_v27 = vmul.f32 0.2, %v5475_v12  ;;  %v5680_v13 = vsel %vm5552_vm11, %v5481_v51, %v5616_v63  ;;  %vm5555_vm1 = vcmp.gt.f32.partialorder %v5483_v4, 0.0  ;;  %v5619_v18 = vmul.f32 0.2, %v5483_v4 }
 0x498   :  { %7342 = vmatprep.subr.bf16.mxu0 %v9705_v52  ;;  %v5485_v39 = vadd.f32 %v11898_v49, %v12228_v47  ;;  %v6491_v59 = vunpack.c.l.b16 %v6235_v42  ;;  %v6239_v17 = vpack.c.bf16 %v5822_v14, %v5822_v14  ;;  %v5889_v44 = vrot.slane %v5675_v23, 4  ;;  %v5498_v25 = vpop.f32.mrf.mxu1  ;;  %v9723_v14 = vld [vmem:[#allocation13 + $0x4c] ss:$16 sps:$4 sm:$0xff]  }
 0x499   :  { %v5913_v57 = vrot.slane %v5679_v7, 4  ;;  %v6236_v19 = vpack.c.bf16 %v5804_v29, %v5804_v29  ;;  %v5828_v15 = vadd.f32 %v5827_v53, %v5826_v11  ;;  %v5845_v58 = vrot.slane %v5844_v37, 1  ;;  %v12230_v53 = vld [vmem:[#allocation30_spill] sm:$0xff] }
 0x49a   :  { %v5683_v54 = vsel %vm5555_vm1, %v5483_v4, %v5619_v18  ;;  %v5851_v8 = vrot.slane %v5850_v21, 1  ;;  %v5869_v5 = vrot.slane %v5868_v55, 1  ;;  %v5676_v2 = vsel %vm5548_vm13, %v5475_v12, %v5612_v27  ;;  %v12229_v12 = vld [vmem:[#allocation28_spill] sm:$0xff]  ;;  %v5500_v27 = vpop.f32.mrf.mxu1 }
 0x49b   :  { %7343 = vmatpush1.bf16.msra.mxu0 %v9703_v26  ;;  %v5919_v33 = vrot.slane %v5680_v13, 4  ;;  %v5873_v10 = vrot.slane %v5872_v22, 2  ;;  %v5937_v49 = vrot.slane %v5683_v54, 4  ;;  %vm5556_vm4 = vcmp.gt.f32.partialorder %v5485_v39, 0.0 }
 0x49c   :  { %7344 = vmatprep.subr.bf16.mxu0 %v9711_v60  ;;  %v5620_v1 = vmul.f32 0.2, %v5485_v39  ;;  %v11941_v41 = vsel %vm6543_vm14, %v11920_v28, %v11913_v16  ;;  %v6495_v61 = vunpack.c.l.b16 %v6239_v17  ;;  %v5890_v11 = vadd.f32 %v5889_v44, %v5675_v23 }
 0x49d   :  { %v5914_v48 = vadd.f32 %v5913_v57, %v5679_v7  ;;  %v6564_v6 = vsel %vm6545_vm0, %v6491_v59, %v11918_v30  ;;  %v11945_v42 = vunpack.c.l.b16 %v6236_v19  ;;  %v5846_v24 = vadd.f32 %v5845_v58, %v5844_v37 }
 0x49e   :  { %v5895_v40 = vrot.slane %v5676_v2, 4  ;;  %v6240_v0 = vpack.c.bf16 %v5828_v15, %v5828_v15  ;;  %v5852_v34 = vadd.f32 %v5851_v8, %v5850_v21  ;;  %v5920_v51 = vadd.f32 %v5919_v33, %v5680_v13  ;;  %v9727_v8 = vld [vmem:[#allocation13 + $0x28] ss:$16 sps:$4 sm:$0xff]  }
 0x49f   :  { %7345 = vmatpush1.bf16.msra.mxu0 %v9709_v3  ;;  %v5684_v62 = vsel %vm5556_vm4, %v5485_v39, %v5620_v1  ;;  %v5870_v31 = vadd.f32 %v5869_v5, %v5868_v55  ;;  %v5874_v16 = vadd.f32 %v5873_v10, %v5872_v22  ;;  %v5938_v28 = vadd.f32 %v5937_v49, %v5683_v54  ;;  %v12231_v55 = vld [vmem:[#allocation29_spill] sm:$0xff]  ;;  %v12232_v3 = vld [vmem:[#allocation31_spill] sm:$0xff]  ;;  %v5502_v5 = vpop.f32.mrf.mxu1 }
 0x4a0   :  { %7346 = vmatprep.subr.bf16.mxu0 %v9717_v45  ;;  %v5489_v29 = vadd.f32 %v11915_v46, %v12229_v12  ;;  %v11950_v30 = vsel %vm6547_vm2, %v6495_v61, %v6564_v6  ;;  %v5891_v52 = vrot.slane %v5890_v11, 2  ;;  %v5915_v43 = vrot.slane %v5914_v48, 2  ;;  %v9721_v46 = vld [vmem:[#allocation13 + $0x48] ss:$16 sps:$4 sm:$0xff]   ;;  %v9735_v10 = vld [vmem:[#allocation13 + $0xc] ss:$16 sps:$4 sm:$0xff]  }
 0x4a1   :  { %v5493_v37 = vadd.f32 %v5492_v20, %v12230_v53  ;;  %v6243_v21 = vpack.c.bf16 %v5846_v24, %v5846_v24  ;;  %v5896_v23 = vadd.f32 %v5895_v40, %v5676_v2  ;;  %v5943_v7 = vrot.slane %v5684_v62, 4  ;;  %v9729_v20 = vld [vmem:[#allocation13 + $0x2c] ss:$16 sps:$4 sm:$0xff]  }
 0x4a2   :  { %vm5559_vm5 = vcmp.gt.f32.partialorder %v5489_v29, 0.0  ;;  %v6244_v63 = vpack.c.bf16 %v5852_v34, %v5852_v34  ;;  %v5921_v36 = vrot.slane %v5920_v51, 2  ;;  %v5623_v4 = vmul.f32 0.2, %v5489_v29  ;;  %v12233_v34 = vld [vmem:[#allocation33_spill] sm:$0xff] }
 0x4a3   :  { %7347 = vmatpush1.bf16.msra.mxu0 %v9715_v56  ;;  %v5491_v22 = vadd.f32 %v11931_v50, %v12231_v55  ;;  %v11955_v26 = vunpack.c.l.b16 %v6240_v0  ;;  %v6247_v13 = vpack.c.bf16 %v5870_v31, %v5870_v31  ;;  %v5875_v60 = vrot.slane %v5874_v16, 1  ;;  %v5504_v56 = vpop.f32.mrf.mxu1 }
 0x4a4   :  { %v5939_v18 = vrot.slane %v5938_v28, 2  ;;  %7348 = vmatprep.subr.bf16.mxu0 %v9723_v14  ;;  %v5892_v47 = vadd.f32 %v5891_v52, %v5890_v11  ;;  %v5916_v39 = vadd.f32 %v5915_v43, %v5914_v48  ;;  %v5687_v59 = vsel %vm5559_vm5, %v5489_v29, %v5623_v4  ;;  %v9741_v29 = vld [vmem:[#allocation13 + $0x1ec] ss:$16 sps:$4 sm:$0xff]  }
 0x4a5   :  { %v5627_v17 = vmul.f32 0.2, %v5493_v37  ;;  %v11958_v44 = vunpack.c.l.b16 %v6243_v21  ;;  %v5897_v57 = vrot.slane %v5896_v23, 2  ;;  %v5944_v19 = vadd.f32 %v5943_v7, %v5684_v62  ;;  %v9733_v62 = vld [vmem:[#allocation13 + $0x8] ss:$16 sps:$4 sm:$0xff]  }
 0x4a6   :  { %vm5563_vm6 = vcmp.gt.f32.partialorder %v5493_v37, 0.0  ;;  %v11960_v50 = vunpack.c.l.b16 %v6244_v63  ;;  %v5922_v15 = vadd.f32 %v5921_v36, %v5920_v51  ;;  %v5624_v58 = vmul.f32 0.2, %v5491_v22  ;;  %v9739_v63 = vld [vmem:[#allocation13 + $0x1e8] ss:$16 sps:$4 sm:$0xff]   ;;  %v5508_v36 = vpop.f32.mrf.mxu1 }
 0x4a7   :  { %7349 = vmatpush1.bf16.msra.mxu0 %v9721_v46  ;;  %v5495_v54 = vadd.f32 %v5494_v32, %v12232_v3  ;;  %v5876_v2 = vadd.f32 %v5875_v60, %v5874_v16  ;;  %v5940_v33 = vadd.f32 %v5939_v18, %v5938_v28  ;;  %v5961_v45 = vrot.slane %v5687_v59, 4 }
 0x4a8   :  { %vm5560_vm7 = vcmp.gt.f32.partialorder %v5491_v22, 0.0  ;;  %7350 = vmatprep.subr.bf16.mxu0 %v9729_v20  ;;  %v11963_v49 = vunpack.c.l.b16 %v6247_v13  ;;  %v5893_v1 = vrot.slane %v5892_v47, 1  ;;  %v5917_v61 = vrot.slane %v5916_v39, 1  ;;  %v12234_v20 = vld [vmem:[#allocation32_spill] sm:$0xff] }
 0x4a9   :  { %v5691_v11 = vsel %vm5563_vm6, %v5493_v37, %v5627_v17  ;;  %v5898_v48 = vadd.f32 %v5897_v57, %v5896_v23  ;;  %v5945_v6 = vrot.slane %v5944_v19, 2  ;;  %v5628_v24 = vmul.f32 0.2, %v5495_v54  ;;  %v12235_v57 = vld [vmem:[#allocation34_spill] sm:$0xff] }
 0x4aa   :  { %v5499_v40 = vadd.f32 %v5498_v25, %v11776_v38  ;;  %v5923_v32 = vrot.slane %v5922_v15, 1  ;;  %v5688_v0 = vsel %vm5560_vm7, %v5491_v22, %v5624_v58  ;;  %vm5564_vm8 = vcmp.gt.f32.partialorder %v5495_v54, 0.0 }
 0x4ab   :  { %7351 = vmatpush1.bf16.msra.mxu0 %v9727_v8  ;;  %v5501_v51 = vadd.f32 %v5500_v27, %v12233_v34  ;;  %v6248_v31 = vpack.c.bf16 %v5876_v2, %v5876_v2  ;;  %v5941_v16 = vrot.slane %v5940_v33, 1  ;;  %v5962_v28 = vadd.f32 %v5961_v45, %v5687_v59  ;;  %v9747_v27 = vld [vmem:[#allocation13 + $0x1cc] ss:$16 sps:$4 sm:$0xff]   ;;  %v9745_v8 = vld [vmem:[#allocation13 + $0x1c8] ss:$16 sps:$4 sm:$0xff]  }
 0x4ac   :  { %v5985_v12 = vrot.slane %v5691_v11, 4  ;;  %7352 = vmatprep.subr.bf16.mxu0 %v9735_v10  ;;  %v11968_v14 = vadd.f32 %v5893_v1, %v5892_v47  ;;  %v5918_v52 = vadd.f32 %v5917_v61, %v5916_v39  ;;  %vm5567_vm9 = vcmp.gt.f32.partialorder %v5499_v40, 0.0 }
 0x4ad   :  { %v5631_v43 = vmul.f32 0.2, %v5499_v40  ;;  %v5946_v38 = vadd.f32 %v5945_v6, %v5944_v19  ;;  %v5967_v25 = vrot.slane %v5688_v0, 4  ;;  %v5692_v53 = vsel %vm5564_vm8, %v5495_v54, %v5628_v24  ;;  %v5510_v54 = vpop.f32.mrf.mxu1 }
 0x4ae   :  { %vm5568_vm11 = vcmp.gt.f32.partialorder %v5501_v51, 0.0  ;;  %v5899_v37 = vrot.slane %v5898_v48, 1  ;;  %v5924_v21 = vadd.f32 %v5923_v32, %v5922_v15  ;;  %v5632_v7 = vmul.f32 0.2, %v5501_v51 }
 0x4af   :  { %v5695_v23 = vsel %vm5567_vm9, %v5499_v40, %v5631_v43  ;;  %7353 = vmatpush1.bf16.msra.mxu0 %v9733_v62  ;;  %v11971_v4 = vunpack.c.l.b16 %v6248_v31  ;;  %v5942_v55 = vadd.f32 %v5941_v16, %v5940_v33  ;;  %v5963_v22 = vrot.slane %v5962_v28, 2  ;;  %v9751_v31 = vld [vmem:[#allocation13 + $0x1a8] ss:$16 sps:$4 sm:$0xff]  }
 0x4b0   :  { %v5986_v46 = vadd.f32 %v5985_v12, %v5691_v11  ;;  %7354 = vmatprep.subr.bf16.mxu0 %v9741_v29  ;;  %v5991_v13 = vrot.slane %v5692_v53, 4  ;;  %v6009_v60 = vrot.slane %v5695_v23, 4  ;;  %v5696_v18 = vsel %vm5568_vm11, %v5501_v51, %v5632_v7  ;;  %v12236_v12 = vld [vmem:[#allocation35_spill] sm:$0xff] }
 0x4b1   :  { %v5503_v47 = vadd.f32 %v5502_v5, %v12234_v20  ;;  %v6255_v39 = vpack.c.bf16 %v5918_v52, %v5918_v52  ;;  %v5947_v59 = vrot.slane %v5946_v38, 1  ;;  %v5968_v17 = vadd.f32 %v5967_v25, %v5688_v0  ;;  %v9753_v5 = vld [vmem:[#allocation13 + $0x1ac] ss:$16 sps:$4 sm:$0xff]  }
 0x4b2   :  { %v5505_v19 = vadd.f32 %v5504_v56, %v12235_v57  ;;  %v6256_v15 = vpack.c.bf16 %v5924_v21, %v5924_v21  ;;  %v6015_v58 = vrot.slane %v5696_v18, 4  ;;  %v6251_v2 = vpack.c.bf16 %v11968_v14, %v11968_v14  ;;  %v5512_v56 = vpop.f32.mrf.mxu1  ;;  %v9759_v52 = vld [vmem:[#allocation13 + $0x18c] ss:$16 sps:$4 sm:$0xff]  }
 0x4b3   :  { %vm5571_vm13 = vcmp.gt.f32.partialorder %v5503_v47, 0.0  ;;  %v5635_v3 = vmul.f32 0.2, %v5503_v47  ;;  %7355 = vmatpush2.bf16.msra.mxu0 %v9739_v63  ;;  %v6259_v33 = vpack.c.bf16 %v5942_v55, %v5942_v55  ;;  %v5964_v45 = vadd.f32 %v5963_v22, %v5962_v28  ;;  %v12237_v22 = vld [vmem:[#allocation47_spill] sm:$0xff] }
 0x4b4   :  { %v5987_v10 = vrot.slane %v5986_v46, 2  ;;  %7356 = vmatprep.subr.bf16.mxu0 %v9747_v27  ;;  %v11978_v1 = vadd.f32 %v5899_v37, %v5898_v48  ;;  %v5992_v61 = vadd.f32 %v5991_v13, %v5692_v53  ;;  %v6010_v11 = vadd.f32 %v6009_v60, %v5695_v23  ;;  %v5514_v27 = vpop.f32.mrf.mxu1 }
 0x4b5   :  { %v5699_v6 = vsel %vm5571_vm13, %v5503_v47, %v5635_v3  ;;  %v11980_v24 = vunpack.c.l.b16 %v6255_v39  ;;  %v11982_v40 = vadd.f32 %v5947_v59, %v5946_v38  ;;  %v5969_v32 = vrot.slane %v5968_v17, 2  ;;  %v9765_v47 = vld [vmem:[#allocation13 + $0x16c] ss:$16 sps:$4 sm:$0xff]  }
 0x4b6   :  { %vm5572_vm1 = vcmp.gt.f32.partialorder %v5505_v19, 0.0  ;;  %v11984_v0 = vunpack.c.l.b16 %v6256_v15  ;;  %v6016_v34 = vadd.f32 %v6015_v58, %v5696_v18  ;;  %v6033_v51 = vrot.slane %v5699_v6, 4  ;;  %v12238_v58 = vld [vmem:[#allocation36_spill] sm:$0xff] }
 0x4b7   :  { %v5636_v62 = vmul.f32 0.2, %v5505_v19  ;;  %7357 = vmatpush2.bf16.msra.mxu0 %v9745_v8  ;;  %v11986_v16 = vunpack.c.l.b16 %v6259_v33  ;;  %v5965_v48 = vrot.slane %v5964_v45, 1  ;;  %v5988_v28 = vadd.f32 %v5987_v10, %v5986_v46 }
 0x4b8   :  { %v5509_v29 = vadd.f32 %v5508_v36, %v12236_v12  ;;  %7358 = vmatprep.subr.bf16.mxu0 %v9753_v5  ;;  %v5993_v43 = vrot.slane %v5992_v61, 2  ;;  %v6011_v38 = vrot.slane %v6010_v11, 2  ;;  %v6034_v25 = vadd.f32 %v6033_v51, %v5699_v6  ;;  %v9757_v36 = vld [vmem:[#allocation13 + $0x188] ss:$16 sps:$4 sm:$0xff]  }
 0x4b9   :  { %v5700_v53 = vsel %vm5572_vm1, %v5505_v19, %v5636_v62  ;;  %v6260_v37 = vpack.c.bf16 %v11982_v40, %v11982_v40  ;;  %v5970_v21 = vadd.f32 %v5969_v32, %v5968_v17  ;;  %v6017_v7 = vrot.slane %v6016_v34, 2  ;;  %v9789_v40 = vld [vmem:[#allocation11 + $0xe4] ss:$16 sps:$4 sm:$0xff]  }
 0x4ba   :  { %v6039_v23 = vrot.slane %v5700_v53, 4  ;;  %vm5575_vm4 = vcmp.gt.f32.partialorder %v5509_v29, 0.0  ;;  %v6035_v63 = vrot.slane %v6034_v25, 2  ;;  %v5639_v55 = vmul.f32 0.2, %v5509_v29 }
 0x4bb   :  { %v5511_v46 = vadd.f32 %v5510_v54, %v12237_v22  ;;  %7359 = vmatpush2.bf16.msra.mxu0 %v9751_v31  ;;  %v11993_v13 = vadd.f32 %v5965_v48, %v5964_v45  ;;  %v5989_v60 = vrot.slane %v5988_v28, 1  ;;  %v5513_v20 = vadd.f32 %v5512_v56, %v11827_v35  ;;  %v9763_v45 = vld [vmem:[#allocation13 + $0x168] ss:$16 sps:$4 sm:$0xff]  }
 0x4bc   :  { %v6040_v18 = vadd.f32 %v6039_v23, %v5700_v53  ;;  %7360 = vmatprep.subr.bf16.mxu0 %v9759_v52  ;;  %v5994_v39 = vadd.f32 %v5993_v43, %v5992_v61  ;;  %v6012_v59 = vadd.f32 %v6011_v38, %v6010_v11  ;;  %v5703_v17 = vsel %vm5575_vm4, %v5509_v29, %v5639_v55  ;;  %v9771_v61 = vld [vmem:[#allocation13 + $0x14c] ss:$16 sps:$4 sm:$0xff]   ;;  %v9769_v43 = vld [vmem:[#allocation13 + $0x148] ss:$16 sps:$4 sm:$0xff]  }
 0x4bd   :  { %vm5576_vm5 = vcmp.gt.f32.partialorder %v5511_v46, 0.0  ;;  %v6057_v19 = vrot.slane %v5703_v17, 4  ;;  %v5640_v15 = vmul.f32 0.2, %v5511_v46  ;;  %v5515_v3 = vadd.f32 %v5514_v27, %v12238_v58 }
 0x4be   :  { %v6041_v57 = vrot.slane %v6040_v18, 2  ;;  %v6018_v54 = vadd.f32 %v6017_v7, %v6016_v34  ;;  %v6036_v8 = vadd.f32 %v6035_v63, %v6034_v25  ;;  %vm5579_vm6 = vcmp.gt.f32.partialorder %v5513_v20, 0.0 }
 0x4bf   :  { %v5643_v33 = vmul.f32 0.2, %v5513_v20  ;;  %7361 = vmatpush2.bf16.msra.mxu0 %v9757_v36  ;;  %v5971_v10 = vrot.slane %v5970_v21, 1  ;;  %v6058_v5 = vadd.f32 %v6057_v19, %v5703_v17  ;;  %v5704_v6 = vsel %vm5576_vm5, %v5511_v46, %v5640_v15 }
 0x4c0   :  { %v6042_v35 = vadd.f32 %v6041_v57, %v6040_v18  ;;  %7362 = vmatprep.subr.bf16.mxu0 %v9765_v47  ;;  %v5990_v11 = vadd.f32 %v5989_v60, %v5988_v28  ;;  %v6013_v32 = vrot.slane %v6012_v59, 1  ;;  %v6063_v51 = vrot.slane %v5704_v6, 4  ;;  %v9777_v28 = vld [vmem:[#allocation13 + $0x12c] ss:$16 sps:$4 sm:$0xff]  }
 0x4c1   :  { %v5707_v62 = vsel %vm5579_vm6, %v5513_v20, %v5643_v33  ;;  %v5995_v56 = vrot.slane %v5994_v39, 1  ;;  %v6059_v31 = vrot.slane %v6058_v5, 2  ;;  %vm5580_vm7 = vcmp.gt.f32.partialorder %v5515_v3, 0.0 }
 0x4c2   :  { %v6081_v48 = vrot.slane %v5707_v62, 4  ;;  %v6019_v34 = vrot.slane %v6018_v54, 1  ;;  %v6037_v12 = vrot.slane %v6036_v8, 1  ;;  %v6064_v29 = vadd.f32 %v6063_v51, %v5704_v6 }
 0x4c3   :  { %v5644_v52 = vmul.f32 0.2, %v5515_v3  ;;  %7363 = vmatpush2.bf16.msra.mxu0 %v9763_v45  ;;  %v6263_v38 = vpack.c.bf16 %v11993_v13, %v11993_v13  ;;  %v6043_v25 = vrot.slane %v6042_v35, 1  ;;  %v6060_v53 = vadd.f32 %v6059_v31, %v6058_v5  ;;  %v9775_v13 = vld [vmem:[#allocation13 + $0x128] ss:$16 sps:$4 sm:$0xff]  }
 0x4c4   :  { %v6082_v23 = vadd.f32 %v6081_v48, %v5707_v62  ;;  %7364 = vmatprep.subr.bf16.mxu0 %v9771_v61  ;;  %v5972_v7 = vadd.f32 %v5971_v10, %v5970_v21  ;;  %v6014_v63 = vadd.f32 %v6013_v32, %v6012_v59  ;;  %v6065_v55 = vrot.slane %v6064_v29, 2  ;;  %v9783_v21 = vld [vmem:[#allocation13 + $0x10c] ss:$16 sps:$4 sm:$0xff]  }
 0x4c5   :  { %v5708_v22 = vsel %vm5580_vm7, %v5515_v3, %v5644_v52  ;;  %v5996_v46 = vadd.f32 %v5995_v56, %v5994_v39  ;;  %v6061_v27 = vrot.slane %v6060_v53, 1  ;;  %v6267_v18 = vpack.c.bf16 %v5990_v11, %v5990_v11  ;;  %v9781_v11 = vld [vmem:[#allocation13 + $0x108] ss:$16 sps:$4 sm:$0xff]  }
 0x4c6   :  { %v6083_v36 = vrot.slane %v6082_v23, 2  ;;  %v6087_v60 = vrot.slane %v5708_v22, 4  ;;  %v6020_v20 = vadd.f32 %v6019_v34, %v6018_v54  ;;  %v6038_v47 = vadd.f32 %v6037_v12, %v6036_v8 }
 0x4c7   :  { %v6066_v17 = vadd.f32 %v6065_v55, %v6064_v29  ;;  %7365 = vmatpush2.bf16.msra.mxu0 %v9769_v43  ;;  %v6044_v57 = vadd.f32 %v6043_v25, %v6042_v35  ;;  %v6062_v19 = vadd.f32 %v6061_v27, %v6060_v53  ;;  %v6516_v59 = vunpack.c.l.b16 %v6260_v37  ;;  %v9795_v55 = vld [vmem:[#allocation11 + $0xc4] ss:$16 sps:$4 sm:$0xff]  }
 0x4c8   :  { %v6084_v15 = vadd.f32 %v6083_v36, %v6082_v23  ;;  %v6088_v58 = vadd.f32 %v6087_v60, %v5708_v22  ;;  %7366 = vmatprep.subr.bf16.mxu0 %v9777_v28  ;;  %v6264_v39 = vpack.c.bf16 %v5972_v7, %v5972_v7  ;;  %v6271_v3 = vpack.c.bf16 %v6014_v63, %v6014_v63  ;;  %v9787_v28 = vld [vmem:[#allocation11 + $0xe0] ss:$16 sps:$4 sm:$0xff]  }
 0x4c9   :  { %v6067_v33 = vrot.slane %v6066_v17, 1  ;;  %v6519_v45 = vunpack.c.l.b16 %v6263_v38  ;;  %v6268_v10 = vpack.c.bf16 %v5996_v46, %v5996_v46  ;;  %v6523_v5 = vunpack.c.l.b16 %v6267_v18 }
 0x4ca   :  { %v6085_v54 = vrot.slane %v6084_v15, 1  ;;  %v6089_v8 = vrot.slane %v6088_v58, 2  ;;  %v6272_v6 = vpack.c.bf16 %v6020_v20, %v6020_v20  ;;  %v6275_v61 = vpack.c.bf16 %v6038_v47, %v6038_v47 }
 0x4cb   :  { %v6068_v35 = vadd.f32 %v6067_v33, %v6066_v17  ;;  %7367 = vmatpush2.bf16.msra.mxu0 %v9775_v13  ;;  %v6276_v32 = vpack.c.bf16 %v6044_v57, %v6044_v57  ;;  %v6279_v51 = vpack.c.bf16 %v6062_v19, %v6062_v19  ;;  %v6590_v37 = vsel %vm6541_vm12, %v11986_v16, %v11980_v24  ;;  %v9793_v57 = vld [vmem:[#allocation11 + $0xc0] ss:$16 sps:$4 sm:$0xff]  }
 0x4cc   :  { %v6086_v62 = vadd.f32 %v6085_v54, %v6084_v15  ;;  %v6090_v56 = vadd.f32 %v6089_v8, %v6088_v58  ;;  %7368 = vmatprep.subr.bf16.mxu0 %v9783_v21  ;;  %v6520_v31 = vunpack.c.l.b16 %v6264_v39  ;;  %v6527_v48 = vunpack.c.l.b16 %v6271_v3  ;;  %v12239_v19 = vld [vmem:[#allocation20_spill] sm:$0xff]  ;;  %v9798_v54 = vld [vmem:[#allocation13 + $0x2ac] ss:$16 sps:$4 sm:$0xff]  }
 0x4cd   :  { %v6280_v34 = vpack.c.bf16 %v6068_v35, %v6068_v35  ;;  %v6524_v12 = vunpack.c.l.b16 %v6268_v10  ;;  %v6252_v43 = vpack.c.bf16 %v11978_v1, %v11978_v1  ;;  %v6597_v38 = vsel %vm6541_vm12, %v6516_v59, %v11984_v0  ;;  %v9799_v10 = vld [vmem:[#allocation11 + $0xa0] ss:$16 sps:$4 sm:$0xff]  }
 0x4ce   :  { %v6283_v29 = vpack.c.bf16 %v6086_v62, %v6086_v62  ;;  %v6091_v52 = vrot.slane %v6090_v56, 1  ;;  %v6591_v25 = vsel %vm6543_vm14, %v6519_v45, %v6590_v37  ;;  %v6528_v53 = vunpack.c.l.b16 %v6272_v6  ;;  %v9784_v45 = vld [vmem:[#allocation13 + $0x2e8] ss:$16 sps:$4 sm:$0xff]   ;;  %v9805_v8 = vld [vmem:[#allocation11 + $0x80] ss:$16 sps:$4 sm:$0xff]  }
 0x4cf   :  { %v6531_v23 = vunpack.c.l.b16 %v6275_v61  ;;  %7369 = vmatpush2.bf16.msra.mxu0 %v9781_v11  ;;  %v6592_v24 = vsel %vm6545_vm0, %v6523_v5, %v6591_v25  ;;  %v6532_v16 = vunpack.c.l.b16 %v6276_v32  ;;  %v6535_v7 = vunpack.c.l.b16 %v6279_v51  ;;  %v9813_v5 = vld [vmem:[#allocation11 + $0x64] ss:$16 sps:$4 sm:$0xff]   ;;  %v9796_v6 = vld [vmem:[#allocation13 + $0x2a8] ss:$16 sps:$4 sm:$0xff]   ;;  %v9804_v61 = vld [vmem:[#allocation13 + $0x28c] ss:$16 sps:$4 sm:$0xff]  }
 0x4d0   :  { %v6092_v63 = vadd.f32 %v6091_v52, %v6090_v56  ;;  %8064 = vmatprep.subr.bf16.mxu0 %v9789_v40  ;;  %v6598_v22 = vsel %vm6543_vm14, %v6520_v31, %v6597_v38  ;;  %v6593_v1 = vsel %vm6547_vm2, %v6527_v48, %v6592_v24  ;;  %v6536_v46 = vunpack.c.l.b16 %v6280_v34  ;;  %v9811_v35 = vld [vmem:[#allocation11 + $0x60] ss:$16 sps:$4 sm:$0xff]   ;;  %v9819_v11 = vld [vmem:[#allocation11 + $0x44] ss:$16 sps:$4 sm:$0xff]   ;;  %v9802_v32 = vld [vmem:[#allocation13 + $0x288] ss:$16 sps:$4 sm:$0xff]  }
 0x4d1   :  { %v6539_v27 = vunpack.c.l.b16 %v6283_v29  ;;  %v6508_v36 = vunpack.c.l.b16 %v6252_v43  ;;  %v6571_v60 = vsel %vm6545_vm0, %v11945_v42, %v11941_v41  ;;  %v6599_v18 = vsel %vm6545_vm0, %v6524_v12, %v6598_v22  ;;  %v9810_v51 = vld [vmem:[#allocation13 + $0x26c] ss:$16 sps:$4 sm:$0xff]   ;;  %v9817_v62 = vld [vmem:[#allocation11 + $0x40] ss:$16 sps:$4 sm:$0xff]   ;;  %v9825_v56 = vld [vmem:[#allocation11 + $0x24] ss:$16 sps:$4 sm:$0xff]  }
 0x4d2   :  { %v6284_v0 = vpack.c.bf16 %v6092_v63, %v6092_v63  ;;  %7371 = vmatmul.mubr.bf16.vlgmr.msra.gmra.mxu0 %v11876_v9  ;;  %v6507_v20 = vunpack.c.l.b16 %v6251_v2  ;;  %v6594_v47 = vsel %vm6549_vm3, %v6531_v23, %v6593_v1  ;;  %v6572_v17 = vsel %vm6547_vm2, %v11955_v26, %v6571_v60  ;;  %v9801_v2 = vld [vmem:[#allocation11 + $0xa4] ss:$16 sps:$4 sm:$0xff]   ;;  %v9808_v40 = vld [vmem:[#allocation13 + $0x268] ss:$16 sps:$4 sm:$0xff]   ;;  %v9816_v37 = vld [vmem:[#allocation13 + $0x24c] ss:$16 sps:$4 sm:$0xff]  }
 0x4d3   :  { %v6600_v13 = vsel %vm6547_vm2, %v6528_v53, %v6599_v18  ;;  %8065 = vmatpush1.bf16.msra.mxu0 %v9787_v28  ;;  %8096 = vmatprep.mubr.bf16.mxu0 %v12239_v19  ;;  %v6595_v41 = vsel %vm6551_vm10, %v6535_v7, %v6594_v47  ;;  %v6573_v9 = vsel %vm6549_vm3, %v11960_v50, %v6572_v17  ;;  %v9823_v31 = vld [vmem:[#allocation11 + $0x20] ss:$16 sps:$4 sm:$0xff]   ;;  %v9831_v48 = vld [vmem:[#allocation11 + $0x4] ss:$16 sps:$4 sm:$0xff]   ;;  %v9814_v34 = vld [vmem:[#allocation13 + $0x248] ss:$16 sps:$4 sm:$0xff]  }
 0x4d4   :  { %v6540_v42 = vunpack.c.l.b16 %v6284_v0  ;;  %v6601_v14 = vsel %vm6549_vm3, %v6532_v16, %v6600_v13  ;;  %8066 = vmatprep.subr.bf16.mxu0 %v9795_v55  ;;  %v6566_v26 = vsel %vm6549_vm3, %v11958_v44, %v11950_v30  ;;  %v6596_v15 = vsel %vm6553_vm15, %v6539_v27, %v6595_v41  ;;  %v9792_v44 = vld [vmem:[#allocation13 + $0x2cc] ss:$16 sps:$4 sm:$0xff]   ;;  %v9829_v29 = vld [vmem:[#allocation11] ss:$16 sps:$4 sm:$0xff]   ;;  %v9837_v52 = vld [vmem:[#allocation11 + $0x1e4] ss:$16 sps:$4 sm:$0xff]  }
 0x4d5   :  { %v6574_v58 = vsel %vm6551_vm10, %v11971_v4, %v6573_v9  ;;  %v6602_v21 = vsel %vm6551_vm10, %v6536_v46, %v6601_v14  ;;  %v6567_v59 = vsel %vm6551_vm10, %v11963_v49, %v6566_v26  ;;  %v9807_v4 = vld [vmem:[#allocation11 + $0x84] ss:$16 sps:$4 sm:$0xff]   ;;  %v9790_v49 = vld [vmem:[#allocation13 + $0x2c8] ss:$16 sps:$4 sm:$0xff]   ;;  %v9822_v12 = vld [vmem:[#allocation13 + $0x22c] ss:$16 sps:$4 sm:$0xff]  }
 0x4d6   :  { %v6575_v50 = vsel %vm6553_vm15, %v6508_v36, %v6574_v58  ;;  %v6603_v39 = vsel %vm6553_vm15, %v6540_v42, %v6602_v21  ;;  %v6568_v3 = vsel %vm6553_vm15, %v6507_v20, %v6567_v59  ;;  %v9820_v43 = vld [vmem:[#allocation13 + $0x228] ss:$16 sps:$4 sm:$0xff]   ;;  %v9828_v38 = vld [vmem:[#allocation13 + $0x20c] ss:$16 sps:$4 sm:$0xff]   ;;  %v9835_v25 = vld [vmem:[#allocation11 + $0x1e0] ss:$16 sps:$4 sm:$0xff]  }
 0x4d7   :  { %v6607_v33 = vpack.c.b16 %v6603_v39, %v6575_v50  ;;  %8067 = vmatpush1.bf16.msra.mxu0 %v9793_v57  ;;  %v12044_v30 = vpack.c.b16 %v6596_v15, %v6568_v3  ;;  %v9843_v53 = vld [vmem:[#allocation11 + $0x1c4] ss:$16 sps:$4 sm:$0xff]   ;;  %v9826_v23 = vld [vmem:[#allocation13 + $0x208] ss:$16 sps:$4 sm:$0xff]   ;;  %v9834_v28 = vld [vmem:[#allocation13 + $0x3ec] ss:$16 sps:$4 sm:$0xff]  }
 0x4d8   :  { %8068 = vmatprep.subr.bf16.mxu0 %v9801_v2  ;;  %v9841_v24 = vld [vmem:[#allocation11 + $0x1c0] ss:$16 sps:$4 sm:$0xff]   ;;  %v9849_v16 = vld [vmem:[#allocation11 + $0x1a4] ss:$16 sps:$4 sm:$0xff]   ;;  %v9832_v7 = vld [vmem:[#allocation13 + $0x3e8] ss:$16 sps:$4 sm:$0xff]  }
 0x4d9   :  { %7327 = vmatprep.mubr.bf16.mxu1 %v6607_v33  ;;  %v9840_v63 = vld [vmem:[#allocation13 + $0x3cc] ss:$16 sps:$4 sm:$0xff]   ;;  %v9847_v55 = vld [vmem:[#allocation11 + $0x1a0] ss:$16 sps:$4 sm:$0xff]   ;;  %v9855_v22 = vld [vmem:[#allocation11 + $0x184] ss:$16 sps:$4 sm:$0xff]  }
 0x4da   :  { %7328 = vmatmul.mubr.bf16.vlgmr.msra.gmra.mxu1 %v12044_v30  ;;  %v9838_v1 = vld [vmem:[#allocation13 + $0x3c8] ss:$16 sps:$4 sm:$0xff]   ;;  %v9846_v46 = vld [vmem:[#allocation13 + $0x3ac] ss:$16 sps:$4 sm:$0xff]   ;;  %v9853_v27 = vld [vmem:[#allocation11 + $0x180] ss:$16 sps:$4 sm:$0xff]  }
 0x4db   :  { %7382 = vmatpush1.bf16.msra.mxu1 %v9784_v45  ;;  %7413 = vmatprep.mubr.bf16.mxu1 %v6607_v33  ;;  %v9861_v0 = vld [vmem:[#allocation11 + $0x164] ss:$16 sps:$4 sm:$0xff]   ;;  %v9844_v36 = vld [vmem:[#allocation13 + $0x3a8] ss:$16 sps:$4 sm:$0xff]   ;;  %v9852_v60 = vld [vmem:[#allocation13 + $0x38c] ss:$16 sps:$4 sm:$0xff]  }
 0x4dc   :  { %7383 = vmatprep.subr.bf16.mxu1 %v9792_v44  ;;  %8069 = vmatpush1.bf16.msra.mxu0 %v9799_v10  ;;  %v9859_v18 = vld [vmem:[#allocation11 + $0x160] ss:$16 sps:$4 sm:$0xff]   ;;  %v9867_v20 = vld [vmem:[#allocation11 + $0x144] ss:$16 sps:$4 sm:$0xff]   ;;  %v9850_v47 = vld [vmem:[#allocation13 + $0x388] ss:$16 sps:$4 sm:$0xff]  }
 0x4dd   :  { %8070 = vmatprep.subr.bf16.mxu0 %v9807_v4  ;;  %v9858_v17 = vld [vmem:[#allocation13 + $0x36c] ss:$16 sps:$4 sm:$0xff]   ;;  %v9865_v13 = vld [vmem:[#allocation11 + $0x140] ss:$16 sps:$4 sm:$0xff]   ;;  %v9873_v57 = vld [vmem:[#allocation11 + $0x124] ss:$16 sps:$4 sm:$0xff]  }
 0x4de   :  { %v9856_v41 = vld [vmem:[#allocation13 + $0x368] ss:$16 sps:$4 sm:$0xff]   ;;  %v9864_v42 = vld [vmem:[#allocation13 + $0x34c] ss:$16 sps:$4 sm:$0xff]   ;;  %v9871_v9 = vld [vmem:[#allocation11 + $0x120] ss:$16 sps:$4 sm:$0xff]  }
 0x4df   :  { %7384 = vmatpush1.bf16.msra.mxu1 %v9790_v49  ;;  %v9879_v14 = vld [vmem:[#allocation11 + $0x104] ss:$16 sps:$4 sm:$0xff]   ;;  %v9862_v2 = vld [vmem:[#allocation13 + $0x348] ss:$16 sps:$4 sm:$0xff]   ;;  %v9870_v26 = vld [vmem:[#allocation13 + $0x32c] ss:$16 sps:$4 sm:$0xff]  }
 0x4e0   :  { %7385 = vmatprep.subr.bf16.mxu1 %v9798_v54  ;;  %8071 = vmatpush1.bf16.msra.mxu0 %v9805_v8  ;;  %v9877_v15 = vld [vmem:[#allocation11 + $0x100] ss:$16 sps:$4 sm:$0xff]   ;;  %v9885_v58 = vld [vmem:[#allocation11 + $0xec] ss:$16 sps:$4 sm:$0xff]   ;;  %v9868_v21 = vld [vmem:[#allocation13 + $0x328] ss:$16 sps:$4 sm:$0xff]  }
 0x4e1   :  { %8072 = vmatprep.subr.bf16.mxu0 %v9813_v5  ;;  %v9876_v59 = vld [vmem:[#allocation13 + $0x30c] ss:$16 sps:$4 sm:$0xff]   ;;  %v9883_v50 = vld [vmem:[#allocation11 + $0xe8] ss:$16 sps:$4 sm:$0xff]   ;;  %v12240_v33 = vld [vmem:[#allocation22_spill] sm:$0xff] }
 0x4e2   :  { %v9891_v39 = vld [vmem:[#allocation11 + $0xcc] ss:$16 sps:$4 sm:$0xff]   ;;  %v9874_v3 = vld [vmem:[#allocation13 + $0x308] ss:$16 sps:$4 sm:$0xff]   ;;  %v9882_v45 = vld [vmem:[#allocation11 + $0x2e4] ss:$16 sps:$4 sm:$0xff]  }
 0x4e3   :  { %7386 = vmatpush1.bf16.msra.mxu1 %v9796_v6  ;;  %v9889_v44 = vld [vmem:[#allocation11 + $0xc8] ss:$16 sps:$4 sm:$0xff]   ;;  %v9897_v10 = vld [vmem:[#allocation11 + $0xac] ss:$16 sps:$4 sm:$0xff]   ;;  %v9880_v4 = vld [vmem:[#allocation11 + $0x2e0] ss:$16 sps:$4 sm:$0xff]  }
 0x4e4   :  { %7387 = vmatprep.subr.bf16.mxu1 %v9804_v61  ;;  %8073 = vmatpush1.bf16.msra.mxu0 %v9811_v35  ;;  %v9888_v49 = vld [vmem:[#allocation11 + $0x2c4] ss:$16 sps:$4 sm:$0xff]   ;;  %v9895_v54 = vld [vmem:[#allocation11 + $0xa8] ss:$16 sps:$4 sm:$0xff]   ;;  %v9903_v8 = vld [vmem:[#allocation11 + $0x8c] ss:$16 sps:$4 sm:$0xff]  }
 0x4e5   :  { %8074 = vmatprep.subr.bf16.mxu0 %v9819_v11  ;;  %v9886_v5 = vld [vmem:[#allocation11 + $0x2c0] ss:$16 sps:$4 sm:$0xff]   ;;  %v12241_v6 = vld [vmem:[#allocation21_spill] sm:$0xff]  ;;  %v9894_v61 = vld [vmem:[#allocation11 + $0x2a4] ss:$16 sps:$4 sm:$0xff]  }
 0x4e6   :  { %v9901_v35 = vld [vmem:[#allocation11 + $0x88] ss:$16 sps:$4 sm:$0xff]   ;;  %v9892_v11 = vld [vmem:[#allocation11 + $0x2a0] ss:$16 sps:$4 sm:$0xff]  }
 0x4e7   :  { %7388 = vmatpush1.bf16.msra.mxu1 %v9802_v32  ;;  %v9900_v32 = vld [vmem:[#allocation11 + $0x284] ss:$16 sps:$4 sm:$0xff]  }
 0x4e8   :  { %7389 = vmatprep.subr.bf16.mxu1 %v9810_v51  ;;  %8075 = vmatpush1.bf16.msra.mxu0 %v9817_v62  ;;  %v9907_v51 = vld [vmem:[#allocation11 + $0x68] ss:$16 sps:$4 sm:$0xff]   ;;  %v9915_v62 = vld [vmem:[#allocation11 + $0x4c] ss:$16 sps:$4 sm:$0xff]  }
 0x4e9   :  { %8076 = vmatprep.subr.bf16.mxu0 %v9825_v56  ;;  %v9906_v56 = vld [vmem:[#allocation11 + $0x264] ss:$16 sps:$4 sm:$0xff]  }
 0x4eb   :  { %7390 = vmatpush1.bf16.msra.mxu1 %v9808_v40  ;;  %v9913_v40 = vld [vmem:[#allocation11 + $0x48] ss:$16 sps:$4 sm:$0xff]  }
 0x4ec   :  { %7391 = vmatprep.subr.bf16.mxu1 %v9816_v37  ;;  %8077 = vmatpush1.bf16.msra.mxu0 %v9823_v31  ;;  %v9921_v37 = vld [vmem:[#allocation11 + $0x2c] ss:$16 sps:$4 sm:$0xff]   ;;  %v9904_v31 = vld [vmem:[#allocation11 + $0x260] ss:$16 sps:$4 sm:$0xff]  }
 0x4ed   :  { %8078 = vmatprep.subr.bf16.mxu0 %v9831_v48  ;;  %v9912_v48 = vld [vmem:[#allocation11 + $0x244] ss:$16 sps:$4 sm:$0xff]  }
 0x4ef   :  { %7392 = vmatpush1.bf16.msra.mxu1 %v9814_v34  ;;  %v9919_v34 = vld [vmem:[#allocation11 + $0x28] ss:$16 sps:$4 sm:$0xff]  }
 0x4f0   :  { %7393 = vmatprep.subr.bf16.mxu1 %v9822_v12  ;;  %8079 = vmatpush1.bf16.msra.mxu0 %v9829_v29  ;;  %v9927_v12 = vld [vmem:[#allocation11 + $0xc] ss:$16 sps:$4 sm:$0xff]   ;;  %v9910_v29 = vld [vmem:[#allocation11 + $0x240] ss:$16 sps:$4 sm:$0xff]  }
 0x4f1   :  { %8080 = vmatprep.subr.bf16.mxu0 %v9837_v52  ;;  %v9918_v52 = vld [vmem:[#allocation11 + $0x224] ss:$16 sps:$4 sm:$0xff]  }
 0x4f3   :  { %7394 = vmatpush1.bf16.msra.mxu1 %v9820_v43  ;;  %v9925_v43 = vld [vmem:[#allocation11 + $0x8] ss:$16 sps:$4 sm:$0xff]  }
 0x4f4   :  { %7395 = vmatprep.subr.bf16.mxu1 %v9828_v38  ;;  %8081 = vmatpush2.bf16.msra.mxu0 %v9835_v25  ;;  %v9933_v38 = vld [vmem:[#allocation11 + $0x1ec] ss:$16 sps:$4 sm:$0xff]   ;;  %v9916_v25 = vld [vmem:[#allocation11 + $0x220] ss:$16 sps:$4 sm:$0xff]  }
 0x4f5   :  { %8082 = vmatprep.subr.bf16.mxu0 %v9843_v53  ;;  %v9924_v53 = vld [vmem:[#allocation11 + $0x204] ss:$16 sps:$4 sm:$0xff]  }
 0x4f7   :  { %7396 = vmatpush1.bf16.msra.mxu1 %v9826_v23  ;;  %v9931_v23 = vld [vmem:[#allocation11 + $0x1e8] ss:$16 sps:$4 sm:$0xff]  }
 0x4f8   :  { %7397 = vmatprep.subr.bf16.mxu1 %v9834_v28  ;;  %8083 = vmatpush2.bf16.msra.mxu0 %v9841_v24  ;;  %v9939_v28 = vld [vmem:[#allocation11 + $0x1cc] ss:$16 sps:$4 sm:$0xff]   ;;  %v9922_v24 = vld [vmem:[#allocation11 + $0x200] ss:$16 sps:$4 sm:$0xff]  }
 0x4f9   :  { %8084 = vmatprep.subr.bf16.mxu0 %v9849_v16  ;;  %v9930_v16 = vld [vmem:[#allocation11 + $0x3e4] ss:$16 sps:$4 sm:$0xff]  }
 0x4fb   :  { %7398 = vmatpush2.bf16.msra.mxu1 %v9832_v7  ;;  %v9937_v7 = vld [vmem:[#allocation11 + $0x1c8] ss:$16 sps:$4 sm:$0xff]  }
 0x4fc   :  { %7399 = vmatprep.subr.bf16.mxu1 %v9840_v63  ;;  %8085 = vmatpush2.bf16.msra.mxu0 %v9847_v55  ;;  %v9945_v63 = vld [vmem:[#allocation11 + $0x1ac] ss:$16 sps:$4 sm:$0xff]   ;;  %v9928_v55 = vld [vmem:[#allocation11 + $0x3e0] ss:$16 sps:$4 sm:$0xff]  }
 0x4fd   :  { %8086 = vmatprep.subr.bf16.mxu0 %v9855_v22  ;;  %v9936_v22 = vld [vmem:[#allocation11 + $0x3c4] ss:$16 sps:$4 sm:$0xff]  }
 0x4ff   :  { %7400 = vmatpush2.bf16.msra.mxu1 %v9838_v1  ;;  %v9943_v1 = vld [vmem:[#allocation11 + $0x1a8] ss:$16 sps:$4 sm:$0xff]  }
 0x500   :  { %7401 = vmatprep.subr.bf16.mxu1 %v9846_v46  ;;  %8087 = vmatpush2.bf16.msra.mxu0 %v9853_v27  ;;  %v9951_v46 = vld [vmem:[#allocation11 + $0x18c] ss:$16 sps:$4 sm:$0xff]   ;;  %v9934_v27 = vld [vmem:[#allocation11 + $0x3c0] ss:$16 sps:$4 sm:$0xff]  }
 0x501   :  { %8088 = vmatprep.subr.bf16.mxu0 %v9861_v0  ;;  %v9942_v0 = vld [vmem:[#allocation11 + $0x3a4] ss:$16 sps:$4 sm:$0xff]  }
 0x503   :  { %7402 = vmatpush2.bf16.msra.mxu1 %v9844_v36  ;;  %v9949_v36 = vld [vmem:[#allocation11 + $0x188] ss:$16 sps:$4 sm:$0xff]  }
 0x504   :  { %7403 = vmatprep.subr.bf16.mxu1 %v9852_v60  ;;  %8089 = vmatpush2.bf16.msra.mxu0 %v9859_v18  ;;  %v9957_v60 = vld [vmem:[#allocation11 + $0x16c] ss:$16 sps:$4 sm:$0xff]   ;;  %v9940_v18 = vld [vmem:[#allocation11 + $0x3a0] ss:$16 sps:$4 sm:$0xff]  }
 0x505   :  { %8090 = vmatprep.subr.bf16.mxu0 %v9867_v20  ;;  %v9948_v20 = vld [vmem:[#allocation11 + $0x384] ss:$16 sps:$4 sm:$0xff]  }
 0x507   :  { %7404 = vmatpush2.bf16.msra.mxu1 %v9850_v47  ;;  %v9955_v47 = vld [vmem:[#allocation11 + $0x168] ss:$16 sps:$4 sm:$0xff]  }
 0x508   :  { %7405 = vmatprep.subr.bf16.mxu1 %v9858_v17  ;;  %8091 = vmatpush2.bf16.msra.mxu0 %v9865_v13  ;;  %v9963_v17 = vld [vmem:[#allocation11 + $0x14c] ss:$16 sps:$4 sm:$0xff]   ;;  %v9946_v13 = vld [vmem:[#allocation11 + $0x380] ss:$16 sps:$4 sm:$0xff]  }
 0x509   :  { %8092 = vmatprep.subr.bf16.mxu0 %v9873_v57  ;;  %v9954_v57 = vld [vmem:[#allocation11 + $0x364] ss:$16 sps:$4 sm:$0xff]  }
 0x50b   :  { %7406 = vmatpush2.bf16.msra.mxu1 %v9856_v41  ;;  %v9961_v41 = vld [vmem:[#allocation11 + $0x148] ss:$16 sps:$4 sm:$0xff]  }
 0x50c   :  { %7407 = vmatprep.subr.bf16.mxu1 %v9864_v42  ;;  %8093 = vmatpush2.bf16.msra.mxu0 %v9871_v9  ;;  %v9969_v42 = vld [vmem:[#allocation11 + $0x12c] ss:$16 sps:$4 sm:$0xff]   ;;  %v9952_v9 = vld [vmem:[#allocation11 + $0x360] ss:$16 sps:$4 sm:$0xff]  }
 0x50d   :  { %8094 = vmatprep.subr.bf16.mxu0 %v9879_v14  ;;  %v9960_v14 = vld [vmem:[#allocation11 + $0x344] ss:$16 sps:$4 sm:$0xff]  }
 0x50f   :  { %7408 = vmatpush2.bf16.msra.mxu1 %v9862_v2  ;;  %v9967_v2 = vld [vmem:[#allocation11 + $0x128] ss:$16 sps:$4 sm:$0xff]  }
 0x510   :  { %7409 = vmatprep.subr.bf16.mxu1 %v9870_v26  ;;  %8095 = vmatpush2.bf16.msra.mxu0 %v9877_v15  ;;  %v9975_v26 = vld [vmem:[#allocation11 + $0x10c] ss:$16 sps:$4 sm:$0xff]   ;;  %v9958_v15 = vld [vmem:[#allocation11 + $0x340] ss:$16 sps:$4 sm:$0xff]  }
 0x511   :  { %8150 = vmatprep.subr.bf16.mxu0 %v9885_v58  ;;  %v9966_v58 = vld [vmem:[#allocation11 + $0x324] ss:$16 sps:$4 sm:$0xff]  }
 0x513   :  { %7410 = vmatpush2.bf16.msra.mxu1 %v9868_v21  ;;  %8097 = vmatmul.mubr.bf16.vlgmr.msra.gmra.mxu0 %v12240_v33  ;;  %v9973_v21 = vld [vmem:[#allocation11 + $0x108] ss:$16 sps:$4 sm:$0xff]  }
 0x514   :  { %7411 = vmatprep.subr.bf16.mxu1 %v9876_v59  ;;  %8151 = vmatpush1.bf16.msra.mxu0 %v9883_v50  ;;  %v9964_v59 = vld [vmem:[#allocation11 + $0x320] ss:$16 sps:$4 sm:$0xff]   ;;  %v9972_v50 = vld [vmem:[#allocation11 + $0x304] ss:$16 sps:$4 sm:$0xff]  }
 0x515   :  { %8152 = vmatprep.subr.bf16.mxu0 %v9891_v39  ;;  %8182 = vmatprep.mubr.bf16.mxu0 %v12239_v19  ;;  %v9909_v19 = vld [vmem:[#allocation11 + $0x6c] ss:$16 sps:$4 sm:$0xff]   ;;  %v9970_v39 = vld [vmem:[#allocation11 + $0x300] ss:$16 sps:$4 sm:$0xff]  }
 0x517   :  { %7412 = vmatpush2.bf16.msra.mxu1 %v9874_v3  ;;  %v9978_v3 = vld [vmem:[#allocation11 + $0x2ec] ss:$16 sps:$4 sm:$0xff]  }
 0x518   :  { %8107 = vmatprep.subr.bf16.mxu1 %v9882_v45  ;;  %8153 = vmatpush1.bf16.msra.mxu0 %v9889_v44  ;;  %v9976_v45 = vld [vmem:[#allocation11 + $0x2e8] ss:$16 sps:$4 sm:$0xff]   ;;  %v9981_v44 = vld [vmem:[#allocation11 + $0x2cc] ss:$16 sps:$4 sm:$0xff]  }
 0x519   :  { %8154 = vmatprep.subr.bf16.mxu0 %v9897_v10  ;;  %v12242_v10 = vld [vmem:[#allocation23_spill] sm:$0xff] }
 0x51a   :  { %7414 = vmatmul.mubr.bf16.vlgmr.msra.gmra.mxu1 %v12044_v30  ;;  %v9898_v30 = vld [vmem:[#allocation11 + $0x280] ss:$16 sps:$4 sm:$0xff]  }
 0x51b   :  { %8108 = vmatpush1.bf16.msra.mxu1 %v9880_v4  ;;  %8139 = vmatprep.mubr.bf16.mxu1 %v12241_v6  ;;  %v9979_v4 = vld [vmem:[#allocation11 + $0x2c8] ss:$16 sps:$4 sm:$0xff]  }
 0x51c   :  { %8109 = vmatprep.subr.bf16.mxu1 %v9888_v49  ;;  %8155 = vmatpush1.bf16.msra.mxu0 %v9895_v54  ;;  %v9984_v49 = vld [vmem:[#allocation11 + $0x2ac] ss:$16 sps:$4 sm:$0xff]   ;;  %v9982_v54 = vld [vmem:[#allocation11 + $0x2a8] ss:$16 sps:$4 sm:$0xff]  }
 0x51d   :  { %8156 = vmatprep.subr.bf16.mxu0 %v9903_v8  ;;  %v9987_v8 = vld [vmem:[#allocation11 + $0x28c] ss:$16 sps:$4 sm:$0xff]  }
 0x51f   :  { %8110 = vmatpush1.bf16.msra.mxu1 %v9886_v5  ;;  %v9990_v5 = vld [vmem:[#allocation11 + $0x26c] ss:$16 sps:$4 sm:$0xff]  }
 0x520   :  { %8111 = vmatprep.subr.bf16.mxu1 %v9894_v61  ;;  %8157 = vmatpush1.bf16.msra.mxu0 %v9901_v35  ;;  %v9988_v61 = vld [vmem:[#allocation11 + $0x268] ss:$16 sps:$4 sm:$0xff]   ;;  %v9993_v35 = vld [vmem:[#allocation11 + $0x24c] ss:$16 sps:$4 sm:$0xff]  }
 0x521   :  { %8158 = vmatprep.subr.bf16.mxu0 %v9909_v19  ;;  %v9991_v19 = vld [vmem:[#allocation11 + $0x248] ss:$16 sps:$4 sm:$0xff]  }
 0x523   :  { %8112 = vmatpush1.bf16.msra.mxu1 %v9892_v11  ;;  %v9996_v11 = vld [vmem:[#allocation11 + $0x22c] ss:$16 sps:$4 sm:$0xff]  }
 0x524   :  { %8113 = vmatprep.subr.bf16.mxu1 %v9900_v32  ;;  %8159 = vmatpush1.bf16.msra.mxu0 %v9907_v51  ;;  %v9999_v32 = vld [vmem:[#allocation11 + $0x20c] ss:$16 sps:$4 sm:$0xff]   ;;  %v9997_v51 = vld [vmem:[#allocation11 + $0x208] ss:$16 sps:$4 sm:$0xff]  }
 0x525   :  { %8160 = vmatprep.subr.bf16.mxu0 %v9915_v62  ;;  %v10002_v62 = vld [vmem:[#allocation11 + $0x3ec] ss:$16 sps:$4 sm:$0xff]  }
 0x527   :  { %8114 = vmatpush1.bf16.msra.mxu1 %v9898_v30  ;;  %v10000_v30 = vld [vmem:[#allocation11 + $0x3e8] ss:$16 sps:$4 sm:$0xff]  }
 0x528   :  { %8115 = vmatprep.subr.bf16.mxu1 %v9906_v56  ;;  %8161 = vmatpush1.bf16.msra.mxu0 %v9913_v40  ;;  %v10005_v56 = vld [vmem:[#allocation11 + $0x3cc] ss:$16 sps:$4 sm:$0xff]   ;;  %v10003_v40 = vld [vmem:[#allocation11 + $0x3c8] ss:$16 sps:$4 sm:$0xff]  }
 0x529   :  { %8162 = vmatprep.subr.bf16.mxu0 %v9921_v37  ;;  %v10008_v37 = vld [vmem:[#allocation11 + $0x3ac] ss:$16 sps:$4 sm:$0xff]  }
 0x52b   :  { %8116 = vmatpush1.bf16.msra.mxu1 %v9904_v31  ;;  %v10006_v31 = vld [vmem:[#allocation11 + $0x3a8] ss:$16 sps:$4 sm:$0xff]  }
 0x52c   :  { %8117 = vmatprep.subr.bf16.mxu1 %v9912_v48  ;;  %8163 = vmatpush1.bf16.msra.mxu0 %v9919_v34  ;;  %v10011_v48 = vld [vmem:[#allocation11 + $0x38c] ss:$16 sps:$4 sm:$0xff]   ;;  %v10009_v34 = vld [vmem:[#allocation11 + $0x388] ss:$16 sps:$4 sm:$0xff]  }
 0x52d   :  { %8164 = vmatprep.subr.bf16.mxu0 %v9927_v12  ;;  %v10014_v12 = vld [vmem:[#allocation11 + $0x36c] ss:$16 sps:$4 sm:$0xff]  }
 0x52f   :  { %8118 = vmatpush1.bf16.msra.mxu1 %v9910_v29  ;;  %v10012_v29 = vld [vmem:[#allocation11 + $0x368] ss:$16 sps:$4 sm:$0xff]  }
 0x530   :  { %8119 = vmatprep.subr.bf16.mxu1 %v9918_v52  ;;  %8165 = vmatpush1.bf16.msra.mxu0 %v9925_v43  ;;  %v10017_v52 = vld [vmem:[#allocation11 + $0x34c] ss:$16 sps:$4 sm:$0xff]   ;;  %v10015_v43 = vld [vmem:[#allocation11 + $0x348] ss:$16 sps:$4 sm:$0xff]  }
 0x531   :  { %8166 = vmatprep.subr.bf16.mxu0 %v9933_v38  ;;  %v10020_v38 = vld [vmem:[#allocation11 + $0x32c] ss:$16 sps:$4 sm:$0xff]  }
 0x533   :  { %8120 = vmatpush1.bf16.msra.mxu1 %v9916_v25  ;;  %v10018_v25 = vld [vmem:[#allocation11 + $0x328] ss:$16 sps:$4 sm:$0xff]  }
 0x534   :  { %8121 = vmatprep.subr.bf16.mxu1 %v9924_v53  ;;  %8167 = vmatpush2.bf16.msra.mxu0 %v9931_v23  ;;  %v10023_v53 = vld [vmem:[#allocation11 + $0x30c] ss:$16 sps:$4 sm:$0xff]   ;;  %v10021_v23 = vld [vmem:[#allocation11 + $0x308] ss:$16 sps:$4 sm:$0xff]  }
 0x535   :  { %8168 = vmatprep.subr.bf16.mxu0 %v9939_v28 }
 0x537   :  { %8122 = vmatpush1.bf16.msra.mxu1 %v9922_v24 }
 0x538   :  { %8123 = vmatprep.subr.bf16.mxu1 %v9930_v16  ;;  %8169 = vmatpush2.bf16.msra.mxu0 %v9937_v7 }
 0x539   :  { %8170 = vmatprep.subr.bf16.mxu0 %v9945_v63 }
 0x53b   :  { %8124 = vmatpush2.bf16.msra.mxu1 %v9928_v55 }
 0x53c   :  { %8125 = vmatprep.subr.bf16.mxu1 %v9936_v22  ;;  %8171 = vmatpush2.bf16.msra.mxu0 %v9943_v1 }
 0x53d   :  { %8172 = vmatprep.subr.bf16.mxu0 %v9951_v46 }
 0x53f   :  { %8126 = vmatpush2.bf16.msra.mxu1 %v9934_v27 }
 0x540   :  { %8127 = vmatprep.subr.bf16.mxu1 %v9942_v0  ;;  %8173 = vmatpush2.bf16.msra.mxu0 %v9949_v36 }
 0x541   :  { %8174 = vmatprep.subr.bf16.mxu0 %v9957_v60 }
 0x543   :  { %8128 = vmatpush2.bf16.msra.mxu1 %v9940_v18 }
 0x544   :  { %8129 = vmatprep.subr.bf16.mxu1 %v9948_v20  ;;  %8175 = vmatpush2.bf16.msra.mxu0 %v9955_v47 }
 0x545   :  { %8176 = vmatprep.subr.bf16.mxu0 %v9963_v17 }
 0x547   :  { %8130 = vmatpush2.bf16.msra.mxu1 %v9946_v13 }
 0x548   :  { %8131 = vmatprep.subr.bf16.mxu1 %v9954_v57  ;;  %8177 = vmatpush2.bf16.msra.mxu0 %v9961_v41 }
 0x549   :  { %8178 = vmatprep.subr.bf16.mxu0 %v9969_v42 }
 0x54b   :  { %8132 = vmatpush2.bf16.msra.mxu1 %v9952_v9  ;;  %v12072_v9 = vld [vmem:[%s12130_s9] sm:$0xf] }
 0x54c   :  { %8133 = vmatprep.subr.bf16.mxu1 %v9960_v14  ;;  %8179 = vmatpush2.bf16.msra.mxu0 %v9967_v2 }
 0x54d   :  { %8180 = vmatprep.subr.bf16.mxu0 %v9975_v26 }
 0x54f   :  { %8134 = vmatpush2.bf16.msra.mxu1 %v9958_v15 }
 0x550   :  { %8135 = vmatprep.subr.bf16.mxu1 %v9966_v58  ;;  %8181 = vmatpush2.bf16.msra.mxu0 %v9973_v21  ;;  %v12243_v21 = vld [vmem:[#allocation26_spill] sm:$0xff] }
 0x552   :  { %v7286_v28 = vpop.f32.mrf.mxu0 }
 0x553   :  { %8136 = vmatpush2.bf16.msra.mxu1 %v9964_v59  ;;  %8183 = vmatmul.mubr.bf16.vlgmr.msra.gmra.mxu0 %v12240_v33  ;;  %v9985_v33 = vld [vmem:[#allocation11 + $0x288] ss:$16 sps:$4 sm:$0xff]   ;;  %v8241_v59 = vrot.slane %v12072_v9, %v12243_v21 }
 0x554   :  { %8137 = vmatprep.subr.bf16.mxu1 %v9972_v50  ;;  %v7288_v24 = vpop.f32.mrf.mxu0 }
 0x556   :  { %v7290_v7 = vpop.f32.mrf.mxu0 }
 0x557   :  { %8138 = vmatpush2.bf16.msra.mxu1 %v9970_v39 }
 0x558   :  { %8193 = vmatprep.subr.bf16.mxu1 %v9978_v3  ;;  %v7292_v55 = vpop.f32.mrf.mxu0 }
 0x55a   :  { %8140 = vmatmul.mubr.bf16.vlgmr.msra.gmra.mxu1 %v12242_v10 }
 0x55b   :  { %8194 = vmatpush1.bf16.msra.mxu1 %v9976_v45  ;;  %8225 = vmatprep.mubr.bf16.mxu1 %v12241_v6  ;;  %v9994_v6 = vld [vmem:[#allocation11 + $0x228] ss:$16 sps:$4 sm:$0xff]  }
 0x55c   :  { %8195 = vmatprep.subr.bf16.mxu1 %v9981_v44 }
 0x55f   :  { %8196 = vmatpush1.bf16.msra.mxu1 %v9979_v4 }
 0x560   :  { %8197 = vmatprep.subr.bf16.mxu1 %v9984_v49 }
 0x563   :  { %8198 = vmatpush1.bf16.msra.mxu1 %v9982_v54  ;;  %v12244_v54 = vld [vmem:[#allocation27_spill] sm:$0xff] }
 0x564   :  { %8199 = vmatprep.subr.bf16.mxu1 %v9987_v8  ;;  %v8245_v8 = vrot.slane %v12072_v9, %v12244_v54 }
 0x567   :  { %8200 = vmatpush1.bf16.msra.mxu1 %v9985_v33 }
 0x568   :  { %8201 = vmatprep.subr.bf16.mxu1 %v9990_v5 }
 0x56b   :  { %8202 = vmatpush1.bf16.msra.mxu1 %v9988_v61 }
 0x56c   :  { %8203 = vmatprep.subr.bf16.mxu1 %v9993_v35 }
 0x56f   :  { %8204 = vmatpush1.bf16.msra.mxu1 %v9991_v19 }
 0x570   :  { %8205 = vmatprep.subr.bf16.mxu1 %v9996_v11 }
 0x573   :  { %8206 = vmatpush1.bf16.msra.mxu1 %v9994_v6 }
 0x574   :  { %8207 = vmatprep.subr.bf16.mxu1 %v9999_v32 }
 0x577   :  { %8208 = vmatpush1.bf16.msra.mxu1 %v9997_v51 }
 0x578   :  { %8209 = vmatprep.subr.bf16.mxu1 %v10002_v62 }
 0x57b   :  { %8210 = vmatpush2.bf16.msra.mxu1 %v10000_v30 }
 0x57c   :  { %8211 = vmatprep.subr.bf16.mxu1 %v10005_v56 }
 0x57f   :  { %8212 = vmatpush2.bf16.msra.mxu1 %v10003_v40 }
 0x580   :  { %8213 = vmatprep.subr.bf16.mxu1 %v10008_v37 }
 0x583   :  { %8214 = vmatpush2.bf16.msra.mxu1 %v10006_v31 }
 0x584   :  { %8215 = vmatprep.subr.bf16.mxu1 %v10011_v48 }
 0x587   :  { %8216 = vmatpush2.bf16.msra.mxu1 %v10009_v34 }
 0x588   :  { %8217 = vmatprep.subr.bf16.mxu1 %v10014_v12 }
 0x58b   :  { %8218 = vmatpush2.bf16.msra.mxu1 %v10012_v29 }
 0x58c   :  { %8219 = vmatprep.subr.bf16.mxu1 %v10017_v52 }
 0x58f   :  { %8220 = vmatpush2.bf16.msra.mxu1 %v10015_v43 }
 0x590   :  { %8221 = vmatprep.subr.bf16.mxu1 %v10020_v38 }
 0x592   :  { %v12055_v22 = vpop.f32.mrf.mxu0 }
 0x593   :  { %8222 = vmatpush2.bf16.msra.mxu1 %v10018_v25 }
 0x594   :  { %8223 = vmatprep.subr.bf16.mxu1 %v10023_v53  ;;  %v12057_v46 = vpop.f32.mrf.mxu0 }
 0x596   :  { %v12061_v36 = vpop.f32.mrf.mxu0 }
 0x597   :  { %8224 = vmatpush2.bf16.msra.mxu1 %v10021_v23 }
 0x598   :  { %v7378_v20 = vpop.f32.mrf.mxu0 }
 0x59a   :  { %8226 = vmatmul.mubr.bf16.vlgmr.msra.gmra.mxu1 %v12242_v10  ;;  %v7329_v16 = vpop.f32.mrf.mxu1 }
 0x59b   :  { %v7330_v42 = vadd.f32 %v7329_v16, %v7286_v28 }
 0x59c   :  { %v7331_v63 = vpop.f32.mrf.mxu1 }
 0x59d   :  { %v7332_v2 = vadd.f32 %v7331_v63, %v7288_v24 }
 0x59e   :  { %v7333_v1 = vpop.f32.mrf.mxu1 }
 0x59f   :  { %v7334_v26 = vadd.f32 %v7333_v1, %v7290_v7 }
 0x5a0   :  { %v7335_v27 = vpop.f32.mrf.mxu1 }
 0x5a1   :  { %v7336_v39 = vadd.f32 %v7335_v27, %v7292_v55 }
 0x5d3   :  { %v8098_v13 = vpop.f32.mrf.mxu0 }
 0x5d4   :  { %v8099_v15 = vadd.f32 %v8098_v13, %v7330_v42 }
 0x5d5   :  { %v8100_v57 = vpop.f32.mrf.mxu0 }
 0x5d6   :  { %v8101_v3 = vadd.f32 %v8100_v57, %v7332_v2 }
 0x5d7   :  { %v8102_v41 = vpop.f32.mrf.mxu0 }
 0x5d8   :  { %v8103_v45 = vadd.f32 %v8102_v41, %v7334_v26 }
 0x5d9   :  { %v8104_v58 = vpop.f32.mrf.mxu0 }
 0x5da   :  { %v12059_v0 = vpop.f32.mrf.mxu1  ;;  %v8105_v4 = vadd.f32 %v8104_v58, %v7336_v39 }
 0x5dc   :  { %v12063_v60 = vpop.f32.mrf.mxu1 }
 0x5de   :  { %v12065_v18 = vpop.f32.mrf.mxu1 }
 0x5e0   :  { %v7421_v47 = vpop.f32.mrf.mxu1 }
 0x5e1   :  { %v12067_v17 = vadd.f32 %v7421_v47, %v7378_v20 }
 0x61a   :  { %v8141_v14 = vpop.f32.mrf.mxu1 }
 0x61b   :  { %v8142_v44 = vadd.f32 %v8141_v14, %v8099_v15 }
 0x61c   :  { %v8143_v50 = vpop.f32.mrf.mxu1 }
 0x61d   :  { %v8144_v49 = vadd.f32 %v8143_v50, %v8101_v3  ;;  %v8258_v61 = vadd.f32 %v8241_v59, %v8142_v44  ;;  %v8184_v44 = vpop.f32.mrf.mxu0 }
 0x61e   :  { %v8145_v10 = vpop.f32.mrf.mxu1 }
 0x61f   :  { %v8146_v33 = vadd.f32 %v8145_v10, %v8103_v45  ;;  %v8259_v11 = vadd.f32 %v8245_v8, %v8144_v49  ;;  %v12081_v10 = vld [vmem:[%s12131_s10] sm:$0xf]  ;;  %s10214_s10 = smov [#allocation14]  }
 0x620   :  { %v8147_v5 = vpop.f32.mrf.mxu1  ;;  %v12086_v49 = vld [vmem:[%s12132_s11] sm:$0xf]  ;;  %s8460_s11 = sshll.u32 %s10214_s10, 4  ;;  %s8461_s11 = int_to_ptr.vmem [resolvable:$true] %s8460_s11 }
 0x621   :  { %v8262_v35 = vadd.f32 %v8241_v59, %v8146_v33  ;;  %v8148_v19 = vadd.f32 %v8147_v5, %v8105_v4  ;;  %v8186_v4 = vpop.f32.mrf.mxu0  ;;  %s10172_s24 = scalar_lea.vmem %s8461_s11, 1024  ;;  %p10177_p8 = scmp.lt.s32.totalorder %s8461_s11, %s8461_s11 }
 0x622   :  { %p10173_p7 = scmp.ne.s32.totalorder %s8461_s11, %s10172_s24  ;;  %p10178_p9 = scmp.lt.s32.totalorder %s10172_s24, %s10172_s24 }
 0x623   :  { %v8266_v6 = vadd.f32 %v8262_v35, %v8258_v61  ;;  %v8263_v32 = vadd.f32 %v8245_v8, %v8148_v19  ;;  %v8368_v8 = vrot.slane %v12081_v10, %v12243_v21  ;;  %v8188_v19 = vpop.f32.mrf.mxu0 }
 0x624   :  { %p10179_p10 = por %p10178_p9, %p10177_p8 }
 0x625   :  { %v8267_v51 = vrot.slane %v8266_v6, 4  ;;  %v8273_v62 = vadd.f32 %v8263_v32, %v8259_v11 }
 0x626   :  { %p10180_p11 = pnand %p10179_p10, %p10173_p7 }
 0x627   :  { %v8268_v30 = vadd.f32 %v8267_v51, %v8266_v6  ;;  %v8274_v56 = vrot.slane %v8273_v62, 4 }
 0x629   :  { %v8269_v40 = vrot.slane %v8268_v30, 2  ;;  %v8275_v37 = vadd.f32 %v8274_v56, %v8273_v62 }
 0x62b   :  { %v8270_v31 = vadd.f32 %v8269_v40, %v8268_v30  ;;  %v8276_v48 = vrot.slane %v8275_v37, 2  ;;  %v7418_v40 = vadd.f32 %v12063_v60, %v12057_v46 }
 0x62d   :  { %v8271_v34 = vrot.slane %v8270_v31, 1  ;;  %v8277_v12 = vadd.f32 %v8276_v48, %v8275_v37  ;;  %v7420_v37 = vadd.f32 %v12065_v18, %v12061_v36 }
 0x62f   :  { %v8272_v29 = vadd.f32 %v8271_v34, %v8270_v31  ;;  %v8278_v52 = vrot.slane %v8277_v12, 1 }
 0x631   :  { %v8295_v43 = vmul.f32 0.0625, %v8272_v29  ;;  %v8279_v38 = vadd.f32 %v8278_v52, %v8277_v12 }
 0x633   :  { %v8299_v25 = vsub.f32 %v8258_v61, %v8295_v43  ;;  %v8303_v53 = vsub.f32 %v8262_v35, %v8295_v43  ;;  %v8296_v23 = vmul.f32 0.0625, %v8279_v38  ;;  %v8398_v35 = vrot.slane %v12086_v49, %v12243_v21 }
 0x634   :  { %v8402_v21 = vrot.slane %v12086_v49, %v12244_v54  ;;  %v8189_v43 = vadd.f32 %v8188_v19, %v7420_v37 }
 0x635   :  { %v8307_v28 = vmul.f32 %v8299_v25, %v8299_v25  ;;  %v8311_v24 = vmul.f32 %v8303_v53, %v8303_v53  ;;  %v8300_v16 = vsub.f32 %v8259_v11, %v8296_v23  ;;  %v8304_v7 = vsub.f32 %v8263_v32, %v8296_v23 }
 0x636   :  { %v8372_v11 = vrot.slane %v12081_v10, %v12244_v54  ;;  %v7416_v32 = vadd.f32 %v12059_v0, %v12055_v22  ;;  %v8190_v22 = vpop.f32.mrf.mxu0  ;;  %v8187_v0 = vadd.f32 %v8186_v4, %v7418_v40 }
 0x637   :  { %v8315_v63 = vadd.f32 %v8311_v24, %v8307_v28  ;;  %v8308_v55 = vmul.f32 %v8300_v16, %v8300_v16  ;;  %v8312_v1 = vmul.f32 %v8304_v7, %v8304_v7  ;;  %v8191_v54 = vadd.f32 %v8190_v22, %v12067_v17  ;;  %v12246_v28 = vld [vmem:[#allocation25_spill] sm:$0xff] }
 0x638   :  { %v8185_v31 = vadd.f32 %v8184_v44, %v7416_v32  ;;  %v8253_v24 = vrot.slane %v12072_v9, %v12246_v28 }
 0x639   :  { %v8316_v27 = vrot.slane %v8315_v63, 4  ;;  %v8322_v20 = vadd.f32 %v8312_v1, %v8308_v55 }
 0x63b   :  { %v8317_v47 = vadd.f32 %v8316_v27, %v8315_v63  ;;  %v8323_v13 = vrot.slane %v8322_v20, 4 }
 0x63d   :  { %v8318_v57 = vrot.slane %v8317_v47, 2  ;;  %v8324_v41 = vadd.f32 %v8323_v13, %v8322_v20 }
 0x63f   :  { %v8319_v42 = vadd.f32 %v8318_v57, %v8317_v47  ;;  %v8325_v14 = vrot.slane %v8324_v41, 2 }
 0x641   :  { %v8320_v2 = vrot.slane %v8319_v42, 1  ;;  %v8326_v26 = vadd.f32 %v8325_v14, %v8324_v41 }
 0x643   :  { %v8321_v15 = vadd.f32 %v8320_v2, %v8319_v42  ;;  %v8327_v58 = vrot.slane %v8326_v26, 1 }
 0x645   :  { %v8343_v59 = vmul.f32 0.0625, %v8321_v15  ;;  %v8328_v50 = vadd.f32 %v8327_v58, %v8326_v26 }
 0x647   :  { %v8347_v39 = vadd.f32 1e-05, %v8343_v59  ;;  %v8344_v3 = vmul.f32 0.0625, %v8328_v50 }
 0x649   :  { %10024 = vrsqrt.f32 %v8347_v39  ;;  %v8348_v45 = vadd.f32 1e-05, %v8344_v3 }
 0x64b   :  { %10026 = vrsqrt.f32 %v8348_v45 }
 0x656   :  { %v10025_v33 = vpop.eup %10024 }
 0x657   :  { %v8355_v5 = vmul.f32 %v10025_v33, %v8299_v25  ;;  %v8359_v61 = vmul.f32 %v10025_v33, %v8303_v53  ;;  %v12245_v25 = vld [vmem:[#allocation24_spill] sm:$0xff] }
 0x658   :  { %v10027_v6 = vpop.eup %10026  ;;  %v8249_v53 = vrot.slane %v12072_v9, %v12245_v25 }
 0x659   :  { %v8385_v51 = vmul.f32 %v8368_v8, %v8355_v5  ;;  %v8389_v62 = vmul.f32 %v8368_v8, %v8359_v61  ;;  %v8356_v30 = vmul.f32 %v10027_v6, %v8300_v16  ;;  %v8360_v56 = vmul.f32 %v10027_v6, %v8304_v7 }
 0x65a   :  { %v8227_v48 = vpop.f32.mrf.mxu1 }
 0x65b   :  { %v8415_v34 = vadd.f32 %v8398_v35, %v8385_v51  ;;  %v8419_v12 = vadd.f32 %v8398_v35, %v8389_v62  ;;  %v8386_v29 = vmul.f32 %v8372_v11, %v8356_v30  ;;  %v8390_v52 = vmul.f32 %v8372_v11, %v8360_v56 }
 0x65c   :  { %v8228_v38 = vadd.f32 %v8227_v48, %v8185_v31  ;;  %v8229_v46 = vpop.f32.mrf.mxu1 }
 0x65d   :  { %vm8423_vm12 = vcmp.gt.f32.partialorder %v8415_v34, 0.0  ;;  %vm8427_vm14 = vcmp.gt.f32.partialorder %v8419_v12, 0.0  ;;  %v8431_v36 = vmul.f32 0.2, %v8415_v34  ;;  %v8435_v60 = vmul.f32 0.2, %v8419_v12 }
 0x65e   :  { %v8416_v18 = vadd.f32 %v8402_v21, %v8386_v29  ;;  %v8420_v23 = vadd.f32 %v8402_v21, %v8390_v52  ;;  %v8231_v16 = vpop.f32.mrf.mxu1  ;;  %v8230_v55 = vadd.f32 %v8229_v46, %v8187_v0  ;;  %v8260_v13 = vadd.f32 %v8249_v53, %v8228_v38 }
 0x65f   :  { %v8439_v7 = vsel %vm8423_vm12, %v8415_v34, %v8431_v36  ;;  %v8443_v63 = vsel %vm8427_vm14, %v8419_v12, %v8435_v60  ;;  %v8232_v1 = vadd.f32 %v8231_v16, %v8189_v43 }
 0x660   :  { %8447 = vst [vmem:[#allocation14] sm:$0xff] %v8439_v7  ;;  %8451 = vst [vmem:[#allocation14 + $0x20] sm:$0xff] %v8443_v63  ;;  %vm8424_vm0 = vcmp.gt.f32.partialorder %v8416_v18, 0.0  ;;  %vm8428_vm2 = vcmp.gt.f32.partialorder %v8420_v23, 0.0  ;;  %v8432_v27 = vmul.f32 0.2, %v8416_v18  ;;  %v8233_v47 = vpop.f32.mrf.mxu1  ;;  %v8261_v9 = vadd.f32 %v8253_v24, %v8230_v55 }
 0x661   :  { %v8436_v20 = vmul.f32 0.2, %v8420_v23  ;;  %v8264_v57 = vadd.f32 %v8249_v53, %v8232_v1  ;;  %v8234_v41 = vadd.f32 %v8233_v47, %v8191_v54  ;;  %v8406_v7 = vrot.slane %v12086_v49, %v12245_v25 }
 0x662   :  { %v8440_v42 = vsel %vm8424_vm0, %v8416_v18, %v8432_v27  ;;  %v8380_v63 = vrot.slane %v12081_v10, %v12246_v28 }
 0x663   :  { %v8444_v17 = vsel %vm8428_vm2, %v8420_v23, %v8436_v20  ;;  %8448 = vst [vmem:[#allocation14 + $0x8] sm:$0xff] %v8440_v42  ;;  %v8280_v14 = vadd.f32 %v8264_v57, %v8260_v13  ;;  %v8265_v2 = vadd.f32 %v8253_v24, %v8234_v41  ;;  %v8376_v23 = vrot.slane %v12081_v10, %v12245_v25 }
 0x664   :  { %8452 = vst [vmem:[#allocation14 + $0x28] sm:$0xff] %v8444_v17 }
 0x665   :  { %v8281_v26 = vrot.slane %v8280_v14, 4  ;;  %v8287_v15 = vadd.f32 %v8265_v2, %v8261_v9 }
 0x667   :  { %v8282_v58 = vadd.f32 %v8281_v26, %v8280_v14  ;;  %v8288_v59 = vrot.slane %v8287_v15, 4 }
 0x669   :  { %v8283_v50 = vrot.slane %v8282_v58, 2  ;;  %v8289_v39 = vadd.f32 %v8288_v59, %v8287_v15 }
 0x66b   :  { %v8284_v3 = vadd.f32 %v8283_v50, %v8282_v58  ;;  %v8290_v45 = vrot.slane %v8289_v39, 2 }
 0x66d   :  { %v8285_v44 = vrot.slane %v8284_v3, 1  ;;  %v8291_v4 = vadd.f32 %v8290_v45, %v8289_v39 }
 0x66f   :  { %v8286_v8 = vadd.f32 %v8285_v44, %v8284_v3  ;;  %v8292_v33 = vrot.slane %v8291_v4, 1 }
 0x671   :  { %v8297_v5 = vmul.f32 0.0625, %v8286_v8  ;;  %v8293_v61 = vadd.f32 %v8292_v33, %v8291_v4 }
 0x673   :  { %v8301_v35 = vsub.f32 %v8260_v13, %v8297_v5  ;;  %v8305_v19 = vsub.f32 %v8264_v57, %v8297_v5  ;;  %v8298_v11 = vmul.f32 0.0625, %v8293_v61  ;;  %v8410_v13 = vrot.slane %v12086_v49, %v12246_v28 }
 0x675   :  { %v8309_v6 = vmul.f32 %v8301_v35, %v8301_v35  ;;  %v8313_v32 = vmul.f32 %v8305_v19, %v8305_v19  ;;  %v8302_v51 = vsub.f32 %v8261_v9, %v8298_v11  ;;  %v8306_v62 = vsub.f32 %v8265_v2, %v8298_v11 }
 0x677   :  { %v8329_v30 = vadd.f32 %v8313_v32, %v8309_v6  ;;  %v8310_v56 = vmul.f32 %v8302_v51, %v8302_v51  ;;  %v8314_v40 = vmul.f32 %v8306_v62, %v8306_v62 }
 0x679   :  { %v8330_v37 = vrot.slane %v8329_v30, 4  ;;  %v8336_v31 = vadd.f32 %v8314_v40, %v8310_v56 }
 0x67b   :  { %v8331_v21 = vadd.f32 %v8330_v37, %v8329_v30  ;;  %v8337_v48 = vrot.slane %v8336_v31, 4 }
 0x67d   :  { %v8332_v34 = vrot.slane %v8331_v21, 2  ;;  %v8338_v12 = vadd.f32 %v8337_v48, %v8336_v31 }
 0x67f   :  { %v8333_v29 = vadd.f32 %v8332_v34, %v8331_v21  ;;  %v8339_v52 = vrot.slane %v8338_v12, 2 }
 0x681   :  { %v8334_v22 = vrot.slane %v8333_v29, 1  ;;  %v8340_v0 = vadd.f32 %v8339_v52, %v8338_v12 }
 0x683   :  { %v8335_v43 = vadd.f32 %v8334_v22, %v8333_v29  ;;  %v8341_v38 = vrot.slane %v8340_v0, 1 }
 0x685   :  { %v8345_v53 = vmul.f32 0.0625, %v8335_v43  ;;  %v8342_v46 = vadd.f32 %v8341_v38, %v8340_v0 }
 0x687   :  { %v8349_v36 = vadd.f32 1e-05, %v8345_v53  ;;  %v8346_v60 = vmul.f32 0.0625, %v8342_v46 }
 0x689   :  { %10028 = vrsqrt.f32 %v8349_v36  ;;  %v8350_v18 = vadd.f32 1e-05, %v8346_v60 }
 0x68b   :  { %10030 = vrsqrt.f32 %v8350_v18 }
 0x696   :  { %v10029_v54 = vpop.eup %10028 }
 0x697   :  { %v8357_v24 = vmul.f32 %v10029_v54, %v8301_v35  ;;  %v8361_v16 = vmul.f32 %v10029_v54, %v8305_v19 }
 0x698   :  { %v10031_v55 = vpop.eup %10030 }
 0x699   :  { %v8387_v1 = vmul.f32 %v8376_v23, %v8357_v24  ;;  %v8391_v27 = vmul.f32 %v8376_v23, %v8361_v16  ;;  %v8358_v20 = vmul.f32 %v10031_v55, %v8302_v51  ;;  %v8362_v47 = vmul.f32 %v10031_v55, %v8306_v62 }
 0x69b   :  { %v8417_v57 = vadd.f32 %v8406_v7, %v8387_v1  ;;  %v8421_v41 = vadd.f32 %v8406_v7, %v8391_v27  ;;  %v8388_v42 = vmul.f32 %v8380_v63, %v8358_v20  ;;  %v8392_v17 = vmul.f32 %v8380_v63, %v8362_v47 }
 0x69d   :  { %vm8425_vm3 = vcmp.gt.f32.partialorder %v8417_v57, 0.0  ;;  %vm8429_vm10 = vcmp.gt.f32.partialorder %v8421_v41, 0.0  ;;  %v8433_v9 = vmul.f32 0.2, %v8417_v57  ;;  %v8437_v14 = vmul.f32 0.2, %v8421_v41 }
 0x69e   :  { %v8418_v25 = vadd.f32 %v8410_v13, %v8388_v42  ;;  %v8422_v2 = vadd.f32 %v8410_v13, %v8392_v17 }
 0x69f   :  { %v8441_v10 = vsel %vm8425_vm3, %v8417_v57, %v8433_v9  ;;  %v8445_v26 = vsel %vm8429_vm10, %v8421_v41, %v8437_v14 }
 0x6a0   :  { %8449 = vst [vmem:[#allocation14 + $0x10] sm:$0xff] %v8441_v10  ;;  %8453 = vst [vmem:[#allocation14 + $0x30] sm:$0xff] %v8445_v26  ;;  %vm8426_vm15 = vcmp.gt.f32.partialorder %v8418_v25, 0.0  ;;  %vm8430_vm8 = vcmp.gt.f32.partialorder %v8422_v2, 0.0  ;;  %v8434_v15 = vmul.f32 0.2, %v8418_v25 }
 0x6a1   :  { %v8438_v49 = vmul.f32 0.2, %v8422_v2 }
 0x6a2   :  { %v8442_v28 = vsel %vm8426_vm15, %v8418_v25, %v8434_v15 }
 0x6a3   :  { %v8446_v58 = vsel %vm8430_vm8, %v8422_v2, %v8438_v49  ;;  %8450 = vst [vmem:[#allocation14 + $0x18] sm:$0xff] %v8442_v28 }
 0x6a4   :  { %8454 = vst [vmem:[#allocation14 + $0x38] sm:$0xff] %v8446_v58 }
 0x6a5   :  { %10183 = shalt.err (!%p10180_p11)
}
 0x6a6   :  { %8466 = dma.vmem_to_hbm [thread:$0]  %s8461_s11, 1024, %s12133_s12, [#allocation4], %s10204_s26, %s10204_s26, %s10205_s27  }
 0x6a7   :  { %10200 = dma.done.wait [#allocation4], 1024  }
 0x6a8   :  { %10201 = vsyncadd [#allocation4], 4294966272 }
 0x6a9   :  { %8470 = vsyncpa [#allocation3], 1 }
 0x6aa   :  { %8471 = vsyncpa [#allocation6], 1 }
 0x6ab   :  { %8472 = vsyncpa [#allocation9], 1 }
 0x6ac   :  { %8473 = vsyncpa [#allocation12], 1 }
 0x6ad   :  { %8474 = vsyncpa [#allocation4], 1 }

</bundles_post_ra>
